<compile_context>
chip_gen: v7x
topology: tpu7x:2x2x1
jax: 0.10.0
libtpu: 0.0.40
codegen_flags: <defaults>
</compile_context>

<pallas_src>
import functools
import math

import jax
import jax.numpy as jnp
from jax.experimental import pallas as pl
from jax.experimental.pallas import tpu as pltpu

# ---------------- configuration (small, ViT-like ratios) ----------------
IMAGE = 32
PATCH = 16
IN_CH = 3
NUM_CLASSES = 10
N_PATCH = (IMAGE // PATCH) ** 2          # 4 patches
SEQ = N_PATCH + 1                        # + CLS token = 5

D_PAD = 128                              # padded hidden width (lane-dense)
HD_PAD = 64                              # padded per-head width
C_PAD = 128                              # padded classifier width

TEACHER_CFG = dict(hidden=64, mlp=256, num_layers=2, heads=4)   # ViT-B/16 analogue
PROXY_CFG   = dict(hidden=48, mlp=192, num_layers=2, heads=3)   # ViT-S/16 analogue
STUDENT_CFG = dict(hidden=32, mlp=128, num_layers=2, heads=2)   # ViT-Ti/16 analogue

_VMEM = pl.BlockSpec(memory_space=pltpu.MemorySpace.VMEM)


def _round_up(v, m):
    return ((v + m - 1) // m) * m


# ------------------------------ fused kernel -----------------------------
def vit_fused_kernel(patches_ref, conv_w_ref, conv_b_ref, tok_bias_ref, mask_ref,
                     ln1_w_ref, ln1_b_ref,
                     wq_ref, bq_ref, wk_ref, bk_ref, wv_ref, bv_ref,
                     wo_ref, bo_ref,
                     ln2_w_ref, ln2_b_ref,
                     fc1_w_ref, fc1_b_ref, fc2_w_ref, fc2_b_ref,
                     lnf_w_ref, lnf_b_ref, head_w_ref, head_b_ref,
                     out_ref,
                     *, num_layers, num_heads, d_real, hd_real, seq, batch):
    """Entire ViT forward for the whole (batch-folded, padded) token matrix."""
    inv_d = 1.0 / float(d_real)
    scale = 1.0 / math.sqrt(float(hd_real))
    eps = 1e-6
    f32 = jnp.float32

    def layer_norm(t, w, b):
        # E[x^2] - E[x]^2 form: zero-padded lanes contribute nothing, and the
        # (1, D) scale/shift are zero on the padded lanes, so padding stays 0.
        mu = jnp.sum(t, axis=-1, keepdims=True) * inv_d
        var = jnp.sum(t * t, axis=-1, keepdims=True) * inv_d - mu * mu
        return (t - mu) * jax.lax.rsqrt(var + eps) * w + b

    # ---- patch embedding + class-token / positional embedding --------------
    # patches: (B*S, C*P*P) with an all-zero row per sample in the CLS slot;
    # tok_bias carries pos_emb (and class_token - conv_b on the CLS rows).
    x = (jnp.dot(patches_ref[...], conv_w_ref[...], preferred_element_type=f32)
         + conv_b_ref[...] + tok_bias_ref[...])                    # (B*S, D)

    mask = mask_ref[...]          # (B*S, B*S) additive block-diagonal mask

    for l in range(num_layers):                    # static unroll (L is small)
        # ---- pre-LN multi-head self-attention (eps=1e-6, pre-norm ViT) ------
        h = layer_norm(x, ln1_w_ref[l], ln1_b_ref[l])
        attn = None
        for hh in range(num_heads):                # per-head weights: no lane slicing
            q = jnp.dot(h, wq_ref[l, hh], preferred_element_type=f32) + bq_ref[l, hh]
            k = jnp.dot(h, wk_ref[l, hh], preferred_element_type=f32) + bk_ref[l, hh]
            v = jnp.dot(h, wv_ref[l, hh], preferred_element_type=f32) + bv_ref[l, hh]
            s = jnp.dot(q, k.T, preferred_element_type=f32) * scale + mask
            s = s - jnp.max(s, axis=-1, keepdims=True)        # stable softmax
            p = jnp.exp(s)
            p = p / jnp.sum(p, axis=-1, keepdims=True)
            ctx = jnp.dot(p, v, preferred_element_type=f32)            # (B*S, E)
            contrib = jnp.dot(ctx, wo_ref[l, hh], preferred_element_type=f32)
            attn = contrib if attn is None else attn + contrib
        x = x + attn + bo_ref[l]                                       # residual 1

        # ---- pre-LN MLP with exact (erf) GELU --------------------------------
        h2 = layer_norm(x, ln2_w_ref[l], ln2_b_ref[l])
        h2 = jnp.dot(h2, fc1_w_ref[l], preferred_element_type=f32) + fc1_b_ref[l]
        h2 = 0.5 * h2 * (1.0 + jax.lax.erf(h2 * (1.0 / math.sqrt(2.0))))
        h2 = jnp.dot(h2, fc2_w_ref[l], preferred_element_type=f32) + fc2_b_ref[l]
        x = x + h2                                                     # residual 2

    # ---- final LN on the CLS tokens + classification head -------------------
    cls = jnp.concatenate([x[b * seq: b * seq + 1, :] for b in range(batch)],
                          axis=0)                                      # (B, D)
    cls = layer_norm(cls, lnf_w_ref[...], lnf_b_ref[...])
    out_ref[...] = (jnp.dot(cls, head_w_ref[...], preferred_element_type=f32)
                    + head_b_ref[...]).astype(out_ref.dtype)


# ------------------------------ model wrapper ----------------------------
def extract_patches(x, patch):
    """NCHW image -> (B, n_patches, C*P*P), row-major over the patch grid
    (matches torchvision conv_proj + reshape + permute ordering)."""
    B, C, H, W = x.shape
    x = x.reshape(B, C, H // patch, patch, W // patch, patch)
    x = x.transpose(0, 2, 4, 1, 3, 5)
    return x.reshape(B, (H // patch) * (W // patch), C * patch * patch)


def vit_forward(params, x, cfg):
    """One fused pallas_call for the whole ViT forward of one model."""
    B = x.shape[0]
    patches = extract_patches(x, PATCH)                        # (B, N, C*P*P)
    pd = patches.shape[-1]
    # A zero "patch" occupies the CLS slot; its embedding comes from tok_bias.
    patches = jnp.concatenate(
        [jnp.zeros((B, 1, pd), patches.dtype), patches], axis=1)   # (B, S, PD)
    patches = patches.reshape(B * SEQ, pd)

    tok_bias = jnp.tile(params["tok_bias"], (B, 1))            # (B*S, D_PAD)
    ids = jnp.arange(B * SEQ) // SEQ                           # sample id per row
    attn_mask = jnp.where(ids[:, None] == ids[None, :], 0.0, -1e30
                          ).astype(jnp.float32)                # block-diag mask

    kernel = functools.partial(
        vit_fused_kernel,
        num_layers=cfg["num_layers"], num_heads=cfg["heads"],
        d_real=cfg["hidden"], hd_real=cfg["hidden"] // cfg["heads"],
        seq=SEQ, batch=B)

    logits = pl.pallas_call(
        kernel,
        out_shape=jax.ShapeDtypeStruct((B, C_PAD), jnp.float32),
        in_specs=[_VMEM] * 25,
        out_specs=_VMEM,
    )(patches, params["conv_w"], params["conv_b"], tok_bias, attn_mask,
      params["ln1_w"], params["ln1_b"],
      params["wq"], params["bq"], params["wk"], params["bk"],
      params["wv"], params["bv"], params["wo"], params["bo"],
      params["ln2_w"], params["ln2_b"],
      params["fc1_w"], params["fc1_b"], params["fc2_w"], params["fc2_b"],
      params["lnf_w"], params["lnf_b"], params["head_w"], params["head_b"])
    return logits[:, :NUM_CLASSES]


# ------------------------- parameter initialization ----------------------
def _normal(key, shape, std=0.02):
    return std * jax.random.normal(key, shape, jnp.float32)


def init_vit_params(key, *, hidden, mlp, num_layers, heads):
    """Deterministic init; all tensors zero-padded to lane-friendly shapes."""
    assert hidden % heads == 0 and hidden <= D_PAD
    hd = hidden // heads
    assert hd <= HD_PAD
    m_p = _round_up(mlp, 128)
    pd = IN_CH * PATCH * PATCH
    L, H = num_layers, heads
    k = jax.random.split(key, 9)

    conv_w = jnp.zeros((pd, D_PAD), jnp.float32).at[:, :hidden].set(
        _normal(k[0], (pd, hidden)))
    conv_b = jnp.zeros((1, D_PAD), jnp.float32)
    class_token = jnp.zeros((D_PAD,), jnp.float32)             # torchvision: zeros
    pos = jnp.zeros((SEQ, D_PAD), jnp.float32).at[:, :hidden].set(
        _normal(k[1], (SEQ, hidden)))
    # CLS row of tok_bias compensates the conv bias applied to the zero patch.
    tok_bias = pos.at[0].add(class_token - conv_b[0])

    def ln_w(prefix):
        return jnp.zeros(prefix + (D_PAD,), jnp.float32).at[..., :hidden].set(1.0)

    return dict(
        conv_w=conv_w, conv_b=conv_b, tok_bias=tok_bias,
        ln1_w=ln_w((L, 1)), ln1_b=jnp.zeros((L, 1, D_PAD), jnp.float32),
        wq=jnp.zeros((L, H, D_PAD, HD_PAD), jnp.float32).at[:, :, :hidden, :hd].set(
            _normal(k[2], (L, H, hidden, hd))),
        bq=jnp.zeros((L, H, 1, HD_PAD), jnp.float32),
        wk=jnp.zeros((L, H, D_PAD, HD_PAD), jnp.float32).at[:, :, :hidden, :hd].set(
            _normal(k[3], (L, H, hidden, hd))),
        bk=jnp.zeros((L, H, 1, HD_PAD), jnp.float32),
        wv=jnp.zeros((L, H, D_PAD, HD_PAD), jnp.float32).at[:, :, :hidden, :hd].set(
            _normal(k[4], (L, H, hidden, hd))),
        bv=jnp.zeros((L, H, 1, HD_PAD), jnp.float32),
        wo=jnp.zeros((L, H, HD_PAD, D_PAD), jnp.float32).at[:, :, :hd, :hidden].set(
            _normal(k[5], (L, H, hd, hidden))),
        bo=jnp.zeros((L, 1, D_PAD), jnp.float32),
        ln2_w=ln_w((L, 1)), ln2_b=jnp.zeros((L, 1, D_PAD), jnp.float32),
        fc1_w=jnp.zeros((L, D_PAD, m_p), jnp.float32).at[:, :hidden, :mlp].set(
            _normal(k[6], (L, hidden, mlp))),
        fc1_b=jnp.zeros((L, 1, m_p), jnp.float32),
        fc2_w=jnp.zeros((L, m_p, D_PAD), jnp.float32).at[:, :mlp, :hidden].set(
            _normal(k[7], (L, mlp, hidden))),
        fc2_b=jnp.zeros((L, 1, D_PAD), jnp.float32),
        lnf_w=ln_w((1,)), lnf_b=jnp.zeros((1, D_PAD), jnp.float32),
        head_w=jnp.zeros((D_PAD, C_PAD), jnp.float32).at[:hidden, :NUM_CLASSES].set(
            _normal(k[8], (hidden, NUM_CLASSES))),
        head_b=jnp.zeros((1, C_PAD), jnp.float32),
    )


def init_tandem_pss_params(key):
    kt, kp, ks = jax.random.split(key, 3)
    return {
        "teacher": init_vit_params(kt, **TEACHER_CFG),
        "proxy_student": init_vit_params(kp, **PROXY_CFG),
        "student": init_vit_params(ks, **STUDENT_CFG),
    }


# ---------------------------- TandemPSS forward --------------------------
def tandem_pss_forward(params, x):
    # TandemTPS: the frozen teacher runs first and its tokens condition the
    # proxy student (ModVisionTransformer proxy=True).  That conditioning
    # module's source is not provided, so the teacher output is not consumed
    # here and XLA dead-code-eliminates the teacher forward under jit.
    # TODO(synk): wire teacher tokens into the proxy-student conditioning once
    # ModVisionTransformer's proxy path is available.
    _ = vit_forward(params["teacher"], x, TEACHER_CFG)
    p_out = vit_forward(params["proxy_student"], x, PROXY_CFG)   # frozen proxy
    s_out = vit_forward(params["student"], x, STUDENT_CFG)       # trainable student
    return s_out, p_out


# --------------------------------- main ----------------------------------
if __name__ == "__main__":
    key = jax.random.PRNGKey(0)
    kx, kparams = jax.random.split(key)
    x = jax.random.normal(kx, (2, IN_CH, IMAGE, IMAGE), jnp.float32)   # NCHW
    params = init_tandem_pss_params(kparams)

    s_out, p_out = jax.jit(tandem_pss_forward)(params, x)
    jax.block_until_ready((s_out, p_out))

    assert s_out.shape == (2, NUM_CLASSES)
    assert p_out.shape == (2, NUM_CLASSES)
    assert bool(jnp.all(jnp.isfinite(s_out))) and bool(jnp.all(jnp.isfinite(p_out)))
    print("KERNEL_OK")
</pallas_src>

<mosaic_0001>
module attributes {stable_mosaic.version = 11 : i64} {
  func.func @vit_fused_kernel(%arg0: memref<10x768xf32, #tpu.memory_space<vmem>>, %arg1: memref<768x128xf32, #tpu.memory_space<vmem>>, %arg2: memref<1x128xf32, #tpu.memory_space<vmem>>, %arg3: memref<10x128xf32, #tpu.memory_space<vmem>>, %arg4: memref<10x10xf32, #tpu.memory_space<vmem>>, %arg5: memref<2x1x128xf32, #tpu.memory_space<vmem>>, %arg6: memref<2x1x128xf32, #tpu.memory_space<vmem>>, %arg7: memref<2x2x128x64xf32, #tpu.memory_space<vmem>>, %arg8: memref<2x2x1x64xf32, #tpu.memory_space<vmem>>, %arg9: memref<2x2x128x64xf32, #tpu.memory_space<vmem>>, %arg10: memref<2x2x1x64xf32, #tpu.memory_space<vmem>>, %arg11: memref<2x2x128x64xf32, #tpu.memory_space<vmem>>, %arg12: memref<2x2x1x64xf32, #tpu.memory_space<vmem>>, %arg13: memref<2x2x64x128xf32, #tpu.memory_space<vmem>>, %arg14: memref<2x1x128xf32, #tpu.memory_space<vmem>>, %arg15: memref<2x1x128xf32, #tpu.memory_space<vmem>>, %arg16: memref<2x1x128xf32, #tpu.memory_space<vmem>>, %arg17: memref<2x128x128xf32, #tpu.memory_space<vmem>>, %arg18: memref<2x1x128xf32, #tpu.memory_space<vmem>>, %arg19: memref<2x128x128xf32, #tpu.memory_space<vmem>>, %arg20: memref<2x1x128xf32, #tpu.memory_space<vmem>>, %arg21: memref<1x128xf32, #tpu.memory_space<vmem>>, %arg22: memref<1x128xf32, #tpu.memory_space<vmem>>, %arg23: memref<128x128xf32, #tpu.memory_space<vmem>>, %arg24: memref<1x128xf32, #tpu.memory_space<vmem>>, %arg25: memref<2x128xf32, #tpu.memory_space<vmem>>) attributes {dimension_semantics = [], scalar_prefetch = 0 : i64, scratch_operands = 0 : i64, tpu.core_type = #tpu.core_type<tc>} {
    %c0 = arith.constant 0 : index
    %c0_0 = arith.constant 0 : index
    %0 = vector.load %arg0[%c0, %c0_0] : memref<10x768xf32, #tpu.memory_space<vmem>>, vector<10x768xf32>
    %c0_1 = arith.constant 0 : index
    %c0_2 = arith.constant 0 : index
    %1 = vector.load %arg1[%c0_1, %c0_2] : memref<768x128xf32, #tpu.memory_space<vmem>>, vector<768x128xf32>
    %cst = arith.constant dense<0.000000e+00> : vector<10x128xf32>
    %2 = tpu.matmul %0, %1, %cst {dimension_numbers = #tpu.dot_dimension_numbers<[1], [0], [0], [1], [0, 0, 1, 1], [], []>} : vector<10x768xf32>, vector<768x128xf32>, vector<10x128xf32> -> vector<10x128xf32>
    %c0_3 = arith.constant 0 : index
    %c0_4 = arith.constant 0 : index
    %3 = vector.load %arg2[%c0_3, %c0_4] : memref<1x128xf32, #tpu.memory_space<vmem>>, vector<1x128xf32>
    %4 = vector.broadcast %3 : vector<1x128xf32> to vector<10x128xf32>
    %5 = arith.addf %2, %4 : vector<10x128xf32>
    %c0_5 = arith.constant 0 : index
    %c0_6 = arith.constant 0 : index
    %6 = vector.load %arg3[%c0_5, %c0_6] : memref<10x128xf32, #tpu.memory_space<vmem>>, vector<10x128xf32>
    %7 = arith.addf %5, %6 : vector<10x128xf32>
    %c0_7 = arith.constant 0 : index
    %c0_8 = arith.constant 0 : index
    %8 = vector.load %arg4[%c0_7, %c0_8] : memref<10x10xf32, #tpu.memory_space<vmem>>, vector<10x10xf32>
    %c0_9 = arith.constant 0 : index
    %c0_10 = arith.constant 0 : index
    %c0_11 = arith.constant 0 : index
    %9 = vector.load %arg5[%c0_9, %c0_10, %c0_11] : memref<2x1x128xf32, #tpu.memory_space<vmem>>, vector<1x1x128xf32>
    %10 = vector.shape_cast %9 : vector<1x1x128xf32> to vector<1x128xf32>
    %c0_12 = arith.constant 0 : index
    %c0_13 = arith.constant 0 : index
    %c0_14 = arith.constant 0 : index
    %11 = vector.load %arg6[%c0_12, %c0_13, %c0_14] : memref<2x1x128xf32, #tpu.memory_space<vmem>>, vector<1x1x128xf32>
    %12 = vector.shape_cast %11 : vector<1x1x128xf32> to vector<1x128xf32>
    %cst_15 = arith.constant dense<0.000000e+00> : vector<10xf32>
    %13 = vector.multi_reduction <add>, %7, %cst_15 [1] : vector<10x128xf32> to vector<10xf32>
    %14 = vector.shape_cast %13 : vector<10xf32> to vector<10x1xf32>
    %cst_16 = arith.constant 3.125000e-02 : f32
    %15 = vector.broadcast %cst_16 : f32 to vector<10x1xf32>
    %16 = arith.mulf %14, %15 : vector<10x1xf32>
    %17 = arith.mulf %7, %7 : vector<10x128xf32>
    %cst_17 = arith.constant dense<0.000000e+00> : vector<10xf32>
    %18 = vector.multi_reduction <add>, %17, %cst_17 [1] : vector<10x128xf32> to vector<10xf32>
    %19 = vector.shape_cast %18 : vector<10xf32> to vector<10x1xf32>
    %cst_18 = arith.constant 3.125000e-02 : f32
    %20 = vector.broadcast %cst_18 : f32 to vector<10x1xf32>
    %21 = arith.mulf %19, %20 : vector<10x1xf32>
    %22 = arith.mulf %16, %16 : vector<10x1xf32>
    %23 = arith.subf %21, %22 : vector<10x1xf32>
    %24 = vector.broadcast %16 : vector<10x1xf32> to vector<10x128xf32>
    %25 = arith.subf %7, %24 : vector<10x128xf32>
    %cst_19 = arith.constant 9.99999997E-7 : f32
    %26 = vector.broadcast %cst_19 : f32 to vector<10x1xf32>
    %27 = arith.addf %23, %26 : vector<10x1xf32>
    %28 = math.rsqrt %27 : vector<10x1xf32>
    %29 = vector.broadcast %28 : vector<10x1xf32> to vector<10x128xf32>
    %30 = arith.mulf %25, %29 : vector<10x128xf32>
    %31 = vector.broadcast %10 : vector<1x128xf32> to vector<10x128xf32>
    %32 = arith.mulf %30, %31 : vector<10x128xf32>
    %33 = vector.broadcast %12 : vector<1x128xf32> to vector<10x128xf32>
    %34 = arith.addf %32, %33 : vector<10x128xf32>
    %c0_20 = arith.constant 0 : index
    %c0_21 = arith.constant 0 : index
    %c0_22 = arith.constant 0 : index
    %c0_23 = arith.constant 0 : index
    %35 = vector.load %arg7[%c0_20, %c0_21, %c0_22, %c0_23] : memref<2x2x128x64xf32, #tpu.memory_space<vmem>>, vector<1x1x128x64xf32>
    %36 = vector.shape_cast %35 : vector<1x1x128x64xf32> to vector<128x64xf32>
    %cst_24 = arith.constant dense<0.000000e+00> : vector<10x64xf32>
    %37 = tpu.matmul %34, %36, %cst_24 {dimension_numbers = #tpu.dot_dimension_numbers<[1], [0], [0], [1], [0, 0, 1, 1], [], []>} : vector<10x128xf32>, vector<128x64xf32>, vector<10x64xf32> -> vector<10x64xf32>
    %c0_25 = arith.constant 0 : index
    %c0_26 = arith.constant 0 : index
    %c0_27 = arith.constant 0 : index
    %c0_28 = arith.constant 0 : index
    %38 = vector.load %arg8[%c0_25, %c0_26, %c0_27, %c0_28] : memref<2x2x1x64xf32, #tpu.memory_space<vmem>>, vector<1x1x1x64xf32>
    %39 = vector.shape_cast %38 : vector<1x1x1x64xf32> to vector<1x64xf32>
    %40 = vector.broadcast %39 : vector<1x64xf32> to vector<10x64xf32>
    %41 = arith.addf %37, %40 : vector<10x64xf32>
    %c0_29 = arith.constant 0 : index
    %c0_30 = arith.constant 0 : index
    %c0_31 = arith.constant 0 : index
    %c0_32 = arith.constant 0 : index
    %42 = vector.load %arg9[%c0_29, %c0_30, %c0_31, %c0_32] : memref<2x2x128x64xf32, #tpu.memory_space<vmem>>, vector<1x1x128x64xf32>
    %43 = vector.shape_cast %42 : vector<1x1x128x64xf32> to vector<128x64xf32>
    %cst_33 = arith.constant dense<0.000000e+00> : vector<10x64xf32>
    %44 = tpu.matmul %34, %43, %cst_33 {dimension_numbers = #tpu.dot_dimension_numbers<[1], [0], [0], [1], [0, 0, 1, 1], [], []>} : vector<10x128xf32>, vector<128x64xf32>, vector<10x64xf32> -> vector<10x64xf32>
    %c0_34 = arith.constant 0 : index
    %c0_35 = arith.constant 0 : index
    %c0_36 = arith.constant 0 : index
    %c0_37 = arith.constant 0 : index
    %45 = vector.load %arg10[%c0_34, %c0_35, %c0_36, %c0_37] : memref<2x2x1x64xf32, #tpu.memory_space<vmem>>, vector<1x1x1x64xf32>
    %46 = vector.shape_cast %45 : vector<1x1x1x64xf32> to vector<1x64xf32>
    %47 = vector.broadcast %46 : vector<1x64xf32> to vector<10x64xf32>
    %48 = arith.addf %44, %47 : vector<10x64xf32>
    %c0_38 = arith.constant 0 : index
    %c0_39 = arith.constant 0 : index
    %c0_40 = arith.constant 0 : index
    %c0_41 = arith.constant 0 : index
    %49 = vector.load %arg11[%c0_38, %c0_39, %c0_40, %c0_41] : memref<2x2x128x64xf32, #tpu.memory_space<vmem>>, vector<1x1x128x64xf32>
    %50 = vector.shape_cast %49 : vector<1x1x128x64xf32> to vector<128x64xf32>
    %cst_42 = arith.constant dense<0.000000e+00> : vector<10x64xf32>
    %51 = tpu.matmul %34, %50, %cst_42 {dimension_numbers = #tpu.dot_dimension_numbers<[1], [0], [0], [1], [0, 0, 1, 1], [], []>} : vector<10x128xf32>, vector<128x64xf32>, vector<10x64xf32> -> vector<10x64xf32>
    %c0_43 = arith.constant 0 : index
    %c0_44 = arith.constant 0 : index
    %c0_45 = arith.constant 0 : index
    %c0_46 = arith.constant 0 : index
    %52 = vector.load %arg12[%c0_43, %c0_44, %c0_45, %c0_46] : memref<2x2x1x64xf32, #tpu.memory_space<vmem>>, vector<1x1x1x64xf32>
    %53 = vector.shape_cast %52 : vector<1x1x1x64xf32> to vector<1x64xf32>
    %54 = vector.broadcast %53 : vector<1x64xf32> to vector<10x64xf32>
    %55 = arith.addf %51, %54 : vector<10x64xf32>
    %56 = tpu.transpose %48, [1, 0] : vector<10x64xf32> -> vector<64x10xf32>
    %cst_47 = arith.constant dense<0.000000e+00> : vector<10x10xf32>
    %57 = tpu.matmul %41, %56, %cst_47 {dimension_numbers = #tpu.dot_dimension_numbers<[1], [0], [0], [1], [0, 0, 1, 1], [], []>} : vector<10x64xf32>, vector<64x10xf32>, vector<10x10xf32> -> vector<10x10xf32>
    %cst_48 = arith.constant 2.500000e-01 : f32
    %58 = vector.broadcast %cst_48 : f32 to vector<10x10xf32>
    %59 = arith.mulf %57, %58 : vector<10x10xf32>
    %60 = arith.addf %59, %8 : vector<10x10xf32>
    %cst_49 = arith.constant dense<0xFF800000> : vector<10xf32>
    %61 = vector.multi_reduction <maximumf>, %60, %cst_49 [1] : vector<10x10xf32> to vector<10xf32>
    %62 = vector.shape_cast %61 : vector<10xf32> to vector<10x1xf32>
    %63 = vector.broadcast %62 : vector<10x1xf32> to vector<10x10xf32>
    %64 = arith.subf %60, %63 : vector<10x10xf32>
    %65 = math.exp %64 : vector<10x10xf32>
    %cst_50 = arith.constant dense<0.000000e+00> : vector<10xf32>
    %66 = vector.multi_reduction <add>, %65, %cst_50 [1] : vector<10x10xf32> to vector<10xf32>
    %67 = vector.shape_cast %66 : vector<10xf32> to vector<10x1xf32>
    %68 = vector.broadcast %67 : vector<10x1xf32> to vector<10x10xf32>
    %69 = arith.divf %65, %68 : vector<10x10xf32>
    %cst_51 = arith.constant dense<0.000000e+00> : vector<10x64xf32>
    %70 = tpu.matmul %69, %55, %cst_51 {dimension_numbers = #tpu.dot_dimension_numbers<[1], [0], [0], [1], [0, 0, 1, 1], [], []>} : vector<10x10xf32>, vector<10x64xf32>, vector<10x64xf32> -> vector<10x64xf32>
    %c0_52 = arith.constant 0 : index
    %c0_53 = arith.constant 0 : index
    %c0_54 = arith.constant 0 : index
    %c0_55 = arith.constant 0 : index
    %71 = vector.load %arg13[%c0_52, %c0_53, %c0_54, %c0_55] : memref<2x2x64x128xf32, #tpu.memory_space<vmem>>, vector<1x1x64x128xf32>
    %72 = vector.shape_cast %71 : vector<1x1x64x128xf32> to vector<64x128xf32>
    %cst_56 = arith.constant dense<0.000000e+00> : vector<10x128xf32>
    %73 = tpu.matmul %70, %72, %cst_56 {dimension_numbers = #tpu.dot_dimension_numbers<[1], [0], [0], [1], [0, 0, 1, 1], [], []>} : vector<10x64xf32>, vector<64x128xf32>, vector<10x128xf32> -> vector<10x128xf32>
    %c0_57 = arith.constant 0 : index
    %c1 = arith.constant 1 : index
    %c0_58 = arith.constant 0 : index
    %c0_59 = arith.constant 0 : index
    %74 = vector.load %arg7[%c0_57, %c1, %c0_58, %c0_59] : memref<2x2x128x64xf32, #tpu.memory_space<vmem>>, vector<1x1x128x64xf32>
    %75 = vector.shape_cast %74 : vector<1x1x128x64xf32> to vector<128x64xf32>
    %cst_60 = arith.constant dense<0.000000e+00> : vector<10x64xf32>
    %76 = tpu.matmul %34, %75, %cst_60 {dimension_numbers = #tpu.dot_dimension_numbers<[1], [0], [0], [1], [0, 0, 1, 1], [], []>} : vector<10x128xf32>, vector<128x64xf32>, vector<10x64xf32> -> vector<10x64xf32>
    %c0_61 = arith.constant 0 : index
    %c1_62 = arith.constant 1 : index
    %c0_63 = arith.constant 0 : index
    %c0_64 = arith.constant 0 : index
    %77 = vector.load %arg8[%c0_61, %c1_62, %c0_63, %c0_64] : memref<2x2x1x64xf32, #tpu.memory_space<vmem>>, vector<1x1x1x64xf32>
    %78 = vector.shape_cast %77 : vector<1x1x1x64xf32> to vector<1x64xf32>
    %79 = vector.broadcast %78 : vector<1x64xf32> to vector<10x64xf32>
    %80 = arith.addf %76, %79 : vector<10x64xf32>
    %c0_65 = arith.constant 0 : index
    %c1_66 = arith.constant 1 : index
    %c0_67 = arith.constant 0 : index
    %c0_68 = arith.constant 0 : index
    %81 = vector.load %arg9[%c0_65, %c1_66, %c0_67, %c0_68] : memref<2x2x128x64xf32, #tpu.memory_space<vmem>>, vector<1x1x128x64xf32>
    %82 = vector.shape_cast %81 : vector<1x1x128x64xf32> to vector<128x64xf32>
    %cst_69 = arith.constant dense<0.000000e+00> : vector<10x64xf32>
    %83 = tpu.matmul %34, %82, %cst_69 {dimension_numbers = #tpu.dot_dimension_numbers<[1], [0], [0], [1], [0, 0, 1, 1], [], []>} : vector<10x128xf32>, vector<128x64xf32>, vector<10x64xf32> -> vector<10x64xf32>
    %c0_70 = arith.constant 0 : index
    %c1_71 = arith.constant 1 : index
    %c0_72 = arith.constant 0 : index
    %c0_73 = arith.constant 0 : index
    %84 = vector.load %arg10[%c0_70, %c1_71, %c0_72, %c0_73] : memref<2x2x1x64xf32, #tpu.memory_space<vmem>>, vector<1x1x1x64xf32>
    %85 = vector.shape_cast %84 : vector<1x1x1x64xf32> to vector<1x64xf32>
    %86 = vector.broadcast %85 : vector<1x64xf32> to vector<10x64xf32>
    %87 = arith.addf %83, %86 : vector<10x64xf32>
    %c0_74 = arith.constant 0 : index
    %c1_75 = arith.constant 1 : index
    %c0_76 = arith.constant 0 : index
    %c0_77 = arith.constant 0 : index
    %88 = vector.load %arg11[%c0_74, %c1_75, %c0_76, %c0_77] : memref<2x2x128x64xf32, #tpu.memory_space<vmem>>, vector<1x1x128x64xf32>
    %89 = vector.shape_cast %88 : vector<1x1x128x64xf32> to vector<128x64xf32>
    %cst_78 = arith.constant dense<0.000000e+00> : vector<10x64xf32>
    %90 = tpu.matmul %34, %89, %cst_78 {dimension_numbers = #tpu.dot_dimension_numbers<[1], [0], [0], [1], [0, 0, 1, 1], [], []>} : vector<10x128xf32>, vector<128x64xf32>, vector<10x64xf32> -> vector<10x64xf32>
    %c0_79 = arith.constant 0 : index
    %c1_80 = arith.constant 1 : index
    %c0_81 = arith.constant 0 : index
    %c0_82 = arith.constant 0 : index
    %91 = vector.load %arg12[%c0_79, %c1_80, %c0_81, %c0_82] : memref<2x2x1x64xf32, #tpu.memory_space<vmem>>, vector<1x1x1x64xf32>
    %92 = vector.shape_cast %91 : vector<1x1x1x64xf32> to vector<1x64xf32>
    %93 = vector.broadcast %92 : vector<1x64xf32> to vector<10x64xf32>
    %94 = arith.addf %90, %93 : vector<10x64xf32>
    %95 = tpu.transpose %87, [1, 0] : vector<10x64xf32> -> vector<64x10xf32>
    %cst_83 = arith.constant dense<0.000000e+00> : vector<10x10xf32>
    %96 = tpu.matmul %80, %95, %cst_83 {dimension_numbers = #tpu.dot_dimension_numbers<[1], [0], [0], [1], [0, 0, 1, 1], [], []>} : vector<10x64xf32>, vector<64x10xf32>, vector<10x10xf32> -> vector<10x10xf32>
    %cst_84 = arith.constant 2.500000e-01 : f32
    %97 = vector.broadcast %cst_84 : f32 to vector<10x10xf32>
    %98 = arith.mulf %96, %97 : vector<10x10xf32>
    %99 = arith.addf %98, %8 : vector<10x10xf32>
    %cst_85 = arith.constant dense<0xFF800000> : vector<10xf32>
    %100 = vector.multi_reduction <maximumf>, %99, %cst_85 [1] : vector<10x10xf32> to vector<10xf32>
    %101 = vector.shape_cast %100 : vector<10xf32> to vector<10x1xf32>
    %102 = vector.broadcast %101 : vector<10x1xf32> to vector<10x10xf32>
    %103 = arith.subf %99, %102 : vector<10x10xf32>
    %104 = math.exp %103 : vector<10x10xf32>
    %cst_86 = arith.constant dense<0.000000e+00> : vector<10xf32>
    %105 = vector.multi_reduction <add>, %104, %cst_86 [1] : vector<10x10xf32> to vector<10xf32>
    %106 = vector.shape_cast %105 : vector<10xf32> to vector<10x1xf32>
    %107 = vector.broadcast %106 : vector<10x1xf32> to vector<10x10xf32>
    %108 = arith.divf %104, %107 : vector<10x10xf32>
    %cst_87 = arith.constant dense<0.000000e+00> : vector<10x64xf32>
    %109 = tpu.matmul %108, %94, %cst_87 {dimension_numbers = #tpu.dot_dimension_numbers<[1], [0], [0], [1], [0, 0, 1, 1], [], []>} : vector<10x10xf32>, vector<10x64xf32>, vector<10x64xf32> -> vector<10x64xf32>
    %c0_88 = arith.constant 0 : index
    %c1_89 = arith.constant 1 : index
    %c0_90 = arith.constant 0 : index
    %c0_91 = arith.constant 0 : index
    %110 = vector.load %arg13[%c0_88, %c1_89, %c0_90, %c0_91] : memref<2x2x64x128xf32, #tpu.memory_space<vmem>>, vector<1x1x64x128xf32>
    %111 = vector.shape_cast %110 : vector<1x1x64x128xf32> to vector<64x128xf32>
    %cst_92 = arith.constant dense<0.000000e+00> : vector<10x128xf32>
    %112 = tpu.matmul %109, %111, %cst_92 {dimension_numbers = #tpu.dot_dimension_numbers<[1], [0], [0], [1], [0, 0, 1, 1], [], []>} : vector<10x64xf32>, vector<64x128xf32>, vector<10x128xf32> -> vector<10x128xf32>
    %113 = arith.addf %73, %112 : vector<10x128xf32>
    %114 = arith.addf %7, %113 : vector<10x128xf32>
    %c0_93 = arith.constant 0 : index
    %c0_94 = arith.constant 0 : index
    %c0_95 = arith.constant 0 : index
    %115 = vector.load %arg14[%c0_93, %c0_94, %c0_95] : memref<2x1x128xf32, #tpu.memory_space<vmem>>, vector<1x1x128xf32>
    %116 = vector.shape_cast %115 : vector<1x1x128xf32> to vector<1x128xf32>
    %117 = vector.broadcast %116 : vector<1x128xf32> to vector<10x128xf32>
    %118 = arith.addf %114, %117 : vector<10x128xf32>
    %c0_96 = arith.constant 0 : index
    %c0_97 = arith.constant 0 : index
    %c0_98 = arith.constant 0 : index
    %119 = vector.load %arg15[%c0_96, %c0_97, %c0_98] : memref<2x1x128xf32, #tpu.memory_space<vmem>>, vector<1x1x128xf32>
    %120 = vector.shape_cast %119 : vector<1x1x128xf32> to vector<1x128xf32>
    %c0_99 = arith.constant 0 : index
    %c0_100 = arith.constant 0 : index
    %c0_101 = arith.constant 0 : index
    %121 = vector.load %arg16[%c0_99, %c0_100, %c0_101] : memref<2x1x128xf32, #tpu.memory_space<vmem>>, vector<1x1x128xf32>
    %122 = vector.shape_cast %121 : vector<1x1x128xf32> to vector<1x128xf32>
    %cst_102 = arith.constant dense<0.000000e+00> : vector<10xf32>
    %123 = vector.multi_reduction <add>, %118, %cst_102 [1] : vector<10x128xf32> to vector<10xf32>
    %124 = vector.shape_cast %123 : vector<10xf32> to vector<10x1xf32>
    %cst_103 = arith.constant 3.125000e-02 : f32
    %125 = vector.broadcast %cst_103 : f32 to vector<10x1xf32>
    %126 = arith.mulf %124, %125 : vector<10x1xf32>
    %127 = arith.mulf %118, %118 : vector<10x128xf32>
    %cst_104 = arith.constant dense<0.000000e+00> : vector<10xf32>
    %128 = vector.multi_reduction <add>, %127, %cst_104 [1] : vector<10x128xf32> to vector<10xf32>
    %129 = vector.shape_cast %128 : vector<10xf32> to vector<10x1xf32>
    %cst_105 = arith.constant 3.125000e-02 : f32
    %130 = vector.broadcast %cst_105 : f32 to vector<10x1xf32>
    %131 = arith.mulf %129, %130 : vector<10x1xf32>
    %132 = arith.mulf %126, %126 : vector<10x1xf32>
    %133 = arith.subf %131, %132 : vector<10x1xf32>
    %134 = vector.broadcast %126 : vector<10x1xf32> to vector<10x128xf32>
    %135 = arith.subf %118, %134 : vector<10x128xf32>
    %cst_106 = arith.constant 9.99999997E-7 : f32
    %136 = vector.broadcast %cst_106 : f32 to vector<10x1xf32>
    %137 = arith.addf %133, %136 : vector<10x1xf32>
    %138 = math.rsqrt %137 : vector<10x1xf32>
    %139 = vector.broadcast %138 : vector<10x1xf32> to vector<10x128xf32>
    %140 = arith.mulf %135, %139 : vector<10x128xf32>
    %141 = vector.broadcast %120 : vector<1x128xf32> to vector<10x128xf32>
    %142 = arith.mulf %140, %141 : vector<10x128xf32>
    %143 = vector.broadcast %122 : vector<1x128xf32> to vector<10x128xf32>
    %144 = arith.addf %142, %143 : vector<10x128xf32>
    %c0_107 = arith.constant 0 : index
    %c0_108 = arith.constant 0 : index
    %c0_109 = arith.constant 0 : index
    %145 = vector.load %arg17[%c0_107, %c0_108, %c0_109] : memref<2x128x128xf32, #tpu.memory_space<vmem>>, vector<1x128x128xf32>
    %146 = vector.shape_cast %145 : vector<1x128x128xf32> to vector<128x128xf32>
    %cst_110 = arith.constant dense<0.000000e+00> : vector<10x128xf32>
    %147 = tpu.matmul %144, %146, %cst_110 {dimension_numbers = #tpu.dot_dimension_numbers<[1], [0], [0], [1], [0, 0, 1, 1], [], []>} : vector<10x128xf32>, vector<128x128xf32>, vector<10x128xf32> -> vector<10x128xf32>
    %c0_111 = arith.constant 0 : index
    %c0_112 = arith.constant 0 : index
    %c0_113 = arith.constant 0 : index
    %148 = vector.load %arg18[%c0_111, %c0_112, %c0_113] : memref<2x1x128xf32, #tpu.memory_space<vmem>>, vector<1x1x128xf32>
    %149 = vector.shape_cast %148 : vector<1x1x128xf32> to vector<1x128xf32>
    %150 = vector.broadcast %149 : vector<1x128xf32> to vector<10x128xf32>
    %151 = arith.addf %147, %150 : vector<10x128xf32>
    %cst_114 = arith.constant 5.000000e-01 : f32
    %152 = vector.broadcast %cst_114 : f32 to vector<10x128xf32>
    %153 = arith.mulf %152, %151 : vector<10x128xf32>
    %cst_115 = arith.constant 0.707106769 : f32
    %154 = vector.broadcast %cst_115 : f32 to vector<10x128xf32>
    %155 = arith.mulf %151, %154 : vector<10x128xf32>
    %156 = math.erf %155 : vector<10x128xf32>
    %cst_116 = arith.constant 1.000000e+00 : f32
    %157 = vector.broadcast %cst_116 : f32 to vector<10x128xf32>
    %158 = arith.addf %157, %156 : vector<10x128xf32>
    %159 = arith.mulf %153, %158 : vector<10x128xf32>
    %c0_117 = arith.constant 0 : index
    %c0_118 = arith.constant 0 : index
    %c0_119 = arith.constant 0 : index
    %160 = vector.load %arg19[%c0_117, %c0_118, %c0_119] : memref<2x128x128xf32, #tpu.memory_space<vmem>>, vector<1x128x128xf32>
    %161 = vector.shape_cast %160 : vector<1x128x128xf32> to vector<128x128xf32>
    %cst_120 = arith.constant dense<0.000000e+00> : vector<10x128xf32>
    %162 = tpu.matmul %159, %161, %cst_120 {dimension_numbers = #tpu.dot_dimension_numbers<[1], [0], [0], [1], [0, 0, 1, 1], [], []>} : vector<10x128xf32>, vector<128x128xf32>, vector<10x128xf32> -> vector<10x128xf32>
    %c0_121 = arith.constant 0 : index
    %c0_122 = arith.constant 0 : index
    %c0_123 = arith.constant 0 : index
    %163 = vector.load %arg20[%c0_121, %c0_122, %c0_123] : memref<2x1x128xf32, #tpu.memory_space<vmem>>, vector<1x1x128xf32>
    %164 = vector.shape_cast %163 : vector<1x1x128xf32> to vector<1x128xf32>
    %165 = vector.broadcast %164 : vector<1x128xf32> to vector<10x128xf32>
    %166 = arith.addf %162, %165 : vector<10x128xf32>
    %167 = arith.addf %118, %166 : vector<10x128xf32>
    %c1_124 = arith.constant 1 : index
    %c0_125 = arith.constant 0 : index
    %c0_126 = arith.constant 0 : index
    %168 = vector.load %arg5[%c1_124, %c0_125, %c0_126] : memref<2x1x128xf32, #tpu.memory_space<vmem>>, vector<1x1x128xf32>
    %169 = vector.shape_cast %168 : vector<1x1x128xf32> to vector<1x128xf32>
    %c1_127 = arith.constant 1 : index
    %c0_128 = arith.constant 0 : index
    %c0_129 = arith.constant 0 : index
    %170 = vector.load %arg6[%c1_127, %c0_128, %c0_129] : memref<2x1x128xf32, #tpu.memory_space<vmem>>, vector<1x1x128xf32>
    %171 = vector.shape_cast %170 : vector<1x1x128xf32> to vector<1x128xf32>
    %cst_130 = arith.constant dense<0.000000e+00> : vector<10xf32>
    %172 = vector.multi_reduction <add>, %167, %cst_130 [1] : vector<10x128xf32> to vector<10xf32>
    %173 = vector.shape_cast %172 : vector<10xf32> to vector<10x1xf32>
    %cst_131 = arith.constant 3.125000e-02 : f32
    %174 = vector.broadcast %cst_131 : f32 to vector<10x1xf32>
    %175 = arith.mulf %173, %174 : vector<10x1xf32>
    %176 = arith.mulf %167, %167 : vector<10x128xf32>
    %cst_132 = arith.constant dense<0.000000e+00> : vector<10xf32>
    %177 = vector.multi_reduction <add>, %176, %cst_132 [1] : vector<10x128xf32> to vector<10xf32>
    %178 = vector.shape_cast %177 : vector<10xf32> to vector<10x1xf32>
    %cst_133 = arith.constant 3.125000e-02 : f32
    %179 = vector.broadcast %cst_133 : f32 to vector<10x1xf32>
    %180 = arith.mulf %178, %179 : vector<10x1xf32>
    %181 = arith.mulf %175, %175 : vector<10x1xf32>
    %182 = arith.subf %180, %181 : vector<10x1xf32>
    %183 = vector.broadcast %175 : vector<10x1xf32> to vector<10x128xf32>
    %184 = arith.subf %167, %183 : vector<10x128xf32>
    %cst_134 = arith.constant 9.99999997E-7 : f32
    %185 = vector.broadcast %cst_134 : f32 to vector<10x1xf32>
    %186 = arith.addf %182, %185 : vector<10x1xf32>
    %187 = math.rsqrt %186 : vector<10x1xf32>
    %188 = vector.broadcast %187 : vector<10x1xf32> to vector<10x128xf32>
    %189 = arith.mulf %184, %188 : vector<10x128xf32>
    %190 = vector.broadcast %169 : vector<1x128xf32> to vector<10x128xf32>
    %191 = arith.mulf %189, %190 : vector<10x128xf32>
    %192 = vector.broadcast %171 : vector<1x128xf32> to vector<10x128xf32>
    %193 = arith.addf %191, %192 : vector<10x128xf32>
    %c1_135 = arith.constant 1 : index
    %c0_136 = arith.constant 0 : index
    %c0_137 = arith.constant 0 : index
    %c0_138 = arith.constant 0 : index
    %194 = vector.load %arg7[%c1_135, %c0_136, %c0_137, %c0_138] : memref<2x2x128x64xf32, #tpu.memory_space<vmem>>, vector<1x1x128x64xf32>
    %195 = vector.shape_cast %194 : vector<1x1x128x64xf32> to vector<128x64xf32>
    %cst_139 = arith.constant dense<0.000000e+00> : vector<10x64xf32>
    %196 = tpu.matmul %193, %195, %cst_139 {dimension_numbers = #tpu.dot_dimension_numbers<[1], [0], [0], [1], [0, 0, 1, 1], [], []>} : vector<10x128xf32>, vector<128x64xf32>, vector<10x64xf32> -> vector<10x64xf32>
    %c1_140 = arith.constant 1 : index
    %c0_141 = arith.constant 0 : index
    %c0_142 = arith.constant 0 : index
    %c0_143 = arith.constant 0 : index
    %197 = vector.load %arg8[%c1_140, %c0_141, %c0_142, %c0_143] : memref<2x2x1x64xf32, #tpu.memory_space<vmem>>, vector<1x1x1x64xf32>
    %198 = vector.shape_cast %197 : vector<1x1x1x64xf32> to vector<1x64xf32>
    %199 = vector.broadcast %198 : vector<1x64xf32> to vector<10x64xf32>
    %200 = arith.addf %196, %199 : vector<10x64xf32>
    %c1_144 = arith.constant 1 : index
    %c0_145 = arith.constant 0 : index
    %c0_146 = arith.constant 0 : index
    %c0_147 = arith.constant 0 : index
    %201 = vector.load %arg9[%c1_144, %c0_145, %c0_146, %c0_147] : memref<2x2x128x64xf32, #tpu.memory_space<vmem>>, vector<1x1x128x64xf32>
    %202 = vector.shape_cast %201 : vector<1x1x128x64xf32> to vector<128x64xf32>
    %cst_148 = arith.constant dense<0.000000e+00> : vector<10x64xf32>
    %203 = tpu.matmul %193, %202, %cst_148 {dimension_numbers = #tpu.dot_dimension_numbers<[1], [0], [0], [1], [0, 0, 1, 1], [], []>} : vector<10x128xf32>, vector<128x64xf32>, vector<10x64xf32> -> vector<10x64xf32>
    %c1_149 = arith.constant 1 : index
    %c0_150 = arith.constant 0 : index
    %c0_151 = arith.constant 0 : index
    %c0_152 = arith.constant 0 : index
    %204 = vector.load %arg10[%c1_149, %c0_150, %c0_151, %c0_152] : memref<2x2x1x64xf32, #tpu.memory_space<vmem>>, vector<1x1x1x64xf32>
    %205 = vector.shape_cast %204 : vector<1x1x1x64xf32> to vector<1x64xf32>
    %206 = vector.broadcast %205 : vector<1x64xf32> to vector<10x64xf32>
    %207 = arith.addf %203, %206 : vector<10x64xf32>
    %c1_153 = arith.constant 1 : index
    %c0_154 = arith.constant 0 : index
    %c0_155 = arith.constant 0 : index
    %c0_156 = arith.constant 0 : index
    %208 = vector.load %arg11[%c1_153, %c0_154, %c0_155, %c0_156] : memref<2x2x128x64xf32, #tpu.memory_space<vmem>>, vector<1x1x128x64xf32>
    %209 = vector.shape_cast %208 : vector<1x1x128x64xf32> to vector<128x64xf32>
    %cst_157 = arith.constant dense<0.000000e+00> : vector<10x64xf32>
    %210 = tpu.matmul %193, %209, %cst_157 {dimension_numbers = #tpu.dot_dimension_numbers<[1], [0], [0], [1], [0, 0, 1, 1], [], []>} : vector<10x128xf32>, vector<128x64xf32>, vector<10x64xf32> -> vector<10x64xf32>
    %c1_158 = arith.constant 1 : index
    %c0_159 = arith.constant 0 : index
    %c0_160 = arith.constant 0 : index
    %c0_161 = arith.constant 0 : index
    %211 = vector.load %arg12[%c1_158, %c0_159, %c0_160, %c0_161] : memref<2x2x1x64xf32, #tpu.memory_space<vmem>>, vector<1x1x1x64xf32>
    %212 = vector.shape_cast %211 : vector<1x1x1x64xf32> to vector<1x64xf32>
    %213 = vector.broadcast %212 : vector<1x64xf32> to vector<10x64xf32>
    %214 = arith.addf %210, %213 : vector<10x64xf32>
    %215 = tpu.transpose %207, [1, 0] : vector<10x64xf32> -> vector<64x10xf32>
    %cst_162 = arith.constant dense<0.000000e+00> : vector<10x10xf32>
    %216 = tpu.matmul %200, %215, %cst_162 {dimension_numbers = #tpu.dot_dimension_numbers<[1], [0], [0], [1], [0, 0, 1, 1], [], []>} : vector<10x64xf32>, vector<64x10xf32>, vector<10x10xf32> -> vector<10x10xf32>
    %cst_163 = arith.constant 2.500000e-01 : f32
    %217 = vector.broadcast %cst_163 : f32 to vector<10x10xf32>
    %218 = arith.mulf %216, %217 : vector<10x10xf32>
    %219 = arith.addf %218, %8 : vector<10x10xf32>
    %cst_164 = arith.constant dense<0xFF800000> : vector<10xf32>
    %220 = vector.multi_reduction <maximumf>, %219, %cst_164 [1] : vector<10x10xf32> to vector<10xf32>
    %221 = vector.shape_cast %220 : vector<10xf32> to vector<10x1xf32>
    %222 = vector.broadcast %221 : vector<10x1xf32> to vector<10x10xf32>
    %223 = arith.subf %219, %222 : vector<10x10xf32>
    %224 = math.exp %223 : vector<10x10xf32>
    %cst_165 = arith.constant dense<0.000000e+00> : vector<10xf32>
    %225 = vector.multi_reduction <add>, %224, %cst_165 [1] : vector<10x10xf32> to vector<10xf32>
    %226 = vector.shape_cast %225 : vector<10xf32> to vector<10x1xf32>
    %227 = vector.broadcast %226 : vector<10x1xf32> to vector<10x10xf32>
    %228 = arith.divf %224, %227 : vector<10x10xf32>
    %cst_166 = arith.constant dense<0.000000e+00> : vector<10x64xf32>
    %229 = tpu.matmul %228, %214, %cst_166 {dimension_numbers = #tpu.dot_dimension_numbers<[1], [0], [0], [1], [0, 0, 1, 1], [], []>} : vector<10x10xf32>, vector<10x64xf32>, vector<10x64xf32> -> vector<10x64xf32>
    %c1_167 = arith.constant 1 : index
    %c0_168 = arith.constant 0 : index
    %c0_169 = arith.constant 0 : index
    %c0_170 = arith.constant 0 : index
    %230 = vector.load %arg13[%c1_167, %c0_168, %c0_169, %c0_170] : memref<2x2x64x128xf32, #tpu.memory_space<vmem>>, vector<1x1x64x128xf32>
    %231 = vector.shape_cast %230 : vector<1x1x64x128xf32> to vector<64x128xf32>
    %cst_171 = arith.constant dense<0.000000e+00> : vector<10x128xf32>
    %232 = tpu.matmul %229, %231, %cst_171 {dimension_numbers = #tpu.dot_dimension_numbers<[1], [0], [0], [1], [0, 0, 1, 1], [], []>} : vector<10x64xf32>, vector<64x128xf32>, vector<10x128xf32> -> vector<10x128xf32>
    %c1_172 = arith.constant 1 : index
    %c1_173 = arith.constant 1 : index
    %c0_174 = arith.constant 0 : index
    %c0_175 = arith.constant 0 : index
    %233 = vector.load %arg7[%c1_172, %c1_173, %c0_174, %c0_175] : memref<2x2x128x64xf32, #tpu.memory_space<vmem>>, vector<1x1x128x64xf32>
    %234 = vector.shape_cast %233 : vector<1x1x128x64xf32> to vector<128x64xf32>
    %cst_176 = arith.constant dense<0.000000e+00> : vector<10x64xf32>
    %235 = tpu.matmul %193, %234, %cst_176 {dimension_numbers = #tpu.dot_dimension_numbers<[1], [0], [0], [1], [0, 0, 1, 1], [], []>} : vector<10x128xf32>, vector<128x64xf32>, vector<10x64xf32> -> vector<10x64xf32>
    %c1_177 = arith.constant 1 : index
    %c1_178 = arith.constant 1 : index
    %c0_179 = arith.constant 0 : index
    %c0_180 = arith.constant 0 : index
    %236 = vector.load %arg8[%c1_177, %c1_178, %c0_179, %c0_180] : memref<2x2x1x64xf32, #tpu.memory_space<vmem>>, vector<1x1x1x64xf32>
    %237 = vector.shape_cast %236 : vector<1x1x1x64xf32> to vector<1x64xf32>
    %238 = vector.broadcast %237 : vector<1x64xf32> to vector<10x64xf32>
    %239 = arith.addf %235, %238 : vector<10x64xf32>
    %c1_181 = arith.constant 1 : index
    %c1_182 = arith.constant 1 : index
    %c0_183 = arith.constant 0 : index
    %c0_184 = arith.constant 0 : index
    %240 = vector.load %arg9[%c1_181, %c1_182, %c0_183, %c0_184] : memref<2x2x128x64xf32, #tpu.memory_space<vmem>>, vector<1x1x128x64xf32>
    %241 = vector.shape_cast %240 : vector<1x1x128x64xf32> to vector<128x64xf32>
    %cst_185 = arith.constant dense<0.000000e+00> : vector<10x64xf32>
    %242 = tpu.matmul %193, %241, %cst_185 {dimension_numbers = #tpu.dot_dimension_numbers<[1], [0], [0], [1], [0, 0, 1, 1], [], []>} : vector<10x128xf32>, vector<128x64xf32>, vector<10x64xf32> -> vector<10x64xf32>
    %c1_186 = arith.constant 1 : index
    %c1_187 = arith.constant 1 : index
    %c0_188 = arith.constant 0 : index
    %c0_189 = arith.constant 0 : index
    %243 = vector.load %arg10[%c1_186, %c1_187, %c0_188, %c0_189] : memref<2x2x1x64xf32, #tpu.memory_space<vmem>>, vector<1x1x1x64xf32>
    %244 = vector.shape_cast %243 : vector<1x1x1x64xf32> to vector<1x64xf32>
    %245 = vector.broadcast %244 : vector<1x64xf32> to vector<10x64xf32>
    %246 = arith.addf %242, %245 : vector<10x64xf32>
    %c1_190 = arith.constant 1 : index
    %c1_191 = arith.constant 1 : index
    %c0_192 = arith.constant 0 : index
    %c0_193 = arith.constant 0 : index
    %247 = vector.load %arg11[%c1_190, %c1_191, %c0_192, %c0_193] : memref<2x2x128x64xf32, #tpu.memory_space<vmem>>, vector<1x1x128x64xf32>
    %248 = vector.shape_cast %247 : vector<1x1x128x64xf32> to vector<128x64xf32>
    %cst_194 = arith.constant dense<0.000000e+00> : vector<10x64xf32>
    %249 = tpu.matmul %193, %248, %cst_194 {dimension_numbers = #tpu.dot_dimension_numbers<[1], [0], [0], [1], [0, 0, 1, 1], [], []>} : vector<10x128xf32>, vector<128x64xf32>, vector<10x64xf32> -> vector<10x64xf32>
    %c1_195 = arith.constant 1 : index
    %c1_196 = arith.constant 1 : index
    %c0_197 = arith.constant 0 : index
    %c0_198 = arith.constant 0 : index
    %250 = vector.load %arg12[%c1_195, %c1_196, %c0_197, %c0_198] : memref<2x2x1x64xf32, #tpu.memory_space<vmem>>, vector<1x1x1x64xf32>
    %251 = vector.shape_cast %250 : vector<1x1x1x64xf32> to vector<1x64xf32>
    %252 = vector.broadcast %251 : vector<1x64xf32> to vector<10x64xf32>
    %253 = arith.addf %249, %252 : vector<10x64xf32>
    %254 = tpu.transpose %246, [1, 0] : vector<10x64xf32> -> vector<64x10xf32>
    %cst_199 = arith.constant dense<0.000000e+00> : vector<10x10xf32>
    %255 = tpu.matmul %239, %254, %cst_199 {dimension_numbers = #tpu.dot_dimension_numbers<[1], [0], [0], [1], [0, 0, 1, 1], [], []>} : vector<10x64xf32>, vector<64x10xf32>, vector<10x10xf32> -> vector<10x10xf32>
    %cst_200 = arith.constant 2.500000e-01 : f32
    %256 = vector.broadcast %cst_200 : f32 to vector<10x10xf32>
    %257 = arith.mulf %255, %256 : vector<10x10xf32>
    %258 = arith.addf %257, %8 : vector<10x10xf32>
    %cst_201 = arith.constant dense<0xFF800000> : vector<10xf32>
    %259 = vector.multi_reduction <maximumf>, %258, %cst_201 [1] : vector<10x10xf32> to vector<10xf32>
    %260 = vector.shape_cast %259 : vector<10xf32> to vector<10x1xf32>
    %261 = vector.broadcast %260 : vector<10x1xf32> to vector<10x10xf32>
    %262 = arith.subf %258, %261 : vector<10x10xf32>
    %263 = math.exp %262 : vector<10x10xf32>
    %cst_202 = arith.constant dense<0.000000e+00> : vector<10xf32>
    %264 = vector.multi_reduction <add>, %263, %cst_202 [1] : vector<10x10xf32> to vector<10xf32>
    %265 = vector.shape_cast %264 : vector<10xf32> to vector<10x1xf32>
    %266 = vector.broadcast %265 : vector<10x1xf32> to vector<10x10xf32>
    %267 = arith.divf %263, %266 : vector<10x10xf32>
    %cst_203 = arith.constant dense<0.000000e+00> : vector<10x64xf32>
    %268 = tpu.matmul %267, %253, %cst_203 {dimension_numbers = #tpu.dot_dimension_numbers<[1], [0], [0], [1], [0, 0, 1, 1], [], []>} : vector<10x10xf32>, vector<10x64xf32>, vector<10x64xf32> -> vector<10x64xf32>
    %c1_204 = arith.constant 1 : index
    %c1_205 = arith.constant 1 : index
    %c0_206 = arith.constant 0 : index
    %c0_207 = arith.constant 0 : index
    %269 = vector.load %arg13[%c1_204, %c1_205, %c0_206, %c0_207] : memref<2x2x64x128xf32, #tpu.memory_space<vmem>>, vector<1x1x64x128xf32>
    %270 = vector.shape_cast %269 : vector<1x1x64x128xf32> to vector<64x128xf32>
    %cst_208 = arith.constant dense<0.000000e+00> : vector<10x128xf32>
    %271 = tpu.matmul %268, %270, %cst_208 {dimension_numbers = #tpu.dot_dimension_numbers<[1], [0], [0], [1], [0, 0, 1, 1], [], []>} : vector<10x64xf32>, vector<64x128xf32>, vector<10x128xf32> -> vector<10x128xf32>
    %272 = arith.addf %232, %271 : vector<10x128xf32>
    %273 = arith.addf %167, %272 : vector<10x128xf32>
    %c1_209 = arith.constant 1 : index
    %c0_210 = arith.constant 0 : index
    %c0_211 = arith.constant 0 : index
    %274 = vector.load %arg14[%c1_209, %c0_210, %c0_211] : memref<2x1x128xf32, #tpu.memory_space<vmem>>, vector<1x1x128xf32>
    %275 = vector.shape_cast %274 : vector<1x1x128xf32> to vector<1x128xf32>
    %276 = vector.broadcast %275 : vector<1x128xf32> to vector<10x128xf32>
    %277 = arith.addf %273, %276 : vector<10x128xf32>
    %c1_212 = arith.constant 1 : index
    %c0_213 = arith.constant 0 : index
    %c0_214 = arith.constant 0 : index
    %278 = vector.load %arg15[%c1_212, %c0_213, %c0_214] : memref<2x1x128xf32, #tpu.memory_space<vmem>>, vector<1x1x128xf32>
    %279 = vector.shape_cast %278 : vector<1x1x128xf32> to vector<1x128xf32>
    %c1_215 = arith.constant 1 : index
    %c0_216 = arith.constant 0 : index
    %c0_217 = arith.constant 0 : index
    %280 = vector.load %arg16[%c1_215, %c0_216, %c0_217] : memref<2x1x128xf32, #tpu.memory_space<vmem>>, vector<1x1x128xf32>
    %281 = vector.shape_cast %280 : vector<1x1x128xf32> to vector<1x128xf32>
    %cst_218 = arith.constant dense<0.000000e+00> : vector<10xf32>
    %282 = vector.multi_reduction <add>, %277, %cst_218 [1] : vector<10x128xf32> to vector<10xf32>
    %283 = vector.shape_cast %282 : vector<10xf32> to vector<10x1xf32>
    %cst_219 = arith.constant 3.125000e-02 : f32
    %284 = vector.broadcast %cst_219 : f32 to vector<10x1xf32>
    %285 = arith.mulf %283, %284 : vector<10x1xf32>
    %286 = arith.mulf %277, %277 : vector<10x128xf32>
    %cst_220 = arith.constant dense<0.000000e+00> : vector<10xf32>
    %287 = vector.multi_reduction <add>, %286, %cst_220 [1] : vector<10x128xf32> to vector<10xf32>
    %288 = vector.shape_cast %287 : vector<10xf32> to vector<10x1xf32>
    %cst_221 = arith.constant 3.125000e-02 : f32
    %289 = vector.broadcast %cst_221 : f32 to vector<10x1xf32>
    %290 = arith.mulf %288, %289 : vector<10x1xf32>
    %291 = arith.mulf %285, %285 : vector<10x1xf32>
    %292 = arith.subf %290, %291 : vector<10x1xf32>
    %293 = vector.broadcast %285 : vector<10x1xf32> to vector<10x128xf32>
    %294 = arith.subf %277, %293 : vector<10x128xf32>
    %cst_222 = arith.constant 9.99999997E-7 : f32
    %295 = vector.broadcast %cst_222 : f32 to vector<10x1xf32>
    %296 = arith.addf %292, %295 : vector<10x1xf32>
    %297 = math.rsqrt %296 : vector<10x1xf32>
    %298 = vector.broadcast %297 : vector<10x1xf32> to vector<10x128xf32>
    %299 = arith.mulf %294, %298 : vector<10x128xf32>
    %300 = vector.broadcast %279 : vector<1x128xf32> to vector<10x128xf32>
    %301 = arith.mulf %299, %300 : vector<10x128xf32>
    %302 = vector.broadcast %281 : vector<1x128xf32> to vector<10x128xf32>
    %303 = arith.addf %301, %302 : vector<10x128xf32>
    %c1_223 = arith.constant 1 : index
    %c0_224 = arith.constant 0 : index
    %c0_225 = arith.constant 0 : index
    %304 = vector.load %arg17[%c1_223, %c0_224, %c0_225] : memref<2x128x128xf32, #tpu.memory_space<vmem>>, vector<1x128x128xf32>
    %305 = vector.shape_cast %304 : vector<1x128x128xf32> to vector<128x128xf32>
    %cst_226 = arith.constant dense<0.000000e+00> : vector<10x128xf32>
    %306 = tpu.matmul %303, %305, %cst_226 {dimension_numbers = #tpu.dot_dimension_numbers<[1], [0], [0], [1], [0, 0, 1, 1], [], []>} : vector<10x128xf32>, vector<128x128xf32>, vector<10x128xf32> -> vector<10x128xf32>
    %c1_227 = arith.constant 1 : index
    %c0_228 = arith.constant 0 : index
    %c0_229 = arith.constant 0 : index
    %307 = vector.load %arg18[%c1_227, %c0_228, %c0_229] : memref<2x1x128xf32, #tpu.memory_space<vmem>>, vector<1x1x128xf32>
    %308 = vector.shape_cast %307 : vector<1x1x128xf32> to vector<1x128xf32>
    %309 = vector.broadcast %308 : vector<1x128xf32> to vector<10x128xf32>
    %310 = arith.addf %306, %309 : vector<10x128xf32>
    %cst_230 = arith.constant 5.000000e-01 : f32
    %311 = vector.broadcast %cst_230 : f32 to vector<10x128xf32>
    %312 = arith.mulf %311, %310 : vector<10x128xf32>
    %cst_231 = arith.constant 0.707106769 : f32
    %313 = vector.broadcast %cst_231 : f32 to vector<10x128xf32>
    %314 = arith.mulf %310, %313 : vector<10x128xf32>
    %315 = math.erf %314 : vector<10x128xf32>
    %cst_232 = arith.constant 1.000000e+00 : f32
    %316 = vector.broadcast %cst_232 : f32 to vector<10x128xf32>
    %317 = arith.addf %316, %315 : vector<10x128xf32>
    %318 = arith.mulf %312, %317 : vector<10x128xf32>
    %c1_233 = arith.constant 1 : index
    %c0_234 = arith.constant 0 : index
    %c0_235 = arith.constant 0 : index
    %319 = vector.load %arg19[%c1_233, %c0_234, %c0_235] : memref<2x128x128xf32, #tpu.memory_space<vmem>>, vector<1x128x128xf32>
    %320 = vector.shape_cast %319 : vector<1x128x128xf32> to vector<128x128xf32>
    %cst_236 = arith.constant dense<0.000000e+00> : vector<10x128xf32>
    %321 = tpu.matmul %318, %320, %cst_236 {dimension_numbers = #tpu.dot_dimension_numbers<[1], [0], [0], [1], [0, 0, 1, 1], [], []>} : vector<10x128xf32>, vector<128x128xf32>, vector<10x128xf32> -> vector<10x128xf32>
    %c1_237 = arith.constant 1 : index
    %c0_238 = arith.constant 0 : index
    %c0_239 = arith.constant 0 : index
    %322 = vector.load %arg20[%c1_237, %c0_238, %c0_239] : memref<2x1x128xf32, #tpu.memory_space<vmem>>, vector<1x1x128xf32>
    %323 = vector.shape_cast %322 : vector<1x1x128xf32> to vector<1x128xf32>
    %324 = vector.broadcast %323 : vector<1x128xf32> to vector<10x128xf32>
    %325 = arith.addf %321, %324 : vector<10x128xf32>
    %326 = arith.addf %277, %325 : vector<10x128xf32>
    %327 = vector.extract_strided_slice %326 {offsets = [0, 0], sizes = [1, 128], strides = [1, 1]} : vector<10x128xf32> to vector<1x128xf32>
    %328 = vector.extract_strided_slice %326 {offsets = [5, 0], sizes = [1, 128], strides = [1, 1]} : vector<10x128xf32> to vector<1x128xf32>
    %329 = tpu.concatenate %327, %328 in 0 : vector<1x128xf32>, vector<1x128xf32> -> vector<2x128xf32>
    %c0_240 = arith.constant 0 : index
    %c0_241 = arith.constant 0 : index
    %330 = vector.load %arg21[%c0_240, %c0_241] : memref<1x128xf32, #tpu.memory_space<vmem>>, vector<1x128xf32>
    %c0_242 = arith.constant 0 : index
    %c0_243 = arith.constant 0 : index
    %331 = vector.load %arg22[%c0_242, %c0_243] : memref<1x128xf32, #tpu.memory_space<vmem>>, vector<1x128xf32>
    %cst_244 = arith.constant dense<0.000000e+00> : vector<2xf32>
    %332 = vector.multi_reduction <add>, %329, %cst_244 [1] : vector<2x128xf32> to vector<2xf32>
    %333 = vector.shape_cast %332 : vector<2xf32> to vector<2x1xf32>
    %cst_245 = arith.constant 3.125000e-02 : f32
    %334 = vector.broadcast %cst_245 : f32 to vector<2x1xf32>
    %335 = arith.mulf %333, %334 : vector<2x1xf32>
    %336 = arith.mulf %329, %329 : vector<2x128xf32>
    %cst_246 = arith.constant dense<0.000000e+00> : vector<2xf32>
    %337 = vector.multi_reduction <add>, %336, %cst_246 [1] : vector<2x128xf32> to vector<2xf32>
    %338 = vector.shape_cast %337 : vector<2xf32> to vector<2x1xf32>
    %cst_247 = arith.constant 3.125000e-02 : f32
    %339 = vector.broadcast %cst_247 : f32 to vector<2x1xf32>
    %340 = arith.mulf %338, %339 : vector<2x1xf32>
    %341 = arith.mulf %335, %335 : vector<2x1xf32>
    %342 = arith.subf %340, %341 : vector<2x1xf32>
    %343 = vector.broadcast %335 : vector<2x1xf32> to vector<2x128xf32>
    %344 = arith.subf %329, %343 : vector<2x128xf32>
    %cst_248 = arith.constant 9.99999997E-7 : f32
    %345 = vector.broadcast %cst_248 : f32 to vector<2x1xf32>
    %346 = arith.addf %342, %345 : vector<2x1xf32>
    %347 = math.rsqrt %346 : vector<2x1xf32>
    %348 = vector.broadcast %347 : vector<2x1xf32> to vector<2x128xf32>
    %349 = arith.mulf %344, %348 : vector<2x128xf32>
    %350 = vector.broadcast %330 : vector<1x128xf32> to vector<2x128xf32>
    %351 = arith.mulf %349, %350 : vector<2x128xf32>
    %352 = vector.broadcast %331 : vector<1x128xf32> to vector<2x128xf32>
    %353 = arith.addf %351, %352 : vector<2x128xf32>
    %c0_249 = arith.constant 0 : index
    %c0_250 = arith.constant 0 : index
    %354 = vector.load %arg23[%c0_249, %c0_250] : memref<128x128xf32, #tpu.memory_space<vmem>>, vector<128x128xf32>
    %cst_251 = arith.constant dense<0.000000e+00> : vector<2x128xf32>
    %355 = tpu.matmul %353, %354, %cst_251 {dimension_numbers = #tpu.dot_dimension_numbers<[1], [0], [0], [1], [0, 0, 1, 1], [], []>} : vector<2x128xf32>, vector<128x128xf32>, vector<2x128xf32> -> vector<2x128xf32>
    %c0_252 = arith.constant 0 : index
    %c0_253 = arith.constant 0 : index
    %356 = vector.load %arg24[%c0_252, %c0_253] : memref<1x128xf32, #tpu.memory_space<vmem>>, vector<1x128xf32>
    %357 = vector.broadcast %356 : vector<1x128xf32> to vector<2x128xf32>
    %358 = arith.addf %355, %357 : vector<2x128xf32>
    %c0_254 = arith.constant 0 : index
    %c0_255 = arith.constant 0 : index
    %359 = vector.load %arg25[%c0_254, %c0_255] : memref<2x128xf32, #tpu.memory_space<vmem>>, vector<2x128xf32>
    tpu.vector_store %arg25[%c0_254, %c0_255], %358 {strides = array<i32>} : memref<2x128xf32, #tpu.memory_space<vmem>>, vector<2x128xf32>,
    return
  }
}

module attributes {stable_mosaic.version = 11 : i64} {
  func.func @vit_fused_kernel(%arg0: memref<10x768xf32, #tpu.memory_space<vmem>>, %arg1: memref<768x128xf32, #tpu.memory_space<vmem>>, %arg2: memref<1x128xf32, #tpu.memory_space<vmem>>, %arg3: memref<10x128xf32, #tpu.memory_space<vmem>>, %arg4: memref<10x10xf32, #tpu.memory_space<vmem>>, %arg5: memref<2x1x128xf32, #tpu.memory_space<vmem>>, %arg6: memref<2x1x128xf32, #tpu.memory_space<vmem>>, %arg7: memref<2x3x128x64xf32, #tpu.memory_space<vmem>>, %arg8: memref<2x3x1x64xf32, #tpu.memory_space<vmem>>, %arg9: memref<2x3x128x64xf32, #tpu.memory_space<vmem>>, %arg10: memref<2x3x1x64xf32, #tpu.memory_space<vmem>>, %arg11: memref<2x3x128x64xf32, #tpu.memory_space<vmem>>, %arg12: memref<2x3x1x64xf32, #tpu.memory_space<vmem>>, %arg13: memref<2x3x64x128xf32, #tpu.memory_space<vmem>>, %arg14: memref<2x1x128xf32, #tpu.memory_space<vmem>>, %arg15: memref<2x1x128xf32, #tpu.memory_space<vmem>>, %arg16: memref<2x1x128xf32, #tpu.memory_space<vmem>>, %arg17: memref<2x128x256xf32, #tpu.memory_space<vmem>>, %arg18: memref<2x1x256xf32, #tpu.memory_space<vmem>>, %arg19: memref<2x256x128xf32, #tpu.memory_space<vmem>>, %arg20: memref<2x1x128xf32, #tpu.memory_space<vmem>>, %arg21: memref<1x128xf32, #tpu.memory_space<vmem>>, %arg22: memref<1x128xf32, #tpu.memory_space<vmem>>, %arg23: memref<128x128xf32, #tpu.memory_space<vmem>>, %arg24: memref<1x128xf32, #tpu.memory_space<vmem>>, %arg25: memref<2x128xf32, #tpu.memory_space<vmem>>) attributes {dimension_semantics = [], scalar_prefetch = 0 : i64, scratch_operands = 0 : i64, tpu.core_type = #tpu.core_type<tc>} {
    %c0 = arith.constant 0 : index
    %c0_0 = arith.constant 0 : index
    %0 = vector.load %arg0[%c0, %c0_0] : memref<10x768xf32, #tpu.memory_space<vmem>>, vector<10x768xf32>
    %c0_1 = arith.constant 0 : index
    %c0_2 = arith.constant 0 : index
    %1 = vector.load %arg1[%c0_1, %c0_2] : memref<768x128xf32, #tpu.memory_space<vmem>>, vector<768x128xf32>
    %cst = arith.constant dense<0.000000e+00> : vector<10x128xf32>
    %2 = tpu.matmul %0, %1, %cst {dimension_numbers = #tpu.dot_dimension_numbers<[1], [0], [0], [1], [0, 0, 1, 1], [], []>} : vector<10x768xf32>, vector<768x128xf32>, vector<10x128xf32> -> vector<10x128xf32>
    %c0_3 = arith.constant 0 : index
    %c0_4 = arith.constant 0 : index
    %3 = vector.load %arg2[%c0_3, %c0_4] : memref<1x128xf32, #tpu.memory_space<vmem>>, vector<1x128xf32>
    %4 = vector.broadcast %3 : vector<1x128xf32> to vector<10x128xf32>
    %5 = arith.addf %2, %4 : vector<10x128xf32>
    %c0_5 = arith.constant 0 : index
    %c0_6 = arith.constant 0 : index
    %6 = vector.load %arg3[%c0_5, %c0_6] : memref<10x128xf32, #tpu.memory_space<vmem>>, vector<10x128xf32>
    %7 = arith.addf %5, %6 : vector<10x128xf32>
    %c0_7 = arith.constant 0 : index
    %c0_8 = arith.constant 0 : index
    %8 = vector.load %arg4[%c0_7, %c0_8] : memref<10x10xf32, #tpu.memory_space<vmem>>, vector<10x10xf32>
    %c0_9 = arith.constant 0 : index
    %c0_10 = arith.constant 0 : index
    %c0_11 = arith.constant 0 : index
    %9 = vector.load %arg5[%c0_9, %c0_10, %c0_11] : memref<2x1x128xf32, #tpu.memory_space<vmem>>, vector<1x1x128xf32>
    %10 = vector.shape_cast %9 : vector<1x1x128xf32> to vector<1x128xf32>
    %c0_12 = arith.constant 0 : index
    %c0_13 = arith.constant 0 : index
    %c0_14 = arith.constant 0 : index
    %11 = vector.load %arg6[%c0_12, %c0_13, %c0_14] : memref<2x1x128xf32, #tpu.memory_space<vmem>>, vector<1x1x128xf32>
    %12 = vector.shape_cast %11 : vector<1x1x128xf32> to vector<1x128xf32>
    %cst_15 = arith.constant dense<0.000000e+00> : vector<10xf32>
    %13 = vector.multi_reduction <add>, %7, %cst_15 [1] : vector<10x128xf32> to vector<10xf32>
    %14 = vector.shape_cast %13 : vector<10xf32> to vector<10x1xf32>
    %cst_16 = arith.constant 0.020833334 : f32
    %15 = vector.broadcast %cst_16 : f32 to vector<10x1xf32>
    %16 = arith.mulf %14, %15 : vector<10x1xf32>
    %17 = arith.mulf %7, %7 : vector<10x128xf32>
    %cst_17 = arith.constant dense<0.000000e+00> : vector<10xf32>
    %18 = vector.multi_reduction <add>, %17, %cst_17 [1] : vector<10x128xf32> to vector<10xf32>
    %19 = vector.shape_cast %18 : vector<10xf32> to vector<10x1xf32>
    %cst_18 = arith.constant 0.020833334 : f32
    %20 = vector.broadcast %cst_18 : f32 to vector<10x1xf32>
    %21 = arith.mulf %19, %20 : vector<10x1xf32>
    %22 = arith.mulf %16, %16 : vector<10x1xf32>
    %23 = arith.subf %21, %22 : vector<10x1xf32>
    %24 = vector.broadcast %16 : vector<10x1xf32> to vector<10x128xf32>
    %25 = arith.subf %7, %24 : vector<10x128xf32>
    %cst_19 = arith.constant 9.99999997E-7 : f32
    %26 = vector.broadcast %cst_19 : f32 to vector<10x1xf32>
    %27 = arith.addf %23, %26 : vector<10x1xf32>
    %28 = math.rsqrt %27 : vector<10x1xf32>
    %29 = vector.broadcast %28 : vector<10x1xf32> to vector<10x128xf32>
    %30 = arith.mulf %25, %29 : vector<10x128xf32>
    %31 = vector.broadcast %10 : vector<1x128xf32> to vector<10x128xf32>
    %32 = arith.mulf %30, %31 : vector<10x128xf32>
    %33 = vector.broadcast %12 : vector<1x128xf32> to vector<10x128xf32>
    %34 = arith.addf %32, %33 : vector<10x128xf32>
    %c0_20 = arith.constant 0 : index
    %c0_21 = arith.constant 0 : index
    %c0_22 = arith.constant 0 : index
    %c0_23 = arith.constant 0 : index
    %35 = vector.load %arg7[%c0_20, %c0_21, %c0_22, %c0_23] : memref<2x3x128x64xf32, #tpu.memory_space<vmem>>, vector<1x1x128x64xf32>
    %36 = vector.shape_cast %35 : vector<1x1x128x64xf32> to vector<128x64xf32>
    %cst_24 = arith.constant dense<0.000000e+00> : vector<10x64xf32>
    %37 = tpu.matmul %34, %36, %cst_24 {dimension_numbers = #tpu.dot_dimension_numbers<[1], [0], [0], [1], [0, 0, 1, 1], [], []>} : vector<10x128xf32>, vector<128x64xf32>, vector<10x64xf32> -> vector<10x64xf32>
    %c0_25 = arith.constant 0 : index
    %c0_26 = arith.constant 0 : index
    %c0_27 = arith.constant 0 : index
    %c0_28 = arith.constant 0 : index
    %38 = vector.load %arg8[%c0_25, %c0_26, %c0_27, %c0_28] : memref<2x3x1x64xf32, #tpu.memory_space<vmem>>, vector<1x1x1x64xf32>
    %39 = vector.shape_cast %38 : vector<1x1x1x64xf32> to vector<1x64xf32>
    %40 = vector.broadcast %39 : vector<1x64xf32> to vector<10x64xf32>
    %41 = arith.addf %37, %40 : vector<10x64xf32>
    %c0_29 = arith.constant 0 : index
    %c0_30 = arith.constant 0 : index
    %c0_31 = arith.constant 0 : index
    %c0_32 = arith.constant 0 : index
    %42 = vector.load %arg9[%c0_29, %c0_30, %c0_31, %c0_32] : memref<2x3x128x64xf32, #tpu.memory_space<vmem>>, vector<1x1x128x64xf32>
    %43 = vector.shape_cast %42 : vector<1x1x128x64xf32> to vector<128x64xf32>
    %cst_33 = arith.constant dense<0.000000e+00> : vector<10x64xf32>
    %44 = tpu.matmul %34, %43, %cst_33 {dimension_numbers = #tpu.dot_dimension_numbers<[1], [0], [0], [1], [0, 0, 1, 1], [], []>} : vector<10x128xf32>, vector<128x64xf32>, vector<10x64xf32> -> vector<10x64xf32>
    %c0_34 = arith.constant 0 : index
    %c0_35 = arith.constant 0 : index
    %c0_36 = arith.constant 0 : index
    %c0_37 = arith.constant 0 : index
    %45 = vector.load %arg10[%c0_34, %c0_35, %c0_36, %c0_37] : memref<2x3x1x64xf32, #tpu.memory_space<vmem>>, vector<1x1x1x64xf32>
    %46 = vector.shape_cast %45 : vector<1x1x1x64xf32> to vector<1x64xf32>
    %47 = vector.broadcast %46 : vector<1x64xf32> to vector<10x64xf32>
    %48 = arith.addf %44, %47 : vector<10x64xf32>
    %c0_38 = arith.constant 0 : index
    %c0_39 = arith.constant 0 : index
    %c0_40 = arith.constant 0 : index
    %c0_41 = arith.constant 0 : index
    %49 = vector.load %arg11[%c0_38, %c0_39, %c0_40, %c0_41] : memref<2x3x128x64xf32, #tpu.memory_space<vmem>>, vector<1x1x128x64xf32>
    %50 = vector.shape_cast %49 : vector<1x1x128x64xf32> to vector<128x64xf32>
    %cst_42 = arith.constant dense<0.000000e+00> : vector<10x64xf32>
    %51 = tpu.matmul %34, %50, %cst_42 {dimension_numbers = #tpu.dot_dimension_numbers<[1], [0], [0], [1], [0, 0, 1, 1], [], []>} : vector<10x128xf32>, vector<128x64xf32>, vector<10x64xf32> -> vector<10x64xf32>
    %c0_43 = arith.constant 0 : index
    %c0_44 = arith.constant 0 : index
    %c0_45 = arith.constant 0 : index
    %c0_46 = arith.constant 0 : index
    %52 = vector.load %arg12[%c0_43, %c0_44, %c0_45, %c0_46] : memref<2x3x1x64xf32, #tpu.memory_space<vmem>>, vector<1x1x1x64xf32>
    %53 = vector.shape_cast %52 : vector<1x1x1x64xf32> to vector<1x64xf32>
    %54 = vector.broadcast %53 : vector<1x64xf32> to vector<10x64xf32>
    %55 = arith.addf %51, %54 : vector<10x64xf32>
    %56 = tpu.transpose %48, [1, 0] : vector<10x64xf32> -> vector<64x10xf32>
    %cst_47 = arith.constant dense<0.000000e+00> : vector<10x10xf32>
    %57 = tpu.matmul %41, %56, %cst_47 {dimension_numbers = #tpu.dot_dimension_numbers<[1], [0], [0], [1], [0, 0, 1, 1], [], []>} : vector<10x64xf32>, vector<64x10xf32>, vector<10x10xf32> -> vector<10x10xf32>
    %cst_48 = arith.constant 2.500000e-01 : f32
    %58 = vector.broadcast %cst_48 : f32 to vector<10x10xf32>
    %59 = arith.mulf %57, %58 : vector<10x10xf32>
    %60 = arith.addf %59, %8 : vector<10x10xf32>
    %cst_49 = arith.constant dense<0xFF800000> : vector<10xf32>
    %61 = vector.multi_reduction <maximumf>, %60, %cst_49 [1] : vector<10x10xf32> to vector<10xf32>
    %62 = vector.shape_cast %61 : vector<10xf32> to vector<10x1xf32>
    %63 = vector.broadcast %62 : vector<10x1xf32> to vector<10x10xf32>
    %64 = arith.subf %60, %63 : vector<10x10xf32>
    %65 = math.exp %64 : vector<10x10xf32>
    %cst_50 = arith.constant dense<0.000000e+00> : vector<10xf32>
    %66 = vector.multi_reduction <add>, %65, %cst_50 [1] : vector<10x10xf32> to vector<10xf32>
    %67 = vector.shape_cast %66 : vector<10xf32> to vector<10x1xf32>
    %68 = vector.broadcast %67 : vector<10x1xf32> to vector<10x10xf32>
    %69 = arith.divf %65, %68 : vector<10x10xf32>
    %cst_51 = arith.constant dense<0.000000e+00> : vector<10x64xf32>
    %70 = tpu.matmul %69, %55, %cst_51 {dimension_numbers = #tpu.dot_dimension_numbers<[1], [0], [0], [1], [0, 0, 1, 1], [], []>} : vector<10x10xf32>, vector<10x64xf32>, vector<10x64xf32> -> vector<10x64xf32>
    %c0_52 = arith.constant 0 : index
    %c0_53 = arith.constant 0 : index
    %c0_54 = arith.constant 0 : index
    %c0_55 = arith.constant 0 : index
    %71 = vector.load %arg13[%c0_52, %c0_53, %c0_54, %c0_55] : memref<2x3x64x128xf32, #tpu.memory_space<vmem>>, vector<1x1x64x128xf32>
    %72 = vector.shape_cast %71 : vector<1x1x64x128xf32> to vector<64x128xf32>
    %cst_56 = arith.constant dense<0.000000e+00> : vector<10x128xf32>
    %73 = tpu.matmul %70, %72, %cst_56 {dimension_numbers = #tpu.dot_dimension_numbers<[1], [0], [0], [1], [0, 0, 1, 1], [], []>} : vector<10x64xf32>, vector<64x128xf32>, vector<10x128xf32> -> vector<10x128xf32>
    %c0_57 = arith.constant 0 : index
    %c1 = arith.constant 1 : index
    %c0_58 = arith.constant 0 : index
    %c0_59 = arith.constant 0 : index
    %74 = vector.load %arg7[%c0_57, %c1, %c0_58, %c0_59] : memref<2x3x128x64xf32, #tpu.memory_space<vmem>>, vector<1x1x128x64xf32>
    %75 = vector.shape_cast %74 : vector<1x1x128x64xf32> to vector<128x64xf32>
    %cst_60 = arith.constant dense<0.000000e+00> : vector<10x64xf32>
    %76 = tpu.matmul %34, %75, %cst_60 {dimension_numbers = #tpu.dot_dimension_numbers<[1], [0], [0], [1], [0, 0, 1, 1], [], []>} : vector<10x128xf32>, vector<128x64xf32>, vector<10x64xf32> -> vector<10x64xf32>
    %c0_61 = arith.constant 0 : index
    %c1_62 = arith.constant 1 : index
    %c0_63 = arith.constant 0 : index
    %c0_64 = arith.constant 0 : index
    %77 = vector.load %arg8[%c0_61, %c1_62, %c0_63, %c0_64] : memref<2x3x1x64xf32, #tpu.memory_space<vmem>>, vector<1x1x1x64xf32>
    %78 = vector.shape_cast %77 : vector<1x1x1x64xf32> to vector<1x64xf32>
    %79 = vector.broadcast %78 : vector<1x64xf32> to vector<10x64xf32>
    %80 = arith.addf %76, %79 : vector<10x64xf32>
    %c0_65 = arith.constant 0 : index
    %c1_66 = arith.constant 1 : index
    %c0_67 = arith.constant 0 : index
    %c0_68 = arith.constant 0 : index
    %81 = vector.load %arg9[%c0_65, %c1_66, %c0_67, %c0_68] : memref<2x3x128x64xf32, #tpu.memory_space<vmem>>, vector<1x1x128x64xf32>
    %82 = vector.shape_cast %81 : vector<1x1x128x64xf32> to vector<128x64xf32>
    %cst_69 = arith.constant dense<0.000000e+00> : vector<10x64xf32>
    %83 = tpu.matmul %34, %82, %cst_69 {dimension_numbers = #tpu.dot_dimension_numbers<[1], [0], [0], [1], [0, 0, 1, 1], [], []>} : vector<10x128xf32>, vector<128x64xf32>, vector<10x64xf32> -> vector<10x64xf32>
    %c0_70 = arith.constant 0 : index
    %c1_71 = arith.constant 1 : index
    %c0_72 = arith.constant 0 : index
    %c0_73 = arith.constant 0 : index
    %84 = vector.load %arg10[%c0_70, %c1_71, %c0_72, %c0_73] : memref<2x3x1x64xf32, #tpu.memory_space<vmem>>, vector<1x1x1x64xf32>
    %85 = vector.shape_cast %84 : vector<1x1x1x64xf32> to vector<1x64xf32>
    %86 = vector.broadcast %85 : vector<1x64xf32> to vector<10x64xf32>
    %87 = arith.addf %83, %86 : vector<10x64xf32>
    %c0_74 = arith.constant 0 : index
    %c1_75 = arith.constant 1 : index
    %c0_76 = arith.constant 0 : index
    %c0_77 = arith.constant 0 : index
    %88 = vector.load %arg11[%c0_74, %c1_75, %c0_76, %c0_77] : memref<2x3x128x64xf32, #tpu.memory_space<vmem>>, vector<1x1x128x64xf32>
    %89 = vector.shape_cast %88 : vector<1x1x128x64xf32> to vector<128x64xf32>
    %cst_78 = arith.constant dense<0.000000e+00> : vector<10x64xf32>
    %90 = tpu.matmul %34, %89, %cst_78 {dimension_numbers = #tpu.dot_dimension_numbers<[1], [0], [0], [1], [0, 0, 1, 1], [], []>} : vector<10x128xf32>, vector<128x64xf32>, vector<10x64xf32> -> vector<10x64xf32>
    %c0_79 = arith.constant 0 : index
    %c1_80 = arith.constant 1 : index
    %c0_81 = arith.constant 0 : index
    %c0_82 = arith.constant 0 : index
    %91 = vector.load %arg12[%c0_79, %c1_80, %c0_81, %c0_82] : memref<2x3x1x64xf32, #tpu.memory_space<vmem>>, vector<1x1x1x64xf32>
    %92 = vector.shape_cast %91 : vector<1x1x1x64xf32> to vector<1x64xf32>
    %93 = vector.broadcast %92 : vector<1x64xf32> to vector<10x64xf32>
    %94 = arith.addf %90, %93 : vector<10x64xf32>
    %95 = tpu.transpose %87, [1, 0] : vector<10x64xf32> -> vector<64x10xf32>
    %cst_83 = arith.constant dense<0.000000e+00> : vector<10x10xf32>
    %96 = tpu.matmul %80, %95, %cst_83 {dimension_numbers = #tpu.dot_dimension_numbers<[1], [0], [0], [1], [0, 0, 1, 1], [], []>} : vector<10x64xf32>, vector<64x10xf32>, vector<10x10xf32> -> vector<10x10xf32>
    %cst_84 = arith.constant 2.500000e-01 : f32
    %97 = vector.broadcast %cst_84 : f32 to vector<10x10xf32>
    %98 = arith.mulf %96, %97 : vector<10x10xf32>
    %99 = arith.addf %98, %8 : vector<10x10xf32>
    %cst_85 = arith.constant dense<0xFF800000> : vector<10xf32>
    %100 = vector.multi_reduction <maximumf>, %99, %cst_85 [1] : vector<10x10xf32> to vector<10xf32>
    %101 = vector.shape_cast %100 : vector<10xf32> to vector<10x1xf32>
    %102 = vector.broadcast %101 : vector<10x1xf32> to vector<10x10xf32>
    %103 = arith.subf %99, %102 : vector<10x10xf32>
    %104 = math.exp %103 : vector<10x10xf32>
    %cst_86 = arith.constant dense<0.000000e+00> : vector<10xf32>
    %105 = vector.multi_reduction <add>, %104, %cst_86 [1] : vector<10x10xf32> to vector<10xf32>
    %106 = vector.shape_cast %105 : vector<10xf32> to vector<10x1xf32>
    %107 = vector.broadcast %106 : vector<10x1xf32> to vector<10x10xf32>
    %108 = arith.divf %104, %107 : vector<10x10xf32>
    %cst_87 = arith.constant dense<0.000000e+00> : vector<10x64xf32>
    %109 = tpu.matmul %108, %94, %cst_87 {dimension_numbers = #tpu.dot_dimension_numbers<[1], [0], [0], [1], [0, 0, 1, 1], [], []>} : vector<10x10xf32>, vector<10x64xf32>, vector<10x64xf32> -> vector<10x64xf32>
    %c0_88 = arith.constant 0 : index
    %c1_89 = arith.constant 1 : index
    %c0_90 = arith.constant 0 : index
    %c0_91 = arith.constant 0 : index
    %110 = vector.load %arg13[%c0_88, %c1_89, %c0_90, %c0_91] : memref<2x3x64x128xf32, #tpu.memory_space<vmem>>, vector<1x1x64x128xf32>
    %111 = vector.shape_cast %110 : vector<1x1x64x128xf32> to vector<64x128xf32>
    %cst_92 = arith.constant dense<0.000000e+00> : vector<10x128xf32>
    %112 = tpu.matmul %109, %111, %cst_92 {dimension_numbers = #tpu.dot_dimension_numbers<[1], [0], [0], [1], [0, 0, 1, 1], [], []>} : vector<10x64xf32>, vector<64x128xf32>, vector<10x128xf32> -> vector<10x128xf32>
    %113 = arith.addf %73, %112 : vector<10x128xf32>
    %c0_93 = arith.constant 0 : index
    %c2 = arith.constant 2 : index
    %c0_94 = arith.constant 0 : index
    %c0_95 = arith.constant 0 : index
    %114 = vector.load %arg7[%c0_93, %c2, %c0_94, %c0_95] : memref<2x3x128x64xf32, #tpu.memory_space<vmem>>, vector<1x1x128x64xf32>
    %115 = vector.shape_cast %114 : vector<1x1x128x64xf32> to vector<128x64xf32>
    %cst_96 = arith.constant dense<0.000000e+00> : vector<10x64xf32>
    %116 = tpu.matmul %34, %115, %cst_96 {dimension_numbers = #tpu.dot_dimension_numbers<[1], [0], [0], [1], [0, 0, 1, 1], [], []>} : vector<10x128xf32>, vector<128x64xf32>, vector<10x64xf32> -> vector<10x64xf32>
    %c0_97 = arith.constant 0 : index
    %c2_98 = arith.constant 2 : index
    %c0_99 = arith.constant 0 : index
    %c0_100 = arith.constant 0 : index
    %117 = vector.load %arg8[%c0_97, %c2_98, %c0_99, %c0_100] : memref<2x3x1x64xf32, #tpu.memory_space<vmem>>, vector<1x1x1x64xf32>
    %118 = vector.shape_cast %117 : vector<1x1x1x64xf32> to vector<1x64xf32>
    %119 = vector.broadcast %118 : vector<1x64xf32> to vector<10x64xf32>
    %120 = arith.addf %116, %119 : vector<10x64xf32>
    %c0_101 = arith.constant 0 : index
    %c2_102 = arith.constant 2 : index
    %c0_103 = arith.constant 0 : index
    %c0_104 = arith.constant 0 : index
    %121 = vector.load %arg9[%c0_101, %c2_102, %c0_103, %c0_104] : memref<2x3x128x64xf32, #tpu.memory_space<vmem>>, vector<1x1x128x64xf32>
    %122 = vector.shape_cast %121 : vector<1x1x128x64xf32> to vector<128x64xf32>
    %cst_105 = arith.constant dense<0.000000e+00> : vector<10x64xf32>
    %123 = tpu.matmul %34, %122, %cst_105 {dimension_numbers = #tpu.dot_dimension_numbers<[1], [0], [0], [1], [0, 0, 1, 1], [], []>} : vector<10x128xf32>, vector<128x64xf32>, vector<10x64xf32> -> vector<10x64xf32>
    %c0_106 = arith.constant 0 : index
    %c2_107 = arith.constant 2 : index
    %c0_108 = arith.constant 0 : index
    %c0_109 = arith.constant 0 : index
    %124 = vector.load %arg10[%c0_106, %c2_107, %c0_108, %c0_109] : memref<2x3x1x64xf32, #tpu.memory_space<vmem>>, vector<1x1x1x64xf32>
    %125 = vector.shape_cast %124 : vector<1x1x1x64xf32> to vector<1x64xf32>
    %126 = vector.broadcast %125 : vector<1x64xf32> to vector<10x64xf32>
    %127 = arith.addf %123, %126 : vector<10x64xf32>
    %c0_110 = arith.constant 0 : index
    %c2_111 = arith.constant 2 : index
    %c0_112 = arith.constant 0 : index
    %c0_113 = arith.constant 0 : index
    %128 = vector.load %arg11[%c0_110, %c2_111, %c0_112, %c0_113] : memref<2x3x128x64xf32, #tpu.memory_space<vmem>>, vector<1x1x128x64xf32>
    %129 = vector.shape_cast %128 : vector<1x1x128x64xf32> to vector<128x64xf32>
    %cst_114 = arith.constant dense<0.000000e+00> : vector<10x64xf32>
    %130 = tpu.matmul %34, %129, %cst_114 {dimension_numbers = #tpu.dot_dimension_numbers<[1], [0], [0], [1], [0, 0, 1, 1], [], []>} : vector<10x128xf32>, vector<128x64xf32>, vector<10x64xf32> -> vector<10x64xf32>
    %c0_115 = arith.constant 0 : index
    %c2_116 = arith.constant 2 : index
    %c0_117 = arith.constant 0 : index
    %c0_118 = arith.constant 0 : index
    %131 = vector.load %arg12[%c0_115, %c2_116, %c0_117, %c0_118] : memref<2x3x1x64xf32, #tpu.memory_space<vmem>>, vector<1x1x1x64xf32>
    %132 = vector.shape_cast %131 : vector<1x1x1x64xf32> to vector<1x64xf32>
    %133 = vector.broadcast %132 : vector<1x64xf32> to vector<10x64xf32>
    %134 = arith.addf %130, %133 : vector<10x64xf32>
    %135 = tpu.transpose %127, [1, 0] : vector<10x64xf32> -> vector<64x10xf32>
    %cst_119 = arith.constant dense<0.000000e+00> : vector<10x10xf32>
    %136 = tpu.matmul %120, %135, %cst_119 {dimension_numbers = #tpu.dot_dimension_numbers<[1], [0], [0], [1], [0, 0, 1, 1], [], []>} : vector<10x64xf32>, vector<64x10xf32>, vector<10x10xf32> -> vector<10x10xf32>
    %cst_120 = arith.constant 2.500000e-01 : f32
    %137 = vector.broadcast %cst_120 : f32 to vector<10x10xf32>
    %138 = arith.mulf %136, %137 : vector<10x10xf32>
    %139 = arith.addf %138, %8 : vector<10x10xf32>
    %cst_121 = arith.constant dense<0xFF800000> : vector<10xf32>
    %140 = vector.multi_reduction <maximumf>, %139, %cst_121 [1] : vector<10x10xf32> to vector<10xf32>
    %141 = vector.shape_cast %140 : vector<10xf32> to vector<10x1xf32>
    %142 = vector.broadcast %141 : vector<10x1xf32> to vector<10x10xf32>
    %143 = arith.subf %139, %142 : vector<10x10xf32>
    %144 = math.exp %143 : vector<10x10xf32>
    %cst_122 = arith.constant dense<0.000000e+00> : vector<10xf32>
    %145 = vector.multi_reduction <add>, %144, %cst_122 [1] : vector<10x10xf32> to vector<10xf32>
    %146 = vector.shape_cast %145 : vector<10xf32> to vector<10x1xf32>
    %147 = vector.broadcast %146 : vector<10x1xf32> to vector<10x10xf32>
    %148 = arith.divf %144, %147 : vector<10x10xf32>
    %cst_123 = arith.constant dense<0.000000e+00> : vector<10x64xf32>
    %149 = tpu.matmul %148, %134, %cst_123 {dimension_numbers = #tpu.dot_dimension_numbers<[1], [0], [0], [1], [0, 0, 1, 1], [], []>} : vector<10x10xf32>, vector<10x64xf32>, vector<10x64xf32> -> vector<10x64xf32>
    %c0_124 = arith.constant 0 : index
    %c2_125 = arith.constant 2 : index
    %c0_126 = arith.constant 0 : index
    %c0_127 = arith.constant 0 : index
    %150 = vector.load %arg13[%c0_124, %c2_125, %c0_126, %c0_127] : memref<2x3x64x128xf32, #tpu.memory_space<vmem>>, vector<1x1x64x128xf32>
    %151 = vector.shape_cast %150 : vector<1x1x64x128xf32> to vector<64x128xf32>
    %cst_128 = arith.constant dense<0.000000e+00> : vector<10x128xf32>
    %152 = tpu.matmul %149, %151, %cst_128 {dimension_numbers = #tpu.dot_dimension_numbers<[1], [0], [0], [1], [0, 0, 1, 1], [], []>} : vector<10x64xf32>, vector<64x128xf32>, vector<10x128xf32> -> vector<10x128xf32>
    %153 = arith.addf %113, %152 : vector<10x128xf32>
    %154 = arith.addf %7, %153 : vector<10x128xf32>
    %c0_129 = arith.constant 0 : index
    %c0_130 = arith.constant 0 : index
    %c0_131 = arith.constant 0 : index
    %155 = vector.load %arg14[%c0_129, %c0_130, %c0_131] : memref<2x1x128xf32, #tpu.memory_space<vmem>>, vector<1x1x128xf32>
    %156 = vector.shape_cast %155 : vector<1x1x128xf32> to vector<1x128xf32>
    %157 = vector.broadcast %156 : vector<1x128xf32> to vector<10x128xf32>
    %158 = arith.addf %154, %157 : vector<10x128xf32>
    %c0_132 = arith.constant 0 : index
    %c0_133 = arith.constant 0 : index
    %c0_134 = arith.constant 0 : index
    %159 = vector.load %arg15[%c0_132, %c0_133, %c0_134] : memref<2x1x128xf32, #tpu.memory_space<vmem>>, vector<1x1x128xf32>
    %160 = vector.shape_cast %159 : vector<1x1x128xf32> to vector<1x128xf32>
    %c0_135 = arith.constant 0 : index
    %c0_136 = arith.constant 0 : index
    %c0_137 = arith.constant 0 : index
    %161 = vector.load %arg16[%c0_135, %c0_136, %c0_137] : memref<2x1x128xf32, #tpu.memory_space<vmem>>, vector<1x1x128xf32>
    %162 = vector.shape_cast %161 : vector<1x1x128xf32> to vector<1x128xf32>
    %cst_138 = arith.constant dense<0.000000e+00> : vector<10xf32>
    %163 = vector.multi_reduction <add>, %158, %cst_138 [1] : vector<10x128xf32> to vector<10xf32>
    %164 = vector.shape_cast %163 : vector<10xf32> to vector<10x1xf32>
    %cst_139 = arith.constant 0.020833334 : f32
    %165 = vector.broadcast %cst_139 : f32 to vector<10x1xf32>
    %166 = arith.mulf %164, %165 : vector<10x1xf32>
    %167 = arith.mulf %158, %158 : vector<10x128xf32>
    %cst_140 = arith.constant dense<0.000000e+00> : vector<10xf32>
    %168 = vector.multi_reduction <add>, %167, %cst_140 [1] : vector<10x128xf32> to vector<10xf32>
    %169 = vector.shape_cast %168 : vector<10xf32> to vector<10x1xf32>
    %cst_141 = arith.constant 0.020833334 : f32
    %170 = vector.broadcast %cst_141 : f32 to vector<10x1xf32>
    %171 = arith.mulf %169, %170 : vector<10x1xf32>
    %172 = arith.mulf %166, %166 : vector<10x1xf32>
    %173 = arith.subf %171, %172 : vector<10x1xf32>
    %174 = vector.broadcast %166 : vector<10x1xf32> to vector<10x128xf32>
    %175 = arith.subf %158, %174 : vector<10x128xf32>
    %cst_142 = arith.constant 9.99999997E-7 : f32
    %176 = vector.broadcast %cst_142 : f32 to vector<10x1xf32>
    %177 = arith.addf %173, %176 : vector<10x1xf32>
    %178 = math.rsqrt %177 : vector<10x1xf32>
    %179 = vector.broadcast %178 : vector<10x1xf32> to vector<10x128xf32>
    %180 = arith.mulf %175, %179 : vector<10x128xf32>
    %181 = vector.broadcast %160 : vector<1x128xf32> to vector<10x128xf32>
    %182 = arith.mulf %180, %181 : vector<10x128xf32>
    %183 = vector.broadcast %162 : vector<1x128xf32> to vector<10x128xf32>
    %184 = arith.addf %182, %183 : vector<10x128xf32>
    %c0_143 = arith.constant 0 : index
    %c0_144 = arith.constant 0 : index
    %c0_145 = arith.constant 0 : index
    %185 = vector.load %arg17[%c0_143, %c0_144, %c0_145] : memref<2x128x256xf32, #tpu.memory_space<vmem>>, vector<1x128x256xf32>
    %186 = vector.shape_cast %185 : vector<1x128x256xf32> to vector<128x256xf32>
    %cst_146 = arith.constant dense<0.000000e+00> : vector<10x256xf32>
    %187 = tpu.matmul %184, %186, %cst_146 {dimension_numbers = #tpu.dot_dimension_numbers<[1], [0], [0], [1], [0, 0, 1, 1], [], []>} : vector<10x128xf32>, vector<128x256xf32>, vector<10x256xf32> -> vector<10x256xf32>
    %c0_147 = arith.constant 0 : index
    %c0_148 = arith.constant 0 : index
    %c0_149 = arith.constant 0 : index
    %188 = vector.load %arg18[%c0_147, %c0_148, %c0_149] : memref<2x1x256xf32, #tpu.memory_space<vmem>>, vector<1x1x256xf32>
    %189 = vector.shape_cast %188 : vector<1x1x256xf32> to vector<1x256xf32>
    %190 = vector.broadcast %189 : vector<1x256xf32> to vector<10x256xf32>
    %191 = arith.addf %187, %190 : vector<10x256xf32>
    %cst_150 = arith.constant 5.000000e-01 : f32
    %192 = vector.broadcast %cst_150 : f32 to vector<10x256xf32>
    %193 = arith.mulf %192, %191 : vector<10x256xf32>
    %cst_151 = arith.constant 0.707106769 : f32
    %194 = vector.broadcast %cst_151 : f32 to vector<10x256xf32>
    %195 = arith.mulf %191, %194 : vector<10x256xf32>
    %196 = math.erf %195 : vector<10x256xf32>
    %cst_152 = arith.constant 1.000000e+00 : f32
    %197 = vector.broadcast %cst_152 : f32 to vector<10x256xf32>
    %198 = arith.addf %197, %196 : vector<10x256xf32>
    %199 = arith.mulf %193, %198 : vector<10x256xf32>
    %c0_153 = arith.constant 0 : index
    %c0_154 = arith.constant 0 : index
    %c0_155 = arith.constant 0 : index
    %200 = vector.load %arg19[%c0_153, %c0_154, %c0_155] : memref<2x256x128xf32, #tpu.memory_space<vmem>>, vector<1x256x128xf32>
    %201 = vector.shape_cast %200 : vector<1x256x128xf32> to vector<256x128xf32>
    %cst_156 = arith.constant dense<0.000000e+00> : vector<10x128xf32>
    %202 = tpu.matmul %199, %201, %cst_156 {dimension_numbers = #tpu.dot_dimension_numbers<[1], [0], [0], [1], [0, 0, 1, 1], [], []>} : vector<10x256xf32>, vector<256x128xf32>, vector<10x128xf32> -> vector<10x128xf32>
    %c0_157 = arith.constant 0 : index
    %c0_158 = arith.constant 0 : index
    %c0_159 = arith.constant 0 : index
    %203 = vector.load %arg20[%c0_157, %c0_158, %c0_159] : memref<2x1x128xf32, #tpu.memory_space<vmem>>, vector<1x1x128xf32>
    %204 = vector.shape_cast %203 : vector<1x1x128xf32> to vector<1x128xf32>
    %205 = vector.broadcast %204 : vector<1x128xf32> to vector<10x128xf32>
    %206 = arith.addf %202, %205 : vector<10x128xf32>
    %207 = arith.addf %158, %206 : vector<10x128xf32>
    %c1_160 = arith.constant 1 : index
    %c0_161 = arith.constant 0 : index
    %c0_162 = arith.constant 0 : index
    %208 = vector.load %arg5[%c1_160, %c0_161, %c0_162] : memref<2x1x128xf32, #tpu.memory_space<vmem>>, vector<1x1x128xf32>
    %209 = vector.shape_cast %208 : vector<1x1x128xf32> to vector<1x128xf32>
    %c1_163 = arith.constant 1 : index
    %c0_164 = arith.constant 0 : index
    %c0_165 = arith.constant 0 : index
    %210 = vector.load %arg6[%c1_163, %c0_164, %c0_165] : memref<2x1x128xf32, #tpu.memory_space<vmem>>, vector<1x1x128xf32>
    %211 = vector.shape_cast %210 : vector<1x1x128xf32> to vector<1x128xf32>
    %cst_166 = arith.constant dense<0.000000e+00> : vector<10xf32>
    %212 = vector.multi_reduction <add>, %207, %cst_166 [1] : vector<10x128xf32> to vector<10xf32>
    %213 = vector.shape_cast %212 : vector<10xf32> to vector<10x1xf32>
    %cst_167 = arith.constant 0.020833334 : f32
    %214 = vector.broadcast %cst_167 : f32 to vector<10x1xf32>
    %215 = arith.mulf %213, %214 : vector<10x1xf32>
    %216 = arith.mulf %207, %207 : vector<10x128xf32>
    %cst_168 = arith.constant dense<0.000000e+00> : vector<10xf32>
    %217 = vector.multi_reduction <add>, %216, %cst_168 [1] : vector<10x128xf32> to vector<10xf32>
    %218 = vector.shape_cast %217 : vector<10xf32> to vector<10x1xf32>
    %cst_169 = arith.constant 0.020833334 : f32
    %219 = vector.broadcast %cst_169 : f32 to vector<10x1xf32>
    %220 = arith.mulf %218, %219 : vector<10x1xf32>
    %221 = arith.mulf %215, %215 : vector<10x1xf32>
    %222 = arith.subf %220, %221 : vector<10x1xf32>
    %223 = vector.broadcast %215 : vector<10x1xf32> to vector<10x128xf32>
    %224 = arith.subf %207, %223 : vector<10x128xf32>
    %cst_170 = arith.constant 9.99999997E-7 : f32
    %225 = vector.broadcast %cst_170 : f32 to vector<10x1xf32>
    %226 = arith.addf %222, %225 : vector<10x1xf32>
    %227 = math.rsqrt %226 : vector<10x1xf32>
    %228 = vector.broadcast %227 : vector<10x1xf32> to vector<10x128xf32>
    %229 = arith.mulf %224, %228 : vector<10x128xf32>
    %230 = vector.broadcast %209 : vector<1x128xf32> to vector<10x128xf32>
    %231 = arith.mulf %229, %230 : vector<10x128xf32>
    %232 = vector.broadcast %211 : vector<1x128xf32> to vector<10x128xf32>
    %233 = arith.addf %231, %232 : vector<10x128xf32>
    %c1_171 = arith.constant 1 : index
    %c0_172 = arith.constant 0 : index
    %c0_173 = arith.constant 0 : index
    %c0_174 = arith.constant 0 : index
    %234 = vector.load %arg7[%c1_171, %c0_172, %c0_173, %c0_174] : memref<2x3x128x64xf32, #tpu.memory_space<vmem>>, vector<1x1x128x64xf32>
    %235 = vector.shape_cast %234 : vector<1x1x128x64xf32> to vector<128x64xf32>
    %cst_175 = arith.constant dense<0.000000e+00> : vector<10x64xf32>
    %236 = tpu.matmul %233, %235, %cst_175 {dimension_numbers = #tpu.dot_dimension_numbers<[1], [0], [0], [1], [0, 0, 1, 1], [], []>} : vector<10x128xf32>, vector<128x64xf32>, vector<10x64xf32> -> vector<10x64xf32>
    %c1_176 = arith.constant 1 : index
    %c0_177 = arith.constant 0 : index
    %c0_178 = arith.constant 0 : index
    %c0_179 = arith.constant 0 : index
    %237 = vector.load %arg8[%c1_176, %c0_177, %c0_178, %c0_179] : memref<2x3x1x64xf32, #tpu.memory_space<vmem>>, vector<1x1x1x64xf32>
    %238 = vector.shape_cast %237 : vector<1x1x1x64xf32> to vector<1x64xf32>
    %239 = vector.broadcast %238 : vector<1x64xf32> to vector<10x64xf32>
    %240 = arith.addf %236, %239 : vector<10x64xf32>
    %c1_180 = arith.constant 1 : index
    %c0_181 = arith.constant 0 : index
    %c0_182 = arith.constant 0 : index
    %c0_183 = arith.constant 0 : index
    %241 = vector.load %arg9[%c1_180, %c0_181, %c0_182, %c0_183] : memref<2x3x128x64xf32, #tpu.memory_space<vmem>>, vector<1x1x128x64xf32>
    %242 = vector.shape_cast %241 : vector<1x1x128x64xf32> to vector<128x64xf32>
    %cst_184 = arith.constant dense<0.000000e+00> : vector<10x64xf32>
    %243 = tpu.matmul %233, %242, %cst_184 {dimension_numbers = #tpu.dot_dimension_numbers<[1], [0], [0], [1], [0, 0, 1, 1], [], []>} : vector<10x128xf32>, vector<128x64xf32>, vector<10x64xf32> -> vector<10x64xf32>
    %c1_185 = arith.constant 1 : index
    %c0_186 = arith.constant 0 : index
    %c0_187 = arith.constant 0 : index
    %c0_188 = arith.constant 0 : index
    %244 = vector.load %arg10[%c1_185, %c0_186, %c0_187, %c0_188] : memref<2x3x1x64xf32, #tpu.memory_space<vmem>>, vector<1x1x1x64xf32>
    %245 = vector.shape_cast %244 : vector<1x1x1x64xf32> to vector<1x64xf32>
    %246 = vector.broadcast %245 : vector<1x64xf32> to vector<10x64xf32>
    %247 = arith.addf %243, %246 : vector<10x64xf32>
    %c1_189 = arith.constant 1 : index
    %c0_190 = arith.constant 0 : index
    %c0_191 = arith.constant 0 : index
    %c0_192 = arith.constant 0 : index
    %248 = vector.load %arg11[%c1_189, %c0_190, %c0_191, %c0_192] : memref<2x3x128x64xf32, #tpu.memory_space<vmem>>, vector<1x1x128x64xf32>
    %249 = vector.shape_cast %248 : vector<1x1x128x64xf32> to vector<128x64xf32>
    %cst_193 = arith.constant dense<0.000000e+00> : vector<10x64xf32>
    %250 = tpu.matmul %233, %249, %cst_193 {dimension_numbers = #tpu.dot_dimension_numbers<[1], [0], [0], [1], [0, 0, 1, 1], [], []>} : vector<10x128xf32>, vector<128x64xf32>, vector<10x64xf32> -> vector<10x64xf32>
    %c1_194 = arith.constant 1 : index
    %c0_195 = arith.constant 0 : index
    %c0_196 = arith.constant 0 : index
    %c0_197 = arith.constant 0 : index
    %251 = vector.load %arg12[%c1_194, %c0_195, %c0_196, %c0_197] : memref<2x3x1x64xf32, #tpu.memory_space<vmem>>, vector<1x1x1x64xf32>
    %252 = vector.shape_cast %251 : vector<1x1x1x64xf32> to vector<1x64xf32>
    %253 = vector.broadcast %252 : vector<1x64xf32> to vector<10x64xf32>
    %254 = arith.addf %250, %253 : vector<10x64xf32>
    %255 = tpu.transpose %247, [1, 0] : vector<10x64xf32> -> vector<64x10xf32>
    %cst_198 = arith.constant dense<0.000000e+00> : vector<10x10xf32>
    %256 = tpu.matmul %240, %255, %cst_198 {dimension_numbers = #tpu.dot_dimension_numbers<[1], [0], [0], [1], [0, 0, 1, 1], [], []>} : vector<10x64xf32>, vector<64x10xf32>, vector<10x10xf32> -> vector<10x10xf32>
    %cst_199 = arith.constant 2.500000e-01 : f32
    %257 = vector.broadcast %cst_199 : f32 to vector<10x10xf32>
    %258 = arith.mulf %256, %257 : vector<10x10xf32>
    %259 = arith.addf %258, %8 : vector<10x10xf32>
    %cst_200 = arith.constant dense<0xFF800000> : vector<10xf32>
    %260 = vector.multi_reduction <maximumf>, %259, %cst_200 [1] : vector<10x10xf32> to vector<10xf32>
    %261 = vector.shape_cast %260 : vector<10xf32> to vector<10x1xf32>
    %262 = vector.broadcast %261 : vector<10x1xf32> to vector<10x10xf32>
    %263 = arith.subf %259, %262 : vector<10x10xf32>
    %264 = math.exp %263 : vector<10x10xf32>
    %cst_201 = arith.constant dense<0.000000e+00> : vector<10xf32>
    %265 = vector.multi_reduction <add>, %264, %cst_201 [1] : vector<10x10xf32> to vector<10xf32>
    %266 = vector.shape_cast %265 : vector<10xf32> to vector<10x1xf32>
    %267 = vector.broadcast %266 : vector<10x1xf32> to vector<10x10xf32>
    %268 = arith.divf %264, %267 : vector<10x10xf32>
    %cst_202 = arith.constant dense<0.000000e+00> : vector<10x64xf32>
    %269 = tpu.matmul %268, %254, %cst_202 {dimension_numbers = #tpu.dot_dimension_numbers<[1], [0], [0], [1], [0, 0, 1, 1], [], []>} : vector<10x10xf32>, vector<10x64xf32>, vector<10x64xf32> -> vector<10x64xf32>
    %c1_203 = arith.constant 1 : index
    %c0_204 = arith.constant 0 : index
    %c0_205 = arith.constant 0 : index
    %c0_206 = arith.constant 0 : index
    %270 = vector.load %arg13[%c1_203, %c0_204, %c0_205, %c0_206] : memref<2x3x64x128xf32, #tpu.memory_space<vmem>>, vector<1x1x64x128xf32>
    %271 = vector.shape_cast %270 : vector<1x1x64x128xf32> to vector<64x128xf32>
    %cst_207 = arith.constant dense<0.000000e+00> : vector<10x128xf32>
    %272 = tpu.matmul %269, %271, %cst_207 {dimension_numbers = #tpu.dot_dimension_numbers<[1], [0], [0], [1], [0, 0, 1, 1], [], []>} : vector<10x64xf32>, vector<64x128xf32>, vector<10x128xf32> -> vector<10x128xf32>
    %c1_208 = arith.constant 1 : index
    %c1_209 = arith.constant 1 : index
    %c0_210 = arith.constant 0 : index
    %c0_211 = arith.constant 0 : index
    %273 = vector.load %arg7[%c1_208, %c1_209, %c0_210, %c0_211] : memref<2x3x128x64xf32, #tpu.memory_space<vmem>>, vector<1x1x128x64xf32>
    %274 = vector.shape_cast %273 : vector<1x1x128x64xf32> to vector<128x64xf32>
    %cst_212 = arith.constant dense<0.000000e+00> : vector<10x64xf32>
    %275 = tpu.matmul %233, %274, %cst_212 {dimension_numbers = #tpu.dot_dimension_numbers<[1], [0], [0], [1], [0, 0, 1, 1], [], []>} : vector<10x128xf32>, vector<128x64xf32>, vector<10x64xf32> -> vector<10x64xf32>
    %c1_213 = arith.constant 1 : index
    %c1_214 = arith.constant 1 : index
    %c0_215 = arith.constant 0 : index
    %c0_216 = arith.constant 0 : index
    %276 = vector.load %arg8[%c1_213, %c1_214, %c0_215, %c0_216] : memref<2x3x1x64xf32, #tpu.memory_space<vmem>>, vector<1x1x1x64xf32>
    %277 = vector.shape_cast %276 : vector<1x1x1x64xf32> to vector<1x64xf32>
    %278 = vector.broadcast %277 : vector<1x64xf32> to vector<10x64xf32>
    %279 = arith.addf %275, %278 : vector<10x64xf32>
    %c1_217 = arith.constant 1 : index
    %c1_218 = arith.constant 1 : index
    %c0_219 = arith.constant 0 : index
    %c0_220 = arith.constant 0 : index
    %280 = vector.load %arg9[%c1_217, %c1_218, %c0_219, %c0_220] : memref<2x3x128x64xf32, #tpu.memory_space<vmem>>, vector<1x1x128x64xf32>
    %281 = vector.shape_cast %280 : vector<1x1x128x64xf32> to vector<128x64xf32>
    %cst_221 = arith.constant dense<0.000000e+00> : vector<10x64xf32>
    %282 = tpu.matmul %233, %281, %cst_221 {dimension_numbers = #tpu.dot_dimension_numbers<[1], [0], [0], [1], [0, 0, 1, 1], [], []>} : vector<10x128xf32>, vector<128x64xf32>, vector<10x64xf32> -> vector<10x64xf32>
    %c1_222 = arith.constant 1 : index
    %c1_223 = arith.constant 1 : index
    %c0_224 = arith.constant 0 : index
    %c0_225 = arith.constant 0 : index
    %283 = vector.load %arg10[%c1_222, %c1_223, %c0_224, %c0_225] : memref<2x3x1x64xf32, #tpu.memory_space<vmem>>, vector<1x1x1x64xf32>
    %284 = vector.shape_cast %283 : vector<1x1x1x64xf32> to vector<1x64xf32>
    %285 = vector.broadcast %284 : vector<1x64xf32> to vector<10x64xf32>
    %286 = arith.addf %282, %285 : vector<10x64xf32>
    %c1_226 = arith.constant 1 : index
    %c1_227 = arith.constant 1 : index
    %c0_228 = arith.constant 0 : index
    %c0_229 = arith.constant 0 : index
    %287 = vector.load %arg11[%c1_226, %c1_227, %c0_228, %c0_229] : memref<2x3x128x64xf32, #tpu.memory_space<vmem>>, vector<1x1x128x64xf32>
    %288 = vector.shape_cast %287 : vector<1x1x128x64xf32> to vector<128x64xf32>
    %cst_230 = arith.constant dense<0.000000e+00> : vector<10x64xf32>
    %289 = tpu.matmul %233, %288, %cst_230 {dimension_numbers = #tpu.dot_dimension_numbers<[1], [0], [0], [1], [0, 0, 1, 1], [], []>} : vector<10x128xf32>, vector<128x64xf32>, vector<10x64xf32> -> vector<10x64xf32>
    %c1_231 = arith.constant 1 : index
    %c1_232 = arith.constant 1 : index
    %c0_233 = arith.constant 0 : index
    %c0_234 = arith.constant 0 : index
    %290 = vector.load %arg12[%c1_231, %c1_232, %c0_233, %c0_234] : memref<2x3x1x64xf32, #tpu.memory_space<vmem>>, vector<1x1x1x64xf32>
    %291 = vector.shape_cast %290 : vector<1x1x1x64xf32> to vector<1x64xf32>
    %292 = vector.broadcast %291 : vector<1x64xf32> to vector<10x64xf32>
    %293 = arith.addf %289, %292 : vector<10x64xf32>
    %294 = tpu.transpose %286, [1, 0] : vector<10x64xf32> -> vector<64x10xf32>
    %cst_235 = arith.constant dense<0.000000e+00> : vector<10x10xf32>
    %295 = tpu.matmul %279, %294, %cst_235 {dimension_numbers = #tpu.dot_dimension_numbers<[1], [0], [0], [1], [0, 0, 1, 1], [], []>} : vector<10x64xf32>, vector<64x10xf32>, vector<10x10xf32> -> vector<10x10xf32>
    %cst_236 = arith.constant 2.500000e-01 : f32
    %296 = vector.broadcast %cst_236 : f32 to vector<10x10xf32>
    %297 = arith.mulf %295, %296 : vector<10x10xf32>
    %298 = arith.addf %297, %8 : vector<10x10xf32>
    %cst_237 = arith.constant dense<0xFF800000> : vector<10xf32>
    %299 = vector.multi_reduction <maximumf>, %298, %cst_237 [1] : vector<10x10xf32> to vector<10xf32>
    %300 = vector.shape_cast %299 : vector<10xf32> to vector<10x1xf32>
    %301 = vector.broadcast %300 : vector<10x1xf32> to vector<10x10xf32>
    %302 = arith.subf %298, %301 : vector<10x10xf32>
    %303 = math.exp %302 : vector<10x10xf32>
    %cst_238 = arith.constant dense<0.000000e+00> : vector<10xf32>
    %304 = vector.multi_reduction <add>, %303, %cst_238 [1] : vector<10x10xf32> to vector<10xf32>
    %305 = vector.shape_cast %304 : vector<10xf32> to vector<10x1xf32>
    %306 = vector.broadcast %305 : vector<10x1xf32> to vector<10x10xf32>
    %307 = arith.divf %303, %306 : vector<10x10xf32>
    %cst_239 = arith.constant dense<0.000000e+00> : vector<10x64xf32>
    %308 = tpu.matmul %307, %293, %cst_239 {dimension_numbers = #tpu.dot_dimension_numbers<[1], [0], [0], [1], [0, 0, 1, 1], [], []>} : vector<10x10xf32>, vector<10x64xf32>, vector<10x64xf32> -> vector<10x64xf32>
    %c1_240 = arith.constant 1 : index
    %c1_241 = arith.constant 1 : index
    %c0_242 = arith.constant 0 : index
    %c0_243 = arith.constant 0 : index
    %309 = vector.load %arg13[%c1_240, %c1_241, %c0_242, %c0_243] : memref<2x3x64x128xf32, #tpu.memory_space<vmem>>, vector<1x1x64x128xf32>
    %310 = vector.shape_cast %309 : vector<1x1x64x128xf32> to vector<64x128xf32>
    %cst_244 = arith.constant dense<0.000000e+00> : vector<10x128xf32>
    %311 = tpu.matmul %308, %310, %cst_244 {dimension_numbers = #tpu.dot_dimension_numbers<[1], [0], [0], [1], [0, 0, 1, 1], [], []>} : vector<10x64xf32>, vector<64x128xf32>, vector<10x128xf32> -> vector<10x128xf32>
    %312 = arith.addf %272, %311 : vector<10x128xf32>
    %c1_245 = arith.constant 1 : index
    %c2_246 = arith.constant 2 : index
    %c0_247 = arith.constant 0 : index
    %c0_248 = arith.constant 0 : index
    %313 = vector.load %arg7[%c1_245, %c2_246, %c0_247, %c0_248] : memref<2x3x128x64xf32, #tpu.memory_space<vmem>>, vector<1x1x128x64xf32>
    %314 = vector.shape_cast %313 : vector<1x1x128x64xf32> to vector<128x64xf32>
    %cst_249 = arith.constant dense<0.000000e+00> : vector<10x64xf32>
    %315 = tpu.matmul %233, %314, %cst_249 {dimension_numbers = #tpu.dot_dimension_numbers<[1], [0], [0], [1], [0, 0, 1, 1], [], []>} : vector<10x128xf32>, vector<128x64xf32>, vector<10x64xf32> -> vector<10x64xf32>
    %c1_250 = arith.constant 1 : index
    %c2_251 = arith.constant 2 : index
    %c0_252 = arith.constant 0 : index
    %c0_253 = arith.constant 0 : index
    %316 = vector.load %arg8[%c1_250, %c2_251, %c0_252, %c0_253] : memref<2x3x1x64xf32, #tpu.memory_space<vmem>>, vector<1x1x1x64xf32>
    %317 = vector.shape_cast %316 : vector<1x1x1x64xf32> to vector<1x64xf32>
    %318 = vector.broadcast %317 : vector<1x64xf32> to vector<10x64xf32>
    %319 = arith.addf %315, %318 : vector<10x64xf32>
    %c1_254 = arith.constant 1 : index
    %c2_255 = arith.constant 2 : index
    %c0_256 = arith.constant 0 : index
    %c0_257 = arith.constant 0 : index
    %320 = vector.load %arg9[%c1_254, %c2_255, %c0_256, %c0_257] : memref<2x3x128x64xf32, #tpu.memory_space<vmem>>, vector<1x1x128x64xf32>
    %321 = vector.shape_cast %320 : vector<1x1x128x64xf32> to vector<128x64xf32>
    %cst_258 = arith.constant dense<0.000000e+00> : vector<10x64xf32>
    %322 = tpu.matmul %233, %321, %cst_258 {dimension_numbers = #tpu.dot_dimension_numbers<[1], [0], [0], [1], [0, 0, 1, 1], [], []>} : vector<10x128xf32>, vector<128x64xf32>, vector<10x64xf32> -> vector<10x64xf32>
    %c1_259 = arith.constant 1 : index
    %c2_260 = arith.constant 2 : index
    %c0_261 = arith.constant 0 : index
    %c0_262 = arith.constant 0 : index
    %323 = vector.load %arg10[%c1_259, %c2_260, %c0_261, %c0_262] : memref<2x3x1x64xf32, #tpu.memory_space<vmem>>, vector<1x1x1x64xf32>
    %324 = vector.shape_cast %323 : vector<1x1x1x64xf32> to vector<1x64xf32>
    %325 = vector.broadcast %324 : vector<1x64xf32> to vector<10x64xf32>
    %326 = arith.addf %322, %325 : vector<10x64xf32>
    %c1_263 = arith.constant 1 : index
    %c2_264 = arith.constant 2 : index
    %c0_265 = arith.constant 0 : index
    %c0_266 = arith.constant 0 : index
    %327 = vector.load %arg11[%c1_263, %c2_264, %c0_265, %c0_266] : memref<2x3x128x64xf32, #tpu.memory_space<vmem>>, vector<1x1x128x64xf32>
    %328 = vector.shape_cast %327 : vector<1x1x128x64xf32> to vector<128x64xf32>
    %cst_267 = arith.constant dense<0.000000e+00> : vector<10x64xf32>
    %329 = tpu.matmul %233, %328, %cst_267 {dimension_numbers = #tpu.dot_dimension_numbers<[1], [0], [0], [1], [0, 0, 1, 1], [], []>} : vector<10x128xf32>, vector<128x64xf32>, vector<10x64xf32> -> vector<10x64xf32>
    %c1_268 = arith.constant 1 : index
    %c2_269 = arith.constant 2 : index
    %c0_270 = arith.constant 0 : index
    %c0_271 = arith.constant 0 : index
    %330 = vector.load %arg12[%c1_268, %c2_269, %c0_270, %c0_271] : memref<2x3x1x64xf32, #tpu.memory_space<vmem>>, vector<1x1x1x64xf32>
    %331 = vector.shape_cast %330 : vector<1x1x1x64xf32> to vector<1x64xf32>
    %332 = vector.broadcast %331 : vector<1x64xf32> to vector<10x64xf32>
    %333 = arith.addf %329, %332 : vector<10x64xf32>
    %334 = tpu.transpose %326, [1, 0] : vector<10x64xf32> -> vector<64x10xf32>
    %cst_272 = arith.constant dense<0.000000e+00> : vector<10x10xf32>
    %335 = tpu.matmul %319, %334, %cst_272 {dimension_numbers = #tpu.dot_dimension_numbers<[1], [0], [0], [1], [0, 0, 1, 1], [], []>} : vector<10x64xf32>, vector<64x10xf32>, vector<10x10xf32> -> vector<10x10xf32>
    %cst_273 = arith.constant 2.500000e-01 : f32
    %336 = vector.broadcast %cst_273 : f32 to vector<10x10xf32>
    %337 = arith.mulf %335, %336 : vector<10x10xf32>
    %338 = arith.addf %337, %8 : vector<10x10xf32>
    %cst_274 = arith.constant dense<0xFF800000> : vector<10xf32>
    %339 = vector.multi_reduction <maximumf>, %338, %cst_274 [1] : vector<10x10xf32> to vector<10xf32>
    %340 = vector.shape_cast %339 : vector<10xf32> to vector<10x1xf32>
    %341 = vector.broadcast %340 : vector<10x1xf32> to vector<10x10xf32>
    %342 = arith.subf %338, %341 : vector<10x10xf32>
    %343 = math.exp %342 : vector<10x10xf32>
    %cst_275 = arith.constant dense<0.000000e+00> : vector<10xf32>
    %344 = vector.multi_reduction <add>, %343, %cst_275 [1] : vector<10x10xf32> to vector<10xf32>
    %345 = vector.shape_cast %344 : vector<10xf32> to vector<10x1xf32>
    %346 = vector.broadcast %345 : vector<10x1xf32> to vector<10x10xf32>
    %347 = arith.divf %343, %346 : vector<10x10xf32>
    %cst_276 = arith.constant dense<0.000000e+00> : vector<10x64xf32>
    %348 = tpu.matmul %347, %333, %cst_276 {dimension_numbers = #tpu.dot_dimension_numbers<[1], [0], [0], [1], [0, 0, 1, 1], [], []>} : vector<10x10xf32>, vector<10x64xf32>, vector<10x64xf32> -> vector<10x64xf32>
    %c1_277 = arith.constant 1 : index
    %c2_278 = arith.constant 2 : index
    %c0_279 = arith.constant 0 : index
    %c0_280 = arith.constant 0 : index
    %349 = vector.load %arg13[%c1_277, %c2_278, %c0_279, %c0_280] : memref<2x3x64x128xf32, #tpu.memory_space<vmem>>, vector<1x1x64x128xf32>
    %350 = vector.shape_cast %349 : vector<1x1x64x128xf32> to vector<64x128xf32>
    %cst_281 = arith.constant dense<0.000000e+00> : vector<10x128xf32>
    %351 = tpu.matmul %348, %350, %cst_281 {dimension_numbers = #tpu.dot_dimension_numbers<[1], [0], [0], [1], [0, 0, 1, 1], [], []>} : vector<10x64xf32>, vector<64x128xf32>, vector<10x128xf32> -> vector<10x128xf32>
    %352 = arith.addf %312, %351 : vector<10x128xf32>
    %353 = arith.addf %207, %352 : vector<10x128xf32>
    %c1_282 = arith.constant 1 : index
    %c0_283 = arith.constant 0 : index
    %c0_284 = arith.constant 0 : index
    %354 = vector.load %arg14[%c1_282, %c0_283, %c0_284] : memref<2x1x128xf32, #tpu.memory_space<vmem>>, vector<1x1x128xf32>
    %355 = vector.shape_cast %354 : vector<1x1x128xf32> to vector<1x128xf32>
    %356 = vector.broadcast %355 : vector<1x128xf32> to vector<10x128xf32>
    %357 = arith.addf %353, %356 : vector<10x128xf32>
    %c1_285 = arith.constant 1 : index
    %c0_286 = arith.constant 0 : index
    %c0_287 = arith.constant 0 : index
    %358 = vector.load %arg15[%c1_285, %c0_286, %c0_287] : memref<2x1x128xf32, #tpu.memory_space<vmem>>, vector<1x1x128xf32>
    %359 = vector.shape_cast %358 : vector<1x1x128xf32> to vector<1x128xf32>
    %c1_288 = arith.constant 1 : index
    %c0_289 = arith.constant 0 : index
    %c0_290 = arith.constant 0 : index
    %360 = vector.load %arg16[%c1_288, %c0_289, %c0_290] : memref<2x1x128xf32, #tpu.memory_space<vmem>>, vector<1x1x128xf32>
    %361 = vector.shape_cast %360 : vector<1x1x128xf32> to vector<1x128xf32>
    %cst_291 = arith.constant dense<0.000000e+00> : vector<10xf32>
    %362 = vector.multi_reduction <add>, %357, %cst_291 [1] : vector<10x128xf32> to vector<10xf32>
    %363 = vector.shape_cast %362 : vector<10xf32> to vector<10x1xf32>
    %cst_292 = arith.constant 0.020833334 : f32
    %364 = vector.broadcast %cst_292 : f32 to vector<10x1xf32>
    %365 = arith.mulf %363, %364 : vector<10x1xf32>
    %366 = arith.mulf %357, %357 : vector<10x128xf32>
    %cst_293 = arith.constant dense<0.000000e+00> : vector<10xf32>
    %367 = vector.multi_reduction <add>, %366, %cst_293 [1] : vector<10x128xf32> to vector<10xf32>
    %368 = vector.shape_cast %367 : vector<10xf32> to vector<10x1xf32>
    %cst_294 = arith.constant 0.020833334 : f32
    %369 = vector.broadcast %cst_294 : f32 to vector<10x1xf32>
    %370 = arith.mulf %368, %369 : vector<10x1xf32>
    %371 = arith.mulf %365, %365 : vector<10x1xf32>
    %372 = arith.subf %370, %371 : vector<10x1xf32>
    %373 = vector.broadcast %365 : vector<10x1xf32> to vector<10x128xf32>
    %374 = arith.subf %357, %373 : vector<10x128xf32>
    %cst_295 = arith.constant 9.99999997E-7 : f32
    %375 = vector.broadcast %cst_295 : f32 to vector<10x1xf32>
    %376 = arith.addf %372, %375 : vector<10x1xf32>
    %377 = math.rsqrt %376 : vector<10x1xf32>
    %378 = vector.broadcast %377 : vector<10x1xf32> to vector<10x128xf32>
    %379 = arith.mulf %374, %378 : vector<10x128xf32>
    %380 = vector.broadcast %359 : vector<1x128xf32> to vector<10x128xf32>
    %381 = arith.mulf %379, %380 : vector<10x128xf32>
    %382 = vector.broadcast %361 : vector<1x128xf32> to vector<10x128xf32>
    %383 = arith.addf %381, %382 : vector<10x128xf32>
    %c1_296 = arith.constant 1 : index
    %c0_297 = arith.constant 0 : index
    %c0_298 = arith.constant 0 : index
    %384 = vector.load %arg17[%c1_296, %c0_297, %c0_298] : memref<2x128x256xf32, #tpu.memory_space<vmem>>, vector<1x128x256xf32>
    %385 = vector.shape_cast %384 : vector<1x128x256xf32> to vector<128x256xf32>
    %cst_299 = arith.constant dense<0.000000e+00> : vector<10x256xf32>
    %386 = tpu.matmul %383, %385, %cst_299 {dimension_numbers = #tpu.dot_dimension_numbers<[1], [0], [0], [1], [0, 0, 1, 1], [], []>} : vector<10x128xf32>, vector<128x256xf32>, vector<10x256xf32> -> vector<10x256xf32>
    %c1_300 = arith.constant 1 : index
    %c0_301 = arith.constant 0 : index
    %c0_302 = arith.constant 0 : index
    %387 = vector.load %arg18[%c1_300, %c0_301, %c0_302] : memref<2x1x256xf32, #tpu.memory_space<vmem>>, vector<1x1x256xf32>
    %388 = vector.shape_cast %387 : vector<1x1x256xf32> to vector<1x256xf32>
    %389 = vector.broadcast %388 : vector<1x256xf32> to vector<10x256xf32>
    %390 = arith.addf %386, %389 : vector<10x256xf32>
    %cst_303 = arith.constant 5.000000e-01 : f32
    %391 = vector.broadcast %cst_303 : f32 to vector<10x256xf32>
    %392 = arith.mulf %391, %390 : vector<10x256xf32>
    %cst_304 = arith.constant 0.707106769 : f32
    %393 = vector.broadcast %cst_304 : f32 to vector<10x256xf32>
    %394 = arith.mulf %390, %393 : vector<10x256xf32>
    %395 = math.erf %394 : vector<10x256xf32>
    %cst_305 = arith.constant 1.000000e+00 : f32
    %396 = vector.broadcast %cst_305 : f32 to vector<10x256xf32>
    %397 = arith.addf %396, %395 : vector<10x256xf32>
    %398 = arith.mulf %392, %397 : vector<10x256xf32>
    %c1_306 = arith.constant 1 : index
    %c0_307 = arith.constant 0 : index
    %c0_308 = arith.constant 0 : index
    %399 = vector.load %arg19[%c1_306, %c0_307, %c0_308] : memref<2x256x128xf32, #tpu.memory_space<vmem>>, vector<1x256x128xf32>
    %400 = vector.shape_cast %399 : vector<1x256x128xf32> to vector<256x128xf32>
    %cst_309 = arith.constant dense<0.000000e+00> : vector<10x128xf32>
    %401 = tpu.matmul %398, %400, %cst_309 {dimension_numbers = #tpu.dot_dimension_numbers<[1], [0], [0], [1], [0, 0, 1, 1], [], []>} : vector<10x256xf32>, vector<256x128xf32>, vector<10x128xf32> -> vector<10x128xf32>
    %c1_310 = arith.constant 1 : index
    %c0_311 = arith.constant 0 : index
    %c0_312 = arith.constant 0 : index
    %402 = vector.load %arg20[%c1_310, %c0_311, %c0_312] : memref<2x1x128xf32, #tpu.memory_space<vmem>>, vector<1x1x128xf32>
    %403 = vector.shape_cast %402 : vector<1x1x128xf32> to vector<1x128xf32>
    %404 = vector.broadcast %403 : vector<1x128xf32> to vector<10x128xf32>
    %405 = arith.addf %401, %404 : vector<10x128xf32>
    %406 = arith.addf %357, %405 : vector<10x128xf32>
    %407 = vector.extract_strided_slice %406 {offsets = [0, 0], sizes = [1, 128], strides = [1, 1]} : vector<10x128xf32> to vector<1x128xf32>
    %408 = vector.extract_strided_slice %406 {offsets = [5, 0], sizes = [1, 128], strides = [1, 1]} : vector<10x128xf32> to vector<1x128xf32>
    %409 = tpu.concatenate %407, %408 in 0 : vector<1x128xf32>, vector<1x128xf32> -> vector<2x128xf32>
    %c0_313 = arith.constant 0 : index
    %c0_314 = arith.constant 0 : index
    %410 = vector.load %arg21[%c0_313, %c0_314] : memref<1x128xf32, #tpu.memory_space<vmem>>, vector<1x128xf32>
    %c0_315 = arith.constant 0 : index
    %c0_316 = arith.constant 0 : index
    %411 = vector.load %arg22[%c0_315, %c0_316] : memref<1x128xf32, #tpu.memory_space<vmem>>, vector<1x128xf32>
    %cst_317 = arith.constant dense<0.000000e+00> : vector<2xf32>
    %412 = vector.multi_reduction <add>, %409, %cst_317 [1] : vector<2x128xf32> to vector<2xf32>
    %413 = vector.shape_cast %412 : vector<2xf32> to vector<2x1xf32>
    %cst_318 = arith.constant 0.020833334 : f32
    %414 = vector.broadcast %cst_318 : f32 to vector<2x1xf32>
    %415 = arith.mulf %413, %414 : vector<2x1xf32>
    %416 = arith.mulf %409, %409 : vector<2x128xf32>
    %cst_319 = arith.constant dense<0.000000e+00> : vector<2xf32>
    %417 = vector.multi_reduction <add>, %416, %cst_319 [1] : vector<2x128xf32> to vector<2xf32>
    %418 = vector.shape_cast %417 : vector<2xf32> to vector<2x1xf32>
    %cst_320 = arith.constant 0.020833334 : f32
    %419 = vector.broadcast %cst_320 : f32 to vector<2x1xf32>
    %420 = arith.mulf %418, %419 : vector<2x1xf32>
    %421 = arith.mulf %415, %415 : vector<2x1xf32>
    %422 = arith.subf %420, %421 : vector<2x1xf32>
    %423 = vector.broadcast %415 : vector<2x1xf32> to vector<2x128xf32>
    %424 = arith.subf %409, %423 : vector<2x128xf32>
    %cst_321 = arith.constant 9.99999997E-7 : f32
    %425 = vector.broadcast %cst_321 : f32 to vector<2x1xf32>
    %426 = arith.addf %422, %425 : vector<2x1xf32>
    %427 = math.rsqrt %426 : vector<2x1xf32>
    %428 = vector.broadcast %427 : vector<2x1xf32> to vector<2x128xf32>
    %429 = arith.mulf %424, %428 : vector<2x128xf32>
    %430 = vector.broadcast %410 : vector<1x128xf32> to vector<2x128xf32>
    %431 = arith.mulf %429, %430 : vector<2x128xf32>
    %432 = vector.broadcast %411 : vector<1x128xf32> to vector<2x128xf32>
    %433 = arith.addf %431, %432 : vector<2x128xf32>
    %c0_322 = arith.constant 0 : index
    %c0_323 = arith.constant 0 : index
    %434 = vector.load %arg23[%c0_322, %c0_323] : memref<128x128xf32, #tpu.memory_space<vmem>>, vector<128x128xf32>
    %cst_324 = arith.constant dense<0.000000e+00> : vector<2x128xf32>
    %435 = tpu.matmul %433, %434, %cst_324 {dimension_numbers = #tpu.dot_dimension_numbers<[1], [0], [0], [1], [0, 0, 1, 1], [], []>} : vector<2x128xf32>, vector<128x128xf32>, vector<2x128xf32> -> vector<2x128xf32>
    %c0_325 = arith.constant 0 : index
    %c0_326 = arith.constant 0 : index
    %436 = vector.load %arg24[%c0_325, %c0_326] : memref<1x128xf32, #tpu.memory_space<vmem>>, vector<1x128xf32>
    %437 = vector.broadcast %436 : vector<1x128xf32> to vector<2x128xf32>
    %438 = arith.addf %435, %437 : vector<2x128xf32>
    %c0_327 = arith.constant 0 : index
    %c0_328 = arith.constant 0 : index
    %439 = vector.load %arg25[%c0_327, %c0_328] : memref<2x128xf32, #tpu.memory_space<vmem>>, vector<2x128xf32>
    tpu.vector_store %arg25[%c0_327, %c0_328], %438 {strides = array<i32>} : memref<2x128xf32, #tpu.memory_space<vmem>>, vector<2x128xf32>,
    return
  }
}

</mosaic_0001>

<bundles_post_ra>
// kernel: tile.14
= control target key start
LH: loop header
LB: loop body
LE: loop exit
PB: predicated region body
PF: predicated region fallthrough
CT: control target
= control target key end

     0   :  { %s32_s0 = inlined_call_operand.vmem [shape: f32[2,5,128], index: 0, kind: input, shape index: {}]   ;;  %s33_s1 = inlined_call_operand.vmem [shape: f32[10,128], index: 1, kind: output, shape index: {}]  }
   0x1   :  { %v2_v0 = vld [vmem:[%s32_s0] sm:$0x1f]   ;;  %v8_v1 = vld [vmem:[%s32_s0 + $0x8] sm:$0x1f]  }
   0x2   :  { %3 = vst [vmem:[%s33_s1] sm:$0x1f] %v2_v0   ;;  %9 = vst [vmem:[%s33_s1 + $0x5] sm:$0x1f] %v8_v1  }

// kernel: tandem_pss_forward.3
= control target key start
LH: loop header
LB: loop body
LE: loop exit
PB: predicated region body
PF: predicated region fallthrough
CT: control target
= control target key end

     0   :  { %s7581_s0 = inlined_call_operand.vmem [shape: f32[10,768], index: 0, kind: input, shape index: {}]   ;;  %s7582_s1 = inlined_call_operand.vmem [shape: f32[768,128], index: 1, kind: input, shape index: {}]   ;;  %s7583_s2 = inlined_call_operand.vmem [shape: f32[1,128], index: 2, kind: input, shape index: {}]   ;;  %s7584_s3 = inlined_call_operand.vmem [shape: f32[10,128], index: 3, kind: input, shape index: {}]   ;;  %s7585_s4 = inlined_call_operand.vmem [shape: f32[10,10], index: 4, kind: input, shape index: {}]   ;;  %s7586_s5 = inlined_call_operand.vmem [shape: f32[2,1,128], index: 5, kind: input, shape index: {}]   ;;  %s7587_s6 = inlined_call_operand.vmem [shape: f32[2,1,128], index: 6, kind: input, shape index: {}]   ;;  %s7588_s7 = inlined_call_operand.vmem [shape: f32[2,2,128,64], index: 7, kind: input, shape index: {}]   ;;  %s7589_s8 = inlined_call_operand.vmem [shape: f32[2,2,1,64], index: 8, kind: input, shape index: {}]   ;;  %s7590_s9 = inlined_call_operand.vmem [shape: f32[2,2,128,64], index: 9, kind: input, shape index: {}]   ;;  %s7591_s10 = inlined_call_operand.vmem [shape: f32[2,2,1,64], index: 10, kind: input, shape index: {}]   ;;  %s7592_s11 = inlined_call_operand.vmem [shape: f32[2,2,128,64], index: 11, kind: input, shape index: {}]   ;;  %s7593_s12 = inlined_call_operand.vmem [shape: f32[2,2,1,64], index: 12, kind: input, shape index: {}]   ;;  %s7594_s13 = inlined_call_operand.vmem [shape: f32[2,2,64,128], index: 13, kind: input, shape index: {}]   ;;  %s7595_s14 = inlined_call_operand.vmem [shape: f32[2,1,128], index: 14, kind: input, shape index: {}]   ;;  %s7596_s15 = inlined_call_operand.vmem [shape: f32[2,1,128], index: 15, kind: input, shape index: {}]   ;;  %s7597_s16 = inlined_call_operand.vmem [shape: f32[2,1,128], index: 16, kind: input, shape index: {}]   ;;  %s7598_s17 = inlined_call_operand.vmem [shape: f32[2,128,128], index: 17, kind: input, shape index: {}]   ;;  %s7599_s18 = inlined_call_operand.vmem [shape: f32[2,1,128], index: 18, kind: input, shape index: {}]   ;;  %s7600_s19 = inlined_call_operand.vmem [shape: f32[2,128,128], index: 19, kind: input, shape index: {}]   ;;  %s7601_s20 = inlined_call_operand.vmem [shape: f32[2,1,128], index: 20, kind: input, shape index: {}]   ;;  %s7602_s21 = inlined_call_operand.vmem [shape: f32[1,128], index: 21, kind: input, shape index: {}]   ;;  %s7603_s22 = inlined_call_operand.vmem [shape: f32[1,128], index: 22, kind: input, shape index: {}]   ;;  %s7604_s23 = inlined_call_operand.vmem [shape: f32[128,128], index: 23, kind: input, shape index: {}]   ;;  %s7605_s24 = inlined_call_operand.vmem [shape: f32[1,128], index: 24, kind: input, shape index: {}]   ;;  %s7606_s25 = inlined_call_operand.hbm [shape: f32[2,128], index: 25, kind: output, shape index: {}]  }
   0x1   :  { %7617 = sst [smem:[#allocation5_spill]] %s7581_s0 }
   0x2   :  { %7618 = sst [smem:[#allocation6_spill]] %s7582_s1 }
   0x3   :  { %7619 = sst [smem:[#allocation7_spill]] %s7583_s2 }
   0x4   :  { %7620 = sst [smem:[#allocation8_spill]] %s7584_s3 }
   0x5   :  { %7621 = sst [smem:[#allocation9_spill]] %s7585_s4 }
   0x6   :  { %7622 = sst [smem:[#allocation10_spill]] %s7586_s5 }
   0x7   :  { %7623 = sst [smem:[#allocation11_spill]] %s7587_s6 }
   0x8   :  { %7624 = sst [smem:[#allocation12_spill]] %s7588_s7 }
   0x9   :  { %7625 = sst [smem:[#allocation13_spill]] %s7589_s8 }
   0xa   :  { %7626 = sst [smem:[#allocation14_spill]] %s7590_s9 }
   0xb   :  { %7627 = sst [smem:[#allocation15_spill]] %s7605_s24 }
   0xc   :  { %7628 = sst [smem:[#allocation16_spill]] %s7606_s25 }
   0xd   :  { %s7629_s6 = sld [smem:[#allocation6_spill]]  ;;  %s7630_s28 = sld [smem:[#allocation5_spill]] }
  0x13   :  { %v109_v0 = vld [vmem:[%s7629_s6 + $0x80] sm:$0xff]  ;;  %v110_v1 = vld [vmem:[%s7629_s6 + $0x88] sm:$0xff]  ;;  %v111_v11 = vld [vmem:[%s7629_s6 + $0x90] sm:$0xff] }
  0x14   :  { %v93_v2 = vld [vmem:[%s7629_s6] sm:$0xff]  ;;  %v5045_v3 = vpack.c.bf16 %v110_v1, %v109_v0  ;;  %v94_v4 = vld [vmem:[%s7629_s6 + $0x8] sm:$0xff]  ;;  %v112_v13 = vld [vmem:[%s7629_s6 + $0x98] sm:$0xff] }
  0x15   :  { %v141_v5 = vld [vmem:[%s7629_s6 + $0x180] sm:$0xff]  ;;  %v142_v6 = vld [vmem:[%s7629_s6 + $0x188] sm:$0xff]  ;;  %v5047_v7 = vpack.c.bf16 %v94_v4, %v93_v2  ;;  %v95_v14 = vld [vmem:[%s7629_s6 + $0x10] sm:$0xff]  ;;  %v5049_v16 = vpack.c.bf16 %v112_v13, %v111_v11 }
  0x16   :  { %v5077_v8 = vpack.c.bf16 %v142_v6, %v141_v5  ;;  %v125_v9 = vld [vmem:[%s7629_s6 + $0x100] sm:$0xff]  ;;  %v126_v10 = vld [vmem:[%s7629_s6 + $0x108] sm:$0xff]  ;;  %5046 = vmatprep.subr.bf16.mxu0 %v5045_v3  ;;  %v96_v15 = vld [vmem:[%s7629_s6 + $0x18] sm:$0xff] }
  0x17   :  { %v5079_v12 = vpack.c.bf16 %v126_v10, %v125_v9  ;;  %5048 = vmatpush3.bf16.msra.mxu0 %v5047_v7  ;;  %v5051_v17 = vpack.c.bf16 %v96_v15, %v95_v14  ;;  %v143_v18 = vld [vmem:[%s7629_s6 + $0x190] sm:$0xff]  ;;  %v144_v19 = vld [vmem:[%s7629_s6 + $0x198] sm:$0xff]  ;;  %v113_v23 = vld [vmem:[%s7629_s6 + $0xa0] sm:$0xff] }
  0x18   :  { %5078 = vmatprep.subr.bf16.mxu1 %v5077_v8  ;;  %v127_v20 = vld [vmem:[%s7629_s6 + $0x110] sm:$0xff]  ;;  %v5081_v21 = vpack.c.bf16 %v144_v19, %v143_v18  ;;  %v128_v22 = vld [vmem:[%s7629_s6 + $0x118] sm:$0xff]  ;;  %v114_v24 = vld [vmem:[%s7629_s6 + $0xa8] sm:$0xff]  ;;  %5050 = vmatprep.subr.bf16.mxu0 %v5049_v16 }
  0x19   :  { %5080 = vmatpush3.bf16.msra.mxu1 %v5079_v12  ;;  %v5083_v25 = vpack.c.bf16 %v128_v22, %v127_v20  ;;  %v5053_v26 = vpack.c.bf16 %v114_v24, %v113_v23  ;;  %v97_v27 = vld [vmem:[%s7629_s6 + $0x20] sm:$0xff]  ;;  %v98_v28 = vld [vmem:[%s7629_s6 + $0x28] sm:$0xff]  ;;  %v115_v35 = vld [vmem:[%s7629_s6 + $0xb0] sm:$0xff] }
  0x1a   :  { %v145_v29 = vld [vmem:[%s7629_s6 + $0x1a0] sm:$0xff]  ;;  %5082 = vmatprep.subr.bf16.mxu1 %v5081_v21  ;;  %v146_v30 = vld [vmem:[%s7629_s6 + $0x1a8] sm:$0xff]  ;;  %v5055_v33 = vpack.c.bf16 %v98_v28, %v97_v27  ;;  %v116_v36 = vld [vmem:[%s7629_s6 + $0xb8] sm:$0xff] }
  0x1b   :  { %v129_v31 = vld [vmem:[%s7629_s6 + $0x120] sm:$0xff]  ;;  %v130_v32 = vld [vmem:[%s7629_s6 + $0x128] sm:$0xff]  ;;  %5052 = vmatpush3.bf16.msra.mxu0 %v5051_v17  ;;  %v5085_v34 = vpack.c.bf16 %v146_v30, %v145_v29  ;;  %v99_v37 = vld [vmem:[%s7629_s6 + $0x30] sm:$0xff]  ;;  %v5057_v39 = vpack.c.bf16 %v116_v36, %v115_v35 }
  0x1c   :  { %5054 = vmatprep.subr.bf16.mxu0 %v5053_v26  ;;  %v5087_v38 = vpack.c.bf16 %v130_v32, %v129_v31  ;;  %v100_v40 = vld [vmem:[%s7629_s6 + $0x38] sm:$0xff]  ;;  %v147_v41 = vld [vmem:[%s7629_s6 + $0x1b0] sm:$0xff]  ;;  %v117_v46 = vld [vmem:[%s7629_s6 + $0xc0] sm:$0xff] }
  0x1d   :  { %5084 = vmatpush3.bf16.msra.mxu1 %v5083_v25  ;;  %v148_v42 = vld [vmem:[%s7629_s6 + $0x1b8] sm:$0xff]  ;;  %v131_v44 = vld [vmem:[%s7629_s6 + $0x130] sm:$0xff]  ;;  %v118_v47 = vld [vmem:[%s7629_s6 + $0xc8] sm:$0xff]  ;;  %v5059_v48 = vpack.c.bf16 %v100_v40, %v99_v37 }
  0x1e   :  { %5086 = vmatprep.subr.bf16.mxu1 %v5085_v34  ;;  %v5089_v43 = vpack.c.bf16 %v148_v42, %v147_v41  ;;  %v132_v45 = vld [vmem:[%s7629_s6 + $0x138] sm:$0xff]  ;;  %v149_v49 = vld [vmem:[%s7629_s6 + $0x1c0] sm:$0xff]  ;;  %v150_v50 = vld [vmem:[%s7629_s6 + $0x1c8] sm:$0xff]  ;;  %v5061_v52 = vpack.c.bf16 %v118_v47, %v117_v46 }
  0x1f   :  { %5056 = vmatpush3.bf16.msra.mxu0 %v5055_v33  ;;  %v5091_v51 = vpack.c.bf16 %v132_v45, %v131_v44  ;;  %v101_v53 = vld [vmem:[%s7629_s6 + $0x40] sm:$0xff]  ;;  %v102_v54 = vld [vmem:[%s7629_s6 + $0x48] sm:$0xff]  ;;  %v5093_v56 = vpack.c.bf16 %v150_v50, %v149_v49  ;;  %v119_v58 = vld [vmem:[%s7629_s6 + $0xd0] sm:$0xff] }
  0x20   :  { %5058 = vmatprep.subr.bf16.mxu0 %v5057_v39  ;;  %v133_v55 = vld [vmem:[%s7629_s6 + $0x140] sm:$0xff]  ;;  %v134_v57 = vld [vmem:[%s7629_s6 + $0x148] sm:$0xff]  ;;  %v120_v59 = vld [vmem:[%s7629_s6 + $0xd8] sm:$0xff]  ;;  %v5063_v62 = vpack.c.bf16 %v102_v54, %v101_v53 }
  0x21   :  { %5088 = vmatpush3.bf16.msra.mxu1 %v5087_v38  ;;  %v151_v60 = vld [vmem:[%s7629_s6 + $0x1d0] sm:$0xff]  ;;  %v152_v61 = vld [vmem:[%s7629_s6 + $0x1d8] sm:$0xff]  ;;  %v5095_v63 = vpack.c.bf16 %v134_v57, %v133_v55  ;;  %v5065_v0 = vpack.c.bf16 %v120_v59, %v119_v58  ;;  %v121_v6 = vld [vmem:[%s7629_s6 + $0xe0] sm:$0xff] }
  0x22   :  { %5090 = vmatprep.subr.bf16.mxu1 %v5089_v43  ;;  %v103_v1 = vld [vmem:[%s7629_s6 + $0x50] sm:$0xff]  ;;  %v104_v2 = vld [vmem:[%s7629_s6 + $0x58] sm:$0xff]  ;;  %v5097_v4 = vpack.c.bf16 %v152_v61, %v151_v60  ;;  %v122_v7 = vld [vmem:[%s7629_s6 + $0xe8] sm:$0xff] }
  0x23   :  { %5060 = vmatpush3.bf16.msra.mxu0 %v5059_v48  ;;  %v135_v3 = vld [vmem:[%s7629_s6 + $0x150] sm:$0xff]  ;;  %v136_v5 = vld [vmem:[%s7629_s6 + $0x158] sm:$0xff]  ;;  %v153_v8 = vld [vmem:[%s7629_s6 + $0x1e0] sm:$0xff]  ;;  %v5067_v10 = vpack.c.bf16 %v104_v2, %v103_v1  ;;  %v5069_v14 = vpack.c.bf16 %v122_v7, %v121_v6 }
  0x24   :  { %5062 = vmatprep.subr.bf16.mxu0 %v5061_v52  ;;  %v154_v9 = vld [vmem:[%s7629_s6 + $0x1e8] sm:$0xff]  ;;  %v105_v11 = vld [vmem:[%s7629_s6 + $0x60] sm:$0xff]  ;;  %v5099_v13 = vpack.c.bf16 %v136_v5, %v135_v3  ;;  %v123_v19 = vld [vmem:[%s7629_s6 + $0xf0] sm:$0xff] }
  0x25   :  { %5092 = vmatpush3.bf16.msra.mxu1 %v5091_v51  ;;  %v82_v12 = vld [vmem:[%s7630_s28 + $0x8] sm:$0xff]  ;;  %v137_v16 = vld [vmem:[%s7629_s6 + $0x160] sm:$0xff]  ;;  %v5101_v18 = vpack.c.bf16 %v154_v9, %v153_v8  ;;  %v124_v20 = vld [vmem:[%s7629_s6 + $0xf8] sm:$0xff] }
  0x26   :  { %5094 = vmatprep.subr.bf16.mxu1 %v5093_v56  ;;  %v106_v15 = vld [vmem:[%s7629_s6 + $0x68] sm:$0xff]  ;;  %260 = vmatprep.mubr.f32.mxu0 %v82_v12  ;;  %v84_v21 = vld [vmem:[%s7630_s28 + $0x18] sm:$0xff]  ;;  %v155_v22 = vld [vmem:[%s7629_s6 + $0x1f0] sm:$0xff]  ;;  %v5073_v26 = vpack.c.bf16 %v124_v20, %v123_v19 }
  0x27   :  { %5064 = vmatpush3.bf16.msra.mxu0 %v5063_v62  ;;  %v138_v17 = vld [vmem:[%s7629_s6 + $0x168] sm:$0xff]  ;;  %v156_v23 = vld [vmem:[%s7629_s6 + $0x1f8] sm:$0xff]  ;;  %335 = vmatprep.mubr.f32.mxu1 %v84_v21  ;;  %v5071_v24 = vpack.c.bf16 %v106_v15, %v105_v11  ;;  %v107_v27 = vld [vmem:[%s7629_s6 + $0x70] sm:$0xff] }
  0x28   :  { %5066 = vmatprep.subr.bf16.mxu0 %v5065_v0  ;;  %v5103_v25 = vpack.c.bf16 %v138_v17, %v137_v16  ;;  %v108_v28 = vld [vmem:[%s7629_s6 + $0x78] sm:$0xff]  ;;  %v139_v29 = vld [vmem:[%s7629_s6 + $0x170] sm:$0xff]  ;;  %v5105_v30 = vpack.c.bf16 %v156_v23, %v155_v22  ;;  %v173_v32 = vld [vmem:[%s7629_s6 + $0x280] sm:$0xff] }
  0x29   :  { %5096 = vmatpush3.bf16.msra.mxu1 %v5095_v63  ;;  %v140_v31 = vld [vmem:[%s7629_s6 + $0x178] sm:$0xff]  ;;  %v174_v33 = vld [vmem:[%s7629_s6 + $0x288] sm:$0xff]  ;;  %v5075_v34 = vpack.c.bf16 %v108_v28, %v107_v27  ;;  %v157_v37 = vld [vmem:[%s7629_s6 + $0x200] sm:$0xff] }
  0x2a   :  { %5098 = vmatprep.subr.bf16.mxu1 %v5097_v4  ;;  %v5107_v35 = vpack.c.bf16 %v140_v31, %v139_v29  ;;  %v5109_v36 = vpack.c.bf16 %v174_v33, %v173_v32  ;;  %v158_v38 = vld [vmem:[%s7629_s6 + $0x208] sm:$0xff]  ;;  %v175_v39 = vld [vmem:[%s7629_s6 + $0x290] sm:$0xff]  ;;  %v176_v40 = vld [vmem:[%s7629_s6 + $0x298] sm:$0xff] }
  0x2b   :  { %5068 = vmatpush3.bf16.msra.mxu0 %v5067_v10  ;;  %v81_v41 = vld [vmem:[%s7630_s28] sm:$0xff]  ;;  %v5111_v42 = vpack.c.bf16 %v158_v38, %v157_v37  ;;  %v83_v43 = vld [vmem:[%s7630_s28 + $0x10] sm:$0xff]  ;;  %v5113_v44 = vpack.c.bf16 %v176_v40, %v175_v39  ;;  %v160_v46 = vld [vmem:[%s7629_s6 + $0x218] sm:$0xff] }
  0x2c   :  { %5070 = vmatprep.subr.bf16.mxu0 %v5069_v14  ;;  %v159_v45 = vld [vmem:[%s7629_s6 + $0x210] sm:$0xff]  ;;  %v177_v47 = vld [vmem:[%s7629_s6 + $0x2a0] sm:$0xff]  ;;  %v178_v48 = vld [vmem:[%s7629_s6 + $0x2a8] sm:$0xff] }
  0x2d   :  { %5100 = vmatpush3.bf16.msra.mxu1 %v5099_v13  ;;  %v88_v49 = vld [vmem:[%s7630_s28 + $0x38] sm:$0x3]  ;;  %v90_v50 = vld [vmem:[%s7630_s28 + $0x48] sm:$0x3]  ;;  %v5115_v51 = vpack.c.bf16 %v160_v46, %v159_v45  ;;  %v87_v52 = vld [vmem:[%s7630_s28 + $0x30] sm:$0x3] }
  0x2e   :  { %5102 = vmatprep.subr.bf16.mxu1 %v5101_v18 }
  0x2f   :  { %5072 = vmatpush3.bf16.msra.mxu0 %v5071_v24 }
  0x30   :  { %5074 = vmatprep.subr.bf16.mxu0 %v5073_v26 }
  0x31   :  { %5104 = vmatpush3.bf16.msra.mxu1 %v5103_v25 }
  0x32   :  { %5106 = vmatprep.subr.bf16.mxu1 %v5105_v30 }
  0x33   :  { %5076 = vmatpush3.bf16.msra.mxu0 %v5075_v34 }
  0x34   :  { %5110 = vmatprep.subr.bf16.mxu0 %v5109_v36 }
  0x35   :  { %5108 = vmatpush3.bf16.msra.mxu1 %v5107_v35 }
  0x36   :  { %261 = vmatmul.mubr.f32.vlgmr.msra.gmra.mrb[0].mxu0 %v81_v41 }
  0x37   :  { %5112 = vmatpush3.bf16.msra.mxu0 %v5111_v42 }
  0x38   :  { %336 = vmatmul.mubr.f32.vlgmr.msra.gmra.mrb[0].mxu1 %v83_v43 }
  0x39   :  { %30 = vsyncpa [#allocation3], 0  ;;  %5114 = vmatprep.subr.bf16.mxu0 %v5113_v44  ;;  %v5117_v53 = vpack.c.bf16 %v178_v48, %v177_v47  ;;  %v161_v54 = vld [vmem:[%s7629_s6 + $0x220] sm:$0xff]  ;;  %v162_v55 = vld [vmem:[%s7629_s6 + $0x228] sm:$0xff]  ;;  %265 = vmatprep.mubr.f32.mxu0 %v88_v49  ;;  %s7631_s30 = sld [smem:[#allocation12_spill]]  ;;  %s7632_s8 = sld [smem:[#allocation14_spill]] }
  0x3a   :  { %v89_v56 = vld [vmem:[%s7630_s28 + $0x40] sm:$0x3]  ;;  %v179_v57 = vld [vmem:[%s7629_s6 + $0x2b0] sm:$0xff]  ;;  %v180_v58 = vld [vmem:[%s7629_s6 + $0x2b8] sm:$0xff]  ;;  %340 = vmatprep.mubr.f32.mxu1 %v90_v50  ;;  %266 = vmatmul.mubr.f32.gmra.mrb[2].mxu0 %v87_v52  ;;  %v5119_v60 = vpack.c.bf16 %v162_v55, %v161_v54  ;;  %s7633_s5 = sld [smem:[#allocation7_spill]]  ;;  %vm431_vm0 = vcmask 1041408  }
  0x3b   :  { %v86_v59 = vld [vmem:[%s7630_s28 + $0x28] sm:$0xff]  ;;  %5116 = vmatpush3.bf16.msra.mxu0 %v5115_v51  ;;  %v5121_v61 = vpack.c.bf16 %v180_v58, %v179_v57  ;;  %v163_v62 = vld [vmem:[%s7629_s6 + $0x230] sm:$0xff]  ;;  %v164_v63 = vld [vmem:[%s7629_s6 + $0x238] sm:$0xff]  ;;  %s7635_s26 = sld [smem:[#allocation10_spill]]  ;;  %s7636_s4 = sld [smem:[#allocation11_spill]]  ;;  %vm768_vm1 = vcmask 523264  }
  0x3c   :  { %341 = vmatmul.mubr.f32.gmra.mrb[2].mxu1 %v89_v56  ;;  %5118 = vmatprep.subr.bf16.mxu0 %v5117_v53  ;;  %v181_v0 = vld [vmem:[%s7629_s6 + $0x2c0] sm:$0xff]  ;;  %v182_v1 = vld [vmem:[%s7629_s6 + $0x2c8] sm:$0xff]  ;;  %v5123_v2 = vpack.c.bf16 %v164_v63, %v163_v62  ;;  %v183_v6 = vld [vmem:[%s7629_s6 + $0x2d0] sm:$0xff]  ;;  %vm5882_vm3 = vmmov 1   ;;  %s7642_s9 = sld [smem:[#allocation9_spill]]  ;;  %vm864_vm5 = vcmask 74752  }
  0x3d   :  { %410 = vmatprep.mubr.f32.mxu0 %v86_v59  ;;  %v5125_v3 = vpack.c.bf16 %v182_v1, %v181_v0  ;;  %v165_v4 = vld [vmem:[%s7629_s6 + $0x240] sm:$0xff]  ;;  %v166_v5 = vld [vmem:[%s7629_s6 + $0x248] sm:$0xff]  ;;  %v184_v7 = vld [vmem:[%s7629_s6 + $0x2d8] sm:$0xff]  ;;  %vm860_vm6 = vcmask 80896   ;;  %vm3404_vm7 = vcmask 1040384   ;;  %vm5884_vm8 = vmmov 0  }
  0x3e   :  { %v5127_v8 = vpack.c.bf16 %v166_v5, %v165_v4  ;;  %v5129_v9 = vpack.c.bf16 %v184_v7, %v183_v6  ;;  %v167_v10 = vld [vmem:[%s7629_s6 + $0x250] sm:$0xff]  ;;  %v168_v11 = vld [vmem:[%s7629_s6 + $0x258] sm:$0xff]  ;;  %v185_v12 = vld [vmem:[%s7629_s6 + $0x2e0] sm:$0xff] }
  0x3f   :  { %5120 = vmatpush3.bf16.msra.mxu0 %v5119_v60  ;;  %v186_v13 = vld [vmem:[%s7629_s6 + $0x2e8] sm:$0xff]  ;;  %v5131_v14 = vpack.c.bf16 %v168_v11, %v167_v10  ;;  %v169_v16 = vld [vmem:[%s7629_s6 + $0x260] sm:$0xff]  ;;  %v187_v18 = vld [vmem:[%s7629_s6 + $0x2f0] sm:$0xff] }
  0x40   :  { %5122 = vmatprep.subr.bf16.mxu0 %v5121_v61  ;;  %v5133_v15 = vpack.c.bf16 %v186_v13, %v185_v12  ;;  %v170_v17 = vld [vmem:[%s7629_s6 + $0x268] sm:$0xff]  ;;  %v188_v19 = vld [vmem:[%s7629_s6 + $0x2f8] sm:$0xff]  ;;  %v171_v22 = vld [vmem:[%s7629_s6 + $0x270] sm:$0xff] }
  0x41   :  { %v5135_v20 = vpack.c.bf16 %v170_v17, %v169_v16  ;;  %v5137_v21 = vpack.c.bf16 %v188_v19, %v187_v18  ;;  %v172_v23 = vld [vmem:[%s7629_s6 + $0x278] sm:$0xff]  ;;  %v85_v25 = vld [vmem:[%s7630_s28 + $0x20] sm:$0xff]  ;;  %v91_v27 = vld [vmem:[%s7630_s28 + $0x50] sm:$0x3]  ;;  %s7634_s6 = sld [smem:[#allocation8_spill]] }
  0x42   :  { %v5139_v24 = vpack.c.bf16 %v172_v23, %v171_v22  ;;  %v92_v26 = vld [vmem:[%s7630_s28 + $0x58] sm:$0x3]  ;;  %v474_v28 = vld [vmem:[%s7631_s30] sm:$0xff]  ;;  %v475_v29 = vld [vmem:[%s7631_s30 + $0x8] sm:$0xff] }
  0x43   :  { %5124 = vmatpush3.bf16.msra.mxu0 %v5123_v2  ;;  %v572_v30 = vld [vmem:[%s7632_s8] sm:$0xff]  ;;  %v5141_v31 = vpack.c.bf16 %v475_v29, %v474_v28  ;;  %v573_v32 = vld [vmem:[%s7632_s8 + $0x8] sm:$0xff]  ;;  %v477_v4 = vld [vmem:[%s7631_s30 + $0x18] sm:$0xff] }
  0x44   :  { %5126 = vmatprep.subr.bf16.mxu0 %v5125_v3  ;;  %v5173_v33 = vpack.c.bf16 %v573_v32, %v572_v30  ;;  %v3545_v35 = vld [vmem:[%s7633_s5] ss:$0 sm:$0xff]  ;;  %v476_v3 = vld [vmem:[%s7631_s30 + $0x10] sm:$0xff]  ;;  %v575_v7 = vld [vmem:[%s7632_s8 + $0x18] sm:$0xff] }
  0x45   :  { %5142 = vmatprep.subr.bf16.mxu1 %v5141_v31  ;;  %v574_v5 = vld [vmem:[%s7632_s8 + $0x10] sm:$0xff]  ;;  %v5145_v6 = vpack.c.bf16 %v477_v4, %v476_v3  ;;  %v479_v10 = vld [vmem:[%s7631_s30 + $0x28] sm:$0xff]  ;;  %v576_v12 = vld [vmem:[%s7632_s8 + $0x20] sm:$0xff] }
  0x46   :  { %5144 = vmatpush3.bf16.msra.mxu1 %v5141_v31  ;;  %v577_v13 = vld [vmem:[%s7632_s8 + $0x28] sm:$0xff]  ;;  %v481_v16 = vld [vmem:[%s7631_s30 + $0x38] sm:$0xff]  ;;  %v578_v17 = vld [vmem:[%s7632_s8 + $0x30] sm:$0xff] }
  0x47   :  { %5128 = vmatpush3.bf16.msra.mxu0 %v5127_v8  ;;  %v421_v54 = vld [vmem:[%s7634_s6] sm:$0xff]  ;;  %v422_v60 = vld [vmem:[%s7634_s6 + $0x8] sm:$0x3]  ;;  %v5177_v8 = vpack.c.bf16 %v575_v7, %v574_v5  ;;  %5146 = vmatprep.subr.bf16.mxu1 %v5145_v6  ;;  %v579_v19 = vld [vmem:[%s7632_s8 + $0x38] sm:$0xff]  ;;  %s7637_s6 = sld [smem:[#allocation13_spill]] }
  0x48   :  { %5130 = vmatprep.subr.bf16.mxu0 %v5129_v9  ;;  %v478_v9 = vld [vmem:[%s7631_s30 + $0x20] sm:$0xff]  ;;  %v483_v22 = vld [vmem:[%s7631_s30 + $0x48] sm:$0xff]  ;;  %v485_v28 = vld [vmem:[%s7631_s30 + $0x58] sm:$0xff] }
  0x49   :  { %v5149_v11 = vpack.c.bf16 %v479_v10, %v478_v9  ;;  %v580_v23 = vld [vmem:[%s7632_s8 + $0x40] sm:$0xff]  ;;  %v582_v29 = vld [vmem:[%s7632_s8 + $0x50] sm:$0xff]  ;;  %v583_v31 = vld [vmem:[%s7632_s8 + $0x58] sm:$0xff] }
  0x4a   :  { %5148 = vmatpush3.bf16.msra.mxu1 %v5145_v6  ;;  %v5193_v32 = vpack.c.bf16 %v583_v31, %v582_v29  ;;  %v3546_v5 = vld [vmem:[%s7635_s26] ss:$0 sm:$0xff]  ;;  %v3582_v29 = vld [vmem:[%s7632_s8 + $0xb0] sm:$0xff]  ;;  %vm6582_vm2 = vmpackc.low %vm768_vm1, %vm768_vm1 }
  0x4b   :  { %5132 = vmatpush3.bf16.msra.mxu0 %v5131_v14  ;;  %v5181_v14 = vpack.c.bf16 %v577_v13, %v576_v12  ;;  %5150 = vmatprep.subr.bf16.mxu1 %v5149_v11  ;;  %v3547_v7 = vld [vmem:[%s7636_s4] ss:$0 sm:$0xff]  ;;  %v672_v13 = vld [vmem:[%s7592_s11 + $0x10] sm:$0xff]  ;;  %vm6599_vm4 = vmpackc.low %vm431_vm0, %vm5882_vm3 }
  0x4c   :  { %5134 = vmatprep.subr.bf16.mxu0 %v5133_v15  ;;  %v480_v15 = vld [vmem:[%s7631_s30 + $0x30] sm:$0xff] }
  0x4d   :  { %v5153_v18 = vpack.c.bf16 %v481_v16, %v480_v15  ;;  %v673_v15 = vld [vmem:[%s7592_s11 + $0x18] sm:$0xff]  ;;  %v3578_v16 = vld [vmem:[%s7632_s8 + $0x90] sm:$0xff] }
  0x4e   :  { %5152 = vmatpush3.bf16.msra.mxu1 %v5149_v11 }
  0x4f   :  { %5136 = vmatpush3.bf16.msra.mxu0 %v5135_v20  ;;  %v5185_v20 = vpack.c.bf16 %v579_v19, %v578_v17  ;;  %5154 = vmatprep.subr.bf16.mxu1 %v5153_v18  ;;  %v3579_v17 = vld [vmem:[%s7632_s8 + $0x98] sm:$0xff]  ;;  %v674_v19 = vld [vmem:[%s7592_s11 + $0x20] sm:$0xff] }
  0x50   :  { %5138 = vmatprep.subr.bf16.mxu0 %v5137_v21  ;;  %v482_v21 = vld [vmem:[%s7631_s30 + $0x40] sm:$0xff] }
  0x52   :  { %5156 = vmatpush3.bf16.msra.mxu1 %v5153_v18 }
  0x53   :  { %5140 = vmatpush3.bf16.msra.mxu0 %v5139_v24  ;;  %v5157_v24 = vpack.c.bf16 %v483_v22, %v482_v21  ;;  %v5285_v21 = vpack.c.bf16 %v3579_v17, %v3578_v16  ;;  %v675_v22 = vld [vmem:[%s7592_s11 + $0x28] sm:$0xff] }
  0x54   :  { %5174 = vmatprep.subr.bf16.mxu0 %v5173_v33 }
  0x55   :  { %5158 = vmatprep.subr.bf16.mxu1 %v5157_v24 }
  0x56   :  { %411 = vmatmul.mubr.f32.vlgmr.msra.gmra.mrb[4].mxu0 %v85_v25  ;;  %v581_v25 = vld [vmem:[%s7632_s8 + $0x48] sm:$0xff]  ;;  %5160 = vmatpush3.bf16.msra.mxu1 %v5157_v24 }
  0x57   :  { %415 = vmatprep.mubr.f32.mxu0 %v92_v26  ;;  %5176 = vmatpush3.bf16.msra.mxu0 %v5173_v33  ;;  %v5189_v26 = vpack.c.bf16 %v581_v25, %v580_v23  ;;  %v486_v33 = vld [vmem:[%s7631_s30 + $0x60] sm:$0xff]  ;;  %v3581_v24 = vld [vmem:[%s7632_s8 + $0xa8] sm:$0xff]  ;;  %v5213_v25 = vpack.c.bf16 %v675_v22, %v674_v19 }
  0x58   :  { %5178 = vmatprep.subr.bf16.mxu0 %v5177_v8  ;;  %v3580_v23 = vld [vmem:[%s7632_s8 + $0xa0] sm:$0xff] }
  0x5a   :  { %416 = vmatmul.mubr.f32.gmra.mrb[6].mxu0 %v91_v27  ;;  %v484_v27 = vld [vmem:[%s7631_s30 + $0x50] sm:$0xff] }
  0x5b   :  { %5180 = vmatpush3.bf16.msra.mxu0 %v5177_v8  ;;  %v5161_v30 = vpack.c.bf16 %v485_v28, %v484_v27  ;;  %v676_v27 = vld [vmem:[%s7592_s11 + $0x30] sm:$0xff]  ;;  %v677_v28 = vld [vmem:[%s7592_s11 + $0x38] sm:$0xff] }
  0x5c   :  { %5182 = vmatprep.subr.bf16.mxu0 %v5181_v14  ;;  %v5217_v31 = vpack.c.bf16 %v677_v28, %v676_v27 }
  0x5d   :  { %5162 = vmatprep.subr.bf16.mxu1 %v5161_v30 }
  0x5e   :  { %5164 = vmatpush3.bf16.msra.mxu1 %v5161_v30  ;;  %v3583_v30 = vld [vmem:[%s7632_s8 + $0xb8] sm:$0xff] }
  0x5f   :  { %5184 = vmatpush3.bf16.msra.mxu0 %v5181_v14 }
  0x60   :  { %5186 = vmatprep.subr.bf16.mxu0 %v5185_v20 }
  0x63   :  { %5188 = vmatpush3.bf16.msra.mxu0 %v5185_v20  ;;  %v5209_v20 = vpack.c.bf16 %v673_v15, %v672_v13 }
  0x64   :  { %5190 = vmatprep.subr.bf16.mxu0 %v5189_v26 }
  0x67   :  { %5192 = vmatpush3.bf16.msra.mxu0 %v5189_v26  ;;  %v5289_v26 = vpack.c.bf16 %v3581_v24, %v3580_v23  ;;  %v6614_v23 = vld [vmem:[%s7642_s9 + $0x8] sm:$0x3] }
  0x68   :  { %5194 = vmatprep.subr.bf16.mxu0 %v5193_v32 }
  0x6b   :  { %5196 = vmatpush3.bf16.msra.mxu0 %v5193_v32  ;;  %v5293_v32 = vpack.c.bf16 %v3583_v30, %v3582_v29 }
 0x109   :  { %v3859_v34 = vpop.f32.mrb[0].mxu0 }
 0x10a   :  { %v3860_v36 = vpop.f32.mrb[1].mxu0 }
 0x10b   :  { %v3897_v37 = vpop.f32.mrb[0].mxu1  ;;  %v3861_v38 = vadd.f32 %v3860_v36, %v3859_v34  ;;  %v487_v34 = vld [vmem:[%s7631_s30 + $0x68] sm:$0xff] }
 0x10c   :  { %v3898_v39 = vpop.f32.mrb[1].mxu1  ;;  %v5165_v36 = vpack.c.bf16 %v487_v34, %v486_v33  ;;  %v678_v33 = vld [vmem:[%s7592_s11 + $0x40] sm:$0xff]  ;;  %v679_v34 = vld [vmem:[%s7592_s11 + $0x48] sm:$0xff] }
 0x10d   :  { %v3899_v40 = vadd.f32 %v3898_v39, %v3897_v37  ;;  %v263_v41 = vadd.f32 %v3861_v38, %v3545_v35  ;;  %v3862_v42 = vpop.f32.mrb[2].mxu0  ;;  %v585_v37 = vld [vmem:[%s7632_s8 + $0x68] sm:$0xff]  ;;  %v488_v39 = vld [vmem:[%s7631_s30 + $0x70] sm:$0xff] }
 0x10e   :  { %v3863_v43 = vpop.f32.mrb[3].mxu0  ;;  %5166 = vmatprep.subr.bf16.mxu1 %v5165_v36 }
 0x10f   :  { %v3900_v44 = vpop.f32.mrb[2].mxu1  ;;  %v338_v45 = vadd.f32 %v3899_v40, %v263_v41  ;;  %v3864_v46 = vadd.f32 %v3863_v43, %v3862_v42  ;;  %5168 = vmatpush3.bf16.msra.mxu1 %v5165_v36  ;;  %v489_v40 = vld [vmem:[%s7631_s30 + $0x78] sm:$0xff]  ;;  %v586_v42 = vld [vmem:[%s7632_s8 + $0x70] sm:$0xff]  ;;  %v3585_v36 = vld [vmem:[%s7632_s8 + $0xc8] sm:$0xff] }
 0x110   :  { %v3901_v47 = vpop.f32.mrb[3].mxu1  ;;  %v5169_v41 = vpack.c.bf16 %v489_v40, %v488_v39  ;;  %v587_v43 = vld [vmem:[%s7632_s8 + $0x78] sm:$0xff]  ;;  %v680_v39 = vld [vmem:[%s7592_s11 + $0x50] sm:$0xff] }
 0x111   :  { %v3902_v48 = vadd.f32 %v3901_v47, %v3900_v44  ;;  %v268_v49 = vadd.f32 %v3864_v46, %v3545_v35  ;;  %v584_v35 = vld [vmem:[%s7632_s8 + $0x60] sm:$0xff]  ;;  %v5201_v44 = vpack.c.bf16 %v587_v43, %v586_v42  ;;  %v671_v46 = vld [vmem:[%s7592_s11 + $0x8] sm:$0xff]  ;;  %v681_v40 = vld [vmem:[%s7592_s11 + $0x58] sm:$0xff] }
 0x112   :  { %v5197_v38 = vpack.c.bf16 %v585_v37, %v584_v35  ;;  %5170 = vmatprep.subr.bf16.mxu1 %v5169_v41  ;;  %v3576_v47 = vld [vmem:[%s7632_s8 + $0x80] sm:$0xff]  ;;  %v5221_v37 = vpack.c.bf16 %v679_v34, %v678_v33  ;;  %v3587_v42 = vld [vmem:[%s7632_s8 + $0xd8] sm:$0xff]  ;;  %v5225_v43 = vpack.c.bf16 %v681_v40, %v680_v39 }
 0x113   :  { %v343_v50 = vadd.f32 %v3902_v48, %v268_v49  ;;  %5172 = vmatpush3.bf16.msra.mxu1 %v5169_v41  ;;  %v3577_v49 = vld [vmem:[%s7632_s8 + $0x88] sm:$0xff]  ;;  %v3584_v35 = vld [vmem:[%s7632_s8 + $0xc0] sm:$0xff]  ;;  %v3586_v41 = vld [vmem:[%s7632_s8 + $0xd0] sm:$0xff] }
 0x114   :  { %5198 = vmatprep.subr.bf16.mxu0 %v5197_v38 }
 0x115   :  { %5200 = vmatpush3.bf16.msra.mxu0 %v5197_v38  ;;  %v5297_v38 = vpack.c.bf16 %v3585_v36, %v3584_v35 }
 0x116   :  { %5202 = vmatprep.subr.bf16.mxu0 %v5201_v44 }
 0x119   :  { %5204 = vmatpush3.bf16.msra.mxu0 %v5201_v44  ;;  %v5301_v44 = vpack.c.bf16 %v3587_v42, %v3586_v41  ;;  %v3558_v42 = vld [vmem:[%s7631_s30 + $0x80] sm:$0xff] }
 0x129   :  { %v3935_v51 = vpop.f32.mrb[4].mxu0 }
 0x12a   :  { %v3936_v52 = vpop.f32.mrb[5].mxu0 }
 0x12b   :  { %v3937_v53 = vadd.f32 %v3936_v52, %v3935_v51 }
 0x12d   :  { %v413_v55 = vadd.f32 %v3937_v53, %v338_v45  ;;  %v3938_v56 = vpop.f32.mrb[6].mxu0  ;;  %v670_v45 = vld [vmem:[%s7592_s11] sm:$0xff] }
 0x12e   :  { %v3939_v57 = vpop.f32.mrb[7].mxu0  ;;  %v5205_v48 = vpack.c.bf16 %v671_v46, %v670_v45  ;;  %v682_v45 = vld [vmem:[%s7592_s11 + $0x60] sm:$0xff]  ;;  %v683_v46 = vld [vmem:[%s7592_s11 + $0x68] sm:$0xff] }
 0x12f   :  { %v6359_v58 = vadd.f32 %v421_v54, %v413_v55  ;;  %v3940_v59 = vadd.f32 %v3939_v57, %v3938_v56 }
 0x130   :  { %5206 = vmatprep.subr.bf16.mxu1 %v5205_v48 }
 0x131   :  { %v418_v61 = vadd.f32 %v3940_v59, %v343_v50  ;;  %429 = vadd.xlane.f32.xlu0 %v6359_v58  ;;  %v437_v62 = vmul.f32 %v6359_v58, %v6359_v58  ;;  %v5281_v50 = vpack.c.bf16 %v3577_v49, %v3576_v47  ;;  %v3588_v47 = vld [vmem:[%s7632_s8 + $0xe0] sm:$0xff]  ;;  %v5229_v49 = vpack.c.bf16 %v683_v46, %v682_v45 }
 0x133   :  { %v6367_v63 = vadd.f32 %v422_v60, %v418_v61  ;;  %439 = vadd.xlane.f32.xlu1 %v437_v62  ;;  %5282 = vmatprep.subr.bf16.mxu0 %v5281_v50 }
 0x135   :  { %v432_v0 = vsel %vm431_vm0, %v6367_v63, 0.0  ;;  %v438_v1 = vmul.f32 %v6367_v63, %v6367_v63 }
 0x136   :  { %433 = vadd.xlane.f32.xlu0 %v432_v0 }
 0x137   :  { %v441_v2 = vsel %vm431_vm0, %v438_v1, 0.0 }
 0x138   :  { %442 = vadd.xlane.f32.xlu1 %v441_v2 }
 0x1be   :  { %v430_v51 = vpop.xlane.xlu0 %429 }
 0x1bf   :  { %v435_v52 = vmul.f32 0.03125, %v430_v51  ;;  %v684_v51 = vld [vmem:[%s7592_s11 + $0x70] sm:$0xff] }
 0x1c0   :  { %v440_v53 = vpop.xlane.xlu1 %439 }
 0x1c1   :  { %v446_v54 = vmul.f32 %v435_v52, %v435_v52  ;;  %v444_v55 = vmul.f32 0.03125, %v440_v53  ;;  %v450_v3 = vsub.f32 %v6359_v58, %v435_v52  ;;  %v685_v52 = vld [vmem:[%s7592_s11 + $0x78] sm:$0xff]  ;;  %v3590_v53 = vld [vmem:[%s7632_s8 + $0xf0] sm:$0xff] }
 0x1c3   :  { %v448_v56 = vsub.f32 %v444_v55, %v446_v54  ;;  %v434_v57 = vpop.xlane.xlu0 %433  ;;  %v3591_v54 = vld [vmem:[%s7632_s8 + $0xf8] sm:$0xff]  ;;  %v5233_v55 = vpack.c.bf16 %v685_v52, %v684_v51 }
 0x1c4   :  { %v436_v59 = vmul.f32 0.03125, %v434_v57  ;;  %v3549_v57 = vld [vmem:[%s7591_s10] ss:$0 sm:$0xff] }
 0x1c5   :  { %v452_v60 = vadd.f32 1e-06, %v448_v56  ;;  %v443_v61 = vpop.xlane.xlu1 %442  ;;  %v5309_v56 = vpack.c.bf16 %v3591_v54, %v3590_v53  ;;  %v3562_v54 = vld [vmem:[%s7631_s30 + $0xa0] sm:$0xff] }
 0x1c6   :  { %v447_v62 = vmul.f32 %v436_v59, %v436_v59  ;;  %v445_v0 = vmul.f32 0.03125, %v443_v61  ;;  %v451_v9 = vsub.f32 %v6367_v63, %v436_v59  ;;  %v3548_v59 = vld [vmem:[%s7637_s6] ss:$0 sm:$0xff] }
 0x1c7   :  { %5798 = vrsqrt.f32 %v452_v60 }
 0x1c8   :  { %v449_v1 = vsub.f32 %v445_v0, %v447_v62 }
 0x1ca   :  { %v453_v2 = vadd.f32 1e-06, %v449_v1 }
 0x1cc   :  { %5800 = vrsqrt.f32 %v453_v2 }
 0x1d1   :  { %v5799_v4 = vpop.eup %5798 }
 0x1d2   :  { %v456_v6 = vmul.f32 %v5799_v4, %v450_v3 }
 0x1d4   :  { %v464_v8 = vmul.f32 %v3546_v5, %v456_v6 }
 0x1d6   :  { %v5801_v10 = vpop.eup %5800  ;;  %v6478_v11 = vadd.f32 %v3547_v7, %v464_v8  ;;  %v3593_v8 = vld [vmem:[%s7591_s10 + $0x1] ss:$0 sm:$0xff] }
 0x1d7   :  { %v457_v12 = vmul.f32 %v5801_v10, %v451_v9 }
 0x1d8   :  { %4350 = vmatprep.mubr.f32.mxu1 %v6478_v11  ;;  %4385 = vmatprep.mubr.f32.mxu0 %v6478_v11 }
 0x1d9   :  { %v465_v14 = vmul.f32 %v3546_v5, %v457_v12 }
 0x1db   :  { %v6494_v18 = vadd.f32 %v3547_v7, %v465_v14  ;;  %v3550_v7 = vld [vmem:[%s7593_s12] ss:$0 sm:$0xff] }
 0x1dd   :  { %4351 = vmatmul.mubr.f32.vlgmr.msra.gmra.mrb[4].mxu1 %v6494_v18  ;;  %4386 = vmatmul.mubr.f32.vlgmr.msra.gmra.mrb[8].mxu0 %v6494_v18 }
 0x1de   :  { %5208 = vmatpush3.bf16.msra.mxu1 %v5205_v48  ;;  %5284 = vmatpush3.bf16.msra.mxu0 %v5281_v50  ;;  %v3589_v48 = vld [vmem:[%s7632_s8 + $0xe8] sm:$0xff] }
 0x1df   :  { %4420 = vmatprep.mubr.f32.mxu1 %v6478_v11  ;;  %4504 = vmatprep.mubr.f32.mxu0 %v6478_v11  ;;  %v5305_v50 = vpack.c.bf16 %v3589_v48, %v3588_v47  ;;  %v3560_v48 = vld [vmem:[%s7631_s30 + $0x90] sm:$0xff] }
 0x1e0   :  { %5210 = vmatprep.subr.bf16.mxu1 %v5209_v20  ;;  %5286 = vmatprep.subr.bf16.mxu0 %v5285_v21 }
 0x1e2   :  { %5212 = vmatpush3.bf16.msra.mxu1 %v5209_v20  ;;  %5288 = vmatpush3.bf16.msra.mxu0 %v5285_v21 }
 0x1e3   :  { %5214 = vmatprep.subr.bf16.mxu1 %v5213_v25  ;;  %5290 = vmatprep.subr.bf16.mxu0 %v5289_v26 }
 0x1e6   :  { %5216 = vmatpush3.bf16.msra.mxu1 %v5213_v25  ;;  %5292 = vmatpush3.bf16.msra.mxu0 %v5289_v26  ;;  %v6619_v26 = vld [vmem:[%s7642_s9] sm:$0xff] }
 0x1e7   :  { %5218 = vmatprep.subr.bf16.mxu1 %v5217_v31  ;;  %5294 = vmatprep.subr.bf16.mxu0 %v5293_v32 }
 0x1ea   :  { %5220 = vmatpush3.bf16.msra.mxu1 %v5217_v31  ;;  %5296 = vmatpush3.bf16.msra.mxu0 %v5293_v32 }
 0x1eb   :  { %5222 = vmatprep.subr.bf16.mxu1 %v5221_v37  ;;  %5298 = vmatprep.subr.bf16.mxu0 %v5297_v38 }
 0x1ee   :  { %5224 = vmatpush3.bf16.msra.mxu1 %v5221_v37  ;;  %5300 = vmatpush3.bf16.msra.mxu0 %v5297_v38 }
 0x1ef   :  { %5226 = vmatprep.subr.bf16.mxu1 %v5225_v43  ;;  %5302 = vmatprep.subr.bf16.mxu0 %v5301_v44 }
 0x1f2   :  { %5228 = vmatpush3.bf16.msra.mxu1 %v5225_v43  ;;  %5304 = vmatpush3.bf16.msra.mxu0 %v5301_v44  ;;  %v3559_v43 = vld [vmem:[%s7631_s30 + $0x88] sm:$0xff] }
 0x1f3   :  { %5230 = vmatprep.subr.bf16.mxu1 %v5229_v49  ;;  %5306 = vmatprep.subr.bf16.mxu0 %v5305_v50  ;;  %v5249_v44 = vpack.c.bf16 %v3559_v43, %v3558_v42 }
 0x1f6   :  { %5232 = vmatpush3.bf16.msra.mxu1 %v5229_v49  ;;  %5308 = vmatpush3.bf16.msra.mxu0 %v5305_v50  ;;  %v3561_v49 = vld [vmem:[%s7631_s30 + $0x98] sm:$0xff] }
 0x1f7   :  { %5234 = vmatprep.subr.bf16.mxu1 %v5233_v55  ;;  %5310 = vmatprep.subr.bf16.mxu0 %v5309_v56  ;;  %v5253_v53 = vpack.c.bf16 %v3561_v49, %v3560_v48 }
 0x1fa   :  { %5236 = vmatpush3.bf16.msra.mxu1 %v5233_v55  ;;  %5312 = vmatpush3.bf16.msra.mxu0 %v5309_v56  ;;  %v3563_v55 = vld [vmem:[%s7631_s30 + $0xa8] sm:$0xff] }
 0x1fb   :  { %v5257_v56 = vpack.c.bf16 %v3563_v55, %v3562_v54 }
 0x1fd   :  { %4421 = vmatmul.mubr.f32.vlgmr.msra.gmra.mrb[6].mxu1 %v6494_v18  ;;  %4505 = vmatmul.mubr.f32.vlgmr.msra.gmra.mrb[10].mxu0 %v6494_v18 }
 0x2b0   :  { %v4352_v60 = vpop.f32.mrb[4].mxu1  ;;  %v4387_v61 = vpop.f32.mrb[8].mxu0 }
 0x2b1   :  { %v667_v62 = vadd.f32 %v4387_v61, %v3549_v57  ;;  %v563_v0 = vpop.f32.mrb[5].mxu1  ;;  %v661_v1 = vpop.f32.mrb[9].mxu0  ;;  %v569_v6 = vadd.f32 %v4352_v60, %v3548_v59  ;;  %v3566_v61 = vld [vmem:[%s7631_s30 + $0xc0] sm:$0xff] }
 0x2b2   :  { %v564_v2 = vadd.f32 %v3548_v59, %v563_v0  ;;  %v662_v3 = vadd.f32 %v3549_v57, %v661_v1  ;;  %v3564_v57 = vld [vmem:[%s7631_s30 + $0xb0] sm:$0xff]  ;;  %v3565_v59 = vld [vmem:[%s7631_s30 + $0xb8] sm:$0xff] }
 0x2b3   :  { %v5261_v60 = vpack.c.bf16 %v3565_v59, %v3564_v57  ;;  %v3568_v1 = vld [vmem:[%s7631_s30 + $0xd0] sm:$0xff] }
 0x2b4   :  { %v5237_v5 = vpack.c.bf16 %v667_v62, %v662_v3  ;;  %4427 = vmatprep.mubr.msk.f32.mxu1 %vm768_vm1, %v564_v2  ;;  %v3567_v62 = vld [vmem:[%s7631_s30 + $0xc8] sm:$0xff]  ;;  %v3569_v2 = vld [vmem:[%s7631_s30 + $0xd8] sm:$0xff] }
 0x2b5   :  { %v5265_v0 = vpack.c.bf16 %v3567_v62, %v3566_v61  ;;  %v5269_v3 = vpack.c.bf16 %v3569_v2, %v3568_v1 }
 0x2b6   :  { %5239 = vmatprep.subr.msk.bf16.mxu1 %vm6582_vm2, %v5237_v5 }
 0x2b7   :  { %5242 = vmatpush3.bf16.xpose.msk.msra.mxu1 %vm6582_vm2, %v5237_v5  ;;  %v3570_v5 = vld [vmem:[%s7631_s30 + $0xe0] sm:$0xff] }
 0x2be   :  { %4428 = vmatmul.mubr.msk.f32.vlgmr.msra.gmra.mrb[8].mxu1 %vm768_vm1, %v569_v6  ;;  %v3571_v6 = vld [vmem:[%s7631_s30 + $0xe8] sm:$0xff] }
 0x2d0   :  { %v4422_v9 = vpop.f32.mrb[6].mxu1  ;;  %v4506_v10 = vpop.f32.mrb[10].mxu0 }
 0x2d1   :  { %v765_v12 = vadd.f32 %v4422_v9, %v3550_v7  ;;  %v1173_v13 = vadd.f32 %v4506_v10, %v3593_v8  ;;  %v759_v14 = vpop.f32.mrb[7].mxu1  ;;  %v1167_v15 = vpop.f32.mrb[11].mxu0  ;;  %v3573_v9 = vld [vmem:[%s7631_s30 + $0xf8] sm:$0xff] }
 0x2d2   :  { %v760_v16 = vadd.f32 %v3550_v7, %v759_v14  ;;  %v1168_v17 = vadd.f32 %v3593_v8, %v1167_v15  ;;  %v5273_v7 = vpack.c.bf16 %v3571_v6, %v3570_v5  ;;  %v3572_v8 = vld [vmem:[%s7631_s30 + $0xf0] sm:$0xff]  ;;  %v3619_v6 = vld [vmem:[%s7594_s13 + $0x40] sm:$0xff] }
 0x2d3   :  { %v5277_v10 = vpack.c.bf16 %v3573_v9, %v3572_v8  ;;  %v3596_v15 = vld [vmem:[%s7592_s11 + $0x90] sm:$0xff] }
 0x2d4   :  { %v5243_v20 = vpack.c.bf16 %v765_v12, %v760_v16  ;;  %v5345_v21 = vpack.c.bf16 %v1173_v13, %v1168_v17  ;;  %v3594_v12 = vld [vmem:[%s7592_s11 + $0x80] sm:$0xff]  ;;  %v3595_v13 = vld [vmem:[%s7592_s11 + $0x88] sm:$0xff]  ;;  %v3597_v16 = vld [vmem:[%s7592_s11 + $0x98] sm:$0xff] }
 0x2d5   :  { %v5313_v14 = vpack.c.bf16 %v3595_v13, %v3594_v12  ;;  %v5317_v17 = vpack.c.bf16 %v3597_v16, %v3596_v15  ;;  %v3621_v13 = vld [vmem:[%s7594_s13 + $0x50] sm:$0xff] }
 0x2d6   :  { %5245 = vmatprep.subr.msk.bf16.mxu1 %vm6599_vm4, %v5243_v20  ;;  %5347 = vmatprep.subr.msk.bf16.mxu0 %vm6582_vm2, %v5345_v21 }
 0x2d7   :  { %5248 = vmatpush3.bf16.msk.msra.mxu1 %vm6599_vm4, %v5243_v20  ;;  %5350 = vmatpush3.bf16.xpose.msk.msra.mxu0 %vm6582_vm2, %v5345_v21  ;;  %v3598_v20 = vld [vmem:[%s7592_s11 + $0xa0] sm:$0xff]  ;;  %v3599_v21 = vld [vmem:[%s7592_s11 + $0xa8] sm:$0xff] }
 0x2d8   :  { %5250 = vmatprep.subr.bf16.mxu1 %v5249_v44 }
 0x391   :  { %v4429_v22 = vpop.f32.mrb[8].mxu1 }
 0x392   :  { %v857_v24 = vmul.f32 0.25, %v4429_v22  ;;  %v847_v25 = vpop.f32.mrb[9].mxu1  ;;  %v5321_v22 = vpack.c.bf16 %v3599_v21, %v3598_v20  ;;  %v3623_v21 = vld [vmem:[%s7594_s13 + $0x60] sm:$0xff] }
 0x393   :  { %v856_v27 = vmul.f32 0.25, %v847_v25  ;;  %v3601_v25 = vld [vmem:[%s7592_s11 + $0xb8] sm:$0xff] }
 0x394   :  { %v859_v28 = vadd.f32 %v857_v24, %v6614_v23  ;;  %v3600_v24 = vld [vmem:[%s7592_s11 + $0xb0] sm:$0xff] }
 0x395   :  { %v858_v29 = vadd.f32 %v856_v27, %v6619_v26  ;;  %v5325_v27 = vpack.c.bf16 %v3601_v25, %v3600_v24  ;;  %v3625_v25 = vld [vmem:[%s7594_s13 + $0x70] sm:$0xff] }
 0x396   :  { %v865_v30 = vsel %vm864_vm5, %v859_v28, -inf }
 0x397   :  { %866 = vmax.xlane.f32.xlu1 %v865_v30  ;;  %v861_v31 = vsel %vm860_vm6, %v858_v29, -inf  ;;  %v3604_v30 = vld [vmem:[%s7592_s11 + $0xd0] sm:$0xff] }
 0x398   :  { %862 = vmax.xlane.f32.xlu0 %v861_v31  ;;  %v3605_v31 = vld [vmem:[%s7592_s11 + $0xd8] sm:$0xff] }
 0x424   :  { %v867_v32 = vpop.xlane.xlu1 %866 }
 0x425   :  { %v869_v33 = vsub.f32 %v859_v28, %v867_v32  ;;  %v863_v34 = vpop.xlane.xlu0 %862  ;;  %v3602_v28 = vld [vmem:[%s7592_s11 + $0xc0] sm:$0xff]  ;;  %v5333_v32 = vpack.c.bf16 %v3605_v31, %v3604_v30  ;;  %v970_v31 = vld [vmem:[%s7594_s13 + $0x10] sm:$0xff] }
 0x426   :  { %v868_v35 = vsub.f32 %v858_v29, %v863_v34  ;;  %v3607_v34 = vld [vmem:[%s7592_s11 + $0xe8] sm:$0xff] }
 0x427   :  { %v872_v36 = vmul.f32 1.442695, %v869_v33  ;;  %v3606_v33 = vld [vmem:[%s7592_s11 + $0xe0] sm:$0xff] }
 0x428   :  { %v870_v37 = vmul.f32 1.442695, %v868_v35  ;;  %v5337_v35 = vpack.c.bf16 %v3607_v34, %v3606_v33 }
 0x429   :  { %5802 = vpow2.f32 %v872_v36  ;;  %v3608_v36 = vld [vmem:[%s7592_s11 + $0xf0] sm:$0xff] }
 0x42a   :  { %5804 = vpow2.f32 %v870_v37  ;;  %v3609_v37 = vld [vmem:[%s7592_s11 + $0xf8] sm:$0xff] }
 0x433   :  { %v5803_v38 = vpop.eup %5802 }
 0x434   :  { %v5805_v39 = vpop.eup %5804  ;;  %v877_v40 = vsel %vm864_vm5, %v5803_v38, 0.0 }
 0x435   :  { %878 = vadd.xlane.f32.xlu1 %v877_v40  ;;  %v874_v41 = vsel %vm860_vm6, %v5805_v39, 0.0 }
 0x436   :  { %875 = vadd.xlane.f32.xlu0 %v874_v41  ;;  %v3575_v41 = vld [vmem:[%s7637_s6 + $0x1] ss:$0 sm:$0xff] }
 0x4c2   :  { %v879_v45 = vpop.xlane.xlu1 %878 }
 0x4c3   :  { %5806 = vrcp.f32 %v879_v45  ;;  %v876_v46 = vpop.xlane.xlu0 %875 }
 0x4c4   :  { %5808 = vrcp.f32 %v876_v46 }
 0x4cd   :  { %v5807_v47 = vpop.eup %5806 }
 0x4ce   :  { %v5809_v50 = vpop.eup %5808  ;;  %v883_v52 = vmul.f32 %v5807_v47, %v5803_v38  ;;  %v5341_v38 = vpack.c.bf16 %v3609_v37, %v3608_v36  ;;  %v972_v36 = vld [vmem:[%s7594_s13 + $0x20] sm:$0xff]  ;;  %v973_v37 = vld [vmem:[%s7594_s13 + $0x28] sm:$0xff] }
 0x4cf   :  { %v881_v51 = vmul.f32 %v5809_v50, %v5805_v39 }
 0x4d1   :  { %4434 = vmatprep.mubr.msk.f32.mxu1 %vm860_vm6, %v881_v51 }
 0x4d2   :  { %4435 = vmatmul.mubr.msk.f32.vlgmr.msra.gmra.mrb[10].mxu1 %vm860_vm6, %v883_v52 }
 0x4d3   :  { %5252 = vmatpush3.bf16.msra.mxu1 %v5249_v44  ;;  %4469 = vmatprep.mubr.f32.mxu1 %v6478_v11 }
 0x4d4   :  { %5254 = vmatprep.subr.bf16.mxu1 %v5253_v53 }
 0x4d7   :  { %5256 = vmatpush3.bf16.msra.mxu1 %v5253_v53 }
 0x4d8   :  { %5258 = vmatprep.subr.bf16.mxu1 %v5257_v56 }
 0x4db   :  { %5260 = vmatpush3.bf16.msra.mxu1 %v5257_v56 }
 0x4dc   :  { %5262 = vmatprep.subr.bf16.mxu1 %v5261_v60 }
 0x4df   :  { %5264 = vmatpush3.bf16.msra.mxu1 %v5261_v60 }
 0x4e0   :  { %5266 = vmatprep.subr.bf16.mxu1 %v5265_v0 }
 0x4e3   :  { %5268 = vmatpush3.bf16.msra.mxu1 %v5265_v0 }
 0x4e4   :  { %5270 = vmatprep.subr.bf16.mxu1 %v5269_v3 }
 0x4e7   :  { %5272 = vmatpush3.bf16.msra.mxu1 %v5269_v3 }
 0x4e8   :  { %5274 = vmatprep.subr.bf16.mxu1 %v5273_v7 }
 0x4eb   :  { %5276 = vmatpush3.bf16.msra.mxu1 %v5273_v7  ;;  %v3620_v7 = vld [vmem:[%s7594_s13 + $0x48] sm:$0xff] }
 0x4ec   :  { %5278 = vmatprep.subr.bf16.mxu1 %v5277_v10  ;;  %v5357_v8 = vpack.c.bf16 %v3620_v7, %v3619_v6  ;;  %v1714_v6 = vld [vmem:[%s7598_s17 + $0x68] sm:$0xff] }
 0x4ef   :  { %5280 = vmatpush3.bf16.msra.mxu1 %v5277_v10 }
 0x4f0   :  { %5314 = vmatprep.subr.bf16.mxu1 %v5313_v14 }
 0x4f2   :  { %4470 = vmatmul.mubr.f32.vlgmr.msra.gmra.mrb[12].mxu1 %v6494_v18 }
 0x4f3   :  { %5316 = vmatpush3.bf16.msra.mxu1 %v5313_v14  ;;  %4539 = vmatprep.mubr.f32.mxu1 %v6478_v11  ;;  %v3603_v11 = vld [vmem:[%s7592_s11 + $0xc8] sm:$0xff]  ;;  %v3622_v14 = vld [vmem:[%s7594_s13 + $0x58] sm:$0xff] }
 0x4f4   :  { %5318 = vmatprep.subr.bf16.mxu1 %v5317_v17  ;;  %v5329_v29 = vpack.c.bf16 %v3603_v11, %v3602_v28  ;;  %v5361_v20 = vpack.c.bf16 %v3622_v14, %v3621_v13  ;;  %v968_v11 = vld [vmem:[%s7594_s13] sm:$0xff]  ;;  %v1810_v13 = vld [vmem:[%s7600_s19 + $0x8] sm:$0xff]  ;;  %v1811_v14 = vld [vmem:[%s7600_s19 + $0x10] sm:$0xff] }
 0x4f7   :  { %5320 = vmatpush3.bf16.msra.mxu1 %v5317_v17 }
 0x4f8   :  { %5322 = vmatprep.subr.bf16.mxu1 %v5321_v22 }
 0x4fb   :  { %5324 = vmatpush3.bf16.msra.mxu1 %v5321_v22  ;;  %v3624_v22 = vld [vmem:[%s7594_s13 + $0x68] sm:$0xff] }
 0x4fc   :  { %5326 = vmatprep.subr.bf16.mxu1 %v5325_v27  ;;  %v5365_v24 = vpack.c.bf16 %v3624_v22, %v3623_v21  ;;  %v1814_v21 = vld [vmem:[%s7600_s19 + $0x28] sm:$0xff] }
 0x4ff   :  { %5328 = vmatpush3.bf16.msra.mxu1 %v5325_v27  ;;  %v3626_v27 = vld [vmem:[%s7594_s13 + $0x78] sm:$0xff] }
 0x500   :  { %5330 = vmatprep.subr.bf16.mxu1 %v5329_v29  ;;  %v5369_v28 = vpack.c.bf16 %v3626_v27, %v3625_v25 }
 0x503   :  { %5332 = vmatpush3.bf16.msra.mxu1 %v5329_v29  ;;  %v969_v29 = vld [vmem:[%s7594_s13 + $0x8] sm:$0xff] }
 0x504   :  { %5334 = vmatprep.subr.bf16.mxu1 %v5333_v32  ;;  %v5373_v30 = vpack.c.bf16 %v969_v29, %v968_v11 }
 0x507   :  { %5336 = vmatpush3.bf16.msra.mxu1 %v5333_v32  ;;  %v971_v32 = vld [vmem:[%s7594_s13 + $0x18] sm:$0xff] }
 0x508   :  { %5338 = vmatprep.subr.bf16.mxu1 %v5337_v35 }
 0x50b   :  { %5340 = vmatpush3.bf16.msra.mxu1 %v5337_v35  ;;  %v5377_v35 = vpack.c.bf16 %v971_v32, %v970_v31 }
 0x50c   :  { %5342 = vmatprep.subr.bf16.mxu1 %v5341_v38 }
 0x50f   :  { %5344 = vmatpush3.bf16.msra.mxu1 %v5341_v38  ;;  %v5381_v38 = vpack.c.bf16 %v973_v37, %v972_v36 }
 0x512   :  { %4540 = vmatmul.mubr.f32.vlgmr.msra.gmra.mrb[14].mxu1 %v6494_v18  ;;  %v3611_v18 = vld [vmem:[%s7593_s12 + $0x1] ss:$0 sm:$0xff] }
 0x5a5   :  { %v6729_v39 = vpop.f32.mrb[10].mxu1 }
 0x5a6   :  { %v6731_v40 = vpop.f32.mrb[11].mxu1 }
 0x5c5   :  { %v4471_v42 = vpop.f32.mrb[12].mxu1 }
 0x5c6   :  { %v1067_v43 = vpop.f32.mrb[13].mxu1  ;;  %v1073_v45 = vadd.f32 %v4471_v42, %v3575_v41  ;;  %v975_v42 = vld [vmem:[%s7594_s13 + $0x38] sm:$0xff] }
 0x5c7   :  { %v1068_v44 = vadd.f32 %v3575_v41, %v1067_v43  ;;  %v974_v41 = vld [vmem:[%s7594_s13 + $0x30] sm:$0xff] }
 0x5c8   :  { %v5385_v43 = vpack.c.bf16 %v975_v42, %v974_v41 }
 0x5c9   :  { %4546 = vmatprep.mubr.msk.f32.mxu0 %vm768_vm1, %v1068_v44  ;;  %v1702_v44 = vld [vmem:[%s7598_s17 + $0x8] sm:$0xff] }
 0x5ca   :  { %4547 = vmatmul.mubr.msk.f32.vlgmr.msra.gmra.mrb[12].mxu0 %vm768_vm1, %v1073_v45 }
 0x5e5   :  { %v4541_v46 = vpop.f32.mrb[14].mxu1 }
 0x5e6   :  { %v1273_v47 = vadd.f32 %v4541_v46, %v3611_v18  ;;  %v1267_v48 = vpop.f32.mrb[15].mxu1  ;;  %v3631_v46 = vld [vmem:[%s7595_s14] ss:$0 sm:$0xff] }
 0x5e7   :  { %v1268_v49 = vadd.f32 %v3611_v18, %v1267_v48 }
 0x5e9   :  { %v5351_v50 = vpack.c.bf16 %v1273_v47, %v1268_v49 }
 0x5eb   :  { %5353 = vmatprep.subr.msk.bf16.mxu0 %vm6599_vm4, %v5351_v50 }
 0x5ec   :  { %5356 = vmatpush3.bf16.msk.msra.mxu0 %vm6599_vm4, %v5351_v50 }
 0x5ed   :  { %5358 = vmatprep.subr.bf16.mxu0 %v5357_v8 }
 0x69d   :  { %v4548_v51 = vpop.f32.mrb[12].mxu0 }
 0x69e   :  { %v1364_v52 = vmul.f32 0.25, %v4548_v51  ;;  %v1354_v53 = vpop.f32.mrb[13].mxu0 }
 0x69f   :  { %v1363_v54 = vmul.f32 0.25, %v1354_v53 }
 0x6a0   :  { %v1366_v55 = vadd.f32 %v1364_v52, %v6614_v23 }
 0x6a1   :  { %v1365_v56 = vadd.f32 %v1363_v54, %v6619_v26  ;;  %v1704_v54 = vld [vmem:[%s7598_s17 + $0x18] sm:$0xff] }
 0x6a2   :  { %v1370_v57 = vsel %vm864_vm5, %v1366_v55, -inf }
 0x6a3   :  { %1371 = vmax.xlane.f32.xlu1 %v1370_v57  ;;  %v1367_v59 = vsel %vm860_vm6, %v1365_v56, -inf  ;;  %v1706_v57 = vld [vmem:[%s7598_s17 + $0x28] sm:$0xff] }
 0x6a4   :  { %1368 = vmax.xlane.f32.xlu0 %v1367_v59 }
 0x730   :  { %v1372_v60 = vpop.xlane.xlu1 %1371 }
 0x731   :  { %v1374_v61 = vsub.f32 %v1366_v55, %v1372_v60  ;;  %v1369_v62 = vpop.xlane.xlu0 %1368  ;;  %v1707_v60 = vld [vmem:[%s7598_s17 + $0x30] sm:$0xff] }
 0x732   :  { %v1373_v0 = vsub.f32 %v1365_v56, %v1369_v62  ;;  %v1705_v56 = vld [vmem:[%s7598_s17 + $0x20] sm:$0xff] }
 0x733   :  { %v1377_v1 = vmul.f32 1.442695, %v1374_v61  ;;  %v5397_v59 = vpack.c.bf16 %v1706_v57, %v1705_v56  ;;  %v1708_v61 = vld [vmem:[%s7598_s17 + $0x38] sm:$0xff] }
 0x734   :  { %v1375_v2 = vmul.f32 1.442695, %v1373_v0  ;;  %v5401_v62 = vpack.c.bf16 %v1708_v61, %v1707_v60  ;;  %v1709_v0 = vld [vmem:[%s7598_s17 + $0x40] sm:$0xff]  ;;  %v1820_v56 = vld [vmem:[%s7600_s19 + $0x58] sm:$0xff]  ;;  %v1822_v60 = vld [vmem:[%s7600_s19 + $0x68] sm:$0xff] }
 0x735   :  { %5810 = vpow2.f32 %v1377_v1  ;;  %v1710_v1 = vld [vmem:[%s7598_s17 + $0x48] sm:$0xff] }
 0x736   :  { %5812 = vpow2.f32 %v1375_v2  ;;  %v5405_v2 = vpack.c.bf16 %v1710_v1, %v1709_v0  ;;  %v1824_v0 = vld [vmem:[%s7600_s19 + $0x78] sm:$0xff] }
 0x73f   :  { %v5811_v3 = vpop.eup %5810 }
 0x740   :  { %v5813_v5 = vpop.eup %5812  ;;  %v1382_v23 = vsel %vm864_vm5, %v5811_v3, 0.0 }
 0x741   :  { %1383 = vadd.xlane.f32.xlu1 %v1382_v23  ;;  %v1379_v26 = vsel %vm860_vm6, %v5813_v5, 0.0 }
 0x742   :  { %1380 = vadd.xlane.f32.xlu0 %v1379_v26  ;;  %v1713_v26 = vld [vmem:[%s7598_s17 + $0x60] sm:$0xff] }
 0x743   :  { %v5413_v7 = vpack.c.bf16 %v1714_v6, %v1713_v26 }
 0x7ce   :  { %v1384_v9 = vpop.xlane.xlu1 %1383 }
 0x7cf   :  { %5814 = vrcp.f32 %v1384_v9  ;;  %v1381_v10 = vpop.xlane.xlu0 %1380  ;;  %v1716_v9 = vld [vmem:[%s7598_s17 + $0x78] sm:$0xff] }
 0x7d0   :  { %5816 = vrcp.f32 %v1381_v10 }
 0x7d9   :  { %v5815_v12 = vpop.eup %5814 }
 0x7da   :  { %v5817_v15 = vpop.eup %5816  ;;  %v1388_v17 = vmul.f32 %v5815_v12, %v5811_v3  ;;  %v1711_v3 = vld [vmem:[%s7598_s17 + $0x50] sm:$0xff]  ;;  %v1809_v12 = vld [vmem:[%s7600_s19] sm:$0xff] }
 0x7db   :  { %v1386_v16 = vmul.f32 %v5817_v15, %v5813_v5  ;;  %v1712_v5 = vld [vmem:[%s7598_s17 + $0x58] sm:$0xff]  ;;  %v5421_v15 = vpack.c.bf16 %v1810_v13, %v1809_v12 }
 0x7dc   :  { %v5409_v23 = vpack.c.bf16 %v1712_v5, %v1711_v3 }
 0x7dd   :  { %4553 = vmatprep.mubr.msk.f32.mxu0 %vm860_vm6, %v1386_v16  ;;  %v1812_v16 = vld [vmem:[%s7600_s19 + $0x18] sm:$0xff] }
 0x7de   :  { %4554 = vmatmul.mubr.msk.f32.vlgmr.msra.gmra.mrb[14].mxu0 %vm860_vm6, %v1388_v17  ;;  %v5425_v17 = vpack.c.bf16 %v1812_v16, %v1811_v14 }
 0x7df   :  { %5360 = vmatpush3.bf16.msra.mxu0 %v5357_v8  ;;  %v1715_v8 = vld [vmem:[%s7598_s17 + $0x70] sm:$0xff] }
 0x7e0   :  { %5362 = vmatprep.subr.bf16.mxu0 %v5361_v20  ;;  %v5417_v10 = vpack.c.bf16 %v1716_v9, %v1715_v8 }
 0x7e3   :  { %5364 = vmatpush3.bf16.msra.mxu0 %v5361_v20  ;;  %v1813_v20 = vld [vmem:[%s7600_s19 + $0x20] sm:$0xff] }
 0x7e4   :  { %5366 = vmatprep.subr.bf16.mxu0 %v5365_v24  ;;  %v5429_v22 = vpack.c.bf16 %v1814_v21, %v1813_v20  ;;  %v3641_v20 = vld [vmem:[%s7631_s30 + $0x108] sm:$0xff]  ;;  %v3658_v21 = vld [vmem:[%s7632_s8 + $0x100] sm:$0xff] }
 0x7e7   :  { %5368 = vmatpush3.bf16.msra.mxu0 %v5365_v24 }
 0x7e8   :  { %5370 = vmatprep.subr.bf16.mxu0 %v5369_v28 }
 0x7eb   :  { %5372 = vmatpush3.bf16.msra.mxu0 %v5369_v28 }
 0x7ec   :  { %5374 = vmatprep.subr.bf16.mxu0 %v5373_v30 }
 0x8b1   :  { %v4555_v33 = vpop.f32.mrb[14].mxu0 }
 0x8b2   :  { %v1464_v34 = vpop.f32.mrb[15].mxu0 }
 0x8b3   :  { %4572 = vmatprep.mubr.msk.f32.mxu0 %vm768_vm1, %v1464_v34 }
 0x8b4   :  { %4573 = vmatmul.mubr.msk.f32.vlgmr.msra.gmra.mrb[16].mxu0 %vm768_vm1, %v4555_v33 }
 0x8b5   :  { %5376 = vmatpush3.bf16.msra.mxu0 %v5373_v30  ;;  %4591 = vmatprep.mubr.msk.f32.mxu0 %vm768_vm1, %v6731_v40  ;;  %v1701_v40 = vld [vmem:[%s7598_s17] sm:$0xff] }
 0x8b6   :  { %5378 = vmatprep.subr.bf16.mxu0 %v5377_v35  ;;  %v5389_v45 = vpack.c.bf16 %v1702_v44, %v1701_v40 }
 0x8b8   :  { %5390 = vmatprep.subr.bf16.mxu1 %v5389_v45 }
 0x8b9   :  { %5380 = vmatpush3.bf16.msra.mxu0 %v5377_v35  ;;  %5392 = vmatpush3.bf16.msra.mxu1 %v5389_v45  ;;  %v3633_v45 = vld [vmem:[%s7597_s16] ss:$0 sm:$0xff] }
 0x8ba   :  { %5382 = vmatprep.subr.bf16.mxu0 %v5381_v38 }
 0x8bd   :  { %5384 = vmatpush3.bf16.msra.mxu0 %v5381_v38 }
 0x8be   :  { %5386 = vmatprep.subr.bf16.mxu0 %v5385_v43 }
 0x8c1   :  { %5388 = vmatpush3.bf16.msra.mxu0 %v5385_v43  ;;  %v3632_v43 = vld [vmem:[%s7596_s15] ss:$0 sm:$0xff] }
 0x8c2   :  { %5422 = vmatprep.subr.bf16.mxu0 %v5421_v15 }
 0x8c4   :  { %4592 = vmatmul.mubr.msk.f32.vlgmr.msra.gmra.mrb[16].mxu0 %vm768_vm1, %v6729_v39 }
 0x8c5   :  { %5424 = vmatpush3.bf16.msra.mxu0 %v5421_v15 }
 0x8c6   :  { %5426 = vmatprep.subr.bf16.mxu0 %v5425_v17 }
 0x8c9   :  { %5428 = vmatpush3.bf16.msra.mxu0 %v5425_v17  ;;  %v3640_v17 = vld [vmem:[%s7631_s30 + $0x100] sm:$0xff] }
 0x8ca   :  { %5430 = vmatprep.subr.bf16.mxu0 %v5429_v22 }
 0x8cd   :  { %5432 = vmatpush3.bf16.msra.mxu0 %v5429_v22  ;;  %v5453_v22 = vpack.c.bf16 %v3641_v20, %v3640_v17 }
 0x997   :  { %v4593_v18 = vpop.f32.mrb[16].mxu0 }
 0x998   :  { %v1645_v47 = vadd.f32 %v4593_v18, %v6367_v63  ;;  %v1635_v48 = vpop.f32.mrb[17].mxu0 }
 0x999   :  { %v1644_v39 = vadd.f32 %v1635_v48, %v6359_v58  ;;  %v1703_v58 = vld [vmem:[%s7598_s17 + $0x10] sm:$0xff] }
 0x99a   :  { %v6818_v49 = vadd.f32 %v3631_v46, %v1645_v47  ;;  %v5393_v55 = vpack.c.bf16 %v1704_v54, %v1703_v58  ;;  %v1818_v58 = vld [vmem:[%s7600_s19 + $0x48] sm:$0xff] }
 0x99b   :  { %v6820_v50 = vadd.f32 %v3631_v46, %v1644_v39 }
 0x99c   :  { %v1659_v51 = vsel %vm431_vm0, %v6818_v49, 0.0  ;;  %v1665_v52 = vmul.f32 %v6818_v49, %v6818_v49  ;;  %5394 = vmatprep.subr.bf16.mxu1 %v5393_v55 }
 0x99d   :  { %1660 = vadd.xlane.f32.xlu1 %v1659_v51  ;;  %1657 = vadd.xlane.f32.xlu0 %v6820_v50  ;;  %v1664_v53 = vmul.f32 %v6820_v50, %v6820_v50  ;;  %v1815_v51 = vld [vmem:[%s7600_s19 + $0x30] sm:$0xff] }
 0x99e   :  { %v1668_v63 = vsel %vm431_vm0, %v1665_v52, 0.0  ;;  %5396 = vmatpush3.bf16.msra.mxu1 %v5393_v55  ;;  %v1816_v52 = vld [vmem:[%s7600_s19 + $0x38] sm:$0xff]  ;;  %v1819_v55 = vld [vmem:[%s7600_s19 + $0x50] sm:$0xff] }
 0x99f   :  { %5398 = vmatprep.subr.bf16.mxu1 %v5397_v59  ;;  %v5441_v57 = vpack.c.bf16 %v1820_v56, %v1819_v55  ;;  %v3666_v55 = vld [vmem:[%s7632_s8 + $0x140] sm:$0xff]  ;;  %v3667_v56 = vld [vmem:[%s7632_s8 + $0x148] sm:$0xff] }
 0x9a1   :  { %1669 = vadd.xlane.f32.xlu1 %v1668_v63  ;;  %1666 = vadd.xlane.f32.xlu0 %v1664_v53  ;;  %v5433_v53 = vpack.c.bf16 %v1816_v52, %v1815_v51  ;;  %v1817_v63 = vld [vmem:[%s7600_s19 + $0x40] sm:$0xff]  ;;  %v3664_v51 = vld [vmem:[%s7632_s8 + $0x130] sm:$0xff]  ;;  %v3665_v52 = vld [vmem:[%s7632_s8 + $0x138] sm:$0xff] }
 0x9a2   :  { %5400 = vmatpush3.bf16.msra.mxu1 %v5397_v59  ;;  %v5437_v54 = vpack.c.bf16 %v1818_v58, %v1817_v63  ;;  %v1821_v59 = vld [vmem:[%s7600_s19 + $0x60] sm:$0xff]  ;;  %v3649_v58 = vld [vmem:[%s7631_s30 + $0x148] sm:$0xff] }
 0x9a3   :  { %5402 = vmatprep.subr.bf16.mxu1 %v5401_v62  ;;  %5434 = vmatprep.subr.bf16.mxu0 %v5433_v53  ;;  %v5445_v61 = vpack.c.bf16 %v1822_v60, %v1821_v59  ;;  %v3648_v63 = vld [vmem:[%s7631_s30 + $0x140] sm:$0xff]  ;;  %v3650_v59 = vld [vmem:[%s7631_s30 + $0x150] sm:$0xff]  ;;  %v3651_v60 = vld [vmem:[%s7631_s30 + $0x158] sm:$0xff] }
 0x9a4   :  { %5436 = vmatpush3.bf16.msra.mxu0 %v5433_v53  ;;  %v5497_v53 = vpack.c.bf16 %v3665_v52, %v3664_v51  ;;  %v3681_v51 = vld [vmem:[%s7592_s11 + $0x128] sm:$0xff] }
 0x9a5   :  { %5438 = vmatprep.subr.bf16.mxu0 %v5437_v54 }
 0x9a6   :  { %5404 = vmatpush3.bf16.msra.mxu1 %v5401_v62  ;;  %v1823_v62 = vld [vmem:[%s7600_s19 + $0x70] sm:$0xff] }
 0x9a7   :  { %5406 = vmatprep.subr.bf16.mxu1 %v5405_v2  ;;  %v5449_v1 = vpack.c.bf16 %v1824_v0, %v1823_v62  ;;  %v3668_v62 = vld [vmem:[%s7632_s8 + $0x150] sm:$0xff]  ;;  %v3669_v0 = vld [vmem:[%s7632_s8 + $0x158] sm:$0xff] }
 0x9a8   :  { %5440 = vmatpush3.bf16.msra.mxu0 %v5437_v54  ;;  %v5469_v54 = vpack.c.bf16 %v3649_v58, %v3648_v63  ;;  %v3683_v63 = vld [vmem:[%s7592_s11 + $0x138] sm:$0xff] }
 0x9a9   :  { %5442 = vmatprep.subr.bf16.mxu0 %v5441_v57 }
 0x9aa   :  { %5408 = vmatpush3.bf16.msra.mxu1 %v5405_v2  ;;  %v3634_v2 = vld [vmem:[%s7599_s18] ss:$0 sm:$0xff] }
 0x9ab   :  { %5410 = vmatprep.subr.bf16.mxu1 %v5409_v23 }
 0x9ac   :  { %5444 = vmatpush3.bf16.msra.mxu0 %v5441_v57  ;;  %v5501_v57 = vpack.c.bf16 %v3667_v56, %v3666_v55  ;;  %v3685_v55 = vld [vmem:[%s7592_s11 + $0x148] sm:$0xff] }
 0x9ad   :  { %5446 = vmatprep.subr.bf16.mxu0 %v5445_v61 }
 0x9ae   :  { %5412 = vmatpush3.bf16.msra.mxu1 %v5409_v23 }
 0x9af   :  { %5414 = vmatprep.subr.bf16.mxu1 %v5413_v7 }
 0x9b0   :  { %5448 = vmatpush3.bf16.msra.mxu0 %v5445_v61  ;;  %v5473_v61 = vpack.c.bf16 %v3651_v60, %v3650_v59  ;;  %v3687_v59 = vld [vmem:[%s7592_s11 + $0x158] sm:$0xff] }
 0x9b1   :  { %5450 = vmatprep.subr.bf16.mxu0 %v5449_v1 }
 0x9b2   :  { %5416 = vmatpush3.bf16.msra.mxu1 %v5413_v7 }
 0x9b3   :  { %5418 = vmatprep.subr.bf16.mxu1 %v5417_v10 }
 0x9b4   :  { %5452 = vmatpush3.bf16.msra.mxu0 %v5449_v1  ;;  %v5505_v1 = vpack.c.bf16 %v3669_v0, %v3668_v62  ;;  %v3689_v62 = vld [vmem:[%s7592_s11 + $0x168] sm:$0xff] }
 0x9b6   :  { %5420 = vmatpush3.bf16.msra.mxu1 %v5417_v10 }
 0x9b7   :  { %5454 = vmatprep.subr.bf16.mxu1 %v5453_v22 }
 0xa2a   :  { %v1661_v24 = vpop.xlane.xlu1 %1660  ;;  %v1658_v25 = vpop.xlane.xlu0 %1657 }
 0xa2b   :  { %v1663_v27 = vmul.f32 0.03125, %v1661_v24  ;;  %v1662_v28 = vmul.f32 0.03125, %v1658_v25  ;;  %v3659_v24 = vld [vmem:[%s7632_s8 + $0x108] sm:$0xff]  ;;  %v3642_v25 = vld [vmem:[%s7631_s30 + $0x110] sm:$0xff] }
 0xa2d   :  { %v1674_v30 = vmul.f32 %v1663_v27, %v1663_v27  ;;  %v1673_v31 = vmul.f32 %v1662_v28, %v1662_v28  ;;  %v1678_v38 = vsub.f32 %v6818_v49, %v1663_v27  ;;  %v1677_v42 = vsub.f32 %v6820_v50, %v1662_v28  ;;  %v3643_v27 = vld [vmem:[%s7631_s30 + $0x118] sm:$0xff] }
 0xa2e   :  { %v1670_v11 = vpop.xlane.xlu1 %1669  ;;  %v1667_v29 = vpop.xlane.xlu0 %1666  ;;  %v5485_v28 = vpack.c.bf16 %v3659_v24, %v3658_v21 }
 0xa2f   :  { %v1672_v32 = vmul.f32 0.03125, %v1670_v11  ;;  %v1671_v33 = vmul.f32 0.03125, %v1667_v29  ;;  %v5457_v11 = vpack.c.bf16 %v3643_v27, %v3642_v25  ;;  %v3635_v29 = vld [vmem:[%s7601_s20] ss:$0 sm:$0xff] }
 0xa30   :  { %5486 = vmatprep.subr.bf16.mxu0 %v5485_v28 }
 0xa31   :  { %v1676_v34 = vsub.f32 %v1672_v32, %v1674_v30  ;;  %v1675_v35 = vsub.f32 %v1671_v33, %v1673_v31 }
 0xa33   :  { %v1680_v36 = vadd.f32 1e-06, %v1676_v34  ;;  %v1679_v37 = vadd.f32 1e-06, %v1675_v35 }
 0xa35   :  { %5818 = vrsqrt.f32 %v1680_v36 }
 0xa36   :  { %5820 = vrsqrt.f32 %v1679_v37 }
 0xa3f   :  { %v5819_v41 = vpop.eup %5818 }
 0xa40   :  { %v5821_v40 = vpop.eup %5820  ;;  %v1684_v44 = vmul.f32 %v5819_v41, %v1678_v38 }
 0xa41   :  { %v1683_v18 = vmul.f32 %v5821_v40, %v1677_v42  ;;  %v3645_v40 = vld [vmem:[%s7631_s30 + $0x128] sm:$0xff] }
 0xa42   :  { %v1692_v46 = vmul.f32 %v3632_v43, %v1684_v44 }
 0xa43   :  { %v1691_v47 = vmul.f32 %v3632_v43, %v1683_v18  ;;  %v3644_v43 = vld [vmem:[%s7631_s30 + $0x120] sm:$0xff]  ;;  %v3663_v18 = vld [vmem:[%s7632_s8 + $0x128] sm:$0xff] }
 0xa44   :  { %v1700_v48 = vadd.f32 %v3633_v45, %v1692_v46  ;;  %v5461_v44 = vpack.c.bf16 %v3645_v40, %v3644_v43  ;;  %v3639_v43 = vld [vmem:[%s7636_s4 + $0x1] ss:$0 sm:$0xff] }
 0xa45   :  { %v1699_v39 = vadd.f32 %v3633_v45, %v1691_v47  ;;  %v3662_v45 = vld [vmem:[%s7632_s8 + $0x120] sm:$0xff]  ;;  %v3646_v47 = vld [vmem:[%s7631_s30 + $0x130] sm:$0xff] }
 0xa46   :  { %v5493_v46 = vpack.c.bf16 %v3663_v18, %v3662_v45  ;;  %v3678_v45 = vld [vmem:[%s7592_s11 + $0x110] sm:$0xff]  ;;  %v3679_v18 = vld [vmem:[%s7592_s11 + $0x118] sm:$0xff] }
 0xa47   :  { %4626 = vmatprep.mubr.f32.mxu1 %v1699_v39 }
 0xa48   :  { %4627 = vmatmul.mubr.f32.vlgmr.msra.gmra.mrb[16].mxu1 %v1700_v48  ;;  %v3647_v48 = vld [vmem:[%s7631_s30 + $0x138] sm:$0xff] }
 0xa49   :  { %5456 = vmatpush3.bf16.msra.mxu1 %v5453_v22  ;;  %v5465_v39 = vpack.c.bf16 %v3647_v48, %v3646_v47  ;;  %v5521_v48 = vpack.c.bf16 %v3679_v18, %v3678_v45 }
 0xa4a   :  { %5458 = vmatprep.subr.bf16.mxu1 %v5457_v11 }
 0xa4d   :  { %5460 = vmatpush3.bf16.msra.mxu1 %v5457_v11 }
 0xa4e   :  { %5462 = vmatprep.subr.bf16.mxu1 %v5461_v44 }
 0xa51   :  { %5464 = vmatpush3.bf16.msra.mxu1 %v5461_v44 }
 0xa52   :  { %5466 = vmatprep.subr.bf16.mxu1 %v5465_v39 }
 0xa55   :  { %5468 = vmatpush3.bf16.msra.mxu1 %v5465_v39  ;;  %v3680_v39 = vld [vmem:[%s7592_s11 + $0x120] sm:$0xff] }
 0xa56   :  { %5470 = vmatprep.subr.bf16.mxu1 %v5469_v54  ;;  %v5525_v52 = vpack.c.bf16 %v3681_v51, %v3680_v39  ;;  %v3744_v51 = vld [vmem:[%s7591_s10 + $0x3] ss:$0 sm:$0xff] }
 0xa59   :  { %5472 = vmatpush3.bf16.msra.mxu1 %v5469_v54  ;;  %v3684_v54 = vld [vmem:[%s7592_s11 + $0x140] sm:$0xff] }
 0xa5a   :  { %5474 = vmatprep.subr.bf16.mxu1 %v5473_v61  ;;  %v5533_v56 = vpack.c.bf16 %v3685_v55, %v3684_v54 }
 0xa5d   :  { %5476 = vmatpush3.bf16.msra.mxu1 %v5473_v61  ;;  %v3688_v61 = vld [vmem:[%s7592_s11 + $0x160] sm:$0xff] }
 0xa5e   :  { %v5541_v0 = vpack.c.bf16 %v3689_v62, %v3688_v61  ;;  %v7195_v62 = vld [vmem:[%s7642_s9] sm:$0xff] }
 0xb1b   :  { %v4628_v3 = vpop.f32.mrb[16].mxu1 }
 0xb1c   :  { %v1796_v5 = vadd.f32 %v4628_v3, %v3634_v2  ;;  %v1790_v23 = vpop.f32.mrb[17].mxu1  ;;  %v3653_v3 = vld [vmem:[%s7631_s30 + $0x168] sm:$0xff] }
 0xb1d   :  { %v1791_v26 = vadd.f32 %v3634_v2, %v1790_v23  ;;  %v3652_v2 = vld [vmem:[%s7631_s30 + $0x160] sm:$0xff] }
 0xb1e   :  { %v1802_v6 = vmul.f32 0.70710677, %v1796_v5  ;;  %v1800_v14 = vmul.f32 0.5, %v1796_v5  ;;  %v5477_v5 = vpack.c.bf16 %v3653_v3, %v3652_v2  ;;  %v3670_v23 = vld [vmem:[%s7632_s8 + $0x160] sm:$0xff]  ;;  %v3691_v2 = vld [vmem:[%s7592_s11 + $0x178] sm:$0xff] }
 0xb1f   :  { %v1801_v7 = vmul.f32 0.70710677, %v1791_v26  ;;  %v1799_v12 = vmul.f32 0.5, %v1791_v26  ;;  %v3671_v26 = vld [vmem:[%s7632_s8 + $0x168] sm:$0xff] }
 0xb20   :  { %5822 = verf.f32 %v1802_v6  ;;  %v5509_v6 = vpack.c.bf16 %v3671_v26, %v3670_v23  ;;  %5478 = vmatprep.subr.bf16.mxu1 %v5477_v5  ;;  %v3728_v23 = vld [vmem:[%s7632_s8 + $0x188] sm:$0xff] }
 0xb21   :  { %5824 = verf.f32 %v1801_v7  ;;  %5480 = vmatpush3.bf16.msra.mxu1 %v5477_v5  ;;  %v3654_v7 = vld [vmem:[%s7631_s30 + $0x170] sm:$0xff]  ;;  %v3727_v5 = vld [vmem:[%s7632_s8 + $0x180] sm:$0xff] }
 0xb22   :  { %v5593_v26 = vpack.c.bf16 %v3728_v23, %v3727_v5 }
 0xb2a   :  { %v5823_v8 = vpop.eup %5822 }
 0xb2b   :  { %v5825_v9 = vpop.eup %5824  ;;  %v1806_v10 = vadd.f32 1.0, %v5823_v8  ;;  %v3655_v8 = vld [vmem:[%s7631_s30 + $0x178] sm:$0xff] }
 0xb2c   :  { %v1805_v13 = vadd.f32 1.0, %v5825_v9  ;;  %v5481_v9 = vpack.c.bf16 %v3655_v8, %v3654_v7  ;;  %v3730_v7 = vld [vmem:[%s7632_s8 + $0x198] sm:$0xff] }
 0xb2d   :  { %v1808_v16 = vmul.f32 %v1806_v10, %v1800_v14  ;;  %v3672_v10 = vld [vmem:[%s7632_s8 + $0x170] sm:$0xff]  ;;  %v3676_v14 = vld [vmem:[%s7592_s11 + $0x100] sm:$0xff] }
 0xb2e   :  { %v1807_v15 = vmul.f32 %v1805_v13, %v1799_v12  ;;  %v3673_v12 = vld [vmem:[%s7632_s8 + $0x178] sm:$0xff]  ;;  %5482 = vmatprep.subr.bf16.mxu1 %v5481_v9 }
 0xb2f   :  { %v5513_v13 = vpack.c.bf16 %v3673_v12, %v3672_v10  ;;  %5484 = vmatpush3.bf16.msra.mxu1 %v5481_v9  ;;  %v3731_v9 = vld [vmem:[%s7632_s8 + $0x1a0] sm:$0xff]  ;;  %v3732_v10 = vld [vmem:[%s7632_s8 + $0x1a8] sm:$0xff] }
 0xb30   :  { %4661 = vmatprep.mubr.f32.mxu0 %v1807_v15  ;;  %v3677_v15 = vld [vmem:[%s7592_s11 + $0x108] sm:$0xff]  ;;  %v5601_v12 = vpack.c.bf16 %v3732_v10, %v3731_v9 }
 0xb31   :  { %4662 = vmatmul.mubr.f32.vlgmr.msra.gmra.mrb[18].mxu0 %v1808_v16  ;;  %v5517_v16 = vpack.c.bf16 %v3677_v15, %v3676_v14  ;;  %v3734_v14 = vld [vmem:[%s7632_s8 + $0x1b8] sm:$0xff] }
 0xb32   :  { %5488 = vmatpush3.bf16.msra.mxu0 %v5485_v28 }
 0xb33   :  { %5518 = vmatprep.subr.bf16.mxu1 %v5517_v16 }
 0xc04   :  { %v4663_v30 = vpop.f32.mrb[18].mxu0 }
 0xc05   :  { %v1904_v31 = vadd.f32 %v4663_v30, %v3635_v29  ;;  %v1898_v32 = vpop.f32.mrb[19].mxu0 }
 0xc06   :  { %v1899_v33 = vadd.f32 %v3635_v29, %v1898_v32 }
 0xc07   :  { %v6953_v34 = vadd.f32 %v1904_v31, %v6818_v49  ;;  %v3660_v49 = vld [vmem:[%s7632_s8 + $0x110] sm:$0xff] }
 0xc08   :  { %v6956_v35 = vadd.f32 %v1899_v33, %v6820_v50  ;;  %v3661_v50 = vld [vmem:[%s7632_s8 + $0x118] sm:$0xff] }
 0xc09   :  { %v1915_v36 = vsel %vm431_vm0, %v6953_v34, 0.0  ;;  %v1921_v37 = vmul.f32 %v6953_v34, %v6953_v34  ;;  %v5489_v42 = vpack.c.bf16 %v3661_v50, %v3660_v49 }
 0xc0a   :  { %1916 = vadd.xlane.f32.xlu1 %v1915_v36  ;;  %1913 = vadd.xlane.f32.xlu0 %v6956_v35  ;;  %v1920_v38 = vmul.f32 %v6956_v35, %v6956_v35 }
 0xc0b   :  { %v1924_v41 = vsel %vm431_vm0, %v1921_v37, 0.0  ;;  %5490 = vmatprep.subr.bf16.mxu0 %v5489_v42 }
 0xc0c   :  { %5492 = vmatpush3.bf16.msra.mxu0 %v5489_v42 }
 0xc0d   :  { %5494 = vmatprep.subr.bf16.mxu0 %v5493_v46 }
 0xc0e   :  { %1925 = vadd.xlane.f32.xlu1 %v1924_v41  ;;  %1922 = vadd.xlane.f32.xlu0 %v1920_v38  ;;  %v3638_v41 = vld [vmem:[%s7635_s26 + $0x1] ss:$0 sm:$0xff] }
 0xc10   :  { %5496 = vmatpush3.bf16.msra.mxu0 %v5493_v46 }
 0xc11   :  { %5498 = vmatprep.subr.bf16.mxu0 %v5497_v53 }
 0xc14   :  { %5500 = vmatpush3.bf16.msra.mxu0 %v5497_v53  ;;  %v3682_v53 = vld [vmem:[%s7592_s11 + $0x130] sm:$0xff] }
 0xc15   :  { %5502 = vmatprep.subr.bf16.mxu0 %v5501_v57  ;;  %v5529_v58 = vpack.c.bf16 %v3683_v63, %v3682_v53 }
 0xc18   :  { %5504 = vmatpush3.bf16.msra.mxu0 %v5501_v57  ;;  %v3686_v57 = vld [vmem:[%s7592_s11 + $0x150] sm:$0xff] }
 0xc19   :  { %5506 = vmatprep.subr.bf16.mxu0 %v5505_v1  ;;  %v5537_v60 = vpack.c.bf16 %v3687_v59, %v3686_v57 }
 0xc1c   :  { %5508 = vmatpush3.bf16.msra.mxu0 %v5505_v1  ;;  %v3690_v1 = vld [vmem:[%s7592_s11 + $0x170] sm:$0xff] }
 0xc1d   :  { %5510 = vmatprep.subr.bf16.mxu0 %v5509_v6  ;;  %v5545_v3 = vpack.c.bf16 %v3691_v2, %v3690_v1 }
 0xc20   :  { %5512 = vmatpush3.bf16.msra.mxu0 %v5509_v6  ;;  %v3729_v6 = vld [vmem:[%s7632_s8 + $0x190] sm:$0xff] }
 0xc21   :  { %5514 = vmatprep.subr.bf16.mxu0 %v5513_v13  ;;  %v5597_v8 = vpack.c.bf16 %v3730_v7, %v3729_v6 }
 0xc24   :  { %5516 = vmatpush3.bf16.msra.mxu0 %v5513_v13  ;;  %v3733_v13 = vld [vmem:[%s7632_s8 + $0x1b0] sm:$0xff] }
 0xc25   :  { %v5605_v15 = vpack.c.bf16 %v3734_v14, %v3733_v13  ;;  %v3710_v13 = vld [vmem:[%s7631_s30 + $0x188] sm:$0xff] }
 0xc97   :  { %v1917_v17 = vpop.xlane.xlu1 %1916  ;;  %v1914_v20 = vpop.xlane.xlu0 %1913 }
 0xc98   :  { %v1919_v21 = vmul.f32 0.03125, %v1917_v17  ;;  %v1918_v22 = vmul.f32 0.03125, %v1914_v20  ;;  %v3736_v17 = vld [vmem:[%s7632_s8 + $0x1c8] sm:$0xff] }
 0xc9a   :  { %v1930_v27 = vmul.f32 %v1919_v21, %v1919_v21  ;;  %v1929_v28 = vmul.f32 %v1918_v22, %v1918_v22  ;;  %v1934_v36 = vsub.f32 %v6953_v34, %v1919_v21  ;;  %v1933_v38 = vsub.f32 %v6956_v35, %v1918_v22  ;;  %v3737_v21 = vld [vmem:[%s7632_s8 + $0x1d0] sm:$0xff]  ;;  %v3738_v22 = vld [vmem:[%s7632_s8 + $0x1d8] sm:$0xff] }
 0xc9b   :  { %v1926_v24 = vpop.xlane.xlu1 %1925  ;;  %v1923_v25 = vpop.xlane.xlu0 %1922 }
 0xc9c   :  { %v1928_v11 = vmul.f32 0.03125, %v1926_v24  ;;  %v1927_v29 = vmul.f32 0.03125, %v1923_v25  ;;  %v5613_v24 = vpack.c.bf16 %v3738_v22, %v3737_v21  ;;  %v3739_v25 = vld [vmem:[%s7632_s8 + $0x1e0] sm:$0xff]  ;;  %v3712_v21 = vld [vmem:[%s7631_s30 + $0x198] sm:$0xff] }
 0xc9e   :  { %v1932_v30 = vsub.f32 %v1928_v11, %v1930_v27  ;;  %v1931_v31 = vsub.f32 %v1927_v29, %v1929_v28  ;;  %v3740_v27 = vld [vmem:[%s7632_s8 + $0x1e8] sm:$0xff]  ;;  %v3741_v11 = vld [vmem:[%s7632_s8 + $0x1f0] sm:$0xff]  ;;  %v3742_v29 = vld [vmem:[%s7632_s8 + $0x1f8] sm:$0xff] }
 0xc9f   :  { %v5617_v28 = vpack.c.bf16 %v3740_v27, %v3739_v25 }
 0xca0   :  { %v1936_v32 = vadd.f32 1e-06, %v1932_v30  ;;  %v1935_v33 = vadd.f32 1e-06, %v1931_v31  ;;  %v5621_v30 = vpack.c.bf16 %v3742_v29, %v3741_v11  ;;  %v3675_v31 = vld [vmem:[%s7591_s10 + $0x2] ss:$0 sm:$0xff] }
 0xca1   :  { %v3714_v11 = vld [vmem:[%s7631_s30 + $0x1a8] sm:$0xff] }
 0xca2   :  { %5826 = vrsqrt.f32 %v1936_v32  ;;  %v3657_v32 = vld [vmem:[%s7637_s6 + $0x2] ss:$0 sm:$0xff] }
 0xca3   :  { %5828 = vrsqrt.f32 %v1935_v33 }
 0xcac   :  { %v5827_v37 = vpop.eup %5826 }
 0xcad   :  { %v5829_v49 = vpop.eup %5828  ;;  %v1940_v50 = vmul.f32 %v5827_v37, %v1934_v36 }
 0xcae   :  { %v1939_v42 = vmul.f32 %v5829_v49, %v1933_v38 }
 0xcaf   :  { %v1948_v40 = vmul.f32 %v3638_v41, %v1940_v50 }
 0xcb0   :  { %v1947_v44 = vmul.f32 %v3638_v41, %v1939_v42 }
 0xcb1   :  { %v7064_v46 = vadd.f32 %v3639_v43, %v1948_v40  ;;  %v3693_v40 = vld [vmem:[%s7593_s12 + $0x2] ss:$0 sm:$0xff] }
 0xcb2   :  { %v7066_v47 = vadd.f32 %v3639_v43, %v1947_v44 }
 0xcb4   :  { %4696 = vmatprep.mubr.f32.mxu1 %v7066_v47  ;;  %4731 = vmatprep.mubr.f32.mxu0 %v7066_v47 }
 0xcb5   :  { %4697 = vmatmul.mubr.f32.vlgmr.msra.gmra.mrb[18].mxu1 %v7064_v46  ;;  %4732 = vmatmul.mubr.f32.vlgmr.msra.gmra.mrb[20].mxu0 %v7064_v46 }
 0xcb6   :  { %5520 = vmatpush3.bf16.msra.mxu1 %v5517_v16  ;;  %4766 = vmatprep.mubr.f32.mxu1 %v7066_v47  ;;  %v3735_v16 = vld [vmem:[%s7632_s8 + $0x1c0] sm:$0xff] }
 0xcb7   :  { %5522 = vmatprep.subr.bf16.mxu1 %v5521_v48  ;;  %v5609_v20 = vpack.c.bf16 %v3736_v17, %v3735_v16 }
 0xcba   :  { %5524 = vmatpush3.bf16.msra.mxu1 %v5521_v48 }
 0xcbb   :  { %5526 = vmatprep.subr.bf16.mxu1 %v5525_v52 }
 0xcbe   :  { %5528 = vmatpush3.bf16.msra.mxu1 %v5525_v52 }
 0xcbf   :  { %5530 = vmatprep.subr.bf16.mxu1 %v5529_v58 }
 0xcc2   :  { %5532 = vmatpush3.bf16.msra.mxu1 %v5529_v58 }
 0xcc3   :  { %5534 = vmatprep.subr.bf16.mxu1 %v5533_v56 }
 0xcc6   :  { %5536 = vmatpush3.bf16.msra.mxu1 %v5533_v56 }
 0xcc7   :  { %5538 = vmatprep.subr.bf16.mxu1 %v5537_v60 }
 0xcca   :  { %5540 = vmatpush3.bf16.msra.mxu1 %v5537_v60  ;;  %v7189_v60 = vld [vmem:[%s7642_s9 + $0x8] sm:$0x3]  ;;  %s7643_s9 = sld [smem:[#allocation15_spill]] }
 0xccb   :  { %5542 = vmatprep.subr.bf16.mxu1 %v5541_v0 }
 0xcce   :  { %5544 = vmatpush3.bf16.msra.mxu1 %v5541_v0 }
 0xccf   :  { %5546 = vmatprep.subr.bf16.mxu1 %v5545_v3 }
 0xcd2   :  { %5548 = vmatpush3.bf16.msra.mxu1 %v5545_v3 }
 0xcd3   :  { %5594 = vmatprep.subr.bf16.mxu1 %v5593_v26 }
 0xcd5   :  { %4767 = vmatmul.mubr.f32.vlgmr.msra.gmra.mrb[20].mxu1 %v7064_v46 }
 0xcd6   :  { %5596 = vmatpush3.bf16.msra.mxu1 %v5593_v26  ;;  %4850 = vmatprep.mubr.f32.mxu1 %v7066_v47 }
 0xcd7   :  { %5598 = vmatprep.subr.bf16.mxu1 %v5597_v8 }
 0xcda   :  { %5600 = vmatpush3.bf16.msra.mxu1 %v5597_v8 }
 0xcdb   :  { %5602 = vmatprep.subr.bf16.mxu1 %v5601_v12 }
 0xcde   :  { %5604 = vmatpush3.bf16.msra.mxu1 %v5601_v12  ;;  %v3709_v12 = vld [vmem:[%s7631_s30 + $0x180] sm:$0xff] }
 0xcdf   :  { %5606 = vmatprep.subr.bf16.mxu1 %v5605_v15  ;;  %v5561_v14 = vpack.c.bf16 %v3710_v13, %v3709_v12 }
 0xce2   :  { %5608 = vmatpush3.bf16.msra.mxu1 %v5605_v15 }
 0xce3   :  { %5610 = vmatprep.subr.bf16.mxu1 %v5609_v20 }
 0xce6   :  { %5612 = vmatpush3.bf16.msra.mxu1 %v5609_v20  ;;  %v3711_v20 = vld [vmem:[%s7631_s30 + $0x190] sm:$0xff] }
 0xce7   :  { %5614 = vmatprep.subr.bf16.mxu1 %v5613_v24  ;;  %v5565_v27 = vpack.c.bf16 %v3712_v21, %v3711_v20 }
 0xcea   :  { %5616 = vmatpush3.bf16.msra.mxu1 %v5613_v24 }
 0xceb   :  { %5618 = vmatprep.subr.bf16.mxu1 %v5617_v28 }
 0xcee   :  { %5620 = vmatpush3.bf16.msra.mxu1 %v5617_v28  ;;  %v3713_v28 = vld [vmem:[%s7631_s30 + $0x1a0] sm:$0xff] }
 0xcef   :  { %5622 = vmatprep.subr.bf16.mxu1 %v5621_v30  ;;  %v5569_v29 = vpack.c.bf16 %v3714_v11, %v3713_v28 }
 0xcf2   :  { %5624 = vmatpush3.bf16.msra.mxu1 %v5621_v30  ;;  %v3715_v30 = vld [vmem:[%s7631_s30 + $0x1b0] sm:$0xff] }
 0xcf5   :  { %4851 = vmatmul.mubr.f32.vlgmr.msra.gmra.mrb[22].mxu1 %v7064_v46 }
 0xd88   :  { %v4698_v33 = vpop.f32.mrb[18].mxu1  ;;  %v4733_v36 = vpop.f32.mrb[20].mxu0 }
 0xd89   :  { %v2154_v37 = vadd.f32 %v4733_v36, %v3675_v31  ;;  %v2048_v38 = vpop.f32.mrb[19].mxu1  ;;  %v2148_v41 = vpop.f32.mrb[21].mxu0  ;;  %v2054_v43 = vadd.f32 %v4698_v33, %v3657_v32  ;;  %v3717_v33 = vld [vmem:[%s7631_s30 + $0x1c0] sm:$0xff]  ;;  %v3718_v36 = vld [vmem:[%s7631_s30 + $0x1c8] sm:$0xff] }
 0xd8a   :  { %v2049_v49 = vadd.f32 %v3657_v32, %v2048_v38  ;;  %v2149_v50 = vadd.f32 %v3675_v31, %v2148_v41  ;;  %v3716_v31 = vld [vmem:[%s7631_s30 + $0x1b8] sm:$0xff]  ;;  %v3719_v38 = vld [vmem:[%s7631_s30 + $0x1d0] sm:$0xff] }
 0xd8b   :  { %v5573_v32 = vpack.c.bf16 %v3716_v31, %v3715_v30  ;;  %v3720_v41 = vld [vmem:[%s7631_s30 + $0x1d8] sm:$0xff] }
 0xd8c   :  { %v5549_v42 = vpack.c.bf16 %v2154_v37, %v2149_v50  ;;  %4773 = vmatprep.mubr.msk.f32.mxu0 %vm768_vm1, %v2049_v49  ;;  %v5577_v37 = vpack.c.bf16 %v3718_v36, %v3717_v33  ;;  %v5581_v49 = vpack.c.bf16 %v3720_v41, %v3719_v38  ;;  %v3721_v50 = vld [vmem:[%s7631_s30 + $0x1e0] sm:$0xff] }
 0xd8e   :  { %5551 = vmatprep.subr.msk.bf16.mxu0 %vm6582_vm2, %v5549_v42 }
 0xd8f   :  { %5554 = vmatpush3.bf16.xpose.msk.msra.mxu0 %vm6582_vm2, %v5549_v42  ;;  %v3722_v42 = vld [vmem:[%s7631_s30 + $0x1e8] sm:$0xff] }
 0xd96   :  { %4774 = vmatmul.mubr.msk.f32.vlgmr.msra.gmra.mrb[22].mxu0 %vm768_vm1, %v2054_v43  ;;  %v5585_v43 = vpack.c.bf16 %v3722_v42, %v3721_v50  ;;  %v3771_v50 = vld [vmem:[%s7594_s13 + $0xc8] sm:$0xff] }
 0xda8   :  { %v4768_v44 = vpop.f32.mrb[20].mxu1 }
 0xda9   :  { %v2254_v45 = vadd.f32 %v4768_v44, %v3693_v40  ;;  %v2248_v18 = vpop.f32.mrb[21].mxu1  ;;  %v3724_v44 = vld [vmem:[%s7631_s30 + $0x1f8] sm:$0xff] }
 0xdaa   :  { %v2249_v48 = vadd.f32 %v3693_v40, %v2248_v18  ;;  %v3723_v40 = vld [vmem:[%s7631_s30 + $0x1f0] sm:$0xff]  ;;  %v3745_v18 = vld [vmem:[%s7592_s11 + $0x180] sm:$0xff] }
 0xdac   :  { %v5555_v39 = vpack.c.bf16 %v2254_v45, %v2249_v48  ;;  %v5589_v45 = vpack.c.bf16 %v3724_v44, %v3723_v40  ;;  %v3746_v48 = vld [vmem:[%s7592_s11 + $0x188] sm:$0xff] }
 0xdae   :  { %5557 = vmatprep.subr.msk.bf16.mxu0 %vm6599_vm4, %v5555_v39 }
 0xdaf   :  { %5560 = vmatpush3.bf16.msk.msra.mxu0 %vm6599_vm4, %v5555_v39  ;;  %v5625_v39 = vpack.c.bf16 %v3746_v48, %v3745_v18  ;;  %v3773_v18 = vld [vmem:[%s7594_s13 + $0xd8] sm:$0xff] }
 0xdb0   :  { %5562 = vmatprep.subr.bf16.mxu0 %v5561_v14 }
 0xdc8   :  { %v4852_v52 = vpop.f32.mrb[22].mxu1 }
 0xdc9   :  { %v2660_v53 = vadd.f32 %v4852_v52, %v3744_v51  ;;  %v2654_v63 = vpop.f32.mrb[23].mxu1  ;;  %v3748_v52 = vld [vmem:[%s7592_s11 + $0x198] sm:$0xff] }
 0xdca   :  { %v2655_v58 = vadd.f32 %v3744_v51, %v2654_v63  ;;  %v3747_v51 = vld [vmem:[%s7592_s11 + $0x190] sm:$0xff]  ;;  %v3749_v63 = vld [vmem:[%s7592_s11 + $0x1a0] sm:$0xff] }
 0xdcc   :  { %v5657_v54 = vpack.c.bf16 %v2660_v53, %v2655_v58  ;;  %v5629_v53 = vpack.c.bf16 %v3748_v52, %v3747_v51  ;;  %v3750_v58 = vld [vmem:[%s7592_s11 + $0x1a8] sm:$0xff] }
 0xdce   :  { %5659 = vmatprep.subr.msk.bf16.mxu1 %vm6582_vm2, %v5657_v54 }
 0xdcf   :  { %5662 = vmatpush3.bf16.xpose.msk.msra.mxu1 %vm6582_vm2, %v5657_v54  ;;  %v5633_v54 = vpack.c.bf16 %v3750_v58, %v3749_v63  ;;  %v3775_v63 = vld [vmem:[%s7594_s13 + $0xe8] sm:$0xff] }
 0xe69   :  { %v4775_v55 = vpop.f32.mrb[22].mxu0 }
 0xe6a   :  { %v2345_v56 = vmul.f32 0.25, %v4775_v55  ;;  %v2335_v57 = vpop.f32.mrb[23].mxu0  ;;  %v3751_v55 = vld [vmem:[%s7592_s11 + $0x1b0] sm:$0xff] }
 0xe6b   :  { %v2344_v59 = vmul.f32 0.25, %v2335_v57 }
 0xe6c   :  { %v2347_v61 = vadd.f32 %v7189_v60, %v2345_v56  ;;  %v3752_v56 = vld [vmem:[%s7592_s11 + $0x1b8] sm:$0xff] }
 0xe6d   :  { %v2346_v0 = vadd.f32 %v7195_v62, %v2344_v59  ;;  %v5637_v57 = vpack.c.bf16 %v3752_v56, %v3751_v55  ;;  %v3753_v59 = vld [vmem:[%s7592_s11 + $0x1c0] sm:$0xff]  ;;  %v3777_v55 = vld [vmem:[%s7594_s13 + $0xf8] sm:$0xff] }
 0xe6e   :  { %v2351_v4 = vsel %vm864_vm5, %v2347_v61, -inf }
 0xe6f   :  { %2352 = vmax.xlane.f32.xlu1 %v2351_v4  ;;  %v2348_v1 = vsel %vm860_vm6, %v2346_v0, -inf  ;;  %v3756_v4 = vld [vmem:[%s7592_s11 + $0x1d8] sm:$0xff] }
 0xe70   :  { %2349 = vmax.xlane.f32.xlu0 %v2348_v1 }
 0xefc   :  { %v2353_v2 = vpop.xlane.xlu1 %2352 }
 0xefd   :  { %v2355_v3 = vsub.f32 %v2347_v61, %v2353_v2  ;;  %v2350_v5 = vpop.xlane.xlu0 %2349  ;;  %v3757_v2 = vld [vmem:[%s7592_s11 + $0x1e0] sm:$0xff] }
 0xefe   :  { %v2354_v23 = vsub.f32 %v2346_v0, %v2350_v5  ;;  %v3755_v0 = vld [vmem:[%s7592_s11 + $0x1d0] sm:$0xff] }
 0xeff   :  { %v2358_v26 = vmul.f32 1.442695, %v2355_v3  ;;  %v5645_v1 = vpack.c.bf16 %v3756_v4, %v3755_v0  ;;  %v3758_v3 = vld [vmem:[%s7592_s11 + $0x1e8] sm:$0xff]  ;;  %v3704_v0 = vld [vmem:[%s7594_s13 + $0x98] sm:$0xff] }
 0xf00   :  { %v2356_v6 = vmul.f32 1.442695, %v2354_v23  ;;  %v5649_v5 = vpack.c.bf16 %v3758_v3, %v3757_v2  ;;  %v3759_v23 = vld [vmem:[%s7592_s11 + $0x1f0] sm:$0xff]  ;;  %v3705_v3 = vld [vmem:[%s7594_s13 + $0xa0] sm:$0xff] }
 0xf01   :  { %5830 = vpow2.f32 %v2358_v26  ;;  %v3760_v26 = vld [vmem:[%s7592_s11 + $0x1f8] sm:$0xff] }
 0xf02   :  { %5832 = vpow2.f32 %v2356_v6  ;;  %v5653_v6 = vpack.c.bf16 %v3760_v26, %v3759_v23  ;;  %v3707_v26 = vld [vmem:[%s7594_s13 + $0xb0] sm:$0xff] }
 0xf0b   :  { %v5831_v7 = vpop.eup %5830 }
 0xf0c   :  { %v5833_v8 = vpop.eup %5832  ;;  %v2363_v9 = vsel %vm864_vm5, %v5831_v7, 0.0 }
 0xf0d   :  { %2364 = vadd.xlane.f32.xlu1 %v2363_v9  ;;  %v2360_v10 = vsel %vm860_vm6, %v5833_v8, 0.0  ;;  %v3726_v9 = vld [vmem:[%s7637_s6 + $0x3] ss:$0 sm:$0xff] }
 0xf0e   :  { %2361 = vadd.xlane.f32.xlu0 %v2360_v10 }
 0xf9a   :  { %v2365_v15 = vpop.xlane.xlu1 %2364 }
 0xf9b   :  { %5834 = vrcp.f32 %v2365_v15  ;;  %v2362_v16 = vpop.xlane.xlu0 %2361 }
 0xf9c   :  { %5836 = vrcp.f32 %v2362_v16 }
 0xfa5   :  { %v5835_v17 = vpop.eup %5834 }
 0xfa6   :  { %v5837_v22 = vpop.eup %5836  ;;  %v2369_v25 = vmul.f32 %v5835_v17, %v5831_v7 }
 0xfa7   :  { %v2367_v24 = vmul.f32 %v5837_v22, %v5833_v8 }
 0xfa9   :  { %4780 = vmatprep.mubr.msk.f32.mxu0 %vm860_vm6, %v2367_v24 }
 0xfaa   :  { %4781 = vmatmul.mubr.msk.f32.vlgmr.msra.gmra.mrb[24].mxu0 %vm860_vm6, %v2369_v25 }
 0xfab   :  { %5564 = vmatpush3.bf16.msra.mxu0 %v5561_v14  ;;  %4815 = vmatprep.mubr.f32.mxu0 %v7066_v47 }
 0xfac   :  { %5566 = vmatprep.subr.bf16.mxu0 %v5565_v27 }
 0xfaf   :  { %5568 = vmatpush3.bf16.msra.mxu0 %v5565_v27 }
 0xfb0   :  { %5570 = vmatprep.subr.bf16.mxu0 %v5569_v29 }
 0xfb3   :  { %5572 = vmatpush3.bf16.msra.mxu0 %v5569_v29 }
 0xfb4   :  { %5574 = vmatprep.subr.bf16.mxu0 %v5573_v32 }
 0xfb7   :  { %5576 = vmatpush3.bf16.msra.mxu0 %v5573_v32 }
 0xfb8   :  { %5578 = vmatprep.subr.bf16.mxu0 %v5577_v37 }
 0xfbb   :  { %5580 = vmatpush3.bf16.msra.mxu0 %v5577_v37 }
 0xfbc   :  { %5582 = vmatprep.subr.bf16.mxu0 %v5581_v49 }
 0xfbf   :  { %5584 = vmatpush3.bf16.msra.mxu0 %v5581_v49  ;;  %v3770_v49 = vld [vmem:[%s7594_s13 + $0xc0] sm:$0xff] }
 0xfc0   :  { %5586 = vmatprep.subr.bf16.mxu0 %v5585_v43  ;;  %v5669_v42 = vpack.c.bf16 %v3771_v50, %v3770_v49  ;;  %v3802_v49 = vld [vmem:[%s7598_s17 + $0xf0] sm:$0xff]  ;;  %v3803_v50 = vld [vmem:[%s7598_s17 + $0xf8] sm:$0xff] }
 0xfc3   :  { %5588 = vmatpush3.bf16.msra.mxu0 %v5585_v43 }
 0xfc4   :  { %5590 = vmatprep.subr.bf16.mxu0 %v5589_v45 }
 0xfc7   :  { %5592 = vmatpush3.bf16.msra.mxu0 %v5589_v45  ;;  %v3772_v45 = vld [vmem:[%s7594_s13 + $0xd0] sm:$0xff] }
 0xfc8   :  { %5626 = vmatprep.subr.bf16.mxu0 %v5625_v39  ;;  %v5673_v52 = vpack.c.bf16 %v3773_v18, %v3772_v45  ;;  %v3809_v18 = vld [vmem:[%s7600_s19 + $0x98] sm:$0xff] }
 0xfca   :  { %4816 = vmatmul.mubr.f32.vlgmr.msra.gmra.mrb[26].mxu0 %v7064_v46 }
 0xfcb   :  { %5628 = vmatpush3.bf16.msra.mxu0 %v5625_v39  ;;  %4885 = vmatprep.mubr.f32.mxu0 %v7066_v47  ;;  %v3754_v47 = vld [vmem:[%s7592_s11 + $0x1c8] sm:$0xff] }
 0xfcc   :  { %5630 = vmatprep.subr.bf16.mxu0 %v5629_v53  ;;  %v5641_v61 = vpack.c.bf16 %v3754_v47, %v3753_v59  ;;  %v3702_v59 = vld [vmem:[%s7594_s13 + $0x88] sm:$0xff] }
 0xfcf   :  { %5632 = vmatpush3.bf16.msra.mxu0 %v5629_v53  ;;  %v3774_v53 = vld [vmem:[%s7594_s13 + $0xe0] sm:$0xff] }
 0xfd0   :  { %5634 = vmatprep.subr.bf16.mxu0 %v5633_v54  ;;  %v5677_v58 = vpack.c.bf16 %v3775_v63, %v3774_v53 }
 0xfd3   :  { %5636 = vmatpush3.bf16.msra.mxu0 %v5633_v54  ;;  %v3776_v54 = vld [vmem:[%s7594_s13 + $0xf0] sm:$0xff] }
 0xfd4   :  { %5638 = vmatprep.subr.bf16.mxu0 %v5637_v57  ;;  %v5681_v56 = vpack.c.bf16 %v3777_v55, %v3776_v54 }
 0xfd7   :  { %5640 = vmatpush3.bf16.msra.mxu0 %v5637_v57  ;;  %v3701_v57 = vld [vmem:[%s7594_s13 + $0x80] sm:$0xff] }
 0xfd8   :  { %5642 = vmatprep.subr.bf16.mxu0 %v5641_v61  ;;  %v5685_v47 = vpack.c.bf16 %v3702_v59, %v3701_v57 }
 0xfdb   :  { %5644 = vmatpush3.bf16.msra.mxu0 %v5641_v61  ;;  %v3703_v61 = vld [vmem:[%s7594_s13 + $0x90] sm:$0xff] }
 0xfdc   :  { %5646 = vmatprep.subr.bf16.mxu0 %v5645_v1  ;;  %v5689_v2 = vpack.c.bf16 %v3704_v0, %v3703_v61 }
 0xfdf   :  { %5648 = vmatpush3.bf16.msra.mxu0 %v5645_v1 }
 0xfe0   :  { %5650 = vmatprep.subr.bf16.mxu0 %v5649_v5 }
 0xfe3   :  { %5652 = vmatpush3.bf16.msra.mxu0 %v5649_v5  ;;  %v3706_v5 = vld [vmem:[%s7594_s13 + $0xa8] sm:$0xff] }
 0xfe4   :  { %5654 = vmatprep.subr.bf16.mxu0 %v5653_v6  ;;  %v5693_v23 = vpack.c.bf16 %v3706_v5, %v3705_v3 }
 0xfe7   :  { %5656 = vmatpush3.bf16.msra.mxu0 %v5653_v6  ;;  %v3708_v6 = vld [vmem:[%s7594_s13 + $0xb8] sm:$0xff] }
 0xfea   :  { %4886 = vmatmul.mubr.f32.vlgmr.msra.gmra.mrb[28].mxu0 %v7064_v46  ;;  %v3762_v46 = vld [vmem:[%s7593_s12 + $0x3] ss:$0 sm:$0xff] }
0x107d   :  { %v7304_v7 = vpop.f32.mrb[24].mxu0 }
0x107e   :  { %v7306_v8 = vpop.f32.mrb[25].mxu0 }
0x109d   :  { %v4817_v10 = vpop.f32.mrb[26].mxu0 }
0x109e   :  { %v2554_v12 = vpop.f32.mrb[27].mxu0  ;;  %v2560_v14 = vadd.f32 %v4817_v10, %v3726_v9  ;;  %v3789_v10 = vld [vmem:[%s7598_s17 + $0x88] sm:$0xff] }
0x109f   :  { %v2555_v13 = vadd.f32 %v3726_v9, %v2554_v12  ;;  %v5697_v9 = vpack.c.bf16 %v3708_v6, %v3707_v26  ;;  %v3786_v26 = vld [vmem:[%s7596_s15 + $0x1] ss:$0 sm:$0xff] }
0x10a1   :  { %4892 = vmatprep.mubr.msk.f32.mxu1 %vm768_vm1, %v2555_v13 }
0x10a2   :  { %4893 = vmatmul.mubr.msk.f32.vlgmr.msra.gmra.mrb[24].mxu1 %vm768_vm1, %v2560_v14  ;;  %v3783_v14 = vld [vmem:[%s7595_s14 + $0x1] ss:$0 sm:$0xff] }
0x10bd   :  { %v4887_v15 = vpop.f32.mrb[28].mxu0 }
0x10be   :  { %v2760_v16 = vadd.f32 %v4887_v15, %v3762_v46  ;;  %v2754_v17 = vpop.f32.mrb[29].mxu0 }
0x10bf   :  { %v2755_v20 = vadd.f32 %v3762_v46, %v2754_v17 }
0x10c1   :  { %v5663_v21 = vpack.c.bf16 %v2760_v16, %v2755_v20 }
0x10c3   :  { %5665 = vmatprep.subr.msk.bf16.mxu1 %vm6599_vm4, %v5663_v21 }
0x10c4   :  { %5668 = vmatpush3.bf16.msk.msra.mxu1 %vm6599_vm4, %v5663_v21 }
0x10c5   :  { %5670 = vmatprep.subr.bf16.mxu1 %v5669_v42 }
0x1175   :  { %v4894_v22 = vpop.f32.mrb[24].mxu1 }
0x1176   :  { %v2851_v24 = vmul.f32 0.25, %v4894_v22  ;;  %v2841_v25 = vpop.f32.mrb[25].mxu1 }
0x1177   :  { %v2850_v27 = vmul.f32 0.25, %v2841_v25 }
0x1178   :  { %v2853_v28 = vadd.f32 %v7189_v60, %v2851_v24  ;;  %v3791_v24 = vld [vmem:[%s7598_s17 + $0x98] sm:$0xff] }
0x1179   :  { %v2852_v11 = vadd.f32 %v7195_v62, %v2850_v27  ;;  %v3792_v27 = vld [vmem:[%s7598_s17 + $0xa0] sm:$0xff] }
0x117a   :  { %v2857_v29 = vsel %vm864_vm5, %v2853_v28, -inf }
0x117b   :  { %2858 = vmax.xlane.f32.xlu1 %v2857_v29  ;;  %v2854_v30 = vsel %vm860_vm6, %v2852_v11, -inf  ;;  %v3794_v29 = vld [vmem:[%s7598_s17 + $0xb0] sm:$0xff] }
0x117c   :  { %2855 = vmax.xlane.f32.xlu0 %v2854_v30  ;;  %v3795_v30 = vld [vmem:[%s7598_s17 + $0xb8] sm:$0xff] }
0x1208   :  { %v2859_v31 = vpop.xlane.xlu1 %2858 }
0x1209   :  { %v2861_v32 = vsub.f32 %v2853_v28, %v2859_v31  ;;  %v2856_v33 = vpop.xlane.xlu0 %2855  ;;  %v3793_v28 = vld [vmem:[%s7598_s17 + $0xa8] sm:$0xff]  ;;  %v5713_v31 = vpack.c.bf16 %v3795_v30, %v3794_v29  ;;  %v3821_v29 = vld [vmem:[%s7600_s19 + $0xf8] sm:$0xff] }
0x120a   :  { %v2860_v36 = vsub.f32 %v2852_v11, %v2856_v33  ;;  %v5709_v11 = vpack.c.bf16 %v3793_v28, %v3792_v27  ;;  %v3797_v33 = vld [vmem:[%s7598_s17 + $0xc8] sm:$0xff] }
0x120b   :  { %v2864_v19 = vmul.f32 1.442695, %v2861_v32  ;;  %v3796_v32 = vld [vmem:[%s7598_s17 + $0xc0] sm:$0xff]  ;;  %v3819_v27 = vld [vmem:[%s7600_s19 + $0xe8] sm:$0xff] }
0x120c   :  { %v2862_v37 = vmul.f32 1.442695, %v2860_v36  ;;  %v5717_v36 = vpack.c.bf16 %v3797_v33, %v3796_v32 }
0x120d   :  { %5838 = vpow2.f32 %v2864_v19  ;;  %v3798_v19 = vld [vmem:[%s7598_s17 + $0xd0] sm:$0xff] }
0x120e   :  { %5840 = vpow2.f32 %v2862_v37  ;;  %v3799_v37 = vld [vmem:[%s7598_s17 + $0xd8] sm:$0xff] }
0x1217   :  { %v5839_v38 = vpop.eup %5838 }
0x1218   :  { %v5841_v41 = vpop.eup %5840  ;;  %v2869_v60 = vsel %vm864_vm5, %v5839_v38, 0.0 }
0x1219   :  { %2870 = vadd.xlane.f32.xlu1 %v2869_v60  ;;  %v2866_v62 = vsel %vm860_vm6, %v5841_v41, 0.0  ;;  %v3801_v60 = vld [vmem:[%s7598_s17 + $0xe8] sm:$0xff] }
0x121a   :  { %2867 = vadd.xlane.f32.xlu0 %v2866_v62 }
0x12a6   :  { %v2871_v43 = vpop.xlane.xlu1 %2870 }
0x12a7   :  { %5842 = vrcp.f32 %v2871_v43  ;;  %v2868_v40 = vpop.xlane.xlu0 %2867  ;;  %v3806_v43 = vld [vmem:[%s7600_s19 + $0x80] sm:$0xff] }
0x12a8   :  { %5844 = vrcp.f32 %v2868_v40  ;;  %v3807_v40 = vld [vmem:[%s7600_s19 + $0x88] sm:$0xff] }
0x12a9   :  { %v5733_v45 = vpack.c.bf16 %v3807_v40, %v3806_v43 }
0x12b1   :  { %v5843_v44 = vpop.eup %5842 }
0x12b2   :  { %v5845_v48 = vpop.eup %5844  ;;  %v2875_v51 = vmul.f32 %v5843_v44, %v5839_v38  ;;  %v5721_v38 = vpack.c.bf16 %v3799_v37, %v3798_v19  ;;  %v3808_v44 = vld [vmem:[%s7600_s19 + $0x90] sm:$0xff] }
0x12b3   :  { %v2873_v39 = vmul.f32 %v5845_v48, %v5841_v41  ;;  %v3800_v41 = vld [vmem:[%s7598_s17 + $0xe0] sm:$0xff]  ;;  %v5737_v48 = vpack.c.bf16 %v3809_v18, %v3808_v44  ;;  %v3439_v18 = vld [vmem:[%s7604_s23 + $0x10] sm:$0xff] }
0x12b4   :  { %v5725_v62 = vpack.c.bf16 %v3801_v60, %v3800_v41  ;;  %v3437_v44 = vld [vmem:[%s7604_s23] sm:$0xff] }
0x12b5   :  { %4899 = vmatprep.mubr.msk.f32.mxu1 %vm860_vm6, %v2873_v39  ;;  %v3810_v39 = vld [vmem:[%s7600_s19 + $0xa0] sm:$0xff] }
0x12b6   :  { %4900 = vmatmul.mubr.msk.f32.vlgmr.msra.gmra.mrb[26].mxu1 %vm860_vm6, %v2875_v51  ;;  %v3811_v51 = vld [vmem:[%s7600_s19 + $0xa8] sm:$0xff] }
0x12b7   :  { %5672 = vmatpush3.bf16.msra.mxu1 %v5669_v42  ;;  %v5729_v42 = vpack.c.bf16 %v3803_v50, %v3802_v49 }
0x12b8   :  { %5674 = vmatprep.subr.bf16.mxu1 %v5673_v52 }
0x12bb   :  { %5676 = vmatpush3.bf16.msra.mxu1 %v5673_v52  ;;  %v5741_v52 = vpack.c.bf16 %v3811_v51, %v3810_v39  ;;  %v3440_v51 = vld [vmem:[%s7604_s23 + $0x18] sm:$0xff] }
0x12bc   :  { %5678 = vmatprep.subr.bf16.mxu1 %v5677_v58 }
0x12bf   :  { %5680 = vmatpush3.bf16.msra.mxu1 %v5677_v58 }
0x12c0   :  { %5682 = vmatprep.subr.bf16.mxu1 %v5681_v56 }
0x12c3   :  { %5684 = vmatpush3.bf16.msra.mxu1 %v5681_v56 }
0x12c4   :  { %5686 = vmatprep.subr.bf16.mxu1 %v5685_v47 }
0x1389   :  { %v4901_v4 = vpop.f32.mrb[26].mxu1 }
0x138a   :  { %v2951_v1 = vpop.f32.mrb[27].mxu1 }
0x138b   :  { %4918 = vmatprep.mubr.msk.f32.mxu1 %vm768_vm1, %v2951_v1 }
0x138c   :  { %4919 = vmatmul.mubr.msk.f32.vlgmr.msra.gmra.mrb[28].mxu1 %vm768_vm1, %v4901_v4 }
0x138d   :  { %5688 = vmatpush3.bf16.msra.mxu1 %v5685_v47  ;;  %4937 = vmatprep.mubr.msk.f32.mxu1 %vm768_vm1, %v7306_v8  ;;  %v3788_v8 = vld [vmem:[%s7598_s17 + $0x80] sm:$0xff] }
0x138e   :  { %5690 = vmatprep.subr.bf16.mxu1 %v5689_v2  ;;  %v5701_v12 = vpack.c.bf16 %v3789_v10, %v3788_v8  ;;  %v3787_v8 = vld [vmem:[%s7597_s16 + $0x1] ss:$0 sm:$0xff] }
0x1390   :  { %5702 = vmatprep.subr.bf16.mxu0 %v5701_v12 }
0x1391   :  { %5692 = vmatpush3.bf16.msra.mxu1 %v5689_v2  ;;  %5704 = vmatpush3.bf16.msra.mxu0 %v5701_v12 }
0x1392   :  { %5694 = vmatprep.subr.bf16.mxu1 %v5693_v23 }
0x1395   :  { %5696 = vmatpush3.bf16.msra.mxu1 %v5693_v23 }
0x1396   :  { %5698 = vmatprep.subr.bf16.mxu1 %v5697_v9 }
0x1399   :  { %5700 = vmatpush3.bf16.msra.mxu1 %v5697_v9 }
0x139a   :  { %5734 = vmatprep.subr.bf16.mxu1 %v5733_v45 }
0x139c   :  { %4938 = vmatmul.mubr.msk.f32.vlgmr.msra.gmra.mrb[28].mxu1 %vm768_vm1, %v7304_v7 }
0x139d   :  { %5736 = vmatpush3.bf16.msra.mxu1 %v5733_v45  ;;  %v3438_v45 = vld [vmem:[%s7604_s23 + $0x8] sm:$0xff] }
0x139e   :  { %5738 = vmatprep.subr.bf16.mxu1 %v5737_v48  ;;  %v5766_v39 = vpack.c.bf16 %v3438_v45, %v3437_v44 }
0x13a1   :  { %5740 = vmatpush3.bf16.msra.mxu1 %v5737_v48  ;;  %v5883_v48 = vmov 0.0|0.0  }
0x13a2   :  { %5742 = vmatprep.subr.bf16.mxu1 %v5741_v52 }
0x13a5   :  { %5744 = vmatpush3.bf16.msra.mxu1 %v5741_v52  ;;  %v5769_v52 = vpack.c.bf16 %v3440_v51, %v3439_v18 }
0x146f   :  { %v4939_v13 = vpop.f32.mrb[28].mxu1 }
0x1470   :  { %v3132_v46 = vadd.f32 %v4939_v13, %v6953_v34  ;;  %v3122_v15 = vpop.f32.mrb[29].mxu1 }
0x1471   :  { %v3131_v7 = vadd.f32 %v3122_v15, %v6956_v35  ;;  %v3790_v35 = vld [vmem:[%s7598_s17 + $0x90] sm:$0xff] }
0x1472   :  { %v7393_v16 = vadd.f32 %v3783_v14, %v3132_v46  ;;  %v5705_v25 = vpack.c.bf16 %v3791_v24, %v3790_v35  ;;  %v3812_v15 = vld [vmem:[%s7600_s19 + $0xb0] sm:$0xff]  ;;  %v3817_v35 = vld [vmem:[%s7600_s19 + $0xd8] sm:$0xff] }
0x1473   :  { %v7395_v17 = vadd.f32 %v3783_v14, %v3131_v7  ;;  %v3813_v7 = vld [vmem:[%s7600_s19 + $0xb8] sm:$0xff] }
0x1474   :  { %v3149_v20 = vsel %vm431_vm0, %v7393_v16, 0.0  ;;  %v3155_v21 = vmul.f32 %v7393_v16, %v7393_v16  ;;  %5706 = vmatprep.subr.bf16.mxu0 %v5705_v25 }
0x1475   :  { %3150 = vadd.xlane.f32.xlu1 %v3149_v20  ;;  %3147 = vadd.xlane.f32.xlu0 %v7395_v17  ;;  %v3154_v22 = vmul.f32 %v7395_v17, %v7395_v17  ;;  %v3814_v20 = vld [vmem:[%s7600_s19 + $0xc0] sm:$0xff] }
0x1476   :  { %v3158_v34 = vsel %vm431_vm0, %v3155_v21, 0.0  ;;  %5708 = vmatpush3.bf16.msra.mxu0 %v5705_v25  ;;  %v3815_v21 = vld [vmem:[%s7600_s19 + $0xc8] sm:$0xff]  ;;  %v3818_v25 = vld [vmem:[%s7600_s19 + $0xe0] sm:$0xff] }
0x1477   :  { %5710 = vmatprep.subr.bf16.mxu0 %v5709_v11  ;;  %v5757_v28 = vpack.c.bf16 %v3819_v27, %v3818_v25 }
0x1479   :  { %3159 = vadd.xlane.f32.xlu1 %v3158_v34  ;;  %3156 = vadd.xlane.f32.xlu0 %v3154_v22  ;;  %v5749_v22 = vpack.c.bf16 %v3815_v21, %v3814_v20  ;;  %v3816_v34 = vld [vmem:[%s7600_s19 + $0xd0] sm:$0xff] }
0x147a   :  { %5712 = vmatpush3.bf16.msra.mxu0 %v5709_v11  ;;  %v5753_v24 = vpack.c.bf16 %v3817_v35, %v3816_v34  ;;  %v3820_v11 = vld [vmem:[%s7600_s19 + $0xf0] sm:$0xff] }
0x147b   :  { %5714 = vmatprep.subr.bf16.mxu0 %v5713_v31  ;;  %v5761_v30 = vpack.c.bf16 %v3821_v29, %v3820_v11  ;;  %v3825_v29 = vld [vmem:[%s7603_s22] ss:$0 sm:$0xff] }
0x147e   :  { %5716 = vmatpush3.bf16.msra.mxu0 %v5713_v31  ;;  %v3805_v31 = vld [vmem:[%s7599_s18 + $0x1] ss:$0 sm:$0xff] }
0x147f   :  { %5718 = vmatprep.subr.bf16.mxu0 %v5717_v36 }
0x1482   :  { %5720 = vmatpush3.bf16.msra.mxu0 %v5717_v36 }
0x1483   :  { %5722 = vmatprep.subr.bf16.mxu0 %v5721_v38 }
0x1486   :  { %5724 = vmatpush3.bf16.msra.mxu0 %v5721_v38 }
0x1487   :  { %5726 = vmatprep.subr.bf16.mxu0 %v5725_v62 }
0x148a   :  { %5728 = vmatpush3.bf16.msra.mxu0 %v5725_v62 }
0x148b   :  { %5730 = vmatprep.subr.bf16.mxu0 %v5729_v42 }
0x148e   :  { %5732 = vmatpush3.bf16.msra.mxu0 %v5729_v42 }
0x148f   :  { %5765 = vmatprep.subr.bf16.mxu0 %v5883_v48 }
0x1502   :  { %v3151_v53 = vpop.xlane.xlu1 %3150  ;;  %v3148_v63 = vpop.xlane.xlu0 %3147 }
0x1503   :  { %v3153_v58 = vmul.f32 0.03125, %v3151_v53  ;;  %v3152_v54 = vmul.f32 0.03125, %v3148_v63  ;;  %v3823_v53 = vld [vmem:[%s7601_s20 + $0x1] ss:$0 sm:$0xff]  ;;  %s5886_s20 = smov [#allocation2]  }
0x1504   :  { %s3537_s12 = sshll.u32 %s5886_s20, 4  ;;  %s3538_s12 = int_to_ptr.vmem [resolvable:$true] %s3537_s12 }
0x1505   :  { %v3164_v57 = vmul.f32 %v3153_v58, %v3153_v58  ;;  %v3163_v59 = vmul.f32 %v3152_v54, %v3152_v54  ;;  %v3168_v3 = vsub.f32 %v7393_v16, %v3153_v58  ;;  %v3167_v23 = vsub.f32 %v7395_v17, %v3152_v54  ;;  %p5863_p1 = scmp.lt.s32.totalorder %s3538_s12, %s3538_s12 }
0x1506   :  { %v3160_v55 = vpop.xlane.xlu1 %3159  ;;  %v3157_v56 = vpop.xlane.xlu0 %3156  ;;  %v5745_v16 = vpack.c.bf16 %v3813_v7, %v3812_v15  ;;  %v3452_v15 = vld [vmem:[%s7604_s23 + $0x78] sm:$0xff] }
0x1507   :  { %v3162_v47 = vmul.f32 0.03125, %v3160_v55  ;;  %v3161_v61 = vmul.f32 0.03125, %v3157_v56 }
0x1508   :  { %5746 = vmatprep.subr.bf16.mxu1 %v5745_v16 }
0x1509   :  { %v3166_v0 = vsub.f32 %v3162_v47, %v3164_v57  ;;  %v3165_v4 = vsub.f32 %v3161_v61, %v3163_v59  ;;  %5748 = vmatpush3.bf16.msra.mxu1 %v5745_v16 }
0x150a   :  { %5750 = vmatprep.subr.bf16.mxu1 %v5749_v22 }
0x150b   :  { %v3170_v1 = vadd.f32 1e-06, %v3166_v0  ;;  %v3169_v2 = vadd.f32 1e-06, %v3165_v4  ;;  %v3441_v0 = vld [vmem:[%s7604_s23 + $0x20] sm:$0xff]  ;;  %v3442_v4 = vld [vmem:[%s7604_s23 + $0x28] sm:$0xff] }
0x150d   :  { %5846 = vrsqrt.f32 %v3170_v1  ;;  %5752 = vmatpush3.bf16.msra.mxu1 %v5749_v22  ;;  %v5772_v1 = vpack.c.bf16 %v3442_v4, %v3441_v0 }
0x150e   :  { %5848 = vrsqrt.f32 %v3169_v2  ;;  %5754 = vmatprep.subr.bf16.mxu1 %v5753_v24  ;;  %v3444_v2 = vld [vmem:[%s7604_s23 + $0x38] sm:$0xff] }
0x1511   :  { %5756 = vmatpush3.bf16.msra.mxu1 %v5753_v24 }
0x1512   :  { %5758 = vmatprep.subr.bf16.mxu1 %v5757_v28 }
0x1515   :  { %5760 = vmatpush3.bf16.msra.mxu1 %v5757_v28  ;;  %v3824_v28 = vld [vmem:[%s7602_s21] ss:$0 sm:$0xff]  ;;  %s5858_s21 = scalar_lea.vmem %s3538_s12, 32 }
0x1516   :  { %5762 = vmatprep.subr.bf16.mxu1 %v5761_v30  ;;  %p5859_p0 = scmp.ne.s32.totalorder %s3538_s12, %s5858_s21  ;;  %p5864_p2 = scmp.lt.s32.totalorder %s5858_s21, %s5858_s21 }
0x1517   :  { %v5847_v5 = vpop.eup %5846 }
0x1518   :  { %v5849_v6 = vpop.eup %5848  ;;  %v3174_v9 = vmul.f32 %v5847_v5, %v3168_v3  ;;  %v3445_v5 = vld [vmem:[%s7604_s23 + $0x40] sm:$0xff]  ;;  %p5865_p3 = por %p5864_p2, %p5863_p1 }
0x1519   :  { %v3173_v10 = vmul.f32 %v5849_v6, %v3167_v23  ;;  %5764 = vmatpush3.bf16.msra.mxu1 %v5761_v30  ;;  %v3446_v23 = vld [vmem:[%s7604_s23 + $0x48] sm:$0xff]  ;;  %v3447_v6 = vld [vmem:[%s7604_s23 + $0x50] sm:$0xff] }
0x151a   :  { %v3182_v12 = vmul.f32 %v3786_v26, %v3174_v9  ;;  %v3448_v9 = vld [vmem:[%s7604_s23 + $0x58] sm:$0xff]  ;;  %p5866_p4 = pnand %p5865_p3, %p5859_p0 }
0x151b   :  { %v3181_v13 = vmul.f32 %v3786_v26, %v3173_v10  ;;  %v5778_v26 = vpack.c.bf16 %v3446_v23, %v3445_v5  ;;  %v5781_v10 = vpack.c.bf16 %v3448_v9, %v3447_v6 }
0x151c   :  { %v3190_v14 = vadd.f32 %v3787_v8, %v3182_v12  ;;  %v3449_v12 = vld [vmem:[%s7604_s23 + $0x60] sm:$0xff] }
0x151d   :  { %v3189_v46 = vadd.f32 %v3787_v8, %v3181_v13  ;;  %v5885_v8 = vmov 0.0   ;;  %v3450_v13 = vld [vmem:[%s7604_s23 + $0x68] sm:$0xff] }
0x151f   :  { %4972 = vmatprep.mubr.f32.mxu0 %v3189_v46  ;;  %v3451_v46 = vld [vmem:[%s7604_s23 + $0x70] sm:$0xff] }
0x1520   :  { %4973 = vmatmul.mubr.f32.vlgmr.msra.gmra.mrb[30].mxu0 %v3190_v14  ;;  %v5784_v14 = vpack.c.bf16 %v3450_v13, %v3449_v12  ;;  %v5787_v7 = vpack.c.bf16 %v3452_v15, %v3451_v46 }
0x1521   :  { %5767 = vmatpush3.bf16.msra.mxu0 %v5766_v39  ;;  %5042 = vmatprep.mubr.msk.f32.mxu0 %vm5884_vm8, %v5885_v8 }
0x1522   :  { %5768 = vmatprep.subr.bf16.mxu0 %v5883_v48 }
0x1525   :  { %5770 = vmatpush3.bf16.msra.mxu0 %v5769_v52 }
0x1526   :  { %5771 = vmatprep.subr.bf16.mxu0 %v5883_v48 }
0x1529   :  { %5773 = vmatpush3.bf16.msra.mxu0 %v5772_v1 }
0x152a   :  { %5774 = vmatprep.subr.bf16.mxu0 %v5883_v48 }
0x15f3   :  { %v4974_v32 = vpop.f32.mrb[30].mxu0 }
0x15f4   :  { %v3288_v33 = vadd.f32 %v4974_v32, %v3805_v31  ;;  %v3282_v36 = vpop.f32.mrb[31].mxu0  ;;  %v3826_v32 = vld [vmem:[%s7643_s9] ss:$0 sm:$0xff] }
0x15f5   :  { %v3283_v19 = vadd.f32 %v3805_v31, %v3282_v36 }
0x15f6   :  { %v3294_v37 = vmul.f32 0.70710677, %v3288_v33  ;;  %v3292_v42 = vmul.f32 0.5, %v3288_v33 }
0x15f7   :  { %v3293_v38 = vmul.f32 0.70710677, %v3283_v19  ;;  %v3291_v49 = vmul.f32 0.5, %v3283_v19 }
0x15f8   :  { %5850 = verf.f32 %v3294_v37 }
0x15f9   :  { %5852 = verf.f32 %v3293_v38 }
0x1602   :  { %v5851_v41 = vpop.eup %5850 }
0x1603   :  { %v5853_v60 = vpop.eup %5852  ;;  %v3298_v62 = vadd.f32 1.0, %v5851_v41 }
0x1604   :  { %v3297_v50 = vadd.f32 1.0, %v5853_v60 }
0x1605   :  { %v3300_v40 = vmul.f32 %v3298_v62, %v3292_v42 }
0x1606   :  { %v3299_v43 = vmul.f32 %v3297_v50, %v3291_v49 }
0x1608   :  { %5007 = vmatprep.mubr.f32.mxu1 %v3299_v43 }
0x1609   :  { %5008 = vmatmul.mubr.f32.vlgmr.msra.gmra.mrb[30].mxu1 %v3300_v40 }
0x16dc   :  { %v5009_v63 = vpop.f32.mrb[30].mxu1 }
0x16dd   :  { %v3392_v58 = vpop.f32.mrb[31].mxu1 }
0x16de   :  { %v3393_v54 = vadd.f32 %v3823_v53, %v3392_v58 }
0x16e0   :  { %v3400_v55 = vadd.f32 %v3393_v54, %v7395_v17  ;;  %v3443_v17 = vld [vmem:[%s7604_s23 + $0x30] sm:$0xff] }
0x16e1   :  { %v5775_v3 = vpack.c.bf16 %v3444_v2, %v3443_v17 }
0x16e2   :  { %v3402_v56 = vrot.slane %v3400_v55, 4 }
0x16e3   :  { %5776 = vmatpush3.bf16.msra.mxu0 %v5775_v3 }
0x16e4   :  { %v3405_v57 = vsel %vm3404_vm7, %v3400_v55, %v3402_v56  ;;  %5777 = vmatprep.subr.bf16.mxu0 %v5883_v48 }
0x16e5   :  { %v3408_v59 = vsel %vm431_vm0, %v3405_v57, 0.0  ;;  %v3412_v47 = vmul.f32 %v3405_v57, %v3405_v57 }
0x16e6   :  { %3409 = vadd.xlane.f32.xlu0 %v3408_v59 }
0x16e7   :  { %v3413_v61 = vsel %vm431_vm0, %v3412_v47, 0.0  ;;  %5779 = vmatpush3.bf16.msra.mxu0 %v5778_v26 }
0x16e8   :  { %3414 = vadd.xlane.f32.xlu1 %v3413_v61  ;;  %5780 = vmatprep.subr.bf16.mxu0 %v5883_v48 }
0x16eb   :  { %5782 = vmatpush3.bf16.msra.mxu0 %v5781_v10 }
0x16ec   :  { %5783 = vmatprep.subr.bf16.mxu0 %v5883_v48 }
0x16ef   :  { %5785 = vmatpush3.bf16.msra.mxu0 %v5784_v14 }
0x16f0   :  { %5786 = vmatprep.subr.bf16.mxu0 %v5883_v48 }
0x16f3   :  { %5788 = vmatpush3.bf16.msra.mxu0 %v5787_v7 }
0x1773   :  { %v3410_v16 = vpop.xlane.xlu0 %3409 }
0x1774   :  { %v3411_v20 = vmul.f32 0.03125, %v3410_v16 }
0x1775   :  { %v3415_v21 = vpop.xlane.xlu1 %3414 }
0x1776   :  { %v3417_v22 = vmul.f32 %v3411_v20, %v3411_v20  ;;  %v3416_v34 = vmul.f32 0.03125, %v3415_v21  ;;  %v3419_v25 = vsub.f32 %v3405_v57, %v3411_v20 }
0x1778   :  { %v3418_v35 = vsub.f32 %v3416_v34, %v3417_v22 }
0x177a   :  { %v3420_v24 = vadd.f32 1e-06, %v3418_v35 }
0x177c   :  { %5854 = vrsqrt.f32 %v3420_v24 }
0x1786   :  { %v5855_v27 = vpop.eup %5854 }
0x1787   :  { %v3422_v11 = vmul.f32 %v5855_v27, %v3419_v25 }
0x1789   :  { %v3429_v30 = vmul.f32 %v3824_v28, %v3422_v11 }
0x178b   :  { %v3436_v31 = vadd.f32 %v3825_v29, %v3429_v30 }
0x178d   :  { %5043 = vmatmul.mubr.f32.vlgmr.msra.gmra.mrb[32].mxu0 %v3436_v31 }
0x1860   :  { %v3526_v33 = vpop.f32.mrb[32].mxu0 }
0x1861   :  { %v3527_v36 = vadd.f32 %v3826_v32, %v3526_v33  ;;  %v5044_v19 = vpop.f32.mrb[33].mxu0 }
0x1863   :  { %3530 = vst [vmem:[#allocation2] sm:$0x3] %v3527_v36 }
0x1864   :  { %5869 = shalt.err (!%p5866_p4)
}
0x1865   :  { %s7644_s4 = sld [smem:[#allocation16_spill]] }
0x186b   :  { %s5870_s27 = scalar_lea.hbm %s7644_s4, 32 }
0x186c   :  { %p5871_p5 = scmp.ne.s32.totalorder %s7644_s4, %s5870_s27  ;;  %p5874_p6 = scmp.lt.u32.totalorder %s5870_s27, %s7644_s4 }
0x186e   :  { %p5876_p7 = pnand %p5874_p6, %p5871_p5 }
0x1870   :  { %5879 = shalt.err (!%p5876_p7)
}
0x1871   :  { %3540 = dma.vmem_to_hbm [thread:$0]  %s3538_s12, 32, %s7644_s4, [#allocation3]  }
0x1872   :  { %5880 = dma.done.wait [#allocation3], 32  }
0x1873   :  { %5881 = vsyncadd [#allocation3], 4294967264 }
0x1874   :  { %3544 = vsyncpa [#allocation3], 1 }

// kernel: tandem_pss_forward.2
= control target key start
LH: loop header
LB: loop body
LE: loop exit
PB: predicated region body
PF: predicated region fallthrough
CT: control target
= control target key end

     0   :  { %s10232_s0 = inlined_call_operand.vmem [shape: f32[10,768], index: 0, kind: input, shape index: {}]   ;;  %s10233_s1 = inlined_call_operand.vmem [shape: f32[768,128], index: 1, kind: input, shape index: {}]   ;;  %s10234_s2 = inlined_call_operand.vmem [shape: f32[1,128], index: 2, kind: input, shape index: {}]   ;;  %s10235_s3 = inlined_call_operand.vmem [shape: f32[10,128], index: 3, kind: input, shape index: {}]   ;;  %s10236_s4 = inlined_call_operand.vmem [shape: f32[10,10], index: 4, kind: input, shape index: {}]   ;;  %s10237_s5 = inlined_call_operand.vmem [shape: f32[2,1,128], index: 5, kind: input, shape index: {}]   ;;  %s10238_s6 = inlined_call_operand.vmem [shape: f32[2,1,128], index: 6, kind: input, shape index: {}]   ;;  %s10239_s7 = inlined_call_operand.vmem [shape: f32[2,3,128,64], index: 7, kind: input, shape index: {}]   ;;  %s10240_s8 = inlined_call_operand.vmem [shape: f32[2,3,1,64], index: 8, kind: input, shape index: {}]   ;;  %s10241_s9 = inlined_call_operand.vmem [shape: f32[2,3,128,64], index: 9, kind: input, shape index: {}]   ;;  %s10242_s10 = inlined_call_operand.vmem [shape: f32[2,3,1,64], index: 10, kind: input, shape index: {}]   ;;  %s10243_s11 = inlined_call_operand.vmem [shape: f32[2,3,128,64], index: 11, kind: input, shape index: {}]   ;;  %s10244_s12 = inlined_call_operand.vmem [shape: f32[2,3,1,64], index: 12, kind: input, shape index: {}]   ;;  %s10245_s13 = inlined_call_operand.vmem [shape: f32[2,3,64,128], index: 13, kind: input, shape index: {}]   ;;  %s10246_s14 = inlined_call_operand.vmem [shape: f32[2,1,128], index: 14, kind: input, shape index: {}]   ;;  %s10247_s15 = inlined_call_operand.vmem [shape: f32[2,1,128], index: 15, kind: input, shape index: {}]   ;;  %s10248_s16 = inlined_call_operand.vmem [shape: f32[2,1,128], index: 16, kind: input, shape index: {}]   ;;  %s10249_s17 = inlined_call_operand.vmem [shape: f32[2,128,256], index: 17, kind: input, shape index: {}]   ;;  %s10250_s18 = inlined_call_operand.vmem [shape: f32[2,1,256], index: 18, kind: input, shape index: {}]   ;;  %s10251_s19 = inlined_call_operand.vmem [shape: f32[2,256,128], index: 19, kind: input, shape index: {}]   ;;  %s10252_s20 = inlined_call_operand.vmem [shape: f32[2,1,128], index: 20, kind: input, shape index: {}]   ;;  %s10253_s21 = inlined_call_operand.vmem [shape: f32[1,128], index: 21, kind: input, shape index: {}]   ;;  %s10254_s22 = inlined_call_operand.vmem [shape: f32[1,128], index: 22, kind: input, shape index: {}]   ;;  %s10255_s23 = inlined_call_operand.vmem [shape: f32[128,128], index: 23, kind: input, shape index: {}]   ;;  %s10256_s24 = inlined_call_operand.vmem [shape: f32[1,128], index: 24, kind: input, shape index: {}]   ;;  %s10257_s25 = inlined_call_operand.hbm [shape: f32[2,128], index: 25, kind: output, shape index: {}]  }
   0x1   :  { %10268 = sst [smem:[#allocation5_spill]] %s10232_s0 }
   0x2   :  { %10269 = sst [smem:[#allocation6_spill]] %s10233_s1 }
   0x3   :  { %10270 = sst [smem:[#allocation7_spill]] %s10234_s2 }
   0x4   :  { %10271 = sst [smem:[#allocation8_spill]] %s10235_s3 }
   0x5   :  { %10272 = sst [smem:[#allocation9_spill]] %s10236_s4 }
   0x6   :  { %10273 = sst [smem:[#allocation10_spill]] %s10237_s5 }
   0x7   :  { %10274 = sst [smem:[#allocation11_spill]] %s10238_s6 }
   0x8   :  { %10275 = sst [smem:[#allocation12_spill]] %s10239_s7 }
   0x9   :  { %10276 = sst [smem:[#allocation13_spill]] %s10240_s8 }
   0xa   :  { %10277 = sst [smem:[#allocation14_spill]] %s10241_s9 }
   0xb   :  { %10278 = sst [smem:[#allocation15_spill]] %s10256_s24 }
   0xc   :  { %10279 = sst [smem:[#allocation16_spill]] %s10257_s25 }
   0xd   :  { %s10280_s6 = sld [smem:[#allocation6_spill]]  ;;  %s10281_s28 = sld [smem:[#allocation5_spill]] }
  0x13   :  { %v109_v0 = vld [vmem:[%s10280_s6 + $0x80] sm:$0xff]  ;;  %v110_v1 = vld [vmem:[%s10280_s6 + $0x88] sm:$0xff]  ;;  %v111_v11 = vld [vmem:[%s10280_s6 + $0x90] sm:$0xff] }
  0x14   :  { %v93_v2 = vld [vmem:[%s10280_s6] sm:$0xff]  ;;  %v6777_v3 = vpack.c.bf16 %v110_v1, %v109_v0  ;;  %v94_v4 = vld [vmem:[%s10280_s6 + $0x8] sm:$0xff]  ;;  %v112_v13 = vld [vmem:[%s10280_s6 + $0x98] sm:$0xff] }
  0x15   :  { %v141_v5 = vld [vmem:[%s10280_s6 + $0x180] sm:$0xff]  ;;  %v142_v6 = vld [vmem:[%s10280_s6 + $0x188] sm:$0xff]  ;;  %v6779_v7 = vpack.c.bf16 %v94_v4, %v93_v2  ;;  %v95_v14 = vld [vmem:[%s10280_s6 + $0x10] sm:$0xff]  ;;  %v6781_v16 = vpack.c.bf16 %v112_v13, %v111_v11 }
  0x16   :  { %v6809_v8 = vpack.c.bf16 %v142_v6, %v141_v5  ;;  %v125_v9 = vld [vmem:[%s10280_s6 + $0x100] sm:$0xff]  ;;  %v126_v10 = vld [vmem:[%s10280_s6 + $0x108] sm:$0xff]  ;;  %6778 = vmatprep.subr.bf16.mxu0 %v6777_v3  ;;  %v96_v15 = vld [vmem:[%s10280_s6 + $0x18] sm:$0xff] }
  0x17   :  { %v6811_v12 = vpack.c.bf16 %v126_v10, %v125_v9  ;;  %6780 = vmatpush3.bf16.msra.mxu0 %v6779_v7  ;;  %v6783_v17 = vpack.c.bf16 %v96_v15, %v95_v14  ;;  %v143_v18 = vld [vmem:[%s10280_s6 + $0x190] sm:$0xff]  ;;  %v144_v19 = vld [vmem:[%s10280_s6 + $0x198] sm:$0xff]  ;;  %v113_v23 = vld [vmem:[%s10280_s6 + $0xa0] sm:$0xff] }
  0x18   :  { %6810 = vmatprep.subr.bf16.mxu1 %v6809_v8  ;;  %v127_v20 = vld [vmem:[%s10280_s6 + $0x110] sm:$0xff]  ;;  %v6813_v21 = vpack.c.bf16 %v144_v19, %v143_v18  ;;  %v128_v22 = vld [vmem:[%s10280_s6 + $0x118] sm:$0xff]  ;;  %v114_v24 = vld [vmem:[%s10280_s6 + $0xa8] sm:$0xff]  ;;  %6782 = vmatprep.subr.bf16.mxu0 %v6781_v16 }
  0x19   :  { %6812 = vmatpush3.bf16.msra.mxu1 %v6811_v12  ;;  %v6815_v25 = vpack.c.bf16 %v128_v22, %v127_v20  ;;  %v6785_v26 = vpack.c.bf16 %v114_v24, %v113_v23  ;;  %v97_v27 = vld [vmem:[%s10280_s6 + $0x20] sm:$0xff]  ;;  %v98_v28 = vld [vmem:[%s10280_s6 + $0x28] sm:$0xff]  ;;  %v115_v35 = vld [vmem:[%s10280_s6 + $0xb0] sm:$0xff] }
  0x1a   :  { %v145_v29 = vld [vmem:[%s10280_s6 + $0x1a0] sm:$0xff]  ;;  %6814 = vmatprep.subr.bf16.mxu1 %v6813_v21  ;;  %v146_v30 = vld [vmem:[%s10280_s6 + $0x1a8] sm:$0xff]  ;;  %v6787_v33 = vpack.c.bf16 %v98_v28, %v97_v27  ;;  %v116_v36 = vld [vmem:[%s10280_s6 + $0xb8] sm:$0xff] }
  0x1b   :  { %v129_v31 = vld [vmem:[%s10280_s6 + $0x120] sm:$0xff]  ;;  %v130_v32 = vld [vmem:[%s10280_s6 + $0x128] sm:$0xff]  ;;  %6784 = vmatpush3.bf16.msra.mxu0 %v6783_v17  ;;  %v6817_v34 = vpack.c.bf16 %v146_v30, %v145_v29  ;;  %v99_v37 = vld [vmem:[%s10280_s6 + $0x30] sm:$0xff]  ;;  %v6789_v39 = vpack.c.bf16 %v116_v36, %v115_v35 }
  0x1c   :  { %6786 = vmatprep.subr.bf16.mxu0 %v6785_v26  ;;  %v6819_v38 = vpack.c.bf16 %v130_v32, %v129_v31  ;;  %v100_v40 = vld [vmem:[%s10280_s6 + $0x38] sm:$0xff]  ;;  %v147_v41 = vld [vmem:[%s10280_s6 + $0x1b0] sm:$0xff]  ;;  %v117_v46 = vld [vmem:[%s10280_s6 + $0xc0] sm:$0xff] }
  0x1d   :  { %6816 = vmatpush3.bf16.msra.mxu1 %v6815_v25  ;;  %v148_v42 = vld [vmem:[%s10280_s6 + $0x1b8] sm:$0xff]  ;;  %v131_v44 = vld [vmem:[%s10280_s6 + $0x130] sm:$0xff]  ;;  %v118_v47 = vld [vmem:[%s10280_s6 + $0xc8] sm:$0xff]  ;;  %v6791_v48 = vpack.c.bf16 %v100_v40, %v99_v37 }
  0x1e   :  { %6818 = vmatprep.subr.bf16.mxu1 %v6817_v34  ;;  %v6821_v43 = vpack.c.bf16 %v148_v42, %v147_v41  ;;  %v132_v45 = vld [vmem:[%s10280_s6 + $0x138] sm:$0xff]  ;;  %v149_v49 = vld [vmem:[%s10280_s6 + $0x1c0] sm:$0xff]  ;;  %v150_v50 = vld [vmem:[%s10280_s6 + $0x1c8] sm:$0xff]  ;;  %v6793_v52 = vpack.c.bf16 %v118_v47, %v117_v46 }
  0x1f   :  { %6788 = vmatpush3.bf16.msra.mxu0 %v6787_v33  ;;  %v6823_v51 = vpack.c.bf16 %v132_v45, %v131_v44  ;;  %v101_v53 = vld [vmem:[%s10280_s6 + $0x40] sm:$0xff]  ;;  %v102_v54 = vld [vmem:[%s10280_s6 + $0x48] sm:$0xff]  ;;  %v6825_v56 = vpack.c.bf16 %v150_v50, %v149_v49  ;;  %v119_v58 = vld [vmem:[%s10280_s6 + $0xd0] sm:$0xff] }
  0x20   :  { %6790 = vmatprep.subr.bf16.mxu0 %v6789_v39  ;;  %v133_v55 = vld [vmem:[%s10280_s6 + $0x140] sm:$0xff]  ;;  %v134_v57 = vld [vmem:[%s10280_s6 + $0x148] sm:$0xff]  ;;  %v120_v59 = vld [vmem:[%s10280_s6 + $0xd8] sm:$0xff]  ;;  %v6795_v62 = vpack.c.bf16 %v102_v54, %v101_v53 }
  0x21   :  { %6820 = vmatpush3.bf16.msra.mxu1 %v6819_v38  ;;  %v151_v60 = vld [vmem:[%s10280_s6 + $0x1d0] sm:$0xff]  ;;  %v152_v61 = vld [vmem:[%s10280_s6 + $0x1d8] sm:$0xff]  ;;  %v6827_v63 = vpack.c.bf16 %v134_v57, %v133_v55  ;;  %v6797_v0 = vpack.c.bf16 %v120_v59, %v119_v58  ;;  %v121_v6 = vld [vmem:[%s10280_s6 + $0xe0] sm:$0xff] }
  0x22   :  { %6822 = vmatprep.subr.bf16.mxu1 %v6821_v43  ;;  %v103_v1 = vld [vmem:[%s10280_s6 + $0x50] sm:$0xff]  ;;  %v104_v2 = vld [vmem:[%s10280_s6 + $0x58] sm:$0xff]  ;;  %v6829_v4 = vpack.c.bf16 %v152_v61, %v151_v60  ;;  %v122_v7 = vld [vmem:[%s10280_s6 + $0xe8] sm:$0xff] }
  0x23   :  { %6792 = vmatpush3.bf16.msra.mxu0 %v6791_v48  ;;  %v135_v3 = vld [vmem:[%s10280_s6 + $0x150] sm:$0xff]  ;;  %v136_v5 = vld [vmem:[%s10280_s6 + $0x158] sm:$0xff]  ;;  %v153_v8 = vld [vmem:[%s10280_s6 + $0x1e0] sm:$0xff]  ;;  %v6799_v10 = vpack.c.bf16 %v104_v2, %v103_v1  ;;  %v6801_v14 = vpack.c.bf16 %v122_v7, %v121_v6 }
  0x24   :  { %6794 = vmatprep.subr.bf16.mxu0 %v6793_v52  ;;  %v154_v9 = vld [vmem:[%s10280_s6 + $0x1e8] sm:$0xff]  ;;  %v105_v11 = vld [vmem:[%s10280_s6 + $0x60] sm:$0xff]  ;;  %v6831_v13 = vpack.c.bf16 %v136_v5, %v135_v3  ;;  %v123_v19 = vld [vmem:[%s10280_s6 + $0xf0] sm:$0xff] }
  0x25   :  { %6824 = vmatpush3.bf16.msra.mxu1 %v6823_v51  ;;  %v82_v12 = vld [vmem:[%s10281_s28 + $0x8] sm:$0xff]  ;;  %v137_v16 = vld [vmem:[%s10280_s6 + $0x160] sm:$0xff]  ;;  %v6833_v18 = vpack.c.bf16 %v154_v9, %v153_v8  ;;  %v124_v20 = vld [vmem:[%s10280_s6 + $0xf8] sm:$0xff] }
  0x26   :  { %6826 = vmatprep.subr.bf16.mxu1 %v6825_v56  ;;  %v106_v15 = vld [vmem:[%s10280_s6 + $0x68] sm:$0xff]  ;;  %260 = vmatprep.mubr.f32.mxu0 %v82_v12  ;;  %v84_v21 = vld [vmem:[%s10281_s28 + $0x18] sm:$0xff]  ;;  %v155_v22 = vld [vmem:[%s10280_s6 + $0x1f0] sm:$0xff]  ;;  %v6805_v26 = vpack.c.bf16 %v124_v20, %v123_v19 }
  0x27   :  { %6796 = vmatpush3.bf16.msra.mxu0 %v6795_v62  ;;  %v138_v17 = vld [vmem:[%s10280_s6 + $0x168] sm:$0xff]  ;;  %v156_v23 = vld [vmem:[%s10280_s6 + $0x1f8] sm:$0xff]  ;;  %335 = vmatprep.mubr.f32.mxu1 %v84_v21  ;;  %v6803_v24 = vpack.c.bf16 %v106_v15, %v105_v11  ;;  %v107_v27 = vld [vmem:[%s10280_s6 + $0x70] sm:$0xff] }
  0x28   :  { %6798 = vmatprep.subr.bf16.mxu0 %v6797_v0  ;;  %v6835_v25 = vpack.c.bf16 %v138_v17, %v137_v16  ;;  %v108_v28 = vld [vmem:[%s10280_s6 + $0x78] sm:$0xff]  ;;  %v139_v29 = vld [vmem:[%s10280_s6 + $0x170] sm:$0xff]  ;;  %v6837_v30 = vpack.c.bf16 %v156_v23, %v155_v22  ;;  %v173_v32 = vld [vmem:[%s10280_s6 + $0x280] sm:$0xff] }
  0x29   :  { %6828 = vmatpush3.bf16.msra.mxu1 %v6827_v63  ;;  %v140_v31 = vld [vmem:[%s10280_s6 + $0x178] sm:$0xff]  ;;  %v174_v33 = vld [vmem:[%s10280_s6 + $0x288] sm:$0xff]  ;;  %v6807_v34 = vpack.c.bf16 %v108_v28, %v107_v27  ;;  %v157_v37 = vld [vmem:[%s10280_s6 + $0x200] sm:$0xff] }
  0x2a   :  { %6830 = vmatprep.subr.bf16.mxu1 %v6829_v4  ;;  %v6839_v35 = vpack.c.bf16 %v140_v31, %v139_v29  ;;  %v6841_v36 = vpack.c.bf16 %v174_v33, %v173_v32  ;;  %v158_v38 = vld [vmem:[%s10280_s6 + $0x208] sm:$0xff]  ;;  %v175_v39 = vld [vmem:[%s10280_s6 + $0x290] sm:$0xff]  ;;  %v176_v40 = vld [vmem:[%s10280_s6 + $0x298] sm:$0xff] }
  0x2b   :  { %6800 = vmatpush3.bf16.msra.mxu0 %v6799_v10  ;;  %v81_v41 = vld [vmem:[%s10281_s28] sm:$0xff]  ;;  %v6843_v42 = vpack.c.bf16 %v158_v38, %v157_v37  ;;  %v83_v43 = vld [vmem:[%s10281_s28 + $0x10] sm:$0xff]  ;;  %v6845_v44 = vpack.c.bf16 %v176_v40, %v175_v39  ;;  %v160_v46 = vld [vmem:[%s10280_s6 + $0x218] sm:$0xff] }
  0x2c   :  { %6802 = vmatprep.subr.bf16.mxu0 %v6801_v14  ;;  %v159_v45 = vld [vmem:[%s10280_s6 + $0x210] sm:$0xff]  ;;  %v177_v47 = vld [vmem:[%s10280_s6 + $0x2a0] sm:$0xff]  ;;  %v178_v48 = vld [vmem:[%s10280_s6 + $0x2a8] sm:$0xff] }
  0x2d   :  { %6832 = vmatpush3.bf16.msra.mxu1 %v6831_v13  ;;  %v88_v49 = vld [vmem:[%s10281_s28 + $0x38] sm:$0x3]  ;;  %v90_v50 = vld [vmem:[%s10281_s28 + $0x48] sm:$0x3]  ;;  %v6847_v51 = vpack.c.bf16 %v160_v46, %v159_v45  ;;  %v87_v52 = vld [vmem:[%s10281_s28 + $0x30] sm:$0x3] }
  0x2e   :  { %6834 = vmatprep.subr.bf16.mxu1 %v6833_v18 }
  0x2f   :  { %6804 = vmatpush3.bf16.msra.mxu0 %v6803_v24 }
  0x30   :  { %6806 = vmatprep.subr.bf16.mxu0 %v6805_v26 }
  0x31   :  { %6836 = vmatpush3.bf16.msra.mxu1 %v6835_v25 }
  0x32   :  { %6838 = vmatprep.subr.bf16.mxu1 %v6837_v30 }
  0x33   :  { %6808 = vmatpush3.bf16.msra.mxu0 %v6807_v34 }
  0x34   :  { %6842 = vmatprep.subr.bf16.mxu0 %v6841_v36 }
  0x35   :  { %6840 = vmatpush3.bf16.msra.mxu1 %v6839_v35 }
  0x36   :  { %261 = vmatmul.mubr.f32.vlgmr.msra.gmra.mrb[0].mxu0 %v81_v41 }
  0x37   :  { %6844 = vmatpush3.bf16.msra.mxu0 %v6843_v42 }
  0x38   :  { %336 = vmatmul.mubr.f32.vlgmr.msra.gmra.mrb[0].mxu1 %v83_v43 }
  0x39   :  { %30 = vsyncpa [#allocation3], 0  ;;  %6846 = vmatprep.subr.bf16.mxu0 %v6845_v44  ;;  %v6849_v53 = vpack.c.bf16 %v178_v48, %v177_v47  ;;  %v161_v54 = vld [vmem:[%s10280_s6 + $0x220] sm:$0xff]  ;;  %v162_v55 = vld [vmem:[%s10280_s6 + $0x228] sm:$0xff]  ;;  %265 = vmatprep.mubr.f32.mxu0 %v88_v49  ;;  %s10282_s30 = sld [smem:[#allocation12_spill]]  ;;  %s10283_s8 = sld [smem:[#allocation14_spill]] }
  0x3a   :  { %v89_v56 = vld [vmem:[%s10281_s28 + $0x40] sm:$0x3]  ;;  %v179_v57 = vld [vmem:[%s10280_s6 + $0x2b0] sm:$0xff]  ;;  %v180_v58 = vld [vmem:[%s10280_s6 + $0x2b8] sm:$0xff]  ;;  %340 = vmatprep.mubr.f32.mxu1 %v90_v50  ;;  %266 = vmatmul.mubr.f32.gmra.mrb[2].mxu0 %v87_v52  ;;  %v6851_v60 = vpack.c.bf16 %v162_v55, %v161_v54  ;;  %s10284_s5 = sld [smem:[#allocation7_spill]]  ;;  %vm431_vm0 = vcmask 1041408  }
  0x3b   :  { %v86_v59 = vld [vmem:[%s10281_s28 + $0x28] sm:$0xff]  ;;  %6848 = vmatpush3.bf16.msra.mxu0 %v6847_v51  ;;  %v6853_v61 = vpack.c.bf16 %v180_v58, %v179_v57  ;;  %v163_v62 = vld [vmem:[%s10280_s6 + $0x230] sm:$0xff]  ;;  %v164_v63 = vld [vmem:[%s10280_s6 + $0x238] sm:$0xff]  ;;  %s10286_s26 = sld [smem:[#allocation10_spill]]  ;;  %s10287_s4 = sld [smem:[#allocation11_spill]]  ;;  %vm768_vm1 = vcmask 523264  }
  0x3c   :  { %341 = vmatmul.mubr.f32.gmra.mrb[2].mxu1 %v89_v56  ;;  %6850 = vmatprep.subr.bf16.mxu0 %v6849_v53  ;;  %v181_v0 = vld [vmem:[%s10280_s6 + $0x2c0] sm:$0xff]  ;;  %v182_v1 = vld [vmem:[%s10280_s6 + $0x2c8] sm:$0xff]  ;;  %v6855_v2 = vpack.c.bf16 %v164_v63, %v163_v62  ;;  %v183_v6 = vld [vmem:[%s10280_s6 + $0x2d0] sm:$0xff]  ;;  %vm7890_vm3 = vmmov 1   ;;  %s10293_s9 = sld [smem:[#allocation9_spill]]  ;;  %vm864_vm5 = vcmask 74752  }
  0x3d   :  { %410 = vmatprep.mubr.f32.mxu0 %v86_v59  ;;  %v6857_v3 = vpack.c.bf16 %v182_v1, %v181_v0  ;;  %v165_v4 = vld [vmem:[%s10280_s6 + $0x240] sm:$0xff]  ;;  %v166_v5 = vld [vmem:[%s10280_s6 + $0x248] sm:$0xff]  ;;  %v184_v7 = vld [vmem:[%s10280_s6 + $0x2d8] sm:$0xff]  ;;  %vm860_vm6 = vcmask 80896   ;;  %vm4680_vm7 = vcmask 1040384   ;;  %vm7893_vm8 = vmmov 0  }
  0x3e   :  { %v6859_v8 = vpack.c.bf16 %v166_v5, %v165_v4  ;;  %v6861_v9 = vpack.c.bf16 %v184_v7, %v183_v6  ;;  %v167_v10 = vld [vmem:[%s10280_s6 + $0x250] sm:$0xff]  ;;  %v168_v11 = vld [vmem:[%s10280_s6 + $0x258] sm:$0xff]  ;;  %v185_v12 = vld [vmem:[%s10280_s6 + $0x2e0] sm:$0xff] }
  0x3f   :  { %6852 = vmatpush3.bf16.msra.mxu0 %v6851_v60  ;;  %v186_v13 = vld [vmem:[%s10280_s6 + $0x2e8] sm:$0xff]  ;;  %v6863_v14 = vpack.c.bf16 %v168_v11, %v167_v10  ;;  %v169_v16 = vld [vmem:[%s10280_s6 + $0x260] sm:$0xff]  ;;  %v187_v18 = vld [vmem:[%s10280_s6 + $0x2f0] sm:$0xff] }
  0x40   :  { %6854 = vmatprep.subr.bf16.mxu0 %v6853_v61  ;;  %v6865_v15 = vpack.c.bf16 %v186_v13, %v185_v12  ;;  %v170_v17 = vld [vmem:[%s10280_s6 + $0x268] sm:$0xff]  ;;  %v188_v19 = vld [vmem:[%s10280_s6 + $0x2f8] sm:$0xff]  ;;  %v171_v22 = vld [vmem:[%s10280_s6 + $0x270] sm:$0xff] }
  0x41   :  { %v6867_v20 = vpack.c.bf16 %v170_v17, %v169_v16  ;;  %v6869_v21 = vpack.c.bf16 %v188_v19, %v187_v18  ;;  %v172_v23 = vld [vmem:[%s10280_s6 + $0x278] sm:$0xff]  ;;  %v85_v25 = vld [vmem:[%s10281_s28 + $0x20] sm:$0xff]  ;;  %v91_v27 = vld [vmem:[%s10281_s28 + $0x50] sm:$0x3]  ;;  %s10285_s6 = sld [smem:[#allocation8_spill]] }
  0x42   :  { %v6871_v24 = vpack.c.bf16 %v172_v23, %v171_v22  ;;  %v92_v26 = vld [vmem:[%s10281_s28 + $0x58] sm:$0x3]  ;;  %v474_v28 = vld [vmem:[%s10282_s30] sm:$0xff]  ;;  %v475_v29 = vld [vmem:[%s10282_s30 + $0x8] sm:$0xff] }
  0x43   :  { %6856 = vmatpush3.bf16.msra.mxu0 %v6855_v2  ;;  %v572_v30 = vld [vmem:[%s10283_s8] sm:$0xff]  ;;  %v6873_v31 = vpack.c.bf16 %v475_v29, %v474_v28  ;;  %v573_v32 = vld [vmem:[%s10283_s8 + $0x8] sm:$0xff]  ;;  %v477_v4 = vld [vmem:[%s10282_s30 + $0x18] sm:$0xff] }
  0x44   :  { %6858 = vmatprep.subr.bf16.mxu0 %v6857_v3  ;;  %v6905_v33 = vpack.c.bf16 %v573_v32, %v572_v30  ;;  %v4821_v35 = vld [vmem:[%s10284_s5] ss:$0 sm:$0xff]  ;;  %v476_v3 = vld [vmem:[%s10282_s30 + $0x10] sm:$0xff]  ;;  %v575_v7 = vld [vmem:[%s10283_s8 + $0x18] sm:$0xff] }
  0x45   :  { %6874 = vmatprep.subr.bf16.mxu1 %v6873_v31  ;;  %v574_v5 = vld [vmem:[%s10283_s8 + $0x10] sm:$0xff]  ;;  %v6877_v6 = vpack.c.bf16 %v477_v4, %v476_v3  ;;  %v479_v10 = vld [vmem:[%s10282_s30 + $0x28] sm:$0xff]  ;;  %v576_v11 = vld [vmem:[%s10283_s8 + $0x20] sm:$0xff] }
  0x46   :  { %6876 = vmatpush3.bf16.msra.mxu1 %v6873_v31  ;;  %v577_v12 = vld [vmem:[%s10283_s8 + $0x28] sm:$0xff]  ;;  %v481_v16 = vld [vmem:[%s10282_s30 + $0x38] sm:$0xff]  ;;  %v578_v17 = vld [vmem:[%s10283_s8 + $0x30] sm:$0xff] }
  0x47   :  { %6860 = vmatpush3.bf16.msra.mxu0 %v6859_v8  ;;  %v421_v54 = vld [vmem:[%s10285_s6] sm:$0xff]  ;;  %v422_v60 = vld [vmem:[%s10285_s6 + $0x8] sm:$0x3]  ;;  %v6909_v8 = vpack.c.bf16 %v575_v7, %v574_v5  ;;  %6878 = vmatprep.subr.bf16.mxu1 %v6877_v6  ;;  %v579_v19 = vld [vmem:[%s10283_s8 + $0x38] sm:$0xff]  ;;  %s10288_s6 = sld [smem:[#allocation13_spill]] }
  0x48   :  { %6862 = vmatprep.subr.bf16.mxu0 %v6861_v9  ;;  %v478_v9 = vld [vmem:[%s10282_s30 + $0x20] sm:$0xff]  ;;  %v483_v22 = vld [vmem:[%s10282_s30 + $0x48] sm:$0xff]  ;;  %v485_v28 = vld [vmem:[%s10282_s30 + $0x58] sm:$0xff] }
  0x49   :  { %v6881_v13 = vpack.c.bf16 %v479_v10, %v478_v9  ;;  %v580_v23 = vld [vmem:[%s10283_s8 + $0x40] sm:$0xff]  ;;  %v582_v29 = vld [vmem:[%s10283_s8 + $0x50] sm:$0xff]  ;;  %v583_v31 = vld [vmem:[%s10283_s8 + $0x58] sm:$0xff] }
  0x4a   :  { %6880 = vmatpush3.bf16.msra.mxu1 %v6877_v6  ;;  %v6925_v32 = vpack.c.bf16 %v583_v31, %v582_v29  ;;  %v4822_v5 = vld [vmem:[%s10286_s26] ss:$0 sm:$0xff]  ;;  %v4858_v29 = vld [vmem:[%s10283_s8 + $0xb0] sm:$0xff]  ;;  %vm8590_vm2 = vmpackc.low %vm768_vm1, %vm768_vm1 }
  0x4b   :  { %6864 = vmatpush3.bf16.msra.mxu0 %v6863_v14  ;;  %v6913_v14 = vpack.c.bf16 %v577_v12, %v576_v11  ;;  %6882 = vmatprep.subr.bf16.mxu1 %v6881_v13  ;;  %v4823_v7 = vld [vmem:[%s10287_s4] ss:$0 sm:$0xff]  ;;  %vm8607_vm4 = vmpackc.low %vm431_vm0, %vm7890_vm3 }
  0x4c   :  { %6866 = vmatprep.subr.bf16.mxu0 %v6865_v15  ;;  %v480_v15 = vld [vmem:[%s10282_s30 + $0x30] sm:$0xff] }
  0x4d   :  { %v6885_v18 = vpack.c.bf16 %v481_v16, %v480_v15  ;;  %v673_v15 = vld [vmem:[%s10243_s11 + $0x18] sm:$0xff]  ;;  %v4854_v16 = vld [vmem:[%s10283_s8 + $0x90] sm:$0xff] }
  0x4e   :  { %6884 = vmatpush3.bf16.msra.mxu1 %v6881_v13  ;;  %v672_v13 = vld [vmem:[%s10243_s11 + $0x10] sm:$0xff] }
  0x4f   :  { %6868 = vmatpush3.bf16.msra.mxu0 %v6867_v20  ;;  %v6917_v20 = vpack.c.bf16 %v579_v19, %v578_v17  ;;  %6886 = vmatprep.subr.bf16.mxu1 %v6885_v18  ;;  %v4855_v17 = vld [vmem:[%s10283_s8 + $0x98] sm:$0xff]  ;;  %v674_v19 = vld [vmem:[%s10243_s11 + $0x20] sm:$0xff] }
  0x50   :  { %6870 = vmatprep.subr.bf16.mxu0 %v6869_v21  ;;  %v482_v21 = vld [vmem:[%s10282_s30 + $0x40] sm:$0xff] }
  0x52   :  { %6888 = vmatpush3.bf16.msra.mxu1 %v6885_v18 }
  0x53   :  { %6872 = vmatpush3.bf16.msra.mxu0 %v6871_v24  ;;  %v6889_v24 = vpack.c.bf16 %v483_v22, %v482_v21  ;;  %v7017_v21 = vpack.c.bf16 %v4855_v17, %v4854_v16  ;;  %v675_v22 = vld [vmem:[%s10243_s11 + $0x28] sm:$0xff] }
  0x54   :  { %6906 = vmatprep.subr.bf16.mxu0 %v6905_v33 }
  0x55   :  { %6890 = vmatprep.subr.bf16.mxu1 %v6889_v24 }
  0x56   :  { %411 = vmatmul.mubr.f32.vlgmr.msra.gmra.mrb[4].mxu0 %v85_v25  ;;  %v581_v25 = vld [vmem:[%s10283_s8 + $0x48] sm:$0xff]  ;;  %6892 = vmatpush3.bf16.msra.mxu1 %v6889_v24 }
  0x57   :  { %415 = vmatprep.mubr.f32.mxu0 %v92_v26  ;;  %6908 = vmatpush3.bf16.msra.mxu0 %v6905_v33  ;;  %v6921_v26 = vpack.c.bf16 %v581_v25, %v580_v23  ;;  %v486_v33 = vld [vmem:[%s10282_s30 + $0x60] sm:$0xff]  ;;  %v4857_v24 = vld [vmem:[%s10283_s8 + $0xa8] sm:$0xff]  ;;  %v6945_v25 = vpack.c.bf16 %v675_v22, %v674_v19 }
  0x58   :  { %6910 = vmatprep.subr.bf16.mxu0 %v6909_v8  ;;  %v4856_v23 = vld [vmem:[%s10283_s8 + $0xa0] sm:$0xff] }
  0x5a   :  { %416 = vmatmul.mubr.f32.gmra.mrb[6].mxu0 %v91_v27  ;;  %v484_v27 = vld [vmem:[%s10282_s30 + $0x50] sm:$0xff] }
  0x5b   :  { %6912 = vmatpush3.bf16.msra.mxu0 %v6909_v8  ;;  %v6893_v30 = vpack.c.bf16 %v485_v28, %v484_v27  ;;  %v676_v27 = vld [vmem:[%s10243_s11 + $0x30] sm:$0xff]  ;;  %v677_v28 = vld [vmem:[%s10243_s11 + $0x38] sm:$0xff] }
  0x5c   :  { %6914 = vmatprep.subr.bf16.mxu0 %v6913_v14  ;;  %v6949_v31 = vpack.c.bf16 %v677_v28, %v676_v27 }
  0x5d   :  { %6894 = vmatprep.subr.bf16.mxu1 %v6893_v30 }
  0x5e   :  { %6896 = vmatpush3.bf16.msra.mxu1 %v6893_v30  ;;  %v4859_v30 = vld [vmem:[%s10283_s8 + $0xb8] sm:$0xff] }
  0x5f   :  { %6916 = vmatpush3.bf16.msra.mxu0 %v6913_v14 }
  0x60   :  { %6918 = vmatprep.subr.bf16.mxu0 %v6917_v20 }
  0x63   :  { %6920 = vmatpush3.bf16.msra.mxu0 %v6917_v20  ;;  %v6941_v20 = vpack.c.bf16 %v673_v15, %v672_v13 }
  0x64   :  { %6922 = vmatprep.subr.bf16.mxu0 %v6921_v26 }
  0x67   :  { %6924 = vmatpush3.bf16.msra.mxu0 %v6921_v26  ;;  %v7021_v26 = vpack.c.bf16 %v4857_v24, %v4856_v23  ;;  %v8622_v23 = vld [vmem:[%s10293_s9 + $0x8] sm:$0x3] }
  0x68   :  { %6926 = vmatprep.subr.bf16.mxu0 %v6925_v32 }
  0x6b   :  { %6928 = vmatpush3.bf16.msra.mxu0 %v6925_v32  ;;  %v7025_v32 = vpack.c.bf16 %v4859_v30, %v4858_v29 }
 0x109   :  { %v5307_v34 = vpop.f32.mrb[0].mxu0 }
 0x10a   :  { %v5308_v36 = vpop.f32.mrb[1].mxu0 }
 0x10b   :  { %v5345_v37 = vpop.f32.mrb[0].mxu1  ;;  %v5309_v38 = vadd.f32 %v5308_v36, %v5307_v34  ;;  %v487_v34 = vld [vmem:[%s10282_s30 + $0x68] sm:$0xff] }
 0x10c   :  { %v5346_v39 = vpop.f32.mrb[1].mxu1  ;;  %v6897_v36 = vpack.c.bf16 %v487_v34, %v486_v33  ;;  %v678_v33 = vld [vmem:[%s10243_s11 + $0x40] sm:$0xff]  ;;  %v679_v34 = vld [vmem:[%s10243_s11 + $0x48] sm:$0xff] }
 0x10d   :  { %v5347_v40 = vadd.f32 %v5346_v39, %v5345_v37  ;;  %v263_v41 = vadd.f32 %v5309_v38, %v4821_v35  ;;  %v5310_v42 = vpop.f32.mrb[2].mxu0  ;;  %v585_v37 = vld [vmem:[%s10283_s8 + $0x68] sm:$0xff]  ;;  %v488_v39 = vld [vmem:[%s10282_s30 + $0x70] sm:$0xff] }
 0x10e   :  { %v5311_v43 = vpop.f32.mrb[3].mxu0  ;;  %6898 = vmatprep.subr.bf16.mxu1 %v6897_v36 }
 0x10f   :  { %v5348_v44 = vpop.f32.mrb[2].mxu1  ;;  %v338_v45 = vadd.f32 %v5347_v40, %v263_v41  ;;  %v5312_v46 = vadd.f32 %v5311_v43, %v5310_v42  ;;  %v489_v40 = vld [vmem:[%s10282_s30 + $0x78] sm:$0xff]  ;;  %v586_v41 = vld [vmem:[%s10283_s8 + $0x70] sm:$0xff]  ;;  %6900 = vmatpush3.bf16.msra.mxu1 %v6897_v36  ;;  %v4861_v36 = vld [vmem:[%s10283_s8 + $0xc8] sm:$0xff] }
 0x110   :  { %v5349_v47 = vpop.f32.mrb[3].mxu1  ;;  %v6901_v42 = vpack.c.bf16 %v489_v40, %v488_v39  ;;  %v587_v43 = vld [vmem:[%s10283_s8 + $0x78] sm:$0xff]  ;;  %v680_v39 = vld [vmem:[%s10243_s11 + $0x50] sm:$0xff] }
 0x111   :  { %v5350_v48 = vadd.f32 %v5349_v47, %v5348_v44  ;;  %v268_v49 = vadd.f32 %v5312_v46, %v4821_v35  ;;  %v584_v35 = vld [vmem:[%s10283_s8 + $0x60] sm:$0xff]  ;;  %v6933_v44 = vpack.c.bf16 %v587_v43, %v586_v41  ;;  %v671_v46 = vld [vmem:[%s10243_s11 + $0x8] sm:$0xff]  ;;  %v681_v40 = vld [vmem:[%s10243_s11 + $0x58] sm:$0xff] }
 0x112   :  { %v6929_v38 = vpack.c.bf16 %v585_v37, %v584_v35  ;;  %6902 = vmatprep.subr.bf16.mxu1 %v6901_v42  ;;  %v4852_v47 = vld [vmem:[%s10283_s8 + $0x80] sm:$0xff]  ;;  %v6953_v37 = vpack.c.bf16 %v679_v34, %v678_v33  ;;  %v4862_v41 = vld [vmem:[%s10283_s8 + $0xd0] sm:$0xff]  ;;  %v6957_v43 = vpack.c.bf16 %v681_v40, %v680_v39 }
 0x113   :  { %v343_v50 = vadd.f32 %v5350_v48, %v268_v49  ;;  %6904 = vmatpush3.bf16.msra.mxu1 %v6901_v42  ;;  %v4853_v49 = vld [vmem:[%s10283_s8 + $0x88] sm:$0xff]  ;;  %v4860_v35 = vld [vmem:[%s10283_s8 + $0xc0] sm:$0xff]  ;;  %v4863_v42 = vld [vmem:[%s10283_s8 + $0xd8] sm:$0xff] }
 0x114   :  { %6930 = vmatprep.subr.bf16.mxu0 %v6929_v38 }
 0x115   :  { %6932 = vmatpush3.bf16.msra.mxu0 %v6929_v38  ;;  %v7029_v38 = vpack.c.bf16 %v4861_v36, %v4860_v35 }
 0x116   :  { %6934 = vmatprep.subr.bf16.mxu0 %v6933_v44 }
 0x119   :  { %6936 = vmatpush3.bf16.msra.mxu0 %v6933_v44  ;;  %v7033_v44 = vpack.c.bf16 %v4863_v42, %v4862_v41  ;;  %v4834_v42 = vld [vmem:[%s10282_s30 + $0x80] sm:$0xff] }
 0x129   :  { %v5383_v51 = vpop.f32.mrb[4].mxu0 }
 0x12a   :  { %v5384_v52 = vpop.f32.mrb[5].mxu0 }
 0x12b   :  { %v5385_v53 = vadd.f32 %v5384_v52, %v5383_v51 }
 0x12d   :  { %v413_v55 = vadd.f32 %v5385_v53, %v338_v45  ;;  %v5386_v56 = vpop.f32.mrb[6].mxu0  ;;  %v670_v45 = vld [vmem:[%s10243_s11] sm:$0xff] }
 0x12e   :  { %v5387_v57 = vpop.f32.mrb[7].mxu0  ;;  %v6937_v48 = vpack.c.bf16 %v671_v46, %v670_v45  ;;  %v682_v45 = vld [vmem:[%s10243_s11 + $0x60] sm:$0xff]  ;;  %v683_v46 = vld [vmem:[%s10243_s11 + $0x68] sm:$0xff] }
 0x12f   :  { %v8367_v58 = vadd.f32 %v421_v54, %v413_v55  ;;  %v5388_v59 = vadd.f32 %v5387_v57, %v5386_v56 }
 0x130   :  { %6938 = vmatprep.subr.bf16.mxu1 %v6937_v48 }
 0x131   :  { %v418_v61 = vadd.f32 %v5388_v59, %v343_v50  ;;  %429 = vadd.xlane.f32.xlu0 %v8367_v58  ;;  %v437_v62 = vmul.f32 %v8367_v58, %v8367_v58  ;;  %v7013_v50 = vpack.c.bf16 %v4853_v49, %v4852_v47  ;;  %v4864_v47 = vld [vmem:[%s10283_s8 + $0xe0] sm:$0xff]  ;;  %v6961_v49 = vpack.c.bf16 %v683_v46, %v682_v45 }
 0x133   :  { %v8375_v63 = vadd.f32 %v422_v60, %v418_v61  ;;  %439 = vadd.xlane.f32.xlu1 %v437_v62  ;;  %7014 = vmatprep.subr.bf16.mxu0 %v7013_v50 }
 0x135   :  { %v432_v0 = vsel %vm431_vm0, %v8375_v63, 0.0  ;;  %v438_v1 = vmul.f32 %v8375_v63, %v8375_v63 }
 0x136   :  { %433 = vadd.xlane.f32.xlu0 %v432_v0 }
 0x137   :  { %v441_v2 = vsel %vm431_vm0, %v438_v1, 0.0 }
 0x138   :  { %442 = vadd.xlane.f32.xlu1 %v441_v2 }
 0x1be   :  { %v430_v51 = vpop.xlane.xlu0 %429 }
 0x1bf   :  { %v435_v52 = vmul.f32 0.020833334, %v430_v51  ;;  %v684_v51 = vld [vmem:[%s10243_s11 + $0x70] sm:$0xff] }
 0x1c0   :  { %v440_v53 = vpop.xlane.xlu1 %439 }
 0x1c1   :  { %v446_v54 = vmul.f32 %v435_v52, %v435_v52  ;;  %v444_v55 = vmul.f32 0.020833334, %v440_v53  ;;  %v450_v3 = vsub.f32 %v8367_v58, %v435_v52  ;;  %v685_v52 = vld [vmem:[%s10243_s11 + $0x78] sm:$0xff]  ;;  %v4866_v53 = vld [vmem:[%s10283_s8 + $0xf0] sm:$0xff] }
 0x1c3   :  { %v448_v56 = vsub.f32 %v444_v55, %v446_v54  ;;  %v434_v57 = vpop.xlane.xlu0 %433  ;;  %v4867_v54 = vld [vmem:[%s10283_s8 + $0xf8] sm:$0xff]  ;;  %v6965_v55 = vpack.c.bf16 %v685_v52, %v684_v51 }
 0x1c4   :  { %v436_v59 = vmul.f32 0.020833334, %v434_v57  ;;  %v4825_v57 = vld [vmem:[%s10242_s10] ss:$0 sm:$0xff] }
 0x1c5   :  { %v452_v60 = vadd.f32 1e-06, %v448_v56  ;;  %v443_v61 = vpop.xlane.xlu1 %442  ;;  %v7041_v56 = vpack.c.bf16 %v4867_v54, %v4866_v53  ;;  %v4838_v54 = vld [vmem:[%s10282_s30 + $0xa0] sm:$0xff] }
 0x1c6   :  { %v447_v62 = vmul.f32 %v436_v59, %v436_v59  ;;  %v445_v0 = vmul.f32 0.020833334, %v443_v61  ;;  %v451_v9 = vsub.f32 %v8375_v63, %v436_v59  ;;  %v4824_v59 = vld [vmem:[%s10288_s6] ss:$0 sm:$0xff] }
 0x1c7   :  { %7782 = vrsqrt.f32 %v452_v60 }
 0x1c8   :  { %v449_v1 = vsub.f32 %v445_v0, %v447_v62 }
 0x1ca   :  { %v453_v2 = vadd.f32 1e-06, %v449_v1 }
 0x1cc   :  { %7784 = vrsqrt.f32 %v453_v2 }
 0x1d1   :  { %v7783_v4 = vpop.eup %7782 }
 0x1d2   :  { %v456_v6 = vmul.f32 %v7783_v4, %v450_v3 }
 0x1d4   :  { %v464_v8 = vmul.f32 %v4822_v5, %v456_v6 }
 0x1d6   :  { %v7785_v10 = vpop.eup %7784  ;;  %v8486_v11 = vadd.f32 %v4823_v7, %v464_v8  ;;  %v4869_v8 = vld [vmem:[%s10242_s10 + $0x1] ss:$0 sm:$0xff] }
 0x1d7   :  { %v457_v12 = vmul.f32 %v7785_v10, %v451_v9 }
 0x1d8   :  { %5946 = vmatprep.mubr.f32.mxu1 %v8486_v11  ;;  %5981 = vmatprep.mubr.f32.mxu0 %v8486_v11 }
 0x1d9   :  { %v465_v14 = vmul.f32 %v4822_v5, %v457_v12 }
 0x1db   :  { %v8502_v18 = vadd.f32 %v4823_v7, %v465_v14  ;;  %v4826_v7 = vld [vmem:[%s10244_s12] ss:$0 sm:$0xff] }
 0x1dd   :  { %5947 = vmatmul.mubr.f32.vlgmr.msra.gmra.mrb[4].mxu1 %v8502_v18  ;;  %5982 = vmatmul.mubr.f32.vlgmr.msra.gmra.mrb[8].mxu0 %v8502_v18 }
 0x1de   :  { %6940 = vmatpush3.bf16.msra.mxu1 %v6937_v48  ;;  %7016 = vmatpush3.bf16.msra.mxu0 %v7013_v50  ;;  %v4865_v48 = vld [vmem:[%s10283_s8 + $0xe8] sm:$0xff] }
 0x1df   :  { %6016 = vmatprep.mubr.f32.mxu1 %v8486_v11  ;;  %6100 = vmatprep.mubr.f32.mxu0 %v8486_v11  ;;  %v7037_v50 = vpack.c.bf16 %v4865_v48, %v4864_v47  ;;  %v4836_v48 = vld [vmem:[%s10282_s30 + $0x90] sm:$0xff] }
 0x1e0   :  { %6942 = vmatprep.subr.bf16.mxu1 %v6941_v20  ;;  %7018 = vmatprep.subr.bf16.mxu0 %v7017_v21 }
 0x1e2   :  { %6944 = vmatpush3.bf16.msra.mxu1 %v6941_v20  ;;  %7020 = vmatpush3.bf16.msra.mxu0 %v7017_v21 }
 0x1e3   :  { %6946 = vmatprep.subr.bf16.mxu1 %v6945_v25  ;;  %7022 = vmatprep.subr.bf16.mxu0 %v7021_v26 }
 0x1e6   :  { %6948 = vmatpush3.bf16.msra.mxu1 %v6945_v25  ;;  %7024 = vmatpush3.bf16.msra.mxu0 %v7021_v26  ;;  %v8627_v26 = vld [vmem:[%s10293_s9] sm:$0xff] }
 0x1e7   :  { %6950 = vmatprep.subr.bf16.mxu1 %v6949_v31  ;;  %7026 = vmatprep.subr.bf16.mxu0 %v7025_v32 }
 0x1ea   :  { %6952 = vmatpush3.bf16.msra.mxu1 %v6949_v31  ;;  %7028 = vmatpush3.bf16.msra.mxu0 %v7025_v32 }
 0x1eb   :  { %6954 = vmatprep.subr.bf16.mxu1 %v6953_v37  ;;  %7030 = vmatprep.subr.bf16.mxu0 %v7029_v38 }
 0x1ee   :  { %6956 = vmatpush3.bf16.msra.mxu1 %v6953_v37  ;;  %7032 = vmatpush3.bf16.msra.mxu0 %v7029_v38 }
 0x1ef   :  { %6958 = vmatprep.subr.bf16.mxu1 %v6957_v43  ;;  %7034 = vmatprep.subr.bf16.mxu0 %v7033_v44 }
 0x1f2   :  { %6960 = vmatpush3.bf16.msra.mxu1 %v6957_v43  ;;  %7036 = vmatpush3.bf16.msra.mxu0 %v7033_v44  ;;  %v4835_v43 = vld [vmem:[%s10282_s30 + $0x88] sm:$0xff] }
 0x1f3   :  { %6962 = vmatprep.subr.bf16.mxu1 %v6961_v49  ;;  %7038 = vmatprep.subr.bf16.mxu0 %v7037_v50  ;;  %v6981_v44 = vpack.c.bf16 %v4835_v43, %v4834_v42  ;;  %v4909_v43 = vld [vmem:[%s10282_s30 + $0x110] sm:$0xff] }
 0x1f6   :  { %6964 = vmatpush3.bf16.msra.mxu1 %v6961_v49  ;;  %7040 = vmatpush3.bf16.msra.mxu0 %v7037_v50  ;;  %v4837_v49 = vld [vmem:[%s10282_s30 + $0x98] sm:$0xff] }
 0x1f7   :  { %6966 = vmatprep.subr.bf16.mxu1 %v6965_v55  ;;  %7042 = vmatprep.subr.bf16.mxu0 %v7041_v56  ;;  %v6985_v53 = vpack.c.bf16 %v4837_v49, %v4836_v48  ;;  %v4913_v49 = vld [vmem:[%s10282_s30 + $0x130] sm:$0xff] }
 0x1fa   :  { %6968 = vmatpush3.bf16.msra.mxu1 %v6965_v55  ;;  %7044 = vmatpush3.bf16.msra.mxu0 %v7041_v56  ;;  %v4839_v55 = vld [vmem:[%s10282_s30 + $0xa8] sm:$0xff] }
 0x1fb   :  { %v6989_v56 = vpack.c.bf16 %v4839_v55, %v4838_v54  ;;  %v4917_v55 = vld [vmem:[%s10282_s30 + $0x150] sm:$0xff] }
 0x1fd   :  { %6017 = vmatmul.mubr.f32.vlgmr.msra.gmra.mrb[6].mxu1 %v8502_v18  ;;  %6101 = vmatmul.mubr.f32.vlgmr.msra.gmra.mrb[10].mxu0 %v8502_v18 }
 0x2b0   :  { %v5948_v60 = vpop.f32.mrb[4].mxu1  ;;  %v5983_v61 = vpop.f32.mrb[8].mxu0 }
 0x2b1   :  { %v667_v62 = vadd.f32 %v5983_v61, %v4825_v57  ;;  %v563_v0 = vpop.f32.mrb[5].mxu1  ;;  %v661_v1 = vpop.f32.mrb[9].mxu0  ;;  %v569_v6 = vadd.f32 %v5948_v60, %v4824_v59  ;;  %v4842_v61 = vld [vmem:[%s10282_s30 + $0xc0] sm:$0xff] }
 0x2b2   :  { %v564_v2 = vadd.f32 %v4824_v59, %v563_v0  ;;  %v662_v3 = vadd.f32 %v4825_v57, %v661_v1  ;;  %v4840_v57 = vld [vmem:[%s10282_s30 + $0xb0] sm:$0xff]  ;;  %v4841_v59 = vld [vmem:[%s10282_s30 + $0xb8] sm:$0xff] }
 0x2b3   :  { %v6993_v60 = vpack.c.bf16 %v4841_v59, %v4840_v57  ;;  %v4844_v1 = vld [vmem:[%s10282_s30 + $0xd0] sm:$0xff]  ;;  %v4919_v59 = vld [vmem:[%s10282_s30 + $0x160] sm:$0xff] }
 0x2b4   :  { %v6969_v5 = vpack.c.bf16 %v667_v62, %v662_v3  ;;  %6023 = vmatprep.mubr.msk.f32.mxu1 %vm768_vm1, %v564_v2  ;;  %v4843_v62 = vld [vmem:[%s10282_s30 + $0xc8] sm:$0xff]  ;;  %v4845_v2 = vld [vmem:[%s10282_s30 + $0xd8] sm:$0xff] }
 0x2b5   :  { %v6997_v0 = vpack.c.bf16 %v4843_v62, %v4842_v61  ;;  %v7001_v3 = vpack.c.bf16 %v4845_v2, %v4844_v1  ;;  %v4921_v62 = vld [vmem:[%s10282_s30 + $0x170] sm:$0xff]  ;;  %v4943_v2 = vld [vmem:[%s10243_s11 + $0x100] sm:$0xff] }
 0x2b6   :  { %6971 = vmatprep.subr.msk.bf16.mxu1 %vm8590_vm2, %v6969_v5 }
 0x2b7   :  { %6974 = vmatpush3.bf16.xpose.msk.msra.mxu1 %vm8590_vm2, %v6969_v5  ;;  %v4846_v5 = vld [vmem:[%s10282_s30 + $0xe0] sm:$0xff] }
 0x2be   :  { %6024 = vmatmul.mubr.msk.f32.vlgmr.msra.gmra.mrb[8].mxu1 %vm768_vm1, %v569_v6  ;;  %v4847_v6 = vld [vmem:[%s10282_s30 + $0xe8] sm:$0xff] }
 0x2d0   :  { %v6018_v9 = vpop.f32.mrb[6].mxu1  ;;  %v6102_v10 = vpop.f32.mrb[10].mxu0 }
 0x2d1   :  { %v765_v12 = vadd.f32 %v6018_v9, %v4826_v7  ;;  %v1173_v13 = vadd.f32 %v6102_v10, %v4869_v8  ;;  %v759_v14 = vpop.f32.mrb[7].mxu1  ;;  %v1167_v15 = vpop.f32.mrb[11].mxu0  ;;  %v4849_v9 = vld [vmem:[%s10282_s30 + $0xf8] sm:$0xff] }
 0x2d2   :  { %v760_v16 = vadd.f32 %v4826_v7, %v759_v14  ;;  %v1168_v17 = vadd.f32 %v4869_v8, %v1167_v15  ;;  %v7005_v7 = vpack.c.bf16 %v4847_v6, %v4846_v5  ;;  %v4848_v8 = vld [vmem:[%s10282_s30 + $0xf0] sm:$0xff] }
 0x2d3   :  { %v7009_v10 = vpack.c.bf16 %v4849_v9, %v4848_v8  ;;  %v4872_v15 = vld [vmem:[%s10243_s11 + $0x90] sm:$0xff]  ;;  %v4947_v9 = vld [vmem:[%s10243_s11 + $0x120] sm:$0xff] }
 0x2d4   :  { %v6975_v20 = vpack.c.bf16 %v765_v12, %v760_v16  ;;  %v7077_v21 = vpack.c.bf16 %v1173_v13, %v1168_v17  ;;  %v4870_v12 = vld [vmem:[%s10243_s11 + $0x80] sm:$0xff]  ;;  %v4871_v13 = vld [vmem:[%s10243_s11 + $0x88] sm:$0xff]  ;;  %v4873_v16 = vld [vmem:[%s10243_s11 + $0x98] sm:$0xff] }
 0x2d5   :  { %v7045_v14 = vpack.c.bf16 %v4871_v13, %v4870_v12  ;;  %v7049_v17 = vpack.c.bf16 %v4873_v16, %v4872_v15  ;;  %v4945_v6 = vld [vmem:[%s10243_s11 + $0x110] sm:$0xff]  ;;  %v4951_v16 = vld [vmem:[%s10243_s11 + $0x140] sm:$0xff] }
 0x2d6   :  { %6977 = vmatprep.subr.msk.bf16.mxu1 %vm8607_vm4, %v6975_v20  ;;  %7079 = vmatprep.subr.msk.bf16.mxu0 %vm8590_vm2, %v7077_v21  ;;  %v4949_v13 = vld [vmem:[%s10243_s11 + $0x130] sm:$0xff] }
 0x2d7   :  { %6980 = vmatpush3.bf16.msk.msra.mxu1 %vm8607_vm4, %v6975_v20  ;;  %7082 = vmatpush3.bf16.xpose.msk.msra.mxu0 %vm8590_vm2, %v7077_v21  ;;  %v4874_v20 = vld [vmem:[%s10243_s11 + $0xa0] sm:$0xff]  ;;  %v4875_v21 = vld [vmem:[%s10243_s11 + $0xa8] sm:$0xff] }
 0x2d8   :  { %6982 = vmatprep.subr.bf16.mxu1 %v6981_v44 }
 0x391   :  { %v6025_v22 = vpop.f32.mrb[8].mxu1 }
 0x392   :  { %v857_v24 = vmul.f32 0.25, %v6025_v22  ;;  %v847_v25 = vpop.f32.mrb[9].mxu1  ;;  %v7053_v22 = vpack.c.bf16 %v4875_v21, %v4874_v20  ;;  %v4953_v21 = vld [vmem:[%s10243_s11 + $0x150] sm:$0xff] }
 0x393   :  { %v856_v27 = vmul.f32 0.25, %v847_v25  ;;  %v4877_v25 = vld [vmem:[%s10243_s11 + $0xb8] sm:$0xff] }
 0x394   :  { %v859_v28 = vadd.f32 %v857_v24, %v8622_v23  ;;  %v4876_v24 = vld [vmem:[%s10243_s11 + $0xb0] sm:$0xff] }
 0x395   :  { %v858_v29 = vadd.f32 %v856_v27, %v8627_v26  ;;  %v7057_v27 = vpack.c.bf16 %v4877_v25, %v4876_v24  ;;  %v4955_v25 = vld [vmem:[%s10243_s11 + $0x160] sm:$0xff] }
 0x396   :  { %v865_v30 = vsel %vm864_vm5, %v859_v28, -inf }
 0x397   :  { %866 = vmax.xlane.f32.xlu1 %v865_v30  ;;  %v861_v31 = vsel %vm860_vm6, %v858_v29, -inf }
 0x398   :  { %862 = vmax.xlane.f32.xlu0 %v861_v31  ;;  %v4880_v31 = vld [vmem:[%s10243_s11 + $0xd0] sm:$0xff] }
 0x424   :  { %v867_v32 = vpop.xlane.xlu1 %866 }
 0x425   :  { %v869_v33 = vsub.f32 %v859_v28, %v867_v32  ;;  %v863_v34 = vpop.xlane.xlu0 %862  ;;  %v4878_v28 = vld [vmem:[%s10243_s11 + $0xc0] sm:$0xff]  ;;  %v4881_v32 = vld [vmem:[%s10243_s11 + $0xd8] sm:$0xff] }
 0x426   :  { %v868_v35 = vsub.f32 %v858_v29, %v863_v34  ;;  %v4879_v29 = vld [vmem:[%s10243_s11 + $0xc8] sm:$0xff]  ;;  %v4882_v34 = vld [vmem:[%s10243_s11 + $0xe0] sm:$0xff] }
 0x427   :  { %v872_v36 = vmul.f32 1.442695, %v869_v33  ;;  %v7061_v30 = vpack.c.bf16 %v4879_v29, %v4878_v28  ;;  %v7065_v33 = vpack.c.bf16 %v4881_v32, %v4880_v31  ;;  %v4957_v29 = vld [vmem:[%s10243_s11 + $0x170] sm:$0xff] }
 0x428   :  { %v870_v37 = vmul.f32 1.442695, %v868_v35  ;;  %v4883_v35 = vld [vmem:[%s10243_s11 + $0xe8] sm:$0xff] }
 0x429   :  { %7786 = vpow2.f32 %v872_v36  ;;  %v7069_v36 = vpack.c.bf16 %v4883_v35, %v4882_v34  ;;  %v4851_v34 = vld [vmem:[%s10288_s6 + $0x1] ss:$0 sm:$0xff] }
 0x42a   :  { %7788 = vpow2.f32 %v870_v37  ;;  %v4884_v37 = vld [vmem:[%s10243_s11 + $0xf0] sm:$0xff] }
 0x433   :  { %v7787_v38 = vpop.eup %7786 }
 0x434   :  { %v7789_v39 = vpop.eup %7788  ;;  %v877_v40 = vsel %vm864_vm5, %v7787_v38, 0.0 }
 0x435   :  { %878 = vadd.xlane.f32.xlu1 %v877_v40  ;;  %v874_v41 = vsel %vm860_vm6, %v7789_v39, 0.0  ;;  %v4907_v40 = vld [vmem:[%s10282_s30 + $0x100] sm:$0xff] }
 0x436   :  { %875 = vadd.xlane.f32.xlu0 %v874_v41  ;;  %v4908_v41 = vld [vmem:[%s10282_s30 + $0x108] sm:$0xff] }
 0x437   :  { %v7121_v42 = vpack.c.bf16 %v4908_v41, %v4907_v40 }
 0x4c2   :  { %v879_v45 = vpop.xlane.xlu1 %878 }
 0x4c3   :  { %7790 = vrcp.f32 %v879_v45  ;;  %v876_v46 = vpop.xlane.xlu0 %875 }
 0x4c4   :  { %7792 = vrcp.f32 %v876_v46  ;;  %v4911_v46 = vld [vmem:[%s10282_s30 + $0x120] sm:$0xff] }
 0x4cd   :  { %v7791_v47 = vpop.eup %7790 }
 0x4ce   :  { %v7793_v50 = vpop.eup %7792  ;;  %v883_v52 = vmul.f32 %v7791_v47, %v7787_v38  ;;  %v4885_v38 = vld [vmem:[%s10243_s11 + $0xf8] sm:$0xff]  ;;  %v4912_v47 = vld [vmem:[%s10282_s30 + $0x128] sm:$0xff] }
 0x4cf   :  { %v881_v51 = vmul.f32 %v7793_v50, %v7789_v39  ;;  %v7073_v39 = vpack.c.bf16 %v4885_v38, %v4884_v37  ;;  %v7129_v48 = vpack.c.bf16 %v4912_v47, %v4911_v46  ;;  %v4914_v50 = vld [vmem:[%s10282_s30 + $0x138] sm:$0xff] }
 0x4d1   :  { %6030 = vmatprep.mubr.msk.f32.mxu1 %vm860_vm6, %v881_v51  ;;  %v7133_v51 = vpack.c.bf16 %v4914_v50, %v4913_v49  ;;  %v4960_v49 = vld [vmem:[%s10244_s12 + $0x2] ss:$0 sm:$0xff] }
 0x4d2   :  { %6031 = vmatmul.mubr.msk.f32.vlgmr.msra.gmra.mrb[10].mxu1 %vm860_vm6, %v883_v52  ;;  %v4915_v52 = vld [vmem:[%s10282_s30 + $0x140] sm:$0xff] }
 0x4d3   :  { %6984 = vmatpush3.bf16.msra.mxu1 %v6981_v44  ;;  %6065 = vmatprep.mubr.f32.mxu1 %v8486_v11  ;;  %v4910_v44 = vld [vmem:[%s10282_s30 + $0x118] sm:$0xff] }
 0x4d4   :  { %6986 = vmatprep.subr.bf16.mxu1 %v6985_v53  ;;  %v7125_v45 = vpack.c.bf16 %v4910_v44, %v4909_v43 }
 0x4d7   :  { %6988 = vmatpush3.bf16.msra.mxu1 %v6985_v53  ;;  %v4916_v53 = vld [vmem:[%s10282_s30 + $0x148] sm:$0xff] }
 0x4d8   :  { %6990 = vmatprep.subr.bf16.mxu1 %v6989_v56  ;;  %v7137_v54 = vpack.c.bf16 %v4916_v53, %v4915_v52 }
 0x4db   :  { %6992 = vmatpush3.bf16.msra.mxu1 %v6989_v56  ;;  %v4918_v56 = vld [vmem:[%s10282_s30 + $0x158] sm:$0xff] }
 0x4dc   :  { %6994 = vmatprep.subr.bf16.mxu1 %v6993_v60  ;;  %v7141_v57 = vpack.c.bf16 %v4918_v56, %v4917_v55 }
 0x4df   :  { %6996 = vmatpush3.bf16.msra.mxu1 %v6993_v60  ;;  %v4920_v60 = vld [vmem:[%s10282_s30 + $0x168] sm:$0xff] }
 0x4e0   :  { %6998 = vmatprep.subr.bf16.mxu1 %v6997_v0  ;;  %v7145_v61 = vpack.c.bf16 %v4920_v60, %v4919_v59 }
 0x4e3   :  { %7000 = vmatpush3.bf16.msra.mxu1 %v6997_v0  ;;  %v4922_v0 = vld [vmem:[%s10282_s30 + $0x178] sm:$0xff] }
 0x4e4   :  { %7002 = vmatprep.subr.bf16.mxu1 %v7001_v3  ;;  %v7149_v1 = vpack.c.bf16 %v4922_v0, %v4921_v62 }
 0x4e7   :  { %7004 = vmatpush3.bf16.msra.mxu1 %v7001_v3  ;;  %v4944_v3 = vld [vmem:[%s10243_s11 + $0x108] sm:$0xff] }
 0x4e8   :  { %7006 = vmatprep.subr.bf16.mxu1 %v7005_v7  ;;  %v7185_v5 = vpack.c.bf16 %v4944_v3, %v4943_v2 }
 0x4eb   :  { %7008 = vmatpush3.bf16.msra.mxu1 %v7005_v7  ;;  %v4946_v7 = vld [vmem:[%s10243_s11 + $0x118] sm:$0xff] }
 0x4ec   :  { %7010 = vmatprep.subr.bf16.mxu1 %v7009_v10  ;;  %v7189_v8 = vpack.c.bf16 %v4946_v7, %v4945_v6 }
 0x4ef   :  { %7012 = vmatpush3.bf16.msra.mxu1 %v7009_v10  ;;  %v4948_v10 = vld [vmem:[%s10243_s11 + $0x128] sm:$0xff] }
 0x4f0   :  { %7046 = vmatprep.subr.bf16.mxu1 %v7045_v14  ;;  %v7193_v12 = vpack.c.bf16 %v4948_v10, %v4947_v9 }
 0x4f2   :  { %6066 = vmatmul.mubr.f32.vlgmr.msra.gmra.mrb[12].mxu1 %v8502_v18 }
 0x4f3   :  { %7048 = vmatpush3.bf16.msra.mxu1 %v7045_v14  ;;  %6135 = vmatprep.mubr.f32.mxu1 %v8486_v11  ;;  %v4950_v14 = vld [vmem:[%s10243_s11 + $0x138] sm:$0xff] }
 0x4f4   :  { %7050 = vmatprep.subr.bf16.mxu1 %v7049_v17  ;;  %v7197_v15 = vpack.c.bf16 %v4950_v14, %v4949_v13  ;;  %v4895_v13 = vld [vmem:[%s10245_s13 + $0x40] sm:$0xff]  ;;  %v4896_v14 = vld [vmem:[%s10245_s13 + $0x48] sm:$0xff] }
 0x4f7   :  { %7052 = vmatpush3.bf16.msra.mxu1 %v7049_v17  ;;  %v4952_v17 = vld [vmem:[%s10243_s11 + $0x148] sm:$0xff] }
 0x4f8   :  { %7054 = vmatprep.subr.bf16.mxu1 %v7053_v22  ;;  %v7201_v20 = vpack.c.bf16 %v4952_v17, %v4951_v16 }
 0x4fb   :  { %7056 = vmatpush3.bf16.msra.mxu1 %v7053_v22  ;;  %v4954_v22 = vld [vmem:[%s10243_s11 + $0x158] sm:$0xff] }
 0x4fc   :  { %7058 = vmatprep.subr.bf16.mxu1 %v7057_v27  ;;  %v7205_v24 = vpack.c.bf16 %v4954_v22, %v4953_v21  ;;  %v4897_v21 = vld [vmem:[%s10245_s13 + $0x50] sm:$0xff]  ;;  %v4898_v22 = vld [vmem:[%s10245_s13 + $0x58] sm:$0xff] }
 0x4ff   :  { %7060 = vmatpush3.bf16.msra.mxu1 %v7057_v27  ;;  %v4956_v27 = vld [vmem:[%s10243_s11 + $0x168] sm:$0xff] }
 0x500   :  { %7062 = vmatprep.subr.bf16.mxu1 %v7061_v30  ;;  %v7209_v28 = vpack.c.bf16 %v4956_v27, %v4955_v25 }
 0x503   :  { %7064 = vmatpush3.bf16.msra.mxu1 %v7061_v30  ;;  %v4958_v30 = vld [vmem:[%s10243_s11 + $0x178] sm:$0xff] }
 0x504   :  { %7066 = vmatprep.subr.bf16.mxu1 %v7065_v33  ;;  %v7213_v31 = vpack.c.bf16 %v4958_v30, %v4957_v29  ;;  %v4899_v29 = vld [vmem:[%s10245_s13 + $0x60] sm:$0xff]  ;;  %v4900_v30 = vld [vmem:[%s10245_s13 + $0x68] sm:$0xff] }
 0x507   :  { %7068 = vmatpush3.bf16.msra.mxu1 %v7065_v33 }
 0x508   :  { %7070 = vmatprep.subr.bf16.mxu1 %v7069_v36 }
 0x50b   :  { %7072 = vmatpush3.bf16.msra.mxu1 %v7069_v36 }
 0x50c   :  { %7074 = vmatprep.subr.bf16.mxu1 %v7073_v39 }
 0x50f   :  { %7076 = vmatpush3.bf16.msra.mxu1 %v7073_v39  ;;  %v4887_v39 = vld [vmem:[%s10244_s12 + $0x1] ss:$0 sm:$0xff] }
 0x510   :  { %7122 = vmatprep.subr.bf16.mxu1 %v7121_v42 }
 0x512   :  { %6136 = vmatmul.mubr.f32.vlgmr.msra.gmra.mrb[14].mxu1 %v8502_v18 }
 0x513   :  { %7124 = vmatpush3.bf16.msra.mxu1 %v7121_v42  ;;  %6222 = vmatprep.mubr.f32.mxu1 %v8486_v11 }
 0x514   :  { %7126 = vmatprep.subr.bf16.mxu1 %v7125_v45 }
 0x517   :  { %7128 = vmatpush3.bf16.msra.mxu1 %v7125_v45  ;;  %v8856_v45 = vld [vmem:[%s10288_s6 + $0x2] ss:$0 sm:$0xff] }
 0x518   :  { %7130 = vmatprep.subr.bf16.mxu1 %v7129_v48 }
 0x51b   :  { %7132 = vmatpush3.bf16.msra.mxu1 %v7129_v48 }
 0x51c   :  { %7134 = vmatprep.subr.bf16.mxu1 %v7133_v51 }
 0x51f   :  { %7136 = vmatpush3.bf16.msra.mxu1 %v7133_v51 }
 0x520   :  { %7138 = vmatprep.subr.bf16.mxu1 %v7137_v54 }
 0x523   :  { %7140 = vmatpush3.bf16.msra.mxu1 %v7137_v54 }
 0x524   :  { %7142 = vmatprep.subr.bf16.mxu1 %v7141_v57 }
 0x527   :  { %7144 = vmatpush3.bf16.msra.mxu1 %v7141_v57 }
 0x528   :  { %7146 = vmatprep.subr.bf16.mxu1 %v7145_v61 }
 0x52b   :  { %7148 = vmatpush3.bf16.msra.mxu1 %v7145_v61 }
 0x52c   :  { %7150 = vmatprep.subr.bf16.mxu1 %v7149_v1 }
 0x52f   :  { %7152 = vmatpush3.bf16.msra.mxu1 %v7149_v1 }
 0x530   :  { %7186 = vmatprep.subr.bf16.mxu1 %v7185_v5 }
 0x532   :  { %6223 = vmatmul.mubr.f32.vlgmr.msra.gmra.mrb[16].mxu1 %v8502_v18 }
 0x533   :  { %7188 = vmatpush3.bf16.msra.mxu1 %v7185_v5  ;;  %6292 = vmatprep.mubr.f32.mxu1 %v8486_v11 }
 0x534   :  { %7190 = vmatprep.subr.bf16.mxu1 %v7189_v8 }
 0x537   :  { %7192 = vmatpush3.bf16.msra.mxu1 %v7189_v8 }
 0x538   :  { %7194 = vmatprep.subr.bf16.mxu1 %v7193_v12 }
 0x53b   :  { %7196 = vmatpush3.bf16.msra.mxu1 %v7193_v12 }
 0x53c   :  { %7198 = vmatprep.subr.bf16.mxu1 %v7197_v15 }
 0x53f   :  { %7200 = vmatpush3.bf16.msra.mxu1 %v7197_v15  ;;  %v7089_v15 = vpack.c.bf16 %v4896_v14, %v4895_v13  ;;  %v4939_v13 = vld [vmem:[%s10283_s8 + $0x170] sm:$0xff]  ;;  %v4940_v14 = vld [vmem:[%s10283_s8 + $0x178] sm:$0xff] }
 0x540   :  { %7202 = vmatprep.subr.bf16.mxu1 %v7201_v20 }
 0x543   :  { %7204 = vmatpush3.bf16.msra.mxu1 %v7201_v20 }
 0x544   :  { %7206 = vmatprep.subr.bf16.mxu1 %v7205_v24 }
 0x547   :  { %7208 = vmatpush3.bf16.msra.mxu1 %v7205_v24 }
 0x548   :  { %7210 = vmatprep.subr.bf16.mxu1 %v7209_v28 }
 0x54b   :  { %7212 = vmatpush3.bf16.msra.mxu1 %v7209_v28  ;;  %v7093_v28 = vpack.c.bf16 %v4898_v22, %v4897_v21 }
 0x54c   :  { %7214 = vmatprep.subr.bf16.mxu1 %v7213_v31 }
 0x54f   :  { %7216 = vmatpush3.bf16.msra.mxu1 %v7213_v31  ;;  %v7097_v31 = vpack.c.bf16 %v4900_v30, %v4899_v29 }
 0x552   :  { %6293 = vmatmul.mubr.f32.vlgmr.msra.gmra.mrb[18].mxu1 %v8502_v18 }
 0x5a5   :  { %v8837_v32 = vpop.f32.mrb[10].mxu1 }
 0x5a6   :  { %v8839_v33 = vpop.f32.mrb[11].mxu1 }
 0x5c5   :  { %v6067_v35 = vpop.f32.mrb[12].mxu1 }
 0x5c6   :  { %v1067_v36 = vpop.f32.mrb[13].mxu1  ;;  %v1073_v38 = vadd.f32 %v6067_v35, %v4851_v34  ;;  %v4902_v35 = vld [vmem:[%s10245_s13 + $0x78] sm:$0xff] }
 0x5c7   :  { %v1068_v37 = vadd.f32 %v4851_v34, %v1067_v36  ;;  %v4901_v34 = vld [vmem:[%s10245_s13 + $0x70] sm:$0xff] }
 0x5c8   :  { %v7101_v36 = vpack.c.bf16 %v4902_v35, %v4901_v34 }
 0x5c9   :  { %6142 = vmatprep.mubr.msk.f32.mxu0 %vm768_vm1, %v1068_v37  ;;  %v968_v37 = vld [vmem:[%s10245_s13] sm:$0xff] }
 0x5ca   :  { %6143 = vmatmul.mubr.msk.f32.vlgmr.msra.gmra.mrb[12].mxu0 %vm768_vm1, %v1073_v38  ;;  %v969_v38 = vld [vmem:[%s10245_s13 + $0x8] sm:$0xff] }
 0x5e5   :  { %v6137_v40 = vpop.f32.mrb[14].mxu1 }
 0x5e6   :  { %v1273_v41 = vadd.f32 %v6137_v40, %v4887_v39  ;;  %v1267_v42 = vpop.f32.mrb[15].mxu1  ;;  %v970_v40 = vld [vmem:[%s10245_s13 + $0x10] sm:$0xff] }
 0x5e7   :  { %v1268_v43 = vadd.f32 %v4887_v39, %v1267_v42  ;;  %v7105_v39 = vpack.c.bf16 %v969_v38, %v968_v37 }
 0x5e9   :  { %v7083_v44 = vpack.c.bf16 %v1273_v41, %v1268_v43  ;;  %v971_v41 = vld [vmem:[%s10245_s13 + $0x18] sm:$0xff] }
 0x5eb   :  { %7085 = vmatprep.subr.msk.bf16.mxu0 %vm8607_vm4, %v7083_v44 }
 0x5ec   :  { %7088 = vmatpush3.bf16.msk.msra.mxu0 %vm8607_vm4, %v7083_v44  ;;  %v7109_v44 = vpack.c.bf16 %v971_v41, %v970_v40  ;;  %v4968_v40 = vld [vmem:[%s10245_s13 + $0x80] sm:$0xff]  ;;  %v4969_v41 = vld [vmem:[%s10245_s13 + $0x88] sm:$0xff] }
 0x5ed   :  { %7090 = vmatprep.subr.bf16.mxu0 %v7089_v15 }
 0x605   :  { %v6224_v46 = vpop.f32.mrb[16].mxu1 }
 0x606   :  { %v8859_v47 = vadd.f32 %v6224_v46, %v8856_v45  ;;  %v8861_v48 = vpop.f32.mrb[17].mxu1  ;;  %v972_v46 = vld [vmem:[%s10245_s13 + $0x20] sm:$0xff] }
 0x625   :  { %v6294_v50 = vpop.f32.mrb[18].mxu1 }
 0x626   :  { %v1941_v51 = vadd.f32 %v6294_v50, %v4960_v49  ;;  %v1935_v52 = vpop.f32.mrb[19].mxu1 }
 0x627   :  { %v1936_v53 = vadd.f32 %v4960_v49, %v1935_v52  ;;  %v973_v49 = vld [vmem:[%s10245_s13 + $0x28] sm:$0xff]  ;;  %v975_v52 = vld [vmem:[%s10245_s13 + $0x38] sm:$0xff] }
 0x628   :  { %v7113_v50 = vpack.c.bf16 %v973_v49, %v972_v46  ;;  %v4970_v49 = vld [vmem:[%s10245_s13 + $0x90] sm:$0xff] }
 0x629   :  { %v8866_v54 = vpack.c.bf16 %v1941_v51, %v1936_v53  ;;  %v974_v51 = vld [vmem:[%s10245_s13 + $0x30] sm:$0xff] }
 0x62a   :  { %v7117_v53 = vpack.c.bf16 %v975_v52, %v974_v51 }
 0x69d   :  { %v6144_v55 = vpop.f32.mrb[12].mxu0 }
 0x69e   :  { %v1364_v56 = vmul.f32 0.25, %v6144_v55  ;;  %v1354_v57 = vpop.f32.mrb[13].mxu0  ;;  %v4925_v55 = vld [vmem:[%s10283_s8 + $0x100] sm:$0xff] }
 0x69f   :  { %v1363_v59 = vmul.f32 0.25, %v1354_v57  ;;  %v4927_v57 = vld [vmem:[%s10283_s8 + $0x110] sm:$0xff] }
 0x6a0   :  { %v1366_v60 = vadd.f32 %v1364_v56, %v8622_v23 }
 0x6a1   :  { %v1365_v61 = vadd.f32 %v1363_v59, %v8627_v26  ;;  %v4928_v59 = vld [vmem:[%s10283_s8 + $0x118] sm:$0xff] }
 0x6a2   :  { %v1370_v62 = vsel %vm864_vm5, %v1366_v60, -inf }
 0x6a3   :  { %1371 = vmax.xlane.f32.xlu1 %v1370_v62  ;;  %v1367_v0 = vsel %vm860_vm6, %v1365_v61, -inf  ;;  %v4930_v62 = vld [vmem:[%s10283_s8 + $0x128] sm:$0xff] }
 0x6a4   :  { %1368 = vmax.xlane.f32.xlu0 %v1367_v0 }
 0x730   :  { %v1372_v1 = vpop.xlane.xlu1 %1371 }
 0x731   :  { %v1374_v2 = vsub.f32 %v1366_v60, %v1372_v1  ;;  %v1369_v3 = vpop.xlane.xlu0 %1368  ;;  %v7157_v60 = vpack.c.bf16 %v4928_v59, %v4927_v57  ;;  %v4931_v1 = vld [vmem:[%s10283_s8 + $0x130] sm:$0xff] }
 0x732   :  { %v1373_v5 = vsub.f32 %v1365_v61, %v1369_v3  ;;  %v4929_v61 = vld [vmem:[%s10283_s8 + $0x120] sm:$0xff]  ;;  %v4974_v59 = vld [vmem:[%s10245_s13 + $0xb0] sm:$0xff] }
 0x733   :  { %v1377_v6 = vmul.f32 1.442695, %v1374_v2  ;;  %v7161_v0 = vpack.c.bf16 %v4930_v62, %v4929_v61  ;;  %v4932_v2 = vld [vmem:[%s10283_s8 + $0x138] sm:$0xff] }
 0x734   :  { %v1375_v7 = vmul.f32 1.442695, %v1373_v5  ;;  %v7165_v3 = vpack.c.bf16 %v4932_v2, %v4931_v1  ;;  %v2291_v1 = vld [vmem:[%s10249_s17 + $0x8] sm:$0xff]  ;;  %v2293_v2 = vld [vmem:[%s10249_s17 + $0x18] sm:$0xff] }
 0x735   :  { %7794 = vpow2.f32 %v1377_v6  ;;  %v4935_v6 = vld [vmem:[%s10283_s8 + $0x150] sm:$0xff] }
 0x736   :  { %7796 = vpow2.f32 %v1375_v7  ;;  %v4936_v7 = vld [vmem:[%s10283_s8 + $0x158] sm:$0xff] }
 0x73f   :  { %v7795_v8 = vpop.eup %7794 }
 0x740   :  { %v7797_v9 = vpop.eup %7796  ;;  %v1382_v10 = vsel %vm864_vm5, %v7795_v8, 0.0 }
 0x741   :  { %1383 = vadd.xlane.f32.xlu1 %v1382_v10  ;;  %v1379_v12 = vsel %vm860_vm6, %v7797_v9, 0.0  ;;  %v4938_v10 = vld [vmem:[%s10283_s8 + $0x168] sm:$0xff] }
 0x742   :  { %1380 = vadd.xlane.f32.xlu0 %v1379_v12 }
 0x7ce   :  { %v1384_v16 = vpop.xlane.xlu1 %1383 }
 0x7cf   :  { %7798 = vrcp.f32 %v1384_v16  ;;  %v1381_v17 = vpop.xlane.xlu0 %1380  ;;  %v1736_v16 = vadd.f32 %v8856_v45, %v8861_v48 }
 0x7d0   :  { %7800 = vrcp.f32 %v1381_v17  ;;  %v4942_v17 = vld [vmem:[%s10242_s10 + $0x2] ss:$0 sm:$0xff] }
 0x7d9   :  { %v7799_v20 = vpop.eup %7798 }
 0x7da   :  { %v7801_v24 = vpop.eup %7800  ;;  %v1388_v27 = vmul.f32 %v7799_v20, %v7795_v8  ;;  %v7173_v8 = vpack.c.bf16 %v4936_v7, %v4935_v6  ;;  %v2297_v6 = vld [vmem:[%s10249_s17 + $0x38] sm:$0xff] }
 0x7db   :  { %v1386_v25 = vmul.f32 %v7801_v24, %v7797_v9  ;;  %v4937_v9 = vld [vmem:[%s10283_s8 + $0x160] sm:$0xff] }
 0x7dc   :  { %v7177_v12 = vpack.c.bf16 %v4938_v10, %v4937_v9  ;;  %v2294_v9 = vld [vmem:[%s10249_s17 + $0x20] sm:$0xff]  ;;  %v2296_v10 = vld [vmem:[%s10249_s17 + $0x30] sm:$0xff] }
 0x7dd   :  { %6149 = vmatprep.mubr.msk.f32.mxu0 %vm860_vm6, %v1386_v25 }
 0x7de   :  { %6150 = vmatmul.mubr.msk.f32.vlgmr.msra.gmra.mrb[14].mxu0 %vm860_vm6, %v1388_v27 }
 0x7df   :  { %7092 = vmatpush3.bf16.msra.mxu0 %v7089_v15  ;;  %v7181_v15 = vpack.c.bf16 %v4940_v14, %v4939_v13  ;;  %v4978_v14 = vld [vmem:[%s10246_s14] ss:$0 sm:$0xff] }
 0x7e0   :  { %7094 = vmatprep.subr.bf16.mxu0 %v7093_v28 }
 0x7e3   :  { %7096 = vmatpush3.bf16.msra.mxu0 %v7093_v28 }
 0x7e4   :  { %7098 = vmatprep.subr.bf16.mxu0 %v7097_v31 }
 0x7e7   :  { %7100 = vmatpush3.bf16.msra.mxu0 %v7097_v31 }
 0x7e8   :  { %7102 = vmatprep.subr.bf16.mxu0 %v7101_v36 }
 0x7eb   :  { %7104 = vmatpush3.bf16.msra.mxu0 %v7101_v36 }
 0x7ec   :  { %7106 = vmatprep.subr.bf16.mxu0 %v7105_v39 }
 0x8b1   :  { %v6151_v42 = vpop.f32.mrb[14].mxu0 }
 0x8b2   :  { %v1464_v43 = vpop.f32.mrb[15].mxu0 }
 0x8b3   :  { %6168 = vmatprep.mubr.msk.f32.mxu0 %vm768_vm1, %v1464_v43 }
 0x8b4   :  { %6169 = vmatmul.mubr.msk.f32.vlgmr.msra.gmra.mrb[16].mxu0 %vm768_vm1, %v6151_v42  ;;  %v7229_v42 = vpack.c.bf16 %v4969_v41, %v4968_v40  ;;  %v2313_v40 = vld [vmem:[%s10249_s17 + $0xb8] sm:$0xff] }
 0x8b5   :  { %7108 = vmatpush3.bf16.msra.mxu0 %v7105_v39  ;;  %6187 = vmatprep.mubr.msk.f32.mxu0 %vm768_vm1, %v8839_v33  ;;  %v4926_v33 = vld [vmem:[%s10283_s8 + $0x108] sm:$0xff] }
 0x8b6   :  { %7110 = vmatprep.subr.bf16.mxu0 %v7109_v44  ;;  %v7153_v56 = vpack.c.bf16 %v4926_v33, %v4925_v55  ;;  %v4972_v33 = vld [vmem:[%s10245_s13 + $0xa0] sm:$0xff] }
 0x8b9   :  { %7112 = vmatpush3.bf16.msra.mxu0 %v7109_v44 }
 0x8ba   :  { %7114 = vmatprep.subr.bf16.mxu0 %v7113_v50 }
 0x8bd   :  { %7116 = vmatpush3.bf16.msra.mxu0 %v7113_v50  ;;  %v4971_v50 = vld [vmem:[%s10245_s13 + $0x98] sm:$0xff] }
 0x8be   :  { %7118 = vmatprep.subr.bf16.mxu0 %v7117_v53  ;;  %v7233_v55 = vpack.c.bf16 %v4971_v50, %v4970_v49  ;;  %v2317_v49 = vld [vmem:[%s10249_s17 + $0xd8] sm:$0xff]  ;;  %v2314_v50 = vld [vmem:[%s10249_s17 + $0xc0] sm:$0xff] }
 0x8c1   :  { %7120 = vmatpush3.bf16.msra.mxu0 %v7117_v53 }
 0x8c2   :  { %7154 = vmatprep.subr.bf16.mxu0 %v7153_v56 }
 0x8c4   :  { %6188 = vmatmul.mubr.msk.f32.vlgmr.msra.gmra.mrb[16].mxu0 %vm768_vm1, %v8837_v32  ;;  %v4933_v32 = vld [vmem:[%s10283_s8 + $0x140] sm:$0xff] }
 0x8c5   :  { %7156 = vmatpush3.bf16.msra.mxu0 %v7153_v56  ;;  %6257 = vmatprep.mubr.f32.mxu0 %v8486_v11  ;;  %v4934_v11 = vld [vmem:[%s10283_s8 + $0x148] sm:$0xff] }
 0x8c6   :  { %7158 = vmatprep.subr.bf16.mxu0 %v7157_v60  ;;  %v7169_v5 = vpack.c.bf16 %v4934_v11, %v4933_v32  ;;  %v4973_v56 = vld [vmem:[%s10245_s13 + $0xa8] sm:$0xff]  ;;  %v7245_v32 = vpack.c.bf16 %v2293_v2, %v2291_v1  ;;  %v2292_v11 = vld [vmem:[%s10249_s17 + $0x10] sm:$0xff]  ;;  %v2431_v1 = vld [vmem:[%s10251_s19] sm:$0xff] }
 0x8c7   :  { %v7237_v57 = vpack.c.bf16 %v4973_v56, %v4972_v33  ;;  %v7891_v33 = vmov 0.0  }
 0x8c8   :  { %7246 = vmatprep.subr.bf16.mxu1 %v7245_v32  ;;  %2398 = vmatprep.mubr.f32.mxu1 %v7891_v33  ;;  %v2449_v32 = vld [vmem:[%s10251_s19 + $0x90] sm:$0xff] }
 0x8c9   :  { %7160 = vmatpush3.bf16.msra.mxu0 %v7157_v60  ;;  %v4975_v60 = vld [vmem:[%s10245_s13 + $0xb8] sm:$0xff] }
 0x8ca   :  { %7162 = vmatprep.subr.bf16.mxu0 %v7161_v0  ;;  %v7241_v61 = vpack.c.bf16 %v4975_v60, %v4974_v59  ;;  %v2318_v59 = vld [vmem:[%s10249_s17 + $0xe0] sm:$0xff]  ;;  %v2320_v60 = vld [vmem:[%s10249_s17 + $0xf0] sm:$0xff] }
 0x8cd   :  { %7164 = vmatpush3.bf16.msra.mxu0 %v7161_v0 }
 0x8ce   :  { %7166 = vmatprep.subr.bf16.mxu0 %v7165_v3 }
 0x8d1   :  { %7168 = vmatpush3.bf16.msra.mxu0 %v7165_v3  ;;  %v2290_v3 = vld [vmem:[%s10249_s17] sm:$0xff] }
 0x8d2   :  { %7170 = vmatprep.subr.bf16.mxu0 %v7169_v5  ;;  %v7247_v7 = vpack.c.bf16 %v2292_v11, %v2290_v3  ;;  %v2432_v3 = vld [vmem:[%s10251_s19 + $0x8] sm:$0xff]  ;;  %v2450_v11 = vld [vmem:[%s10251_s19 + $0x98] sm:$0xff] }
 0x8d4   :  { %7248 = vmatpush1.bf16.msra.mxu1 %v7247_v7  ;;  %v2433_v7 = vld [vmem:[%s10251_s19 + $0x10] sm:$0xff] }
 0x8d5   :  { %7172 = vmatpush3.bf16.msra.mxu0 %v7169_v5  ;;  %v2295_v5 = vld [vmem:[%s10249_s17 + $0x28] sm:$0xff] }
 0x8d6   :  { %7174 = vmatprep.subr.bf16.mxu0 %v7173_v8 }
 0x8d9   :  { %7176 = vmatpush3.bf16.msra.mxu0 %v7173_v8  ;;  %v7249_v8 = vpack.c.bf16 %v2297_v6, %v2295_v5  ;;  %v7279_v5 = vpack.c.bf16 %v2432_v3, %v2431_v1  ;;  %v7281_v6 = vpack.c.bf16 %v2450_v11, %v2449_v32  ;;  %v2460_v3 = vld [vmem:[%s10251_s19 + $0xe8] sm:$0xff]  ;;  %v2443_v11 = vld [vmem:[%s10251_s19 + $0x60] sm:$0xff] }
 0x8da   :  { %7178 = vmatprep.subr.bf16.mxu0 %v7177_v12 }
 0x8db   :  { %7250 = vmatprep.subr.bf16.mxu1 %v7249_v8  ;;  %v2434_v8 = vld [vmem:[%s10251_s19 + $0x18] sm:$0xff] }
 0x8dd   :  { %7180 = vmatpush3.bf16.msra.mxu0 %v7177_v12  ;;  %v7251_v12 = vpack.c.bf16 %v2296_v10, %v2294_v9  ;;  %v2451_v9 = vld [vmem:[%s10251_s19 + $0xa0] sm:$0xff]  ;;  %v2452_v10 = vld [vmem:[%s10251_s19 + $0xa8] sm:$0xff] }
 0x8de   :  { %7182 = vmatprep.subr.bf16.mxu0 %v7181_v15 }
 0x8df   :  { %7252 = vmatpush1.bf16.msra.mxu1 %v7251_v12  ;;  %v7283_v12 = vpack.c.bf16 %v2434_v8, %v2433_v7  ;;  %v2461_v7 = vld [vmem:[%s10251_s19 + $0xf0] sm:$0xff]  ;;  %v2462_v8 = vld [vmem:[%s10251_s19 + $0xf8] sm:$0xff] }
 0x8e1   :  { %7184 = vmatpush3.bf16.msra.mxu0 %v7181_v15 }
 0x8e4   :  { %6258 = vmatmul.mubr.f32.vlgmr.msra.gmra.mrb[18].mxu0 %v8502_v18 }
 0x8e5   :  { %6299 = vmatprep.mubr.msk.f32.mxu0 %vm768_vm1, %v1736_v16 }
 0x9b7   :  { %v6259_v20 = vpop.f32.mrb[18].mxu0 }
 0x9b8   :  { %v1841_v21 = vadd.f32 %v6259_v20, %v4942_v17  ;;  %v1835_v22 = vpop.f32.mrb[19].mxu0 }
 0x9b9   :  { %v1836_v24 = vadd.f32 %v4942_v17, %v1835_v22 }
 0x9bb   :  { %v7217_v25 = vpack.c.bf16 %v1841_v21, %v1836_v24 }
 0x9bd   :  { %7219 = vmatprep.subr.msk.bf16.mxu0 %vm8590_vm2, %v7217_v25 }
 0x9be   :  { %7222 = vmatpush3.bf16.xpose.msk.msra.mxu0 %vm8590_vm2, %v7217_v25 }
 0x9bf   :  { %7225 = vmatprep.subr.msk.bf16.mxu0 %vm8607_vm4, %v8866_v54 }
 0x9c5   :  { %6300 = vmatmul.mubr.msk.f32.vlgmr.msra.gmra.mrb[20].mxu0 %vm768_vm1, %v8859_v47 }
 0x9c6   :  { %7228 = vmatpush3.bf16.msk.msra.mxu0 %vm8607_vm4, %v8866_v54 }
 0x9c7   :  { %7230 = vmatprep.subr.bf16.mxu0 %v7229_v42 }
 0xa98   :  { %v6301_v18 = vpop.f32.mrb[20].mxu0 }
 0xa99   :  { %v2032_v45 = vmul.f32 0.25, %v6301_v18  ;;  %v2022_v48 = vpop.f32.mrb[21].mxu0  ;;  %v2301_v18 = vld [vmem:[%s10249_s17 + $0x58] sm:$0xff] }
 0xa9a   :  { %v2031_v27 = vmul.f32 0.25, %v2022_v48  ;;  %v2298_v48 = vld [vmem:[%s10249_s17 + $0x40] sm:$0xff] }
 0xa9b   :  { %v2034_v28 = vadd.f32 %v2032_v45, %v8622_v23 }
 0xa9c   :  { %v2033_v29 = vadd.f32 %v2031_v27, %v8627_v26  ;;  %v2300_v27 = vld [vmem:[%s10249_s17 + $0x50] sm:$0xff] }
 0xa9d   :  { %v2038_v30 = vsel %vm864_vm5, %v2034_v28, -inf }
 0xa9e   :  { %2039 = vmax.xlane.f32.xlu1 %v2038_v30  ;;  %v2035_v31 = vsel %vm860_vm6, %v2033_v29, -inf  ;;  %v2305_v30 = vld [vmem:[%s10249_s17 + $0x78] sm:$0xff] }
 0xa9f   :  { %2036 = vmax.xlane.f32.xlu0 %v2035_v31 }
 0xb2b   :  { %v2040_v34 = vpop.xlane.xlu1 %2039 }
 0xb2c   :  { %v2042_v47 = vsub.f32 %v2034_v28, %v2040_v34  ;;  %v2037_v35 = vpop.xlane.xlu0 %2036  ;;  %v7255_v28 = vpack.c.bf16 %v2300_v27, %v2298_v48  ;;  %v2302_v34 = vld [vmem:[%s10249_s17 + $0x60] sm:$0xff] }
 0xb2d   :  { %v2041_v36 = vsub.f32 %v2033_v29, %v2037_v35  ;;  %v2303_v29 = vld [vmem:[%s10249_s17 + $0x68] sm:$0xff] }
 0xb2e   :  { %v2045_v37 = vmul.f32 1.442695, %v2042_v47  ;;  %v7257_v31 = vpack.c.bf16 %v2305_v30, %v2303_v29  ;;  %v2304_v47 = vld [vmem:[%s10249_s17 + $0x70] sm:$0xff] }
 0xb2f   :  { %v2043_v54 = vmul.f32 1.442695, %v2041_v36  ;;  %v7259_v35 = vpack.c.bf16 %v2304_v47, %v2302_v34  ;;  %v2307_v36 = vld [vmem:[%s10249_s17 + $0x88] sm:$0xff] }
 0xb30   :  { %7802 = vpow2.f32 %v2045_v37  ;;  %v2309_v37 = vld [vmem:[%s10249_s17 + $0x98] sm:$0xff] }
 0xb31   :  { %7804 = vpow2.f32 %v2043_v54  ;;  %v7261_v54 = vpack.c.bf16 %v2309_v37, %v2307_v36  ;;  %v4980_v37 = vld [vmem:[%s10248_s16] ss:$0 sm:$0xff] }
 0xb3a   :  { %v7803_v38 = vpop.eup %7802 }
 0xb3b   :  { %v7805_v39 = vpop.eup %7804  ;;  %v2050_v23 = vsel %vm864_vm5, %v7803_v38, 0.0 }
 0xb3c   :  { %2051 = vadd.xlane.f32.xlu1 %v2050_v23  ;;  %v2047_v26 = vsel %vm860_vm6, %v7805_v39, 0.0 }
 0xb3d   :  { %2048 = vadd.xlane.f32.xlu0 %v2047_v26  ;;  %v2311_v26 = vld [vmem:[%s10249_s17 + $0xa8] sm:$0xff] }
 0xb3e   :  { %v7265_v41 = vpack.c.bf16 %v2313_v40, %v2311_v26 }
 0xbc9   :  { %v2052_v43 = vpop.xlane.xlu1 %2051 }
 0xbca   :  { %7806 = vrcp.f32 %v2052_v43  ;;  %v2049_v44 = vpop.xlane.xlu0 %2048  ;;  %v2312_v43 = vld [vmem:[%s10249_s17 + $0xb0] sm:$0xff] }
 0xbcb   :  { %7808 = vrcp.f32 %v2049_v44 }
 0xbd4   :  { %v7807_v46 = vpop.eup %7806 }
 0xbd5   :  { %v7809_v51 = vpop.eup %7808  ;;  %v2056_v53 = vmul.f32 %v7807_v46, %v7803_v38  ;;  %v2306_v38 = vld [vmem:[%s10249_s17 + $0x80] sm:$0xff]  ;;  %v2315_v46 = vld [vmem:[%s10249_s17 + $0xc8] sm:$0xff] }
 0xbd6   :  { %v2054_v52 = vmul.f32 %v7809_v51, %v7805_v39  ;;  %v2308_v39 = vld [vmem:[%s10249_s17 + $0x90] sm:$0xff]  ;;  %v7269_v51 = vpack.c.bf16 %v2317_v49, %v2315_v46  ;;  %v2438_v49 = vld [vmem:[%s10251_s19 + $0x38] sm:$0xff] }
 0xbd7   :  { %v7263_v23 = vpack.c.bf16 %v2308_v39, %v2306_v38  ;;  %v2437_v46 = vld [vmem:[%s10251_s19 + $0x30] sm:$0xff] }
 0xbd8   :  { %6306 = vmatprep.mubr.msk.f32.mxu0 %vm860_vm6, %v2054_v52  ;;  %v2316_v52 = vld [vmem:[%s10249_s17 + $0xd0] sm:$0xff] }
 0xbd9   :  { %6307 = vmatmul.mubr.msk.f32.vlgmr.msra.gmra.mrb[22].mxu0 %vm860_vm6, %v2056_v53  ;;  %v2319_v53 = vld [vmem:[%s10249_s17 + $0xe8] sm:$0xff]  ;;  %v7271_v56 = vpack.c.bf16 %v2316_v52, %v2314_v50  ;;  %v7291_v50 = vpack.c.bf16 %v2438_v49, %v2437_v46 }
 0xbda   :  { %7232 = vmatpush3.bf16.msra.mxu0 %v7229_v42  ;;  %v2310_v42 = vld [vmem:[%s10249_s17 + $0xa0] sm:$0xff]  ;;  %v2456_v52 = vld [vmem:[%s10251_s19 + $0xc8] sm:$0xff] }
 0xbdb   :  { %7234 = vmatprep.subr.bf16.mxu0 %v7233_v55  ;;  %v7267_v44 = vpack.c.bf16 %v2312_v43, %v2310_v42  ;;  %v2453_v42 = vld [vmem:[%s10251_s19 + $0xb0] sm:$0xff]  ;;  %v2454_v43 = vld [vmem:[%s10251_s19 + $0xb8] sm:$0xff] }
 0xbde   :  { %7236 = vmatpush3.bf16.msra.mxu0 %v7233_v55  ;;  %v2321_v55 = vld [vmem:[%s10249_s17 + $0xf8] sm:$0xff] }
 0xbdf   :  { %7238 = vmatprep.subr.bf16.mxu0 %v7237_v57 }
 0xbe2   :  { %7240 = vmatpush3.bf16.msra.mxu0 %v7237_v57  ;;  %v7273_v57 = vpack.c.bf16 %v2321_v55, %v2319_v53  ;;  %v2439_v55 = vld [vmem:[%s10251_s19 + $0x40] sm:$0xff] }
 0xbe3   :  { %7242 = vmatprep.subr.bf16.mxu0 %v7241_v61 }
 0xbe6   :  { %7244 = vmatpush3.bf16.msra.mxu0 %v7241_v61  ;;  %v7275_v61 = vpack.c.bf16 %v2320_v60, %v2318_v59  ;;  %v2457_v59 = vld [vmem:[%s10251_s19 + $0xd0] sm:$0xff]  ;;  %v2458_v60 = vld [vmem:[%s10251_s19 + $0xd8] sm:$0xff] }
 0xcac   :  { %v6308_v62 = vpop.f32.mrb[22].mxu0 }
 0xcad   :  { %v2132_v0 = vpop.f32.mrb[23].mxu0 }
 0xcae   :  { %6325 = vmatprep.mubr.msk.f32.mxu0 %vm768_vm1, %v2132_v0  ;;  %v2448_v0 = vld [vmem:[%s10251_s19 + $0x88] sm:$0xff] }
 0xcaf   :  { %6326 = vmatmul.mubr.msk.f32.vlgmr.msra.gmra.mrb[16].mxu0 %vm768_vm1, %v6308_v62  ;;  %v2447_v62 = vld [vmem:[%s10251_s19 + $0x80] sm:$0xff] }
 0xcb0   :  { %v7277_v2 = vpack.c.bf16 %v2448_v0, %v2447_v62  ;;  %v2441_v62 = vld [vmem:[%s10251_s19 + $0x50] sm:$0xff]  ;;  %v2442_v0 = vld [vmem:[%s10251_s19 + $0x58] sm:$0xff] }
 0xcb1   :  { %v7299_v1 = vpack.c.bf16 %v2442_v0, %v2441_v62 }
 0xcb2   :  { %7278 = vmatprep.subr.bf16.mxu0 %v7277_v2  ;;  %v2459_v2 = vld [vmem:[%s10251_s19 + $0xe0] sm:$0xff] }
 0xcb3   :  { %7280 = vmatpush3.bf16.msra.mxu0 %v7279_v5  ;;  %v7301_v32 = vpack.c.bf16 %v2460_v3, %v2459_v2  ;;  %v2444_v5 = vld [vmem:[%s10251_s19 + $0x68] sm:$0xff] }
 0xcb4   :  { %7282 = vmatprep.subr.bf16.mxu0 %v7281_v6  ;;  %v7303_v6 = vpack.c.bf16 %v2444_v5, %v2443_v11 }
 0xcb7   :  { %7284 = vmatpush3.bf16.msra.mxu0 %v7283_v12  ;;  %v2446_v12 = vld [vmem:[%s10251_s19 + $0x78] sm:$0xff] }
 0xd82   :  { %v6327_v13 = vpop.f32.mrb[16].mxu0 }
 0xd83   :  { %v2234_v15 = vadd.f32 %v6327_v13, %v8375_v63  ;;  %v2222_v16 = vpop.f32.mrb[17].mxu0  ;;  %v7285_v13 = vpack.c.bf16 %v2452_v10, %v2451_v9  ;;  %v7305_v9 = vpack.c.bf16 %v2462_v8, %v2461_v7  ;;  %v2445_v10 = vld [vmem:[%s10251_s19 + $0x70] sm:$0xff] }
 0xd84   :  { %v2233_v17 = vadd.f32 %v2222_v16, %v8367_v58  ;;  %v2299_v58 = vld [vmem:[%s10249_s17 + $0x48] sm:$0xff]  ;;  %v4988_v8 = vld [vmem:[%s10282_s30 + $0x190] sm:$0xff] }
 0xd85   :  { %v9061_v20 = vadd.f32 %v4978_v14, %v2234_v15  ;;  %v7253_v45 = vpack.c.bf16 %v2301_v18, %v2299_v58  ;;  %v2436_v15 = vld [vmem:[%s10251_s19 + $0x28] sm:$0xff]  ;;  %7286 = vmatprep.subr.bf16.mxu0 %v7285_v13  ;;  %v7307_v13 = vpack.c.bf16 %v2446_v12, %v2445_v10  ;;  %v5006_v12 = vld [vmem:[%s10283_s8 + $0x190] sm:$0xff] }
 0xd86   :  { %v9063_v21 = vadd.f32 %v4978_v14, %v2233_v17  ;;  %v2435_v14 = vld [vmem:[%s10251_s19 + $0x20] sm:$0xff] }
 0xd87   :  { %v2254_v24 = vmul.f32 %v9061_v20, %v9061_v20  ;;  %v2248_v25 = vsel %vm431_vm0, %v9061_v20, 0.0  ;;  %7254 = vmatprep.subr.bf16.mxu1 %v7253_v45  ;;  %v7287_v16 = vpack.c.bf16 %v2436_v15, %v2435_v14  ;;  %v2324_v14 = vlaneseq }
 0xd88   :  { %2246 = vadd.xlane.f32.xlu0 %v9063_v21  ;;  %v2253_v22 = vmul.f32 %v9063_v21, %v9063_v21  ;;  %7256 = vmatpush1.bf16.msra.mxu1 %v7255_v28 }
 0xd89   :  { %v2257_v63 = vsel %vm431_vm0, %v2254_v24, 0.0  ;;  %7258 = vmatprep.subr.bf16.mxu1 %v7257_v31  ;;  %7288 = vmatpush3.bf16.msra.mxu0 %v7287_v16  ;;  %v9251_v15 = vshrl.u32 %v2324_v14, 7 }
 0xd8a   :  { %2255 = vadd.xlane.f32.xlu1 %v2253_v22 }
 0xd8b   :  { %v2326_v16 = vsub.s32 0, %v9251_v15 }
 0xd8c   :  { %2249 = vadd.xlane.f32.xlu0 %v2248_v25  ;;  %7260 = vmatpush1.bf16.msra.mxu1 %v7259_v35  ;;  %v4979_v35 = vld [vmem:[%s10247_s15] ss:$0 sm:$0xff] }
 0xd8d   :  { %7262 = vmatprep.subr.bf16.mxu1 %v7261_v54 }
 0xd8e   :  { %2258 = vadd.xlane.f32.xlu1 %v2257_v63 }
 0xd90   :  { %7264 = vmatpush1.bf16.msra.mxu1 %v7263_v23 }
 0xd91   :  { %7266 = vmatprep.subr.bf16.mxu1 %v7265_v41 }
 0xd94   :  { %7268 = vmatpush1.bf16.msra.mxu1 %v7267_v44  ;;  %v7289_v44 = vpack.c.bf16 %v2454_v43, %v2453_v42 }
 0xd95   :  { %7270 = vmatprep.subr.bf16.mxu1 %v7269_v51  ;;  %v2455_v51 = vld [vmem:[%s10251_s19 + $0xc0] sm:$0xff] }
 0xd96   :  { %7290 = vmatprep.subr.bf16.mxu0 %v7289_v44  ;;  %v7293_v53 = vpack.c.bf16 %v2456_v52, %v2455_v51  ;;  %v4986_v51 = vld [vmem:[%s10282_s30 + $0x180] sm:$0xff]  ;;  %v4987_v52 = vld [vmem:[%s10282_s30 + $0x188] sm:$0xff] }
 0xd97   :  { %7292 = vmatpush3.bf16.msra.mxu0 %v7291_v50 }
 0xd98   :  { %7272 = vmatpush1.bf16.msra.mxu1 %v7271_v56  ;;  %v2440_v56 = vld [vmem:[%s10251_s19 + $0x48] sm:$0xff]  ;;  %7294 = vmatprep.subr.bf16.mxu0 %v7293_v53  ;;  %v7309_v53 = vpack.c.bf16 %v4987_v52, %v4986_v51  ;;  %v5001_v51 = vld [vmem:[%s10282_s30 + $0x1f8] sm:$0xff] }
 0xd99   :  { %7274 = vmatprep.subr.bf16.mxu1 %v7273_v57  ;;  %v7295_v57 = vpack.c.bf16 %v2440_v56, %v2439_v55  ;;  %v4981_v56 = vld [vmem:[%s10252_s20] ss:$0 sm:$0xff] }
 0xd9b   :  { %7296 = vmatpush3.bf16.msra.mxu0 %v7295_v57 }
 0xd9c   :  { %7276 = vmatpush1.bf16.msra.mxu1 %v7275_v61  ;;  %v7297_v61 = vpack.c.bf16 %v2458_v60, %v2457_v59 }
 0xd9d   :  { %7310 = vmatprep.subr.bf16.mxu1 %v7309_v53 }
 0xd9e   :  { %7298 = vmatprep.subr.bf16.mxu0 %v7297_v61 }
 0xd9f   :  { %7300 = vmatpush3.bf16.msra.mxu0 %v7299_v1 }
 0xda0   :  { %7302 = vmatprep.subr.bf16.mxu0 %v7301_v32 }
 0xda3   :  { %7304 = vmatpush3.bf16.msra.mxu0 %v7303_v6  ;;  %v5004_v6 = vld [vmem:[%s10283_s8 + $0x180] sm:$0xff] }
 0xda4   :  { %7306 = vmatprep.subr.bf16.mxu0 %v7305_v9  ;;  %v4989_v9 = vld [vmem:[%s10282_s30 + $0x198] sm:$0xff] }
 0xda5   :  { %v7313_v10 = vpack.c.bf16 %v4989_v9, %v4988_v8 }
 0xda7   :  { %7308 = vmatpush3.bf16.msra.mxu0 %v7307_v13  ;;  %v5007_v13 = vld [vmem:[%s10283_s8 + $0x198] sm:$0xff] }
 0xda8   :  { %v7345_v14 = vpack.c.bf16 %v5007_v13, %v5006_v12 }
 0xe15   :  { %v2247_v17 = vpop.xlane.xlu0 %2246 }
 0xe16   :  { %v2251_v22 = vmul.f32 0.020833334, %v2247_v17  ;;  %v2322_v17 = vld [vmem:[%s10250_s18] sm:$0x3] }
 0xe17   :  { %v2256_v24 = vpop.xlane.xlu1 %2255 }
 0xe18   :  { %v2262_v25 = vmul.f32 %v2251_v22, %v2251_v22  ;;  %v2260_v63 = vmul.f32 0.020833334, %v2256_v24  ;;  %v2266_v34 = vsub.f32 %v9063_v21, %v2251_v22  ;;  %v2330_v22 = vsub.s32 1, %v9251_v15 }
 0xe19   :  { %v2250_v58 = vpop.xlane.xlu0 %2249  ;;  %v2327_v24 = vrot.slane %v2322_v17, %v2326_v16 }
 0xe1a   :  { %v2264_v18 = vsub.f32 %v2260_v63, %v2262_v25  ;;  %v2252_v45 = vmul.f32 0.020833334, %v2250_v58  ;;  %v2331_v25 = vrot.slane %v2322_v17, %v2330_v22  ;;  %v4990_v17 = vld [vmem:[%s10282_s30 + $0x1a0] sm:$0xff] }
 0xe1b   :  { %v2259_v48 = vpop.xlane.xlu1 %2258 }
 0xe1c   :  { %v2268_v27 = vadd.f32 1e-06, %v2264_v18  ;;  %v2263_v28 = vmul.f32 %v2252_v45, %v2252_v45  ;;  %v2261_v29 = vmul.f32 0.020833334, %v2259_v48  ;;  %v2267_v54 = vsub.f32 %v9061_v20, %v2252_v45 }
 0xe1e   :  { %7810 = vrsqrt.f32 %v2268_v27  ;;  %v2265_v30 = vsub.f32 %v2261_v29, %v2263_v28 }
 0xe20   :  { %v2269_v31 = vadd.f32 1e-06, %v2265_v30 }
 0xe22   :  { %7812 = vrsqrt.f32 %v2269_v31 }
 0xe28   :  { %v7811_v47 = vpop.eup %7810 }
 0xe29   :  { %v2272_v36 = vmul.f32 %v7811_v47, %v2266_v34 }
 0xe2b   :  { %v2280_v38 = vmul.f32 %v4979_v35, %v2272_v36 }
 0xe2c   :  { %v7813_v39 = vpop.eup %7812 }
 0xe2d   :  { %v2288_v23 = vadd.f32 %v4980_v37, %v2280_v38  ;;  %v2273_v26 = vmul.f32 %v7813_v39, %v2267_v54 }
 0xe2f   :  { %2399 = vmatmul.mubr.f32.vlgmr.msra.gmra.mrb[20].mxu1 %v2288_v23  ;;  %v2281_v40 = vmul.f32 %v4979_v35, %v2273_v26 }
 0xe30   :  { %2404 = vmatprep.mubr.f32.mxu1 %v7891_v33  ;;  %7312 = vmatpush3.bf16.msra.mxu1 %v7309_v53  ;;  %v5018_v53 = vld [vmem:[%s10283_s8 + $0x1f0] sm:$0xff] }
 0xe31   :  { %v2289_v41 = vadd.f32 %v4980_v37, %v2281_v40  ;;  %7314 = vmatprep.subr.bf16.mxu1 %v7313_v10 }
 0xe33   :  { %2405 = vmatmul.mubr.f32.gmra.mrb[22].mxu1 %v2289_v41 }
 0xe34   :  { %7316 = vmatpush3.bf16.msra.mxu1 %v7313_v10 }
 0xf02   :  { %v2400_v63 = vpop.f32.mrb[20].mxu1 }
 0xf03   :  { %v2401_v58 = vadd.f32 %v2400_v63, %v2327_v24  ;;  %v2402_v18 = vpop.f32.mrb[21].mxu1  ;;  %v5008_v63 = vld [vmem:[%s10283_s8 + $0x1a0] sm:$0xff] }
 0xf04   :  { %v2403_v45 = vadd.f32 %v2402_v18, %v2331_v25 }
 0xf05   :  { %v2415_v48 = vmul.f32 0.70710677, %v2401_v58  ;;  %v2411_v39 = vmul.f32 0.5, %v2401_v58  ;;  %v5009_v58 = vld [vmem:[%s10283_s8 + $0x1a8] sm:$0xff] }
 0xf06   :  { %v2416_v27 = vmul.f32 0.70710677, %v2403_v45  ;;  %v2406_v28 = vpop.f32.mrb[22].mxu1  ;;  %v2412_v54 = vmul.f32 0.5, %v2403_v45  ;;  %v7349_v18 = vpack.c.bf16 %v5009_v58, %v5008_v63  ;;  %v4992_v45 = vld [vmem:[%s10282_s30 + $0x1b0] sm:$0xff] }
 0xf07   :  { %7814 = verf.f32 %v2415_v48  ;;  %v2407_v29 = vadd.f32 %v2406_v28, %v2327_v24  ;;  %v2408_v30 = vpop.f32.mrb[23].mxu1  ;;  %v4991_v24 = vld [vmem:[%s10282_s30 + $0x1a8] sm:$0xff]  ;;  %v4993_v48 = vld [vmem:[%s10282_s30 + $0x1b8] sm:$0xff]  ;;  %v5010_v28 = vld [vmem:[%s10283_s8 + $0x1b0] sm:$0xff] }
 0xf08   :  { %7816 = verf.f32 %v2416_v27  ;;  %v2409_v31 = vadd.f32 %v2408_v30, %v2331_v25  ;;  %v7317_v25 = vpack.c.bf16 %v4991_v24, %v4990_v17  ;;  %v7321_v27 = vpack.c.bf16 %v4993_v48, %v4992_v45  ;;  %v4985_v24 = vld [vmem:[%s10287_s4 + $0x1] ss:$0 sm:$0xff]  ;;  %v5024_v48 = vld [vmem:[%s10243_s11 + $0x190] sm:$0xff] }
 0xf09   :  { %v2417_v34 = vmul.f32 0.70710677, %v2407_v29  ;;  %v2413_v46 = vmul.f32 0.5, %v2407_v29  ;;  %v5011_v29 = vld [vmem:[%s10283_s8 + $0x1b8] sm:$0xff] }
 0xf0a   :  { %v2418_v47 = vmul.f32 0.70710677, %v2409_v31  ;;  %v2414_v43 = vmul.f32 0.5, %v2409_v31  ;;  %7318 = vmatprep.subr.bf16.mxu1 %v7317_v25  ;;  %v7353_v30 = vpack.c.bf16 %v5011_v29, %v5010_v28  ;;  %v4994_v31 = vld [vmem:[%s10282_s30 + $0x1c0] sm:$0xff] }
 0xf0b   :  { %7818 = verf.f32 %v2417_v34  ;;  %7320 = vmatpush3.bf16.msra.mxu1 %v7317_v25  ;;  %v4995_v34 = vld [vmem:[%s10282_s30 + $0x1c8] sm:$0xff] }
 0xf0c   :  { %7820 = verf.f32 %v2418_v47  ;;  %7322 = vmatprep.subr.bf16.mxu1 %v7321_v27  ;;  %v7325_v47 = vpack.c.bf16 %v4995_v34, %v4994_v31  ;;  %v5026_v31 = vld [vmem:[%s10243_s11 + $0x1a0] sm:$0xff]  ;;  %v5027_v34 = vld [vmem:[%s10243_s11 + $0x1a8] sm:$0xff] }
 0xf0f   :  { %7324 = vmatpush3.bf16.msra.mxu1 %v7321_v27  ;;  %v5025_v27 = vld [vmem:[%s10243_s11 + $0x198] sm:$0xff] }
 0xf10   :  { %7326 = vmatprep.subr.bf16.mxu1 %v7325_v47 }
 0xf11   :  { %v7815_v35 = vpop.eup %7814 }
 0xf12   :  { %v7817_v36 = vpop.eup %7816  ;;  %v2423_v37 = vadd.f32 1.0, %v7815_v35  ;;  %v5012_v35 = vld [vmem:[%s10283_s8 + $0x1c0] sm:$0xff] }
 0xf13   :  { %v2424_v38 = vadd.f32 1.0, %v7817_v36  ;;  %v5013_v36 = vld [vmem:[%s10283_s8 + $0x1c8] sm:$0xff]  ;;  %7328 = vmatpush3.bf16.msra.mxu1 %v7325_v47  ;;  %v7381_v47 = vpack.c.bf16 %v5027_v34, %v5026_v31 }
 0xf14   :  { %v2427_v41 = vmul.f32 %v2423_v37, %v2411_v39  ;;  %v7357_v37 = vpack.c.bf16 %v5013_v36, %v5012_v35  ;;  %v5028_v35 = vld [vmem:[%s10243_s11 + $0x1b0] sm:$0xff]  ;;  %v5029_v36 = vld [vmem:[%s10243_s11 + $0x1b8] sm:$0xff] }
 0xf15   :  { %v7819_v23 = vpop.eup %7818  ;;  %v2428_v26 = vmul.f32 %v2424_v38, %v2412_v54  ;;  %v4996_v54 = vld [vmem:[%s10282_s30 + $0x1d0] sm:$0xff]  ;;  %v4997_v38 = vld [vmem:[%s10282_s30 + $0x1d8] sm:$0xff] }
 0xf16   :  { %v7821_v40 = vpop.eup %7820  ;;  %v2425_v42 = vadd.f32 1.0, %v7819_v23  ;;  %v7329_v39 = vpack.c.bf16 %v4997_v38, %v4996_v54  ;;  %v5014_v23 = vld [vmem:[%s10283_s8 + $0x1d0] sm:$0xff]  ;;  %v5030_v54 = vld [vmem:[%s10243_s11 + $0x1c0] sm:$0xff]  ;;  %v5031_v38 = vld [vmem:[%s10243_s11 + $0x1c8] sm:$0xff] }
 0xf17   :  { %v2426_v44 = vadd.f32 1.0, %v7821_v40  ;;  %2534 = vmatprep.mubr.f32.mxu0 %v2428_v26  ;;  %v5015_v26 = vld [vmem:[%s10283_s8 + $0x1d8] sm:$0xff] }
 0xf18   :  { %2535 = vmatmul.mubr.f32.vlgmr.msra.gmra.mrb[24].mxu0 %v2427_v41  ;;  %v2429_v50 = vmul.f32 %v2425_v42, %v2413_v46  ;;  %v7361_v40 = vpack.c.bf16 %v5015_v26, %v5014_v23  ;;  %7330 = vmatprep.subr.bf16.mxu1 %v7329_v39  ;;  %v4998_v41 = vld [vmem:[%s10282_s30 + $0x1e0] sm:$0xff]  ;;  %v4999_v42 = vld [vmem:[%s10282_s30 + $0x1e8] sm:$0xff]  ;;  %v5032_v23 = vld [vmem:[%s10243_s11 + $0x1d0] sm:$0xff] }
 0xf19   :  { %v2430_v49 = vmul.f32 %v2426_v44, %v2414_v43  ;;  %7332 = vmatpush3.bf16.msra.mxu1 %v7329_v39  ;;  %v7333_v43 = vpack.c.bf16 %v4999_v42, %v4998_v41  ;;  %v5016_v44 = vld [vmem:[%s10283_s8 + $0x1e0] sm:$0xff]  ;;  %v5017_v46 = vld [vmem:[%s10283_s8 + $0x1e8] sm:$0xff]  ;;  %v7389_v39 = vpack.c.bf16 %v5031_v38, %v5030_v54  ;;  %v5033_v26 = vld [vmem:[%s10243_s11 + $0x1d8] sm:$0xff] }
 0xf1a   :  { %v5034_v41 = vld [vmem:[%s10243_s11 + $0x1e0] sm:$0xff]  ;;  %v5035_v42 = vld [vmem:[%s10243_s11 + $0x1e8] sm:$0xff] }
 0xf1b   :  { %2539 = vmatprep.mubr.f32.mxu0 %v2430_v49  ;;  %v7365_v49 = vpack.c.bf16 %v5017_v46, %v5016_v44  ;;  %7334 = vmatprep.subr.bf16.mxu1 %v7333_v43  ;;  %v5036_v44 = vld [vmem:[%s10243_s11 + $0x1f0] sm:$0xff]  ;;  %v5037_v46 = vld [vmem:[%s10243_s11 + $0x1f8] sm:$0xff] }
 0xf1c   :  { %2540 = vmatmul.mubr.f32.gmra.mrb[26].mxu0 %v2429_v50  ;;  %v5000_v50 = vld [vmem:[%s10282_s30 + $0x1f0] sm:$0xff] }
 0xf1d   :  { %7336 = vmatpush3.bf16.msra.mxu1 %v7333_v43  ;;  %v7337_v52 = vpack.c.bf16 %v5001_v51, %v5000_v50  ;;  %v7397_v43 = vpack.c.bf16 %v5035_v42, %v5034_v41  ;;  %v5073_v50 = vld [vmem:[%s10283_s8 + $0x200] sm:$0xff]  ;;  %v5074_v51 = vld [vmem:[%s10283_s8 + $0x208] sm:$0xff] }
 0xf1f   :  { %7338 = vmatprep.subr.bf16.mxu1 %v7337_v52 }
 0xf21   :  { %7340 = vmatpush3.bf16.msra.mxu1 %v7337_v52  ;;  %v7449_v52 = vpack.c.bf16 %v5074_v51, %v5073_v50 }
 0xfeb   :  { %v5637_v55 = vpop.f32.mrb[24].mxu0 }
 0xfec   :  { %v5638_v57 = vpop.f32.mrb[25].mxu0 }
 0xfed   :  { %v5639_v59 = vadd.f32 %v5638_v57, %v5637_v55  ;;  %v5019_v55 = vld [vmem:[%s10283_s8 + $0x1f8] sm:$0xff]  ;;  %v5022_v57 = vld [vmem:[%s10243_s11 + $0x180] sm:$0xff] }
 0xfef   :  { %v2537_v60 = vadd.f32 %v5639_v59, %v4981_v56  ;;  %v5640_v61 = vpop.f32.mrb[26].mxu0  ;;  %v5023_v59 = vld [vmem:[%s10243_s11 + $0x188] sm:$0xff] }
 0xff0   :  { %v5641_v62 = vpop.f32.mrb[27].mxu0 }
 0xff1   :  { %v9272_v0 = vadd.f32 %v2537_v60, %v9063_v21  ;;  %v5642_v1 = vadd.f32 %v5641_v62, %v5640_v61  ;;  %v7373_v60 = vpack.c.bf16 %v5023_v59, %v5022_v57  ;;  %v5077_v57 = vld [vmem:[%s10283_s8 + $0x220] sm:$0xff]  ;;  %v5078_v59 = vld [vmem:[%s10283_s8 + $0x228] sm:$0xff] }
 0xff3   :  { %v2542_v2 = vadd.f32 %v5642_v1, %v4981_v56  ;;  %2551 = vadd.xlane.f32.xlu0 %v9272_v0  ;;  %v2558_v32 = vmul.f32 %v9272_v0, %v9272_v0  ;;  %v7369_v56 = vpack.c.bf16 %v5019_v55, %v5018_v53  ;;  %7374 = vmatprep.subr.bf16.mxu1 %v7373_v60  ;;  %v5075_v53 = vld [vmem:[%s10283_s8 + $0x210] sm:$0xff]  ;;  %v5076_v55 = vld [vmem:[%s10283_s8 + $0x218] sm:$0xff] }
 0xff5   :  { %v9276_v3 = vadd.f32 %v2542_v2, %v9061_v20  ;;  %v5005_v20 = vld [vmem:[%s10283_s8 + $0x188] sm:$0xff] }
 0xff6   :  { %v7341_v7 = vpack.c.bf16 %v5005_v20, %v5004_v6 }
 0xff7   :  { %2560 = vadd.xlane.f32.xlu0 %v2558_v32  ;;  %v2553_v11 = vsel %vm431_vm0, %v9276_v3, 0.0  ;;  %v2559_v5 = vmul.f32 %v9276_v3, %v9276_v3 }
 0xff8   :  { %2554 = vadd.xlane.f32.xlu1 %v2553_v11  ;;  %7342 = vmatprep.subr.bf16.mxu0 %v7341_v7 }
 0xff9   :  { %v2562_v21 = vsel %vm431_vm0, %v2559_v5, 0.0  ;;  %7344 = vmatpush3.bf16.msra.mxu0 %v7341_v7 }
 0xffa   :  { %7346 = vmatprep.subr.bf16.mxu0 %v7345_v14 }
 0xffc   :  { %2563 = vadd.xlane.f32.xlu1 %v2562_v21 }
 0xffd   :  { %7348 = vmatpush3.bf16.msra.mxu0 %v7345_v14  ;;  %v4984_v14 = vld [vmem:[%s10286_s26 + $0x1] ss:$0 sm:$0xff] }
 0xffe   :  { %7350 = vmatprep.subr.bf16.mxu0 %v7349_v18 }
0x1001   :  { %7352 = vmatpush3.bf16.msra.mxu0 %v7349_v18 }
0x1002   :  { %7354 = vmatprep.subr.bf16.mxu0 %v7353_v30 }
0x1005   :  { %7356 = vmatpush3.bf16.msra.mxu0 %v7353_v30  ;;  %v7377_v30 = vpack.c.bf16 %v5025_v27, %v5024_v48 }
0x1006   :  { %7358 = vmatprep.subr.bf16.mxu0 %v7357_v37 }
0x1009   :  { %7360 = vmatpush3.bf16.msra.mxu0 %v7357_v37  ;;  %v7385_v37 = vpack.c.bf16 %v5029_v36, %v5028_v35 }
0x100a   :  { %7362 = vmatprep.subr.bf16.mxu0 %v7361_v40 }
0x100d   :  { %7364 = vmatpush3.bf16.msra.mxu0 %v7361_v40  ;;  %v7393_v40 = vpack.c.bf16 %v5033_v26, %v5032_v23 }
0x100e   :  { %7366 = vmatprep.subr.bf16.mxu0 %v7365_v49 }
0x1011   :  { %7368 = vmatpush3.bf16.msra.mxu0 %v7365_v49  ;;  %v7401_v49 = vpack.c.bf16 %v5037_v46, %v5036_v44  ;;  %v9520_v44 = vld [vmem:[%s10293_s9 + $0x8] sm:$0x3] }
0x1012   :  { %7370 = vmatprep.subr.bf16.mxu0 %v7369_v56 }
0x1015   :  { %7372 = vmatpush3.bf16.msra.mxu0 %v7369_v56  ;;  %v7453_v56 = vpack.c.bf16 %v5076_v55, %v5075_v53 }
0x1080   :  { %v2552_v61 = vpop.xlane.xlu0 %2551 }
0x1081   :  { %v2556_v62 = vmul.f32 0.020833334, %v2552_v61  ;;  %v5079_v61 = vld [vmem:[%s10283_s8 + $0x230] sm:$0xff] }
0x1083   :  { %v2567_v2 = vmul.f32 %v2556_v62, %v2556_v62  ;;  %v2571_v12 = vsub.f32 %v9272_v0, %v2556_v62  ;;  %v5080_v62 = vld [vmem:[%s10283_s8 + $0x238] sm:$0xff] }
0x1084   :  { %v2561_v1 = vpop.xlane.xlu0 %2560 }
0x1085   :  { %v2565_v32 = vmul.f32 0.020833334, %v2561_v1  ;;  %v2555_v11 = vpop.xlane.xlu1 %2554  ;;  %v7461_v1 = vpack.c.bf16 %v5080_v62, %v5079_v61 }
0x1086   :  { %v2557_v5 = vmul.f32 0.020833334, %v2555_v11 }
0x1087   :  { %v2569_v21 = vsub.f32 %v2565_v32, %v2567_v2  ;;  %v5081_v2 = vld [vmem:[%s10283_s8 + $0x240] sm:$0xff]  ;;  %v5082_v32 = vld [vmem:[%s10283_s8 + $0x248] sm:$0xff] }
0x1088   :  { %v2568_v7 = vmul.f32 %v2557_v5, %v2557_v5  ;;  %v2572_v63 = vsub.f32 %v9276_v3, %v2557_v5  ;;  %v7465_v11 = vpack.c.bf16 %v5082_v32, %v5081_v2  ;;  %v5083_v5 = vld [vmem:[%s10283_s8 + $0x250] sm:$0xff]  ;;  %v5055_v32 = vld [vmem:[%s10282_s30 + $0x200] sm:$0xff] }
0x1089   :  { %v2573_v6 = vadd.f32 1e-06, %v2569_v21  ;;  %v2564_v20 = vpop.xlane.xlu1 %2563  ;;  %v5084_v21 = vld [vmem:[%s10283_s8 + $0x258] sm:$0xff] }
0x108a   :  { %v2566_v8 = vmul.f32 0.020833334, %v2564_v20  ;;  %v5085_v20 = vld [vmem:[%s10283_s8 + $0x260] sm:$0xff] }
0x108b   :  { %7822 = vrsqrt.f32 %v2573_v6  ;;  %v7469_v6 = vpack.c.bf16 %v5084_v21, %v5083_v5 }
0x108c   :  { %v2570_v9 = vsub.f32 %v2566_v8, %v2568_v7  ;;  %v5086_v7 = vld [vmem:[%s10283_s8 + $0x268] sm:$0xff] }
0x108d   :  { %v7473_v8 = vpack.c.bf16 %v5086_v7, %v5085_v20  ;;  %v5057_v7 = vld [vmem:[%s10282_s30 + $0x210] sm:$0xff] }
0x108e   :  { %v2574_v10 = vadd.f32 1e-06, %v2570_v9  ;;  %v5087_v9 = vld [vmem:[%s10283_s8 + $0x270] sm:$0xff] }
0x1090   :  { %7824 = vrsqrt.f32 %v2574_v10  ;;  %v5088_v10 = vld [vmem:[%s10283_s8 + $0x278] sm:$0xff] }
0x1095   :  { %v7823_v13 = vpop.eup %7822 }
0x1096   :  { %v2577_v17 = vmul.f32 %v7823_v13, %v2571_v12  ;;  %v7477_v12 = vpack.c.bf16 %v5088_v10, %v5087_v9  ;;  %v5021_v13 = vld [vmem:[%s10242_s10 + $0x3] ss:$0 sm:$0xff] }
0x1098   :  { %v2585_v25 = vmul.f32 %v4984_v14, %v2577_v17 }
0x109a   :  { %v7825_v58 = vpop.eup %7824  ;;  %v9389_v18 = vadd.f32 %v4985_v24, %v2585_v25 }
0x109b   :  { %v2578_v45 = vmul.f32 %v7825_v58, %v2572_v63 }
0x109c   :  { %6360 = vmatprep.mubr.f32.mxu1 %v9389_v18  ;;  %6395 = vmatprep.mubr.f32.mxu0 %v9389_v18 }
0x109d   :  { %v2586_v28 = vmul.f32 %v4984_v14, %v2578_v45  ;;  %v5003_v14 = vld [vmem:[%s10288_s6 + $0x3] ss:$0 sm:$0xff] }
0x109f   :  { %v9399_v29 = vadd.f32 %v4985_v24, %v2586_v28 }
0x10a1   :  { %6361 = vmatmul.mubr.f32.vlgmr.msra.gmra.mrb[24].mxu1 %v9399_v29  ;;  %6396 = vmatmul.mubr.f32.vlgmr.msra.gmra.mrb[28].mxu0 %v9399_v29 }
0x10a2   :  { %7376 = vmatpush3.bf16.msra.mxu1 %v7373_v60  ;;  %6430 = vmatprep.mubr.f32.mxu1 %v9389_v18  ;;  %v7457_v60 = vpack.c.bf16 %v5078_v59, %v5077_v57 }
0x10a3   :  { %7378 = vmatprep.subr.bf16.mxu1 %v7377_v30 }
0x10a6   :  { %7380 = vmatpush3.bf16.msra.mxu1 %v7377_v30  ;;  %v5039_v30 = vld [vmem:[%s10244_s12 + $0x3] ss:$0 sm:$0xff] }
0x10a7   :  { %7382 = vmatprep.subr.bf16.mxu1 %v7381_v47 }
0x10aa   :  { %7384 = vmatpush3.bf16.msra.mxu1 %v7381_v47 }
0x10ab   :  { %7386 = vmatprep.subr.bf16.mxu1 %v7385_v37 }
0x10ae   :  { %7388 = vmatpush3.bf16.msra.mxu1 %v7385_v37  ;;  %v5090_v37 = vld [vmem:[%s10242_s10 + $0x4] ss:$0 sm:$0xff] }
0x10af   :  { %7390 = vmatprep.subr.bf16.mxu1 %v7389_v39 }
0x10b2   :  { %7392 = vmatpush3.bf16.msra.mxu1 %v7389_v39 }
0x10b3   :  { %7394 = vmatprep.subr.bf16.mxu1 %v7393_v40 }
0x10b6   :  { %7396 = vmatpush3.bf16.msra.mxu1 %v7393_v40 }
0x10b7   :  { %7398 = vmatprep.subr.bf16.mxu1 %v7397_v43 }
0x10ba   :  { %7400 = vmatpush3.bf16.msra.mxu1 %v7397_v43 }
0x10bb   :  { %7402 = vmatprep.subr.bf16.mxu1 %v7401_v49 }
0x10be   :  { %7404 = vmatpush3.bf16.msra.mxu1 %v7401_v49  ;;  %v9526_v49 = vld [vmem:[%s10293_s9] sm:$0xff] }
0x10bf   :  { %7450 = vmatprep.subr.bf16.mxu1 %v7449_v52 }
0x10c1   :  { %6431 = vmatmul.mubr.f32.vlgmr.msra.gmra.mrb[26].mxu1 %v9399_v29 }
0x10c2   :  { %7452 = vmatpush3.bf16.msra.mxu1 %v7449_v52  ;;  %6514 = vmatprep.mubr.f32.mxu1 %v9389_v18 }
0x10c3   :  { %7454 = vmatprep.subr.bf16.mxu1 %v7453_v56 }
0x10c6   :  { %7456 = vmatpush3.bf16.msra.mxu1 %v7453_v56 }
0x10c7   :  { %7458 = vmatprep.subr.bf16.mxu1 %v7457_v60 }
0x10ca   :  { %7460 = vmatpush3.bf16.msra.mxu1 %v7457_v60 }
0x10cb   :  { %7462 = vmatprep.subr.bf16.mxu1 %v7461_v1 }
0x10ce   :  { %7464 = vmatpush3.bf16.msra.mxu1 %v7461_v1 }
0x10cf   :  { %7466 = vmatprep.subr.bf16.mxu1 %v7465_v11 }
0x10d2   :  { %7468 = vmatpush3.bf16.msra.mxu1 %v7465_v11  ;;  %v5056_v11 = vld [vmem:[%s10282_s30 + $0x208] sm:$0xff] }
0x10d3   :  { %7470 = vmatprep.subr.bf16.mxu1 %v7469_v6  ;;  %v7417_v5 = vpack.c.bf16 %v5056_v11, %v5055_v32  ;;  %v5106_v32 = vld [vmem:[%s10243_s11 + $0x278] sm:$0xff] }
0x10d6   :  { %7472 = vmatpush3.bf16.msra.mxu1 %v7469_v6 }
0x10d7   :  { %7474 = vmatprep.subr.bf16.mxu1 %v7473_v8 }
0x10da   :  { %7476 = vmatpush3.bf16.msra.mxu1 %v7473_v8  ;;  %v5058_v8 = vld [vmem:[%s10282_s30 + $0x218] sm:$0xff] }
0x10db   :  { %7478 = vmatprep.subr.bf16.mxu1 %v7477_v12 }
0x10de   :  { %7480 = vmatpush3.bf16.msra.mxu1 %v7477_v12 }
0x10e1   :  { %6515 = vmatmul.mubr.f32.vlgmr.msra.gmra.mrb[28].mxu1 %v9399_v29 }
0x1174   :  { %v6362_v17 = vpop.f32.mrb[24].mxu1  ;;  %v6397_v24 = vpop.f32.mrb[28].mxu0 }
0x1175   :  { %v2792_v25 = vadd.f32 %v6397_v24, %v5021_v13  ;;  %v2686_v63 = vpop.f32.mrb[25].mxu1  ;;  %v2786_v58 = vpop.f32.mrb[29].mxu0  ;;  %v2692_v28 = vadd.f32 %v6362_v17, %v5003_v14  ;;  %v5060_v17 = vld [vmem:[%s10282_s30 + $0x228] sm:$0xff] }
0x1176   :  { %v2687_v45 = vadd.f32 %v5003_v14, %v2686_v63  ;;  %v2787_v48 = vadd.f32 %v5021_v13, %v2786_v58  ;;  %v7421_v13 = vpack.c.bf16 %v5058_v8, %v5057_v7  ;;  %v5059_v14 = vld [vmem:[%s10282_s30 + $0x220] sm:$0xff]  ;;  %v5062_v63 = vld [vmem:[%s10282_s30 + $0x238] sm:$0xff] }
0x1177   :  { %v7425_v24 = vpack.c.bf16 %v5060_v17, %v5059_v14  ;;  %v5131_v7 = vld [vmem:[%s10282_s30 + $0x298] sm:$0xff] }
0x1178   :  { %v7405_v27 = vpack.c.bf16 %v2792_v25, %v2787_v48  ;;  %6437 = vmatprep.mubr.msk.f32.mxu0 %vm768_vm1, %v2687_v45  ;;  %v5061_v25 = vld [vmem:[%s10282_s30 + $0x230] sm:$0xff]  ;;  %v5063_v45 = vld [vmem:[%s10282_s30 + $0x240] sm:$0xff]  ;;  %v5064_v48 = vld [vmem:[%s10282_s30 + $0x248] sm:$0xff] }
0x1179   :  { %v7429_v58 = vpack.c.bf16 %v5062_v63, %v5061_v25  ;;  %v5135_v14 = vld [vmem:[%s10282_s30 + $0x2b8] sm:$0xff]  ;;  %v5137_v25 = vld [vmem:[%s10282_s30 + $0x2c8] sm:$0xff] }
0x117a   :  { %7407 = vmatprep.subr.msk.bf16.mxu0 %vm8590_vm2, %v7405_v27 }
0x117b   :  { %7410 = vmatpush3.bf16.xpose.msk.msra.mxu0 %vm8590_vm2, %v7405_v27  ;;  %v7433_v27 = vpack.c.bf16 %v5064_v48, %v5063_v45  ;;  %v5139_v45 = vld [vmem:[%s10282_s30 + $0x2d8] sm:$0xff] }
0x1182   :  { %6438 = vmatmul.mubr.msk.f32.vlgmr.msra.gmra.mrb[30].mxu0 %vm768_vm1, %v2692_v28  ;;  %v5065_v28 = vld [vmem:[%s10282_s30 + $0x250] sm:$0xff] }
0x1194   :  { %v6432_v31 = vpop.f32.mrb[26].mxu1 }
0x1195   :  { %v2892_v34 = vadd.f32 %v6432_v31, %v5039_v30  ;;  %v2886_v47 = vpop.f32.mrb[27].mxu1 }
0x1196   :  { %v2887_v35 = vadd.f32 %v5039_v30, %v2886_v47  ;;  %v5066_v30 = vld [vmem:[%s10282_s30 + $0x258] sm:$0xff]  ;;  %v5068_v47 = vld [vmem:[%s10282_s30 + $0x268] sm:$0xff] }
0x1197   :  { %v7437_v31 = vpack.c.bf16 %v5066_v30, %v5065_v28  ;;  %v5141_v28 = vld [vmem:[%s10282_s30 + $0x2e8] sm:$0xff] }
0x1198   :  { %v7411_v36 = vpack.c.bf16 %v2892_v34, %v2887_v35  ;;  %v5067_v34 = vld [vmem:[%s10282_s30 + $0x260] sm:$0xff] }
0x1199   :  { %v7441_v35 = vpack.c.bf16 %v5068_v47, %v5067_v34  ;;  %v5143_v34 = vld [vmem:[%s10282_s30 + $0x2f8] sm:$0xff] }
0x119a   :  { %7413 = vmatprep.subr.msk.bf16.mxu0 %vm8607_vm4, %v7411_v36 }
0x119b   :  { %7416 = vmatpush3.bf16.msk.msra.mxu0 %vm8607_vm4, %v7411_v36  ;;  %v5069_v36 = vld [vmem:[%s10282_s30 + $0x270] sm:$0xff] }
0x119c   :  { %7418 = vmatprep.subr.bf16.mxu0 %v7417_v5 }
0x11b4   :  { %v6516_v54 = vpop.f32.mrb[28].mxu1 }
0x11b5   :  { %v3298_v38 = vadd.f32 %v6516_v54, %v5090_v37  ;;  %v3292_v39 = vpop.f32.mrb[29].mxu1 }
0x11b6   :  { %v3293_v23 = vadd.f32 %v5090_v37, %v3292_v39  ;;  %v5070_v37 = vld [vmem:[%s10282_s30 + $0x278] sm:$0xff]  ;;  %v5092_v39 = vld [vmem:[%s10243_s11 + $0x208] sm:$0xff] }
0x11b7   :  { %v7445_v54 = vpack.c.bf16 %v5070_v37, %v5069_v36  ;;  %v5165_v36 = vld [vmem:[%s10243_s11 + $0x288] sm:$0xff] }
0x11b8   :  { %v7513_v26 = vpack.c.bf16 %v3298_v38, %v3293_v23  ;;  %v5091_v38 = vld [vmem:[%s10243_s11 + $0x200] sm:$0xff] }
0x11b9   :  { %v7481_v23 = vpack.c.bf16 %v5092_v39, %v5091_v38  ;;  %v5167_v38 = vld [vmem:[%s10243_s11 + $0x298] sm:$0xff] }
0x11ba   :  { %7515 = vmatprep.subr.msk.bf16.mxu1 %vm8590_vm2, %v7513_v26 }
0x11bb   :  { %7518 = vmatpush3.bf16.xpose.msk.msra.mxu1 %vm8590_vm2, %v7513_v26  ;;  %v5093_v26 = vld [vmem:[%s10243_s11 + $0x210] sm:$0xff] }
0x1255   :  { %v6439_v40 = vpop.f32.mrb[30].mxu0 }
0x1256   :  { %v2983_v41 = vmul.f32 0.25, %v6439_v40  ;;  %v2973_v42 = vpop.f32.mrb[31].mxu0  ;;  %v5094_v40 = vld [vmem:[%s10243_s11 + $0x218] sm:$0xff] }
0x1257   :  { %v2982_v43 = vmul.f32 0.25, %v2973_v42  ;;  %v5095_v42 = vld [vmem:[%s10243_s11 + $0x220] sm:$0xff] }
0x1258   :  { %v2985_v46 = vadd.f32 %v9520_v44, %v2983_v41  ;;  %v7485_v41 = vpack.c.bf16 %v5094_v40, %v5093_v26  ;;  %v5169_v26 = vld [vmem:[%s10243_s11 + $0x2a8] sm:$0xff] }
0x1259   :  { %v2984_v50 = vadd.f32 %v9526_v49, %v2982_v43  ;;  %v5096_v43 = vld [vmem:[%s10243_s11 + $0x228] sm:$0xff] }
0x125a   :  { %v2989_v51 = vsel %vm864_vm5, %v2985_v46, -inf }
0x125b   :  { %2990 = vmax.xlane.f32.xlu1 %v2989_v51  ;;  %v2986_v52 = vsel %vm860_vm6, %v2984_v50, -inf  ;;  %v5098_v51 = vld [vmem:[%s10243_s11 + $0x238] sm:$0xff] }
0x125c   :  { %2987 = vmax.xlane.f32.xlu0 %v2986_v52 }
0x12e8   :  { %v2991_v53 = vpop.xlane.xlu1 %2990 }
0x12e9   :  { %v2993_v55 = vsub.f32 %v2985_v46, %v2991_v53  ;;  %v2988_v56 = vpop.xlane.xlu0 %2987  ;;  %v7489_v46 = vpack.c.bf16 %v5096_v43, %v5095_v42  ;;  %v5099_v53 = vld [vmem:[%s10243_s11 + $0x240] sm:$0xff]  ;;  %v5171_v42 = vld [vmem:[%s10243_s11 + $0x2b8] sm:$0xff] }
0x12ea   :  { %v2992_v57 = vsub.f32 %v2984_v50, %v2988_v56  ;;  %v5097_v50 = vld [vmem:[%s10243_s11 + $0x230] sm:$0xff] }
0x12eb   :  { %v2996_v59 = vmul.f32 1.442695, %v2993_v55  ;;  %v7493_v52 = vpack.c.bf16 %v5098_v51, %v5097_v50  ;;  %v5100_v55 = vld [vmem:[%s10243_s11 + $0x248] sm:$0xff] }
0x12ec   :  { %v2994_v60 = vmul.f32 1.442695, %v2992_v57  ;;  %v7497_v56 = vpack.c.bf16 %v5100_v55, %v5099_v53  ;;  %v5101_v57 = vld [vmem:[%s10243_s11 + $0x250] sm:$0xff]  ;;  %v5173_v50 = vld [vmem:[%s10243_s11 + $0x2c8] sm:$0xff]  ;;  %v5175_v53 = vld [vmem:[%s10243_s11 + $0x2d8] sm:$0xff] }
0x12ed   :  { %7826 = vpow2.f32 %v2996_v59  ;;  %v5102_v59 = vld [vmem:[%s10243_s11 + $0x258] sm:$0xff] }
0x12ee   :  { %7828 = vpow2.f32 %v2994_v60  ;;  %v7501_v60 = vpack.c.bf16 %v5102_v59, %v5101_v57  ;;  %v5177_v57 = vld [vmem:[%s10243_s11 + $0x2e8] sm:$0xff] }
0x12f7   :  { %v7827_v61 = vpop.eup %7826 }
0x12f8   :  { %v7829_v62 = vpop.eup %7828  ;;  %v3001_v1 = vsel %vm864_vm5, %v7827_v61, 0.0 }
0x12f9   :  { %3002 = vadd.xlane.f32.xlu1 %v3001_v1  ;;  %v2998_v2 = vsel %vm860_vm6, %v7829_v62, 0.0 }
0x12fa   :  { %2999 = vadd.xlane.f32.xlu0 %v2998_v2  ;;  %v5105_v2 = vld [vmem:[%s10243_s11 + $0x270] sm:$0xff] }
0x12fb   :  { %v7509_v11 = vpack.c.bf16 %v5106_v32, %v5105_v2  ;;  %v5072_v32 = vld [vmem:[%s10288_s6 + $0x4] ss:$0 sm:$0xff] }
0x1386   :  { %v3003_v21 = vpop.xlane.xlu1 %3002 }
0x1387   :  { %7830 = vrcp.f32 %v3003_v21  ;;  %v3000_v6 = vpop.xlane.xlu0 %2999  ;;  %v5129_v21 = vld [vmem:[%s10282_s30 + $0x288] sm:$0xff] }
0x1388   :  { %7832 = vrcp.f32 %v3000_v6 }
0x1391   :  { %v7831_v20 = vpop.eup %7830 }
0x1392   :  { %v7833_v9 = vpop.eup %7832  ;;  %v3007_v12 = vmul.f32 %v7831_v20, %v7827_v61  ;;  %v5103_v61 = vld [vmem:[%s10243_s11 + $0x260] sm:$0xff]  ;;  %v5130_v20 = vld [vmem:[%s10282_s30 + $0x290] sm:$0xff] }
0x1393   :  { %v3005_v10 = vmul.f32 %v7833_v9, %v7829_v62  ;;  %v5104_v62 = vld [vmem:[%s10243_s11 + $0x268] sm:$0xff]  ;;  %v7561_v8 = vpack.c.bf16 %v5131_v7, %v5130_v20  ;;  %v5132_v9 = vld [vmem:[%s10282_s30 + $0x2a0] sm:$0xff] }
0x1394   :  { %v7505_v1 = vpack.c.bf16 %v5104_v62, %v5103_v61  ;;  %v5179_v61 = vld [vmem:[%s10243_s11 + $0x2f8] sm:$0xff]  ;;  %v5108_v20 = vld [vmem:[%s10244_s12 + $0x4] ss:$0 sm:$0xff] }
0x1395   :  { %6444 = vmatprep.mubr.msk.f32.mxu0 %vm860_vm6, %v3005_v10  ;;  %v5133_v10 = vld [vmem:[%s10282_s30 + $0x2a8] sm:$0xff] }
0x1396   :  { %6445 = vmatmul.mubr.msk.f32.vlgmr.msra.gmra.mrb[32].mxu0 %vm860_vm6, %v3007_v12  ;;  %v7565_v12 = vpack.c.bf16 %v5133_v10, %v5132_v9 }
0x1397   :  { %7420 = vmatpush3.bf16.msra.mxu0 %v7417_v5  ;;  %6479 = vmatprep.mubr.f32.mxu0 %v9389_v18  ;;  %v5128_v5 = vld [vmem:[%s10282_s30 + $0x280] sm:$0xff] }
0x1398   :  { %7422 = vmatprep.subr.bf16.mxu0 %v7421_v13  ;;  %v7557_v6 = vpack.c.bf16 %v5129_v21, %v5128_v5 }
0x139b   :  { %7424 = vmatpush3.bf16.msra.mxu0 %v7421_v13  ;;  %v5134_v13 = vld [vmem:[%s10282_s30 + $0x2b0] sm:$0xff] }
0x139c   :  { %7426 = vmatprep.subr.bf16.mxu0 %v7425_v24  ;;  %v7569_v17 = vpack.c.bf16 %v5135_v14, %v5134_v13  ;;  %v9755_v13 = vld [vmem:[%s10288_s6 + $0x5] ss:$0 sm:$0xff] }
0x139f   :  { %7428 = vmatpush3.bf16.msra.mxu0 %v7425_v24  ;;  %v5136_v24 = vld [vmem:[%s10282_s30 + $0x2c0] sm:$0xff] }
0x13a0   :  { %7430 = vmatprep.subr.bf16.mxu0 %v7429_v58  ;;  %v7573_v63 = vpack.c.bf16 %v5137_v25, %v5136_v24  ;;  %v5181_v25 = vld [vmem:[%s10244_s12 + $0x5] ss:$0 sm:$0xff] }
0x13a3   :  { %7432 = vmatpush3.bf16.msra.mxu0 %v7429_v58  ;;  %v5138_v58 = vld [vmem:[%s10282_s30 + $0x2d0] sm:$0xff] }
0x13a4   :  { %7434 = vmatprep.subr.bf16.mxu0 %v7433_v27  ;;  %v7577_v48 = vpack.c.bf16 %v5139_v45, %v5138_v58 }
0x13a7   :  { %7436 = vmatpush3.bf16.msra.mxu0 %v7433_v27  ;;  %v5140_v27 = vld [vmem:[%s10282_s30 + $0x2e0] sm:$0xff] }
0x13a8   :  { %7438 = vmatprep.subr.bf16.mxu0 %v7437_v31  ;;  %v7581_v30 = vpack.c.bf16 %v5141_v28, %v5140_v27 }
0x13ab   :  { %7440 = vmatpush3.bf16.msra.mxu0 %v7437_v31  ;;  %v5142_v31 = vld [vmem:[%s10282_s30 + $0x2f0] sm:$0xff] }
0x13ac   :  { %7442 = vmatprep.subr.bf16.mxu0 %v7441_v35  ;;  %v7585_v47 = vpack.c.bf16 %v5143_v34, %v5142_v31 }
0x13af   :  { %7444 = vmatpush3.bf16.msra.mxu0 %v7441_v35  ;;  %v5164_v35 = vld [vmem:[%s10243_s11 + $0x280] sm:$0xff] }
0x13b0   :  { %7446 = vmatprep.subr.bf16.mxu0 %v7445_v54  ;;  %v7621_v37 = vpack.c.bf16 %v5165_v36, %v5164_v35 }
0x13b3   :  { %7448 = vmatpush3.bf16.msra.mxu0 %v7445_v54  ;;  %v5166_v54 = vld [vmem:[%s10243_s11 + $0x290] sm:$0xff] }
0x13b4   :  { %7482 = vmatprep.subr.bf16.mxu0 %v7481_v23  ;;  %v7625_v39 = vpack.c.bf16 %v5167_v38, %v5166_v54 }
0x13b6   :  { %6480 = vmatmul.mubr.f32.vlgmr.msra.gmra.mrb[34].mxu0 %v9399_v29 }
0x13b7   :  { %7484 = vmatpush3.bf16.msra.mxu0 %v7481_v23  ;;  %6549 = vmatprep.mubr.f32.mxu0 %v9389_v18  ;;  %v5168_v23 = vld [vmem:[%s10243_s11 + $0x2a0] sm:$0xff] }
0x13b8   :  { %7486 = vmatprep.subr.bf16.mxu0 %v7485_v41  ;;  %v7629_v40 = vpack.c.bf16 %v5169_v26, %v5168_v23 }
0x13bb   :  { %7488 = vmatpush3.bf16.msra.mxu0 %v7485_v41  ;;  %v5170_v41 = vld [vmem:[%s10243_s11 + $0x2b0] sm:$0xff] }
0x13bc   :  { %7490 = vmatprep.subr.bf16.mxu0 %v7489_v46  ;;  %v7633_v43 = vpack.c.bf16 %v5171_v42, %v5170_v41 }
0x13bf   :  { %7492 = vmatpush3.bf16.msra.mxu0 %v7489_v46  ;;  %v5172_v46 = vld [vmem:[%s10243_s11 + $0x2c0] sm:$0xff] }
0x13c0   :  { %7494 = vmatprep.subr.bf16.mxu0 %v7493_v52  ;;  %v7637_v51 = vpack.c.bf16 %v5173_v50, %v5172_v46  ;;  %v5116_v50 = vld [vmem:[%s10245_s13 + $0x100] sm:$0xff] }
0x13c3   :  { %7496 = vmatpush3.bf16.msra.mxu0 %v7493_v52  ;;  %v5174_v52 = vld [vmem:[%s10243_s11 + $0x2d0] sm:$0xff] }
0x13c4   :  { %7498 = vmatprep.subr.bf16.mxu0 %v7497_v56  ;;  %v7641_v55 = vpack.c.bf16 %v5175_v53, %v5174_v52 }
0x13c7   :  { %7500 = vmatpush3.bf16.msra.mxu0 %v7497_v56  ;;  %v5176_v56 = vld [vmem:[%s10243_s11 + $0x2e0] sm:$0xff] }
0x13c8   :  { %7502 = vmatprep.subr.bf16.mxu0 %v7501_v60  ;;  %v7645_v59 = vpack.c.bf16 %v5177_v57, %v5176_v56  ;;  %v5118_v57 = vld [vmem:[%s10245_s13 + $0x110] sm:$0xff] }
0x13cb   :  { %7504 = vmatpush3.bf16.msra.mxu0 %v7501_v60  ;;  %v5178_v60 = vld [vmem:[%s10243_s11 + $0x2f0] sm:$0xff] }
0x13cc   :  { %7506 = vmatprep.subr.bf16.mxu0 %v7505_v1  ;;  %v7649_v62 = vpack.c.bf16 %v5179_v61, %v5178_v60 }
0x13cf   :  { %7508 = vmatpush3.bf16.msra.mxu0 %v7505_v1 }
0x13d0   :  { %7510 = vmatprep.subr.bf16.mxu0 %v7509_v11 }
0x13d3   :  { %7512 = vmatpush3.bf16.msra.mxu0 %v7509_v11 }
0x13d4   :  { %7558 = vmatprep.subr.bf16.mxu0 %v7557_v6 }
0x13d6   :  { %6550 = vmatmul.mubr.f32.vlgmr.msra.gmra.mrb[36].mxu0 %v9399_v29 }
0x13d7   :  { %7560 = vmatpush3.bf16.msra.mxu0 %v7557_v6  ;;  %6636 = vmatprep.mubr.f32.mxu0 %v9389_v18 }
0x13d8   :  { %7562 = vmatprep.subr.bf16.mxu0 %v7561_v8 }
0x13db   :  { %7564 = vmatpush3.bf16.msra.mxu0 %v7561_v8 }
0x13dc   :  { %7566 = vmatprep.subr.bf16.mxu0 %v7565_v12 }
0x13df   :  { %7568 = vmatpush3.bf16.msra.mxu0 %v7565_v12 }
0x13e0   :  { %7570 = vmatprep.subr.bf16.mxu0 %v7569_v17 }
0x13e3   :  { %7572 = vmatpush3.bf16.msra.mxu0 %v7569_v17 }
0x13e4   :  { %7574 = vmatprep.subr.bf16.mxu0 %v7573_v63 }
0x13e7   :  { %7576 = vmatpush3.bf16.msra.mxu0 %v7573_v63 }
0x13e8   :  { %7578 = vmatprep.subr.bf16.mxu0 %v7577_v48 }
0x13eb   :  { %7580 = vmatpush3.bf16.msra.mxu0 %v7577_v48 }
0x13ec   :  { %7582 = vmatprep.subr.bf16.mxu0 %v7581_v30 }
0x13ef   :  { %7584 = vmatpush3.bf16.msra.mxu0 %v7581_v30 }
0x13f0   :  { %7586 = vmatprep.subr.bf16.mxu0 %v7585_v47 }
0x13f3   :  { %7588 = vmatpush3.bf16.msra.mxu0 %v7585_v47 }
0x13f4   :  { %7622 = vmatprep.subr.bf16.mxu0 %v7621_v37 }
0x13f6   :  { %6637 = vmatmul.mubr.f32.vlgmr.msra.gmra.mrb[38].mxu0 %v9399_v29 }
0x13f7   :  { %7624 = vmatpush3.bf16.msra.mxu0 %v7621_v37  ;;  %6706 = vmatprep.mubr.f32.mxu0 %v9389_v18 }
0x13f8   :  { %7626 = vmatprep.subr.bf16.mxu0 %v7625_v39 }
0x13fb   :  { %7628 = vmatpush3.bf16.msra.mxu0 %v7625_v39 }
0x13fc   :  { %7630 = vmatprep.subr.bf16.mxu0 %v7629_v40 }
0x13ff   :  { %7632 = vmatpush3.bf16.msra.mxu0 %v7629_v40 }
0x1400   :  { %7634 = vmatprep.subr.bf16.mxu0 %v7633_v43 }
0x1403   :  { %7636 = vmatpush3.bf16.msra.mxu0 %v7633_v43 }
0x1404   :  { %7638 = vmatprep.subr.bf16.mxu0 %v7637_v51 }
0x1407   :  { %7640 = vmatpush3.bf16.msra.mxu0 %v7637_v51  ;;  %v5117_v51 = vld [vmem:[%s10245_s13 + $0x108] sm:$0xff] }
0x1408   :  { %7642 = vmatprep.subr.bf16.mxu0 %v7641_v55  ;;  %v7525_v52 = vpack.c.bf16 %v5117_v51, %v5116_v50  ;;  %v5158_v51 = vld [vmem:[%s10283_s8 + $0x2e0] sm:$0xff] }
0x140b   :  { %7644 = vmatpush3.bf16.msra.mxu0 %v7641_v55 }
0x140c   :  { %7646 = vmatprep.subr.bf16.mxu0 %v7645_v59 }
0x140f   :  { %7648 = vmatpush3.bf16.msra.mxu0 %v7645_v59  ;;  %v5119_v59 = vld [vmem:[%s10245_s13 + $0x118] sm:$0xff] }
0x1410   :  { %7650 = vmatprep.subr.bf16.mxu0 %v7649_v62 }
0x1413   :  { %7652 = vmatpush3.bf16.msra.mxu0 %v7649_v62 }
0x1416   :  { %6707 = vmatmul.mubr.f32.vlgmr.msra.gmra.mrb[40].mxu0 %v9399_v29 }
0x1417   :  { %4528 = vmatprep.mubr.f32.mxu0 %v7891_v33 }
0x1469   :  { %v9736_v1 = vpop.f32.mrb[32].mxu0 }
0x146a   :  { %v9738_v2 = vpop.f32.mrb[33].mxu0 }
0x1489   :  { %v6481_v11 = vpop.f32.mrb[34].mxu0 }
0x148a   :  { %v3192_v5 = vpop.f32.mrb[35].mxu0  ;;  %v3198_v6 = vadd.f32 %v6481_v11, %v5072_v32  ;;  %v5120_v11 = vld [vmem:[%s10245_s13 + $0x120] sm:$0xff] }
0x148b   :  { %v3193_v21 = vadd.f32 %v5072_v32, %v3192_v5  ;;  %v7529_v32 = vpack.c.bf16 %v5119_v59, %v5118_v57  ;;  %v5121_v5 = vld [vmem:[%s10245_s13 + $0x128] sm:$0xff] }
0x148d   :  { %6556 = vmatprep.mubr.msk.f32.mxu1 %vm768_vm1, %v3193_v21  ;;  %v7533_v21 = vpack.c.bf16 %v5121_v5, %v5120_v11 }
0x148e   :  { %6557 = vmatmul.mubr.msk.f32.vlgmr.msra.gmra.mrb[30].mxu1 %vm768_vm1, %v3198_v6  ;;  %v5122_v6 = vld [vmem:[%s10245_s13 + $0x130] sm:$0xff] }
0x14a9   :  { %v6551_v7 = vpop.f32.mrb[36].mxu0 }
0x14aa   :  { %v3398_v8 = vadd.f32 %v6551_v7, %v5108_v20  ;;  %v3392_v9 = vpop.f32.mrb[37].mxu0 }
0x14ab   :  { %v3393_v10 = vadd.f32 %v5108_v20, %v3392_v9  ;;  %v5123_v20 = vld [vmem:[%s10245_s13 + $0x138] sm:$0xff]  ;;  %v5048_v9 = vld [vmem:[%s10245_s13 + $0xc8] sm:$0xff] }
0x14ac   :  { %v7537_v7 = vpack.c.bf16 %v5123_v20, %v5122_v6 }
0x14ad   :  { %v7519_v12 = vpack.c.bf16 %v3398_v8, %v3393_v10  ;;  %v5047_v8 = vld [vmem:[%s10245_s13 + $0xc0] sm:$0xff] }
0x14ae   :  { %v7541_v10 = vpack.c.bf16 %v5048_v9, %v5047_v8 }
0x14af   :  { %7521 = vmatprep.subr.msk.bf16.mxu1 %vm8607_vm4, %v7519_v12 }
0x14b0   :  { %7524 = vmatpush3.bf16.msk.msra.mxu1 %vm8607_vm4, %v7519_v12  ;;  %v5049_v12 = vld [vmem:[%s10245_s13 + $0xd0] sm:$0xff] }
0x14b1   :  { %7526 = vmatprep.subr.bf16.mxu1 %v7525_v52 }
0x14c9   :  { %v6638_v14 = vpop.f32.mrb[38].mxu0 }
0x14ca   :  { %v9758_v17 = vadd.f32 %v6638_v14, %v9755_v13  ;;  %v9760_v24 = vpop.f32.mrb[39].mxu0  ;;  %v5050_v14 = vld [vmem:[%s10245_s13 + $0xd8] sm:$0xff] }
0x14cb   :  { %v3861_v59 = vadd.f32 %v9755_v13, %v9760_v24 }
0x14e9   :  { %v6708_v63 = vpop.f32.mrb[40].mxu0 }
0x14ea   :  { %v4066_v58 = vadd.f32 %v6708_v63, %v5181_v25  ;;  %v4060_v45 = vpop.f32.mrb[41].mxu0 }
0x14eb   :  { %v4061_v48 = vadd.f32 %v5181_v25, %v4060_v45  ;;  %v5051_v45 = vld [vmem:[%s10245_s13 + $0xe0] sm:$0xff] }
0x14ed   :  { %v9765_v27 = vpack.c.bf16 %v4066_v58, %v4061_v48  ;;  %v7545_v58 = vpack.c.bf16 %v5050_v14, %v5049_v12  ;;  %v5052_v48 = vld [vmem:[%s10245_s13 + $0xe8] sm:$0xff] }
0x1561   :  { %v6558_v28 = vpop.f32.mrb[30].mxu1 }
0x1562   :  { %v3489_v30 = vmul.f32 0.25, %v6558_v28  ;;  %v3479_v31 = vpop.f32.mrb[31].mxu1  ;;  %v7549_v28 = vpack.c.bf16 %v5052_v48, %v5051_v45 }
0x1563   :  { %v3488_v34 = vmul.f32 0.25, %v3479_v31  ;;  %v5054_v31 = vld [vmem:[%s10245_s13 + $0xf8] sm:$0xff] }
0x1564   :  { %v3491_v47 = vadd.f32 %v9520_v44, %v3489_v30  ;;  %v5053_v30 = vld [vmem:[%s10245_s13 + $0xf0] sm:$0xff] }
0x1565   :  { %v3490_v35 = vadd.f32 %v9526_v49, %v3488_v34  ;;  %v7553_v34 = vpack.c.bf16 %v5054_v31, %v5053_v30  ;;  %v5191_v30 = vld [vmem:[%s10245_s13 + $0x150] sm:$0xff]  ;;  %v5192_v31 = vld [vmem:[%s10245_s13 + $0x158] sm:$0xff] }
0x1566   :  { %v3495_v36 = vsel %vm864_vm5, %v3491_v47, -inf }
0x1567   :  { %3496 = vmax.xlane.f32.xlu1 %v3495_v36  ;;  %v3492_v37 = vsel %vm860_vm6, %v3490_v35, -inf  ;;  %v5148_v36 = vld [vmem:[%s10283_s8 + $0x290] sm:$0xff] }
0x1568   :  { %3493 = vmax.xlane.f32.xlu0 %v3492_v37  ;;  %v5149_v37 = vld [vmem:[%s10283_s8 + $0x298] sm:$0xff] }
0x15f4   :  { %v3497_v54 = vpop.xlane.xlu1 %3496 }
0x15f5   :  { %v3499_v38 = vsub.f32 %v3491_v47, %v3497_v54  ;;  %v3494_v39 = vpop.xlane.xlu0 %3493  ;;  %v5146_v47 = vld [vmem:[%s10283_s8 + $0x280] sm:$0xff]  ;;  %v7593_v54 = vpack.c.bf16 %v5149_v37, %v5148_v36  ;;  %v5194_v37 = vld [vmem:[%s10245_s13 + $0x168] sm:$0xff] }
0x15f6   :  { %v3498_v23 = vsub.f32 %v3490_v35, %v3494_v39  ;;  %v5151_v39 = vld [vmem:[%s10283_s8 + $0x2a8] sm:$0xff]  ;;  %v5193_v36 = vld [vmem:[%s10245_s13 + $0x160] sm:$0xff] }
0x15f7   :  { %v3502_v26 = vmul.f32 1.442695, %v3499_v38  ;;  %v5150_v38 = vld [vmem:[%s10283_s8 + $0x2a0] sm:$0xff] }
0x15f8   :  { %v3500_v40 = vmul.f32 1.442695, %v3498_v23  ;;  %v7597_v23 = vpack.c.bf16 %v5151_v39, %v5150_v38  ;;  %v5195_v38 = vld [vmem:[%s10245_s13 + $0x170] sm:$0xff]  ;;  %v5196_v39 = vld [vmem:[%s10245_s13 + $0x178] sm:$0xff] }
0x15f9   :  { %7834 = vpow2.f32 %v3502_v26  ;;  %v5152_v26 = vld [vmem:[%s10283_s8 + $0x2b0] sm:$0xff] }
0x15fa   :  { %7836 = vpow2.f32 %v3500_v40  ;;  %v5153_v40 = vld [vmem:[%s10283_s8 + $0x2b8] sm:$0xff] }
0x1603   :  { %v7835_v41 = vpop.eup %7834 }
0x1604   :  { %v7837_v42 = vpop.eup %7836  ;;  %v3507_v43 = vsel %vm864_vm5, %v7835_v41, 0.0 }
0x1605   :  { %3508 = vadd.xlane.f32.xlu1 %v3507_v43  ;;  %v3504_v46 = vsel %vm860_vm6, %v7837_v42, 0.0  ;;  %v5156_v43 = vld [vmem:[%s10283_s8 + $0x2d0] sm:$0xff] }
0x1606   :  { %3505 = vadd.xlane.f32.xlu0 %v3504_v46  ;;  %v5157_v46 = vld [vmem:[%s10283_s8 + $0x2d8] sm:$0xff] }
0x1607   :  { %v7609_v50 = vpack.c.bf16 %v5157_v46, %v5156_v43  ;;  %v5207_v43 = vld [vmem:[%s10249_s17 + $0x110] sm:$0xff]  ;;  %v5210_v46 = vld [vmem:[%s10249_s17 + $0x128] sm:$0xff] }
0x1692   :  { %v3509_v53 = vpop.xlane.xlu1 %3508 }
0x1693   :  { %7838 = vrcp.f32 %v3509_v53  ;;  %v3506_v55 = vpop.xlane.xlu0 %3505 }
0x1694   :  { %7840 = vrcp.f32 %v3506_v55  ;;  %v5160_v55 = vld [vmem:[%s10283_s8 + $0x2f0] sm:$0xff] }
0x169d   :  { %v7839_v56 = vpop.eup %7838 }
0x169e   :  { %v7841_v60 = vpop.eup %7840  ;;  %v3513_v62 = vmul.f32 %v7839_v56, %v7835_v41  ;;  %v7601_v41 = vpack.c.bf16 %v5153_v40, %v5152_v26  ;;  %v5161_v56 = vld [vmem:[%s10283_s8 + $0x2f8] sm:$0xff] }
0x169f   :  { %v3511_v61 = vmul.f32 %v7841_v60, %v7837_v42  ;;  %v7617_v57 = vpack.c.bf16 %v5161_v56, %v5160_v55  ;;  %v5163_v60 = vld [vmem:[%s10242_s10 + $0x5] ss:$0 sm:$0xff]  ;;  %v5211_v55 = vld [vmem:[%s10249_s17 + $0x130] sm:$0xff] }
0x16a1   :  { %6563 = vmatprep.mubr.msk.f32.mxu1 %vm860_vm6, %v3511_v61 }
0x16a2   :  { %6564 = vmatmul.mubr.msk.f32.vlgmr.msra.gmra.mrb[32].mxu1 %vm860_vm6, %v3513_v62 }
0x16a3   :  { %7528 = vmatpush3.bf16.msra.mxu1 %v7525_v52  ;;  %v5159_v52 = vld [vmem:[%s10283_s8 + $0x2e8] sm:$0xff] }
0x16a4   :  { %7530 = vmatprep.subr.bf16.mxu1 %v7529_v32  ;;  %v7613_v53 = vpack.c.bf16 %v5159_v52, %v5158_v51 }
0x16a7   :  { %7532 = vmatpush3.bf16.msra.mxu1 %v7529_v32 }
0x16a8   :  { %7534 = vmatprep.subr.bf16.mxu1 %v7533_v21 }
0x16ab   :  { %7536 = vmatpush3.bf16.msra.mxu1 %v7533_v21 }
0x16ac   :  { %7538 = vmatprep.subr.bf16.mxu1 %v7537_v7 }
0x16af   :  { %7540 = vmatpush3.bf16.msra.mxu1 %v7537_v7 }
0x16b0   :  { %7542 = vmatprep.subr.bf16.mxu1 %v7541_v10 }
0x1775   :  { %v6565_v25 = vpop.f32.mrb[32].mxu1 }
0x1776   :  { %v3589_v63 = vpop.f32.mrb[33].mxu1 }
0x1777   :  { %6582 = vmatprep.mubr.msk.f32.mxu1 %vm768_vm1, %v3589_v63  ;;  %v5190_v63 = vld [vmem:[%s10245_s13 + $0x148] sm:$0xff] }
0x1778   :  { %6583 = vmatmul.mubr.msk.f32.vlgmr.msra.gmra.mrb[34].mxu1 %vm768_vm1, %v6565_v25  ;;  %v5189_v25 = vld [vmem:[%s10245_s13 + $0x140] sm:$0xff] }
0x1779   :  { %7544 = vmatpush3.bf16.msra.mxu1 %v7541_v10  ;;  %6601 = vmatprep.mubr.msk.f32.mxu1 %vm768_vm1, %v9738_v2  ;;  %v5147_v2 = vld [vmem:[%s10283_s8 + $0x288] sm:$0xff] }
0x177a   :  { %7546 = vmatprep.subr.bf16.mxu1 %v7545_v58  ;;  %v7589_v35 = vpack.c.bf16 %v5147_v2, %v5146_v47 }
0x177d   :  { %7548 = vmatpush3.bf16.msra.mxu1 %v7545_v58  ;;  %v7665_v58 = vpack.c.bf16 %v5190_v63, %v5189_v25  ;;  %v5226_v63 = vld [vmem:[%s10249_s17 + $0x1a8] sm:$0xff] }
0x177e   :  { %7550 = vmatprep.subr.bf16.mxu1 %v7549_v28 }
0x1781   :  { %7552 = vmatpush3.bf16.msra.mxu1 %v7549_v28 }
0x1782   :  { %7554 = vmatprep.subr.bf16.mxu1 %v7553_v34 }
0x1785   :  { %7556 = vmatpush3.bf16.msra.mxu1 %v7553_v34 }
0x1786   :  { %7590 = vmatprep.subr.bf16.mxu1 %v7589_v35 }
0x1788   :  { %6602 = vmatmul.mubr.msk.f32.vlgmr.msra.gmra.mrb[34].mxu1 %vm768_vm1, %v9736_v1  ;;  %v5154_v1 = vld [vmem:[%s10283_s8 + $0x2c0] sm:$0xff] }
0x1789   :  { %7592 = vmatpush3.bf16.msra.mxu1 %v7589_v35  ;;  %6671 = vmatprep.mubr.f32.mxu1 %v9389_v18  ;;  %v5155_v18 = vld [vmem:[%s10283_s8 + $0x2c8] sm:$0xff]  ;;  %v7669_v35 = vpack.c.bf16 %v5192_v31, %v5191_v30  ;;  %s10294_s8 = sld [smem:[#allocation15_spill]] }
0x178a   :  { %7594 = vmatprep.subr.bf16.mxu1 %v7593_v54  ;;  %v7605_v42 = vpack.c.bf16 %v5155_v18, %v5154_v1  ;;  %v5208_v1 = vld [vmem:[%s10249_s17 + $0x118] sm:$0xff]  ;;  %v5205_v18 = vld [vmem:[%s10249_s17 + $0x100] sm:$0xff]  ;;  %v5230_v31 = vld [vmem:[%s10249_s17 + $0x1c8] sm:$0xff] }
0x178b   :  { %v7683_v51 = vpack.c.bf16 %v5207_v43, %v5205_v18  ;;  %v5256_v43 = vld [vmem:[%s10251_s19 + $0x190] sm:$0xff] }
0x178d   :  { %7596 = vmatpush3.bf16.msra.mxu1 %v7593_v54  ;;  %v7673_v54 = vpack.c.bf16 %v5194_v37, %v5193_v36  ;;  %v5234_v36 = vld [vmem:[%s10249_s17 + $0x1e8] sm:$0xff]  ;;  %v5236_v37 = vld [vmem:[%s10249_s17 + $0x1f8] sm:$0xff] }
0x178e   :  { %7598 = vmatprep.subr.bf16.mxu1 %v7597_v23 }
0x1791   :  { %7600 = vmatpush3.bf16.msra.mxu1 %v7597_v23  ;;  %v7677_v23 = vpack.c.bf16 %v5196_v39, %v5195_v38  ;;  %v7709_v38 = vpack.c.bf16 %v5236_v37, %v5234_v36  ;;  %v5233_v39 = vld [vmem:[%s10249_s17 + $0x1e0] sm:$0xff] }
0x1792   :  { %7602 = vmatprep.subr.bf16.mxu1 %v7601_v41  ;;  %v5246_v37 = vld [vmem:[%s10251_s19 + $0x140] sm:$0xff] }
0x1795   :  { %7604 = vmatpush3.bf16.msra.mxu1 %v7601_v41  ;;  %v5206_v41 = vld [vmem:[%s10249_s17 + $0x108] sm:$0xff] }
0x1796   :  { %7606 = vmatprep.subr.bf16.mxu1 %v7605_v42 }
0x1799   :  { %7608 = vmatpush3.bf16.msra.mxu1 %v7605_v42  ;;  %v7681_v42 = vpack.c.bf16 %v5208_v1, %v5206_v41  ;;  %v5255_v41 = vld [vmem:[%s10251_s19 + $0x188] sm:$0xff]  ;;  %v5238_v1 = vld [vmem:[%s10251_s19 + $0x100] sm:$0xff] }
0x179a   :  { %7610 = vmatprep.subr.bf16.mxu1 %v7609_v50 }
0x179b   :  { %7682 = vmatprep.subr.bf16.mxu0 %v7681_v42  ;;  %v5239_v42 = vld [vmem:[%s10251_s19 + $0x108] sm:$0xff] }
0x179c   :  { %7684 = vmatpush1.bf16.msra.mxu0 %v7683_v51 }
0x179d   :  { %7612 = vmatpush3.bf16.msra.mxu1 %v7609_v50  ;;  %v5212_v50 = vld [vmem:[%s10249_s17 + $0x138] sm:$0xff] }
0x179e   :  { %7614 = vmatprep.subr.bf16.mxu1 %v7613_v53  ;;  %v7685_v52 = vpack.c.bf16 %v5212_v50, %v5210_v46  ;;  %v5257_v46 = vld [vmem:[%s10251_s19 + $0x198] sm:$0xff]  ;;  %v7715_v50 = vpack.c.bf16 %v5239_v42, %v5238_v1  ;;  %v5267_v42 = vld [vmem:[%s10251_s19 + $0x1e8] sm:$0xff] }
0x179f   :  { %v7717_v51 = vpack.c.bf16 %v5257_v46, %v5256_v43  ;;  %v5250_v46 = vld [vmem:[%s10251_s19 + $0x160] sm:$0xff] }
0x17a0   :  { %7686 = vmatprep.subr.bf16.mxu0 %v7685_v52  ;;  %v5240_v52 = vld [vmem:[%s10251_s19 + $0x110] sm:$0xff] }
0x17a1   :  { %7616 = vmatpush3.bf16.msra.mxu1 %v7613_v53  ;;  %v5209_v53 = vld [vmem:[%s10249_s17 + $0x120] sm:$0xff] }
0x17a2   :  { %7618 = vmatprep.subr.bf16.mxu1 %v7617_v57  ;;  %v7687_v56 = vpack.c.bf16 %v5211_v55, %v5209_v53  ;;  %v5241_v53 = vld [vmem:[%s10251_s19 + $0x118] sm:$0xff]  ;;  %v5258_v55 = vld [vmem:[%s10251_s19 + $0x1a0] sm:$0xff] }
0x17a4   :  { %7688 = vmatpush1.bf16.msra.mxu0 %v7687_v56  ;;  %v5259_v56 = vld [vmem:[%s10251_s19 + $0x1a8] sm:$0xff] }
0x17a5   :  { %7620 = vmatpush3.bf16.msra.mxu1 %v7617_v57 }
0x17a8   :  { %6672 = vmatmul.mubr.f32.vlgmr.msra.gmra.mrb[36].mxu1 %v9399_v29 }
0x17a9   :  { %6713 = vmatprep.mubr.msk.f32.mxu1 %vm768_vm1, %v3861_v59  ;;  %v5200_v59 = vld [vmem:[%s10246_s14 + $0x1] ss:$0 sm:$0xff] }
0x187b   :  { %v6673_v61 = vpop.f32.mrb[36].mxu1 }
0x187c   :  { %v3966_v62 = vadd.f32 %v6673_v61, %v5163_v60  ;;  %v3960_v32 = vpop.f32.mrb[37].mxu1 }
0x187d   :  { %v3961_v11 = vadd.f32 %v5163_v60, %v3960_v32 }
0x187f   :  { %v7653_v5 = vpack.c.bf16 %v3966_v62, %v3961_v11 }
0x1881   :  { %7655 = vmatprep.subr.msk.bf16.mxu1 %vm8590_vm2, %v7653_v5 }
0x1882   :  { %7658 = vmatpush3.bf16.xpose.msk.msra.mxu1 %vm8590_vm2, %v7653_v5 }
0x1883   :  { %7661 = vmatprep.subr.msk.bf16.mxu1 %vm8607_vm4, %v9765_v27 }
0x1889   :  { %6714 = vmatmul.mubr.msk.f32.vlgmr.msra.gmra.mrb[38].mxu1 %vm768_vm1, %v9758_v17 }
0x188a   :  { %7664 = vmatpush3.bf16.msk.msra.mxu1 %vm8607_vm4, %v9765_v27 }
0x188b   :  { %7666 = vmatprep.subr.bf16.mxu1 %v7665_v58 }
0x195c   :  { %v6715_v29 = vpop.f32.mrb[38].mxu1 }
0x195d   :  { %v4157_v13 = vmul.f32 0.25, %v6715_v29  ;;  %v4147_v24 = vpop.f32.mrb[39].mxu1 }
0x195e   :  { %v4156_v21 = vmul.f32 0.25, %v4147_v24  ;;  %v5216_v24 = vld [vmem:[%s10249_s17 + $0x158] sm:$0xff] }
0x195f   :  { %v4159_v6 = vadd.f32 %v9520_v44, %v4157_v13 }
0x1960   :  { %v4158_v4 = vadd.f32 %v9526_v49, %v4156_v21 }
0x1961   :  { %v4163_v20 = vsel %vm864_vm5, %v4159_v6, -inf }
0x1962   :  { %4164 = vmax.xlane.f32.xlu1 %v4163_v20  ;;  %v4160_v7 = vsel %vm860_vm6, %v4158_v4, -inf }
0x1963   :  { %4161 = vmax.xlane.f32.xlu0 %v4160_v7  ;;  %v5218_v7 = vld [vmem:[%s10249_s17 + $0x168] sm:$0xff] }
0x19ef   :  { %v4165_v8 = vpop.xlane.xlu1 %4164 }
0x19f0   :  { %v4167_v17 = vsub.f32 %v4159_v6, %v4165_v8  ;;  %v4162_v9 = vpop.xlane.xlu0 %4161  ;;  %v5213_v6 = vld [vmem:[%s10249_s17 + $0x140] sm:$0xff]  ;;  %v5220_v8 = vld [vmem:[%s10249_s17 + $0x178] sm:$0xff] }
0x19f1   :  { %v4166_v10 = vsub.f32 %v4158_v4, %v4162_v9  ;;  %v5215_v4 = vld [vmem:[%s10249_s17 + $0x150] sm:$0xff]  ;;  %v5217_v9 = vld [vmem:[%s10249_s17 + $0x160] sm:$0xff] }
0x19f2   :  { %v4170_v19 = vmul.f32 1.442695, %v4167_v17  ;;  %v7691_v20 = vpack.c.bf16 %v5215_v4, %v5213_v6  ;;  %v7693_v17 = vpack.c.bf16 %v5220_v8, %v5218_v7 }
0x19f3   :  { %v4168_v27 = vmul.f32 1.442695, %v4166_v10  ;;  %v5219_v10 = vld [vmem:[%s10249_s17 + $0x170] sm:$0xff] }
0x19f4   :  { %7842 = vpow2.f32 %v4170_v19  ;;  %v7695_v19 = vpack.c.bf16 %v5219_v10, %v5217_v9 }
0x19f5   :  { %7844 = vpow2.f32 %v4168_v27  ;;  %v5222_v27 = vld [vmem:[%s10249_s17 + $0x188] sm:$0xff] }
0x19fe   :  { %v7843_v12 = vpop.eup %7842 }
0x19ff   :  { %v7845_v14 = vpop.eup %7844  ;;  %v4175_v44 = vsel %vm864_vm5, %v7843_v12, 0.0 }
0x1a00   :  { %4176 = vadd.xlane.f32.xlu1 %v4175_v44  ;;  %v4172_v49 = vsel %vm860_vm6, %v7845_v14, 0.0  ;;  %v5221_v44 = vld [vmem:[%s10249_s17 + $0x180] sm:$0xff] }
0x1a01   :  { %4173 = vadd.xlane.f32.xlu0 %v4172_v49  ;;  %v5223_v49 = vld [vmem:[%s10249_s17 + $0x190] sm:$0xff] }
0x1a02   :  { %v7699_v25 = vpack.c.bf16 %v5223_v49, %v5221_v44 }
0x1a8d   :  { %v4177_v45 = vpop.xlane.xlu1 %4176 }
0x1a8e   :  { %7846 = vrcp.f32 %v4177_v45  ;;  %v4174_v48 = vpop.xlane.xlu0 %4173 }
0x1a8f   :  { %7848 = vrcp.f32 %v4174_v48  ;;  %v5225_v48 = vld [vmem:[%s10249_s17 + $0x1a0] sm:$0xff] }
0x1a98   :  { %v7847_v28 = vpop.eup %7846 }
0x1a99   :  { %v7849_v34 = vpop.eup %7848  ;;  %v4181_v2 = vmul.f32 %v7847_v28, %v7843_v12  ;;  %v5224_v12 = vld [vmem:[%s10249_s17 + $0x198] sm:$0xff]  ;;  %v5227_v28 = vld [vmem:[%s10249_s17 + $0x1b0] sm:$0xff] }
0x1a9a   :  { %v4179_v47 = vmul.f32 %v7849_v34, %v7845_v14  ;;  %v7697_v14 = vpack.c.bf16 %v5224_v12, %v5222_v27  ;;  %v7703_v30 = vpack.c.bf16 %v5227_v28, %v5225_v48  ;;  %v5232_v34 = vld [vmem:[%s10249_s17 + $0x1d8] sm:$0xff]  ;;  %v5203_v27 = vld [vmem:[%s10247_s15 + $0x1] ss:$0 sm:$0xff]  ;;  %v5260_v28 = vld [vmem:[%s10251_s19 + $0x1b0] sm:$0xff] }
0x1a9c   :  { %6720 = vmatprep.mubr.msk.f32.mxu1 %vm860_vm6, %v4179_v47  ;;  %v5229_v47 = vld [vmem:[%s10249_s17 + $0x1c0] sm:$0xff] }
0x1a9d   :  { %6721 = vmatmul.mubr.msk.f32.vlgmr.msra.gmra.mrb[40].mxu1 %vm860_vm6, %v4181_v2  ;;  %v7705_v2 = vpack.c.bf16 %v5232_v34, %v5230_v31  ;;  %v5245_v34 = vld [vmem:[%s10251_s19 + $0x138] sm:$0xff] }
0x1a9e   :  { %7668 = vmatpush3.bf16.msra.mxu1 %v7665_v58  ;;  %v5228_v58 = vld [vmem:[%s10249_s17 + $0x1b8] sm:$0xff] }
0x1a9f   :  { %7670 = vmatprep.subr.bf16.mxu1 %v7669_v35  ;;  %v7701_v45 = vpack.c.bf16 %v5228_v58, %v5226_v63 }
0x1aa2   :  { %7672 = vmatpush3.bf16.msra.mxu1 %v7669_v35  ;;  %v5231_v35 = vld [vmem:[%s10249_s17 + $0x1d0] sm:$0xff] }
0x1aa3   :  { %7674 = vmatprep.subr.bf16.mxu1 %v7673_v54 }
0x1aa6   :  { %7676 = vmatpush3.bf16.msra.mxu1 %v7673_v54  ;;  %v7707_v54 = vpack.c.bf16 %v5231_v35, %v5229_v47  ;;  %v5263_v35 = vld [vmem:[%s10251_s19 + $0x1c8] sm:$0xff] }
0x1aa7   :  { %7678 = vmatprep.subr.bf16.mxu1 %v7677_v23 }
0x1aaa   :  { %7680 = vmatpush3.bf16.msra.mxu1 %v7677_v23  ;;  %v5235_v23 = vld [vmem:[%s10249_s17 + $0x1f0] sm:$0xff] }
0x1b70   :  { %v6722_v26 = vpop.f32.mrb[40].mxu1 }
0x1b71   :  { %v4257_v40 = vpop.f32.mrb[41].mxu1 }
0x1b72   :  { %6739 = vmatprep.mubr.msk.f32.mxu1 %vm768_vm1, %v4257_v40  ;;  %v5254_v40 = vld [vmem:[%s10251_s19 + $0x180] sm:$0xff] }
0x1b73   :  { %6740 = vmatmul.mubr.msk.f32.vlgmr.msra.gmra.mrb[34].mxu1 %vm768_vm1, %v6722_v26  ;;  %v7711_v26 = vpack.c.bf16 %v5235_v23, %v5233_v39  ;;  %v7713_v18 = vpack.c.bf16 %v5255_v41, %v5254_v40  ;;  %v5264_v39 = vld [vmem:[%s10251_s19 + $0x1d0] sm:$0xff]  ;;  %v5265_v23 = vld [vmem:[%s10251_s19 + $0x1d8] sm:$0xff] }
0x1b74   :  { %v5248_v40 = vld [vmem:[%s10251_s19 + $0x150] sm:$0xff]  ;;  %v5249_v41 = vld [vmem:[%s10251_s19 + $0x158] sm:$0xff] }
0x1b75   :  { %7714 = vmatprep.subr.bf16.mxu1 %v7713_v18  ;;  %v7735_v1 = vpack.c.bf16 %v5249_v41, %v5248_v40  ;;  %v5266_v18 = vld [vmem:[%s10251_s19 + $0x1e0] sm:$0xff] }
0x1b76   :  { %7716 = vmatpush3.bf16.msra.mxu1 %v7715_v50  ;;  %v7737_v43 = vpack.c.bf16 %v5267_v42, %v5266_v18  ;;  %v5251_v50 = vld [vmem:[%s10251_s19 + $0x168] sm:$0xff]  ;;  %v4717_v42 = vld [vmem:[%s10255_s23 + $0x20] sm:$0xff] }
0x1b77   :  { %7718 = vmatprep.subr.bf16.mxu1 %v7717_v51  ;;  %v7739_v51 = vpack.c.bf16 %v5251_v50, %v5250_v46  ;;  %v4720_v50 = vld [vmem:[%s10255_s23 + $0x38] sm:$0xff] }
0x1c46   :  { %v6741_v57 = vpop.f32.mrb[34].mxu1 }
0x1c47   :  { %v4359_v60 = vadd.f32 %v6741_v57, %v9276_v3  ;;  %v4347_v61 = vpop.f32.mrb[35].mxu1  ;;  %v7719_v57 = vpack.c.bf16 %v5241_v53, %v5240_v52  ;;  %v5268_v52 = vld [vmem:[%s10251_s19 + $0x1f0] sm:$0xff]  ;;  %v5269_v53 = vld [vmem:[%s10251_s19 + $0x1f8] sm:$0xff] }
0x1c48   :  { %v4358_v62 = vadd.f32 %v4347_v61, %v9272_v0  ;;  %v5214_v0 = vld [vmem:[%s10249_s17 + $0x148] sm:$0xff] }
0x1c49   :  { %v9960_v32 = vadd.f32 %v5200_v59, %v4359_v60  ;;  %v7689_v21 = vpack.c.bf16 %v5216_v24, %v5214_v0  ;;  %v5242_v60 = vld [vmem:[%s10251_s19 + $0x120] sm:$0xff]  ;;  %v5243_v61 = vld [vmem:[%s10251_s19 + $0x128] sm:$0xff]  ;;  %7720 = vmatpush3.bf16.msra.mxu1 %v7719_v57  ;;  %v5253_v57 = vld [vmem:[%s10251_s19 + $0x178] sm:$0xff] }
0x1c4a   :  { %v9962_v11 = vadd.f32 %v5200_v59, %v4358_v62  ;;  %v7721_v59 = vpack.c.bf16 %v5259_v56, %v5258_v55  ;;  %v7723_v62 = vpack.c.bf16 %v5243_v61, %v5242_v60  ;;  %v7741_v55 = vpack.c.bf16 %v5269_v53, %v5268_v52  ;;  %v5252_v56 = vld [vmem:[%s10251_s19 + $0x170] sm:$0xff]  ;;  %v5237_v60 = vld [vmem:[%s10250_s18 + $0x2] sm:$0x3]  ;;  %v4722_v53 = vld [vmem:[%s10255_s23 + $0x48] sm:$0xff] }
0x1c4b   :  { %v4382_v29 = vmul.f32 %v9960_v32, %v9960_v32  ;;  %v4376_v13 = vsel %vm431_vm0, %v9960_v32, 0.0  ;;  %7690 = vmatprep.subr.bf16.mxu0 %v7689_v21  ;;  %v4457_v61 = vrot.slane %v5237_v60, %v2326_v16  ;;  %v4721_v52 = vld [vmem:[%s10255_s23 + $0x40] sm:$0xff] }
0x1c4c   :  { %4374 = vadd.xlane.f32.xlu0 %v9962_v11  ;;  %v4381_v5 = vmul.f32 %v9962_v11, %v9962_v11  ;;  %7692 = vmatpush1.bf16.msra.mxu0 %v7691_v20 }
0x1c4d   :  { %v4385_v3 = vsel %vm431_vm0, %v4382_v29, 0.0  ;;  %7694 = vmatprep.subr.bf16.mxu0 %v7693_v17  ;;  %7722 = vmatprep.subr.bf16.mxu1 %v7721_v59  ;;  %v7743_v59 = vpack.c.bf16 %v5253_v57, %v5252_v56  ;;  %v4723_v56 = vld [vmem:[%s10255_s23 + $0x50] sm:$0xff]  ;;  %v4724_v57 = vld [vmem:[%s10255_s23 + $0x58] sm:$0xff] }
0x1c4e   :  { %4383 = vadd.xlane.f32.xlu1 %v4381_v5  ;;  %7724 = vmatpush3.bf16.msra.mxu1 %v7723_v62  ;;  %v4461_v62 = vrot.slane %v5237_v60, %v2330_v22  ;;  %v4725_v60 = vld [vmem:[%s10255_s23 + $0x60] sm:$0xff] }
0x1c50   :  { %4377 = vadd.xlane.f32.xlu0 %v4376_v13  ;;  %7696 = vmatpush1.bf16.msra.mxu0 %v7695_v19 }
0x1c51   :  { %7698 = vmatprep.subr.bf16.mxu0 %v7697_v14  ;;  %v5204_v14 = vld [vmem:[%s10248_s16 + $0x1] ss:$0 sm:$0xff] }
0x1c52   :  { %4386 = vadd.xlane.f32.xlu1 %v4385_v3 }
0x1c54   :  { %7700 = vmatpush1.bf16.msra.mxu0 %v7699_v25 }
0x1c55   :  { %7702 = vmatprep.subr.bf16.mxu0 %v7701_v45 }
0x1c58   :  { %7704 = vmatpush1.bf16.msra.mxu0 %v7703_v30  ;;  %v5261_v30 = vld [vmem:[%s10251_s19 + $0x1b8] sm:$0xff] }
0x1c59   :  { %7706 = vmatprep.subr.bf16.mxu0 %v7705_v2  ;;  %v7725_v31 = vpack.c.bf16 %v5261_v30, %v5260_v28  ;;  %v5262_v2 = vld [vmem:[%s10251_s19 + $0x1c0] sm:$0xff]  ;;  %v4714_v28 = vld [vmem:[%s10255_s23 + $0x8] sm:$0xff]  ;;  %v4715_v30 = vld [vmem:[%s10255_s23 + $0x10] sm:$0xff] }
0x1c5a   :  { %v7729_v36 = vpack.c.bf16 %v5263_v35, %v5262_v2  ;;  %v5271_v35 = vld [vmem:[%s10252_s20 + $0x1] ss:$0 sm:$0xff]  ;;  %s7894_s20 = smov [#allocation2]  }
0x1c5b   :  { %7726 = vmatprep.subr.bf16.mxu1 %v7725_v31  ;;  %v7892_v31 = vmov 0.0|0.0   ;;  %s4813_s15 = sshll.u32 %s7894_s20, 4  ;;  %s4814_s15 = int_to_ptr.vmem [resolvable:$true] %s4813_s15 }
0x1c5c   :  { %7708 = vmatpush1.bf16.msra.mxu0 %v7707_v54  ;;  %v5247_v54 = vld [vmem:[%s10251_s19 + $0x148] sm:$0xff]  ;;  %p7871_p1 = scmp.lt.s32.totalorder %s4814_s15, %s4814_s15 }
0x1c5d   :  { %7710 = vmatprep.subr.bf16.mxu0 %v7709_v38  ;;  %v7731_v38 = vpack.c.bf16 %v5247_v54, %v5246_v37 }
0x1c60   :  { %7712 = vmatpush1.bf16.msra.mxu0 %v7711_v26  ;;  %v7733_v26 = vpack.c.bf16 %v5265_v23, %v5264_v39 }
0x1c61   :  { %7745 = vmatprep.subr.bf16.mxu0 %v7892_v31 }
0x1cd9   :  { %v4375_v5 = vpop.xlane.xlu0 %4374 }
0x1cda   :  { %v4379_v29 = vmul.f32 0.020833334, %v4375_v5 }
0x1cdb   :  { %v4384_v13 = vpop.xlane.xlu1 %4383 }
0x1cdc   :  { %v4390_v3 = vmul.f32 %v4379_v29, %v4379_v29  ;;  %v4388_v0 = vmul.f32 0.020833334, %v4384_v13  ;;  %v4394_v10 = vsub.f32 %v9962_v11, %v4379_v29 }
0x1cdd   :  { %v4378_v24 = vpop.xlane.xlu0 %4377 }
0x1cde   :  { %v4392_v21 = vsub.f32 %v4388_v0, %v4390_v3  ;;  %v4380_v6 = vmul.f32 0.020833334, %v4378_v24 }
0x1cdf   :  { %v4387_v4 = vpop.xlane.xlu1 %4386 }
0x1ce0   :  { %v4396_v20 = vadd.f32 1e-06, %v4392_v21  ;;  %v4391_v7 = vmul.f32 %v4380_v6, %v4380_v6  ;;  %v4389_v8 = vmul.f32 0.020833334, %v4387_v4  ;;  %v4395_v44 = vsub.f32 %v9960_v32, %v4380_v6  ;;  %v5244_v32 = vld [vmem:[%s10251_s19 + $0x130] sm:$0xff] }
0x1ce1   :  { %v7727_v47 = vpack.c.bf16 %v5245_v34, %v5244_v32  ;;  %v4716_v34 = vld [vmem:[%s10255_s23 + $0x18] sm:$0xff] }
0x1ce2   :  { %7850 = vrsqrt.f32 %v4396_v20  ;;  %v4393_v17 = vsub.f32 %v4389_v8, %v4391_v7 }
0x1ce3   :  { %7728 = vmatpush3.bf16.msra.mxu1 %v7727_v47  ;;  %v7749_v47 = vpack.c.bf16 %v4716_v34, %v4715_v30 }
0x1ce4   :  { %v4397_v9 = vadd.f32 1e-06, %v4393_v17  ;;  %7730 = vmatprep.subr.bf16.mxu1 %v7729_v36 }
0x1ce6   :  { %7852 = vrsqrt.f32 %v4397_v9 }
0x1ce7   :  { %7732 = vmatpush3.bf16.msra.mxu1 %v7731_v38 }
0x1ce8   :  { %7734 = vmatprep.subr.bf16.mxu1 %v7733_v26 }
0x1ceb   :  { %7736 = vmatpush3.bf16.msra.mxu1 %v7735_v1 }
0x1cec   :  { %v7851_v19 = vpop.eup %7850  ;;  %7738 = vmatprep.subr.bf16.mxu1 %v7737_v43  ;;  %v4718_v43 = vld [vmem:[%s10255_s23 + $0x28] sm:$0xff] }
0x1ced   :  { %v4400_v12 = vmul.f32 %v7851_v19, %v4394_v10  ;;  %v7752_v46 = vpack.c.bf16 %v4718_v43, %v4717_v42 }
0x1cef   :  { %v4408_v49 = vmul.f32 %v5203_v27, %v4400_v12  ;;  %7740 = vmatpush3.bf16.msra.mxu1 %v7739_v51 }
0x1cf0   :  { %v7853_v25 = vpop.eup %7852  ;;  %7742 = vmatprep.subr.bf16.mxu1 %v7741_v55  ;;  %v7758_v55 = vpack.c.bf16 %v4722_v53, %v4721_v52 }
0x1cf1   :  { %v4416_v63 = vadd.f32 %v5204_v14, %v4408_v49  ;;  %v4401_v58 = vmul.f32 %v7853_v25, %v4395_v44 }
0x1cf3   :  { %4529 = vmatmul.mubr.f32.vlgmr.msra.gmra.mrb[42].mxu0 %v4416_v63  ;;  %v4409_v45 = vmul.f32 %v5203_v27, %v4401_v58  ;;  %7744 = vmatpush3.bf16.msra.mxu1 %v7743_v59  ;;  %v7761_v59 = vpack.c.bf16 %v4724_v57, %v4723_v56 }
0x1cf4   :  { %4534 = vmatprep.mubr.f32.mxu0 %v7891_v33 }
0x1cf5   :  { %v4417_v48 = vadd.f32 %v5204_v14, %v4409_v45 }
0x1cf7   :  { %4535 = vmatmul.mubr.f32.gmra.mrb[44].mxu0 %v4417_v48  ;;  %v4713_v48 = vld [vmem:[%s10255_s23] sm:$0xff] }
0x1cf8   :  { %v7746_v32 = vpack.c.bf16 %v4714_v28, %v4713_v48  ;;  %6774 = vmatprep.mubr.msk.f32.mxu0 %vm7893_vm8, %v7891_v33  ;;  %v5273_v33 = vld [vmem:[%s10254_s22] ss:$0 sm:$0xff] }
0x1cfa   :  { %7747 = vmatpush3.bf16.msra.mxu0 %v7746_v32 }
0x1cfb   :  { %7748 = vmatprep.subr.bf16.mxu0 %v7892_v31 }
0x1cfe   :  { %7750 = vmatpush3.bf16.msra.mxu0 %v7749_v47 }
0x1cff   :  { %7751 = vmatprep.subr.bf16.mxu0 %v7892_v31 }
0x1d02   :  { %7753 = vmatpush3.bf16.msra.mxu0 %v7752_v46 }
0x1d03   :  { %7754 = vmatprep.subr.bf16.mxu0 %v7892_v31 }
0x1dc6   :  { %v4530_v5 = vpop.f32.mrb[42].mxu0 }
0x1dc7   :  { %v4531_v29 = vadd.f32 %v4530_v5, %v4457_v61  ;;  %v4532_v13 = vpop.f32.mrb[43].mxu0  ;;  %v4727_v5 = vld [vmem:[%s10255_s23 + $0x70] sm:$0xff] }
0x1dc8   :  { %v4533_v3 = vadd.f32 %v4532_v13, %v4461_v62 }
0x1dc9   :  { %v4545_v0 = vmul.f32 0.70710677, %v4531_v29  ;;  %v4541_v10 = vmul.f32 0.5, %v4531_v29  ;;  %v4728_v29 = vld [vmem:[%s10255_s23 + $0x78] sm:$0xff] }
0x1dca   :  { %v4546_v24 = vmul.f32 0.70710677, %v4533_v3  ;;  %v4536_v21 = vpop.f32.mrb[44].mxu0  ;;  %v4542_v22 = vmul.f32 0.5, %v4533_v3  ;;  %v7767_v13 = vpack.c.bf16 %v4728_v29, %v4727_v5 }
0x1dcb   :  { %7854 = verf.f32 %v4545_v0  ;;  %v4537_v6 = vadd.f32 %v4536_v21, %v4457_v61  ;;  %v4538_v4 = vpop.f32.mrb[45].mxu0  ;;  %v4726_v61 = vld [vmem:[%s10255_s23 + $0x68] sm:$0xff] }
0x1dcc   :  { %7856 = verf.f32 %v4546_v24  ;;  %v4539_v20 = vadd.f32 %v4538_v4, %v4461_v62  ;;  %v7764_v62 = vpack.c.bf16 %v4726_v61, %v4725_v60 }
0x1dcd   :  { %v4547_v7 = vmul.f32 0.70710677, %v4537_v6  ;;  %v4543_v63 = vmul.f32 0.5, %v4537_v6 }
0x1dce   :  { %v4548_v8 = vmul.f32 0.70710677, %v4539_v20  ;;  %v4544_v49 = vmul.f32 0.5, %v4539_v20 }
0x1dcf   :  { %7858 = verf.f32 %v4547_v7 }
0x1dd0   :  { %7860 = verf.f32 %v4548_v8 }
0x1dd5   :  { %v7855_v16 = vpop.eup %7854 }
0x1dd6   :  { %v7857_v17 = vpop.eup %7856  ;;  %v4553_v15 = vadd.f32 1.0, %v7855_v16  ;;  %v5272_v16 = vld [vmem:[%s10253_s21] ss:$0 sm:$0xff]  ;;  %s7866_s21 = scalar_lea.vmem %s4814_s15, 32 }
0x1dd7   :  { %v4554_v9 = vadd.f32 1.0, %v7857_v17  ;;  %p7867_p0 = scmp.ne.s32.totalorder %s4814_s15, %s7866_s21  ;;  %p7872_p2 = scmp.lt.s32.totalorder %s7866_s21, %s7866_s21 }
0x1dd8   :  { %v4557_v14 = vmul.f32 %v4553_v15, %v4541_v10 }
0x1dd9   :  { %v7859_v19 = vpop.eup %7858  ;;  %v4558_v27 = vmul.f32 %v4554_v9, %v4542_v22  ;;  %v5274_v9 = vld [vmem:[%s10294_s8] ss:$0 sm:$0xff]  ;;  %p7873_p3 = por %p7872_p2, %p7871_p1 }
0x1dda   :  { %v7861_v12 = vpop.eup %7860  ;;  %v4555_v44 = vadd.f32 1.0, %v7859_v19 }
0x1ddb   :  { %v4556_v25 = vadd.f32 1.0, %v7861_v12  ;;  %4666 = vmatprep.mubr.f32.mxu1 %v4558_v27  ;;  %p7874_p4 = pnand %p7873_p3, %p7867_p0 }
0x1ddc   :  { %4667 = vmatmul.mubr.f32.vlgmr.msra.gmra.mrb[42].mxu1 %v4557_v14  ;;  %v4559_v45 = vmul.f32 %v4555_v44, %v4543_v63 }
0x1ddd   :  { %v4560_v58 = vmul.f32 %v4556_v25, %v4544_v49 }
0x1ddf   :  { %4671 = vmatprep.mubr.f32.mxu1 %v4560_v58 }
0x1de0   :  { %4672 = vmatmul.mubr.f32.gmra.mrb[44].mxu1 %v4559_v45 }
0x1eaf   :  { %v5891_v2 = vpop.f32.mrb[42].mxu1 }
0x1eb0   :  { %v5892_v36 = vpop.f32.mrb[43].mxu1 }
0x1eb1   :  { %v5893_v37 = vadd.f32 %v5892_v36, %v5891_v2 }
0x1eb3   :  { %v4669_v54 = vadd.f32 %v5893_v37, %v5271_v35  ;;  %v5894_v38 = vpop.f32.mrb[44].mxu1 }
0x1eb4   :  { %v5895_v39 = vpop.f32.mrb[45].mxu1 }
0x1eb5   :  { %v4676_v23 = vadd.f32 %v4669_v54, %v9962_v11  ;;  %v4719_v11 = vld [vmem:[%s10255_s23 + $0x30] sm:$0xff] }
0x1eb6   :  { %v7755_v51 = vpack.c.bf16 %v4720_v50, %v4719_v11 }
0x1eb7   :  { %v4678_v26 = vrot.slane %v4676_v23, 4 }
0x1eb8   :  { %7756 = vmatpush3.bf16.msra.mxu0 %v7755_v51 }
0x1eb9   :  { %v4681_v40 = vsel %vm4680_vm7, %v4676_v23, %v4678_v26  ;;  %7757 = vmatprep.subr.bf16.mxu0 %v7892_v31 }
0x1eba   :  { %v4684_v41 = vsel %vm431_vm0, %v4681_v40, 0.0  ;;  %v4688_v1 = vmul.f32 %v4681_v40, %v4681_v40 }
0x1ebb   :  { %4685 = vadd.xlane.f32.xlu0 %v4684_v41 }
0x1ebc   :  { %v4689_v18 = vsel %vm431_vm0, %v4688_v1, 0.0  ;;  %7759 = vmatpush3.bf16.msra.mxu0 %v7758_v55 }
0x1ebd   :  { %4690 = vadd.xlane.f32.xlu1 %v4689_v18  ;;  %7760 = vmatprep.subr.bf16.mxu0 %v7892_v31 }
0x1ec0   :  { %7762 = vmatpush3.bf16.msra.mxu0 %v7761_v59 }
0x1ec1   :  { %7763 = vmatprep.subr.bf16.mxu0 %v7892_v31 }
0x1ec4   :  { %7765 = vmatpush3.bf16.msra.mxu0 %v7764_v62 }
0x1ec5   :  { %7766 = vmatprep.subr.bf16.mxu0 %v7892_v31 }
0x1ec8   :  { %7768 = vmatpush3.bf16.msra.mxu0 %v7767_v13 }
0x1f48   :  { %v4686_v3 = vpop.xlane.xlu0 %4685 }
0x1f49   :  { %v4687_v0 = vmul.f32 0.020833334, %v4686_v3 }
0x1f4a   :  { %v4691_v24 = vpop.xlane.xlu1 %4690 }
0x1f4b   :  { %v4693_v21 = vmul.f32 %v4687_v0, %v4687_v0  ;;  %v4692_v6 = vmul.f32 0.020833334, %v4691_v24  ;;  %v4695_v7 = vsub.f32 %v4681_v40, %v4687_v0 }
0x1f4d   :  { %v4694_v4 = vsub.f32 %v4692_v6, %v4693_v21 }
0x1f4f   :  { %v4696_v20 = vadd.f32 1e-06, %v4694_v4 }
0x1f51   :  { %7862 = vrsqrt.f32 %v4696_v20 }
0x1f5b   :  { %v7863_v8 = vpop.eup %7862 }
0x1f5c   :  { %v4698_v17 = vmul.f32 %v7863_v8, %v4695_v7 }
0x1f5e   :  { %v4705_v15 = vmul.f32 %v5272_v16, %v4698_v17 }
0x1f60   :  { %v4712_v22 = vadd.f32 %v5273_v33, %v4705_v15 }
0x1f62   :  { %6775 = vmatmul.mubr.f32.vlgmr.msra.gmra.mrb[46].mxu0 %v4712_v22 }
0x2035   :  { %v4802_v10 = vpop.f32.mrb[46].mxu0 }
0x2036   :  { %v4803_v19 = vadd.f32 %v5274_v9, %v4802_v10  ;;  %v6776_v27 = vpop.f32.mrb[47].mxu0 }
0x2038   :  { %4806 = vst [vmem:[#allocation2] sm:$0x3] %v4803_v19 }
0x2039   :  { %7877 = shalt.err (!%p7874_p4)
}
0x203a   :  { %s10295_s16 = sld [smem:[#allocation16_spill]] }
0x2040   :  { %s7878_s17 = scalar_lea.hbm %s10295_s16, 32 }
0x2041   :  { %p7879_p5 = scmp.ne.s32.totalorder %s10295_s16, %s7878_s17  ;;  %p7882_p6 = scmp.lt.u32.totalorder %s7878_s17, %s10295_s16 }
0x2043   :  { %p7884_p7 = pnand %p7882_p6, %p7879_p5 }
0x2045   :  { %7887 = shalt.err (!%p7884_p7)
}
0x2046   :  { %4816 = dma.vmem_to_hbm [thread:$0]  %s4814_s15, 32, %s10295_s16, [#allocation3]  }
0x2047   :  { %7888 = dma.done.wait [#allocation3], 32  }
0x2048   :  { %7889 = vsyncadd [#allocation3], 4294967264 }
0x2049   :  { %4820 = vsyncpa [#allocation3], 1 }

</bundles_post_ra>
